<compile_context>
chip_gen: v7x
topology: tpu7x:2x2x1
jax: 0.10.0
libtpu: 0.0.40
codegen_flags: <defaults>
</compile_context>

<pallas_src>
import functools
import math

import jax
import jax.numpy as jnp
from jax.experimental import pallas as pl
from jax.experimental.pallas import tpu as pltpu


def _round_up(x, m):
    return ((x + m - 1) // m) * m


def _choose_tm(M, cap=256):
    """Row-tile: multiple of 8, <= cap, and (when possible) >=2 row blocks so
    both TensorCores of a v7x chip get work."""
    if M >= 16:
        tm = min(cap, _round_up((M + 1) // 2, 8))
    else:
        tm = _round_up(max(M, 1), 8)
    Mp = _round_up(M, tm)
    return tm, Mp


# ----------------------------------------------------------------------------
# Pallas kernel 1: matmul + fused bias (single K block resident in VMEM)
# ----------------------------------------------------------------------------

def _mm_bias_kernel(a_ref, b_ref, bias_ref, o_ref):
    o_ref[...] = (jnp.dot(a_ref[...], b_ref[...],
                          preferred_element_type=jnp.float32)
                  + bias_ref[...]).astype(o_ref.dtype)


# Fallback for very large K (never triggered at the shapes in this script).
def _mm_bias_acc_kernel(a_ref, b_ref, bias_ref, o_ref, acc_ref):
    @pl.when(pl.program_id(1) == 0)
    def _():
        acc_ref[...] = jnp.broadcast_to(bias_ref[...], acc_ref.shape)

    acc_ref[...] += jnp.dot(a_ref[...], b_ref[...],
                            preferred_element_type=jnp.float32)

    @pl.when(pl.program_id(1) == pl.num_programs(1) - 1)
    def _():
        o_ref[...] = acc_ref[...].astype(o_ref.dtype)


_K_SINGLE_MAX = 2048


def matmul_bias(a, b, bias, *, out_dtype=jnp.bfloat16, tm_cap=256, tk=512):
    """(M,K) @ (K,N) + bias[1,N].  bf16 operands, f32 accumulation."""
    M, K = a.shape
    _, N = b.shape
    a = a.astype(jnp.bfloat16)
    tm, Mp = _choose_tm(M, tm_cap)
    if Mp != M:
        a = jnp.pad(a, ((0, Mp - M), (0, 0)))

    if K <= _K_SINGLE_MAX:
        out = pl.pallas_call(
            _mm_bias_kernel,
            out_shape=jax.ShapeDtypeStruct((Mp, N), out_dtype),
            grid=(Mp // tm,),
            in_specs=[pl.BlockSpec((tm, K), lambda i: (i, 0)),
                      pl.BlockSpec((K, N), lambda i: (0, 0)),
                      pl.BlockSpec((1, N), lambda i: (0, 0))],
            out_specs=pl.BlockSpec((tm, N), lambda i: (i, 0)),
            compiler_params=pltpu.CompilerParams(
                dimension_semantics=("parallel",)),
        )(a, b, bias)
    else:
        Kp = _round_up(K, tk)
        a = jnp.pad(a, ((0, 0), (0, Kp - K)))
        b = jnp.pad(b, ((0, Kp - K), (0, 0)))
        out = pl.pallas_call(
            _mm_bias_acc_kernel,
            out_shape=jax.ShapeDtypeStruct((Mp, N), out_dtype),
            grid=(Mp // tm, Kp // tk),
            in_specs=[pl.BlockSpec((tm, tk), lambda i, k: (i, k)),
                      pl.BlockSpec((tk, N), lambda i, k: (k, 0)),
                      pl.BlockSpec((1, N), lambda i, k: (0, 0))],
            out_specs=pl.BlockSpec((tm, N), lambda i, k: (i, 0)),
            scratch_shapes=[pltpu.VMEM((tm, N), jnp.float32)],
            compiler_params=pltpu.CompilerParams(
                dimension_semantics=("parallel", "arbitrary")),
        )(a, b, bias)
    return out if Mp == M else out[:M]


# ----------------------------------------------------------------------------
# Pallas kernel 2: fused gate-matmul + memory-cell state update
# ----------------------------------------------------------------------------

def _fused_cell_kernel(a_ref, wg_ref, bg_ref, c_ref, m_ref, wfc_ref, wfm_ref,
                       h_o, c_o, m_o, d_o, *, ch):
    # Gate matmul (MXU, f32 acc); bias (incl. forget_bias) folded into bg.
    g = jnp.dot(a_ref[...], wg_ref[...],
                preferred_element_type=jnp.float32) + bg_ref[...]
    # Lane-dense transcendentals on the full (tm, 8*ch) slab, then slice the
    # per-gate results.  Gate layout: [gi gf gg go | di df dg draw].
    sg = jax.nn.sigmoid(g)
    tg = jnp.tanh(g)
    c_new = sg[:, ch:2 * ch] * c_ref[...] + sg[:, 0:ch] * tg[:, 2 * ch:3 * ch]
    m_new = (sg[:, 5 * ch:6 * ch] * m_ref[...].astype(jnp.float32)
             + sg[:, 4 * ch:5 * ch] * tg[:, 6 * ch:7 * ch])
    # 1x1 "fusion" conv of concat([c_new, m_new]) as two tiny bf16 MXU dots.
    fused = (jnp.dot(c_new.astype(jnp.bfloat16), wfc_ref[...],
                     preferred_element_type=jnp.float32)
             + jnp.dot(m_new.astype(jnp.bfloat16), wfm_ref[...],
                       preferred_element_type=jnp.float32))
    h_o[...] = (sg[:, 3 * ch:4 * ch] * jnp.tanh(fused)).astype(h_o.dtype)
    c_o[...] = c_new
    m_o[...] = m_new.astype(m_o.dtype)
    d_o[...] = tg[:, 7 * ch:8 * ch].astype(d_o.dtype)


def pallas_fused_cell(a, wg, bg, c, m, wfc, wfm, *, tm_cap=256):
    M, Kp = a.shape
    Ng = wg.shape[1]
    ch = wfc.shape[0]
    tm, Mp = _choose_tm(M, tm_cap)
    if Mp != M:
        rpad = ((0, Mp - M), (0, 0))
        a, c, m = jnp.pad(a, rpad), jnp.pad(c, rpad), jnp.pad(m, rpad)

    row_spec = pl.BlockSpec((tm, ch), lambda i: (i, 0))
    outs = pl.pallas_call(
        functools.partial(_fused_cell_kernel, ch=ch),
        out_shape=(jax.ShapeDtypeStruct((Mp, ch), jnp.bfloat16),   # h
                   jax.ShapeDtypeStruct((Mp, ch), jnp.float32),    # c (f32)
                   jax.ShapeDtypeStruct((Mp, ch), jnp.bfloat16),   # m
                   jax.ShapeDtypeStruct((Mp, ch), jnp.bfloat16)),  # diff_x
        grid=(Mp // tm,),
        in_specs=[pl.BlockSpec((tm, Kp), lambda i: (i, 0)),
                  pl.BlockSpec((Kp, Ng), lambda i: (0, 0)),
                  pl.BlockSpec((1, Ng), lambda i: (0, 0)),
                  pl.BlockSpec((tm, ch), lambda i: (i, 0)),
                  pl.BlockSpec((tm, ch), lambda i: (i, 0)),
                  pl.BlockSpec((ch, ch), lambda i: (0, 0)),
                  pl.BlockSpec((ch, ch), lambda i: (0, 0))],
        out_specs=(row_spec, row_spec, row_spec, row_spec),
        compiler_params=pltpu.CompilerParams(
            dimension_semantics=("parallel",)),
    )(a, wg, bg, c, m, wfc, wfm)
    if Mp != M:
        outs = tuple(o[:M] for o in outs)
    return outs


# ----------------------------------------------------------------------------
# Conv / deconv / pool wrappers (NHWC; im2col glue in XLA, compute in Pallas)
# ----------------------------------------------------------------------------

def conv2d_nhwc(x, wmat, bias, k, stride, padding):
    """x: (B,H,W,Cin); wmat: (k*k*Cin, Cout) with rows ordered (kh,kw,ci)."""
    B, H, W, Cin = x.shape
    Cout = wmat.shape[1]
    Hout = (H + 2 * padding - k) // stride + 1
    Wout = (W + 2 * padding - k) // stride + 1
    x = x.astype(jnp.bfloat16)
    if k == 1 and stride == 1 and padding == 0:
        a = x.reshape(B * H * W, Cin)
    else:
        xp = jnp.pad(x, ((0, 0), (padding, padding), (padding, padding), (0, 0)))
        cols = [xp[:, i:i + stride * Hout:stride, j:j + stride * Wout:stride, :]
                for i in range(k) for j in range(k)]
        a = jnp.concatenate(cols, axis=-1).reshape(B * Hout * Wout, k * k * Cin)
    out = matmul_bias(a, wmat, bias)
    return out.reshape(B, Hout, Wout, Cout)


def conv_transpose2d_nhwc(x, wmat4, bias4):
    """ConvTranspose2d(k=4, s=2, p=1) via stride-phase decomposition: one
    matmul over the (H+1)x(W+1) grid producing the 4 output parities as
    column groups, interleaved with a single transpose+reshape+slice."""
    B, H, W, Cin = x.shape
    cout = bias4.shape[1] // 4
    x = x.astype(jnp.bfloat16)
    xp = jnp.pad(x, ((0, 0), (1, 1), (1, 1), (0, 0)))
    cols = [xp[:, i:i + H + 1, j:j + W + 1, :]
            for i in range(2) for j in range(2)]
    a = jnp.concatenate(cols, axis=-1).reshape(B * (H + 1) * (W + 1), 4 * Cin)
    out = matmul_bias(a, wmat4, bias4)                        # (M, 4*cout)
    out = out.reshape(B, H + 1, W + 1, 2, 2, cout)            # (qh,qw,a,b,c)
    y = jnp.transpose(out, (0, 1, 3, 2, 4, 5)).reshape(
        B, 2 * (H + 1), 2 * (W + 1), cout)                    # T[r,s]=out[r-1,s-1]
    return y[:, 1:2 * H + 1, 1:2 * W + 1, :]


def maxpool2d_nhwc(x, k=4, stride=2, padding=1):
    # TODO(synk): kept as an XLA-fused pairwise-maximum tree (per perf review)
    # instead of a Pallas kernel -- avoids materializing the k*k stacked tensor.
    B, H, W, C = x.shape
    Hout = (H + 2 * padding - k) // stride + 1
    Wout = (W + 2 * padding - k) // stride + 1
    xp = jnp.pad(x, ((0, 0), (padding, padding), (padding, padding), (0, 0)),
                 constant_values=-jnp.inf)
    out = None
    for i in range(k):
        for j in range(k):
            s = xp[:, i:i + stride * Hout:stride, j:j + stride * Wout:stride, :]
            out = s if out is None else jnp.maximum(out, s)
    return out


# ----------------------------------------------------------------------------
# MDST_MemCell (PredRNN-style substitute) and MSMM_Net forward
# ----------------------------------------------------------------------------

def cell_forward(cp, x, h, c, m, d, k):
    """Returns (h_new, c_new, m_new, diff_x_new); all tensors NHWC."""
    B, H, W, _ = x.shape
    ch = cp['Wf_c'].shape[0]
    pad = k // 2

    inp = jnp.concatenate([x.astype(jnp.bfloat16), h.astype(jnp.bfloat16),
                           d.astype(jnp.bfloat16), m.astype(jnp.bfloat16)],
                          axis=-1)                        # (B,H,W,2*(cin+ch))
    ctot = inp.shape[-1]
    xp = jnp.pad(inp, ((0, 0), (pad, pad), (pad, pad), (0, 0)))
    cols = [xp[:, i:i + H, j:j + W, :] for i in range(k) for j in range(k)]
    K = k * k * ctot
    Kp = cp['Wg'].shape[0]
    if Kp > K:            # contraction-dim padding folded into the concat
        cols.append(jnp.zeros((B, H, W, Kp - K), jnp.bfloat16))
    a = jnp.concatenate(cols, axis=-1).reshape(B * H * W, Kp)

    M = B * H * W
    h_n, c_n, m_n, d_n = pallas_fused_cell(
        a, cp['Wg'], cp['bg'],
        c.reshape(M, ch).astype(jnp.float32),
        m.reshape(M, ch).astype(jnp.bfloat16),
        cp['Wf_c'], cp['Wf_m'])

    rs = lambda t: t.reshape(B, H, W, ch)
    return rs(h_n), rs(c_n), rs(m_n), rs(d_n)


def msmm_forward(params, inputs, out_len, ksizes):
    """inputs: (B, S, C, H, W) NCHW -> prediction (B, out_len, C, H, W)."""
    B, S, C, H, W = inputs.shape
    x_seq = jnp.transpose(inputs, (0, 1, 3, 4, 2)).astype(jnp.bfloat16)

    cells = params['cells']
    layers = len(cells)
    hidden = [cells[i]['Wf_c'].shape[0] for i in range(layers)]

    h = [jnp.zeros((B, H >> i, W >> i, hidden[i]), jnp.bfloat16)
         for i in range(layers)]
    c = [jnp.zeros((B, H >> i, W >> i, hidden[i]), jnp.float32)
         for i in range(layers)]
    m = jnp.zeros((B, H, W, hidden[0]), jnp.bfloat16)

    preds = []
    x = None
    x_pred = None
    for s in range(S + out_len):
        if s < S:
            x = x_seq[:, s]
            diff_x = x if s == 0 else x - x_seq[:, s - 1]
        else:
            diff_x = x_pred - x
            x = x_pred

        h[0], c[0], m, diff_x = cell_forward(cells[0], x, h[0], c[0], m,
                                             diff_x, ksizes[0])
        for i in range(1, layers):
            chp = hidden[i - 1]
            # one channel-concat max-pool for both h[i-1] and diff_x
            z = maxpool2d_nhwc(jnp.concatenate([h[i - 1], diff_x], axis=-1))
            x_t, diff_x = z[..., :chp], z[..., chp:]
            dn = params['down'][i - 1]
            m = conv2d_nhwc(m, dn['W'], dn['b'], 4, 2, 1)
            h[i], c[i], m, diff_x = cell_forward(cells[i], x_t, h[i], c[i], m,
                                                 diff_x, ksizes[i])

        up = params['up']
        x_pred = conv_transpose2d_nhwc(h[-1], up[-1]['W4'], up[-1]['b4'])
        for i in range(layers - 2, 0, -1):
            x_pred = conv_transpose2d_nhwc(x_pred + h[i],
                                           up[i - 1]['W4'], up[i - 1]['b4'])
        x_pred = conv2d_nhwc(x_pred + h[0], params['last_W'],
                             params['last_b'], 1, 1, 0)
        for i in range(layers - 2, -1, -1):
            m = conv_transpose2d_nhwc(m, up[i]['W4'], up[i]['b4'])

        if s >= S:
            preds.append(x_pred)

    out = jnp.stack(preds, axis=1)                 # (B, out_len, H, W, C)
    return jnp.transpose(out, (0, 1, 4, 2, 3)).astype(jnp.float32)


# ----------------------------------------------------------------------------
# Deterministic parameter init + one-time matmul-layout preparation
# ----------------------------------------------------------------------------

def init_params(key, in_channels, hidden, ksizes):
    """PyTorch-layout parameters (deterministic)."""
    params = {'cells': [], 'down': [], 'up': []}
    state = {'key': key}

    def w(shape, scale=0.1):
        state['key'], sub = jax.random.split(state['key'])
        return (scale * jax.random.normal(sub, shape)).astype(jnp.float32)

    layers = len(hidden)
    for i in range(layers):
        cin = in_channels if i == 0 else hidden[i - 1]
        ch = hidden[i]
        k = ksizes[i]
        params['cells'].append({
            'W_xh': w((4 * ch, cin + ch, k, k)),
            'b_xh': jnp.zeros((4 * ch,), jnp.float32),
            'W_dm': w((3 * ch, cin + ch, k, k)),
            'b_dm': jnp.zeros((3 * ch,), jnp.float32),
            'W_d': w((ch, cin, k, k)),
            'b_d': jnp.zeros((ch,), jnp.float32),
            'W_fuse': w((ch, 2 * ch, 1, 1)),
        })
        if i + 1 < layers:
            params['down'].append({
                'W': w((hidden[i + 1], hidden[i], 4, 4)),
                'b': jnp.zeros((hidden[i + 1],), jnp.float32),
            })
            params['up'].append({
                'W': w((hidden[i + 1], hidden[i], 4, 4)),   # PyTorch ConvT layout
                'b': jnp.zeros((hidden[i],), jnp.float32),
            })
    params['conv_last_W'] = w((in_channels, hidden[0], 1, 1))
    return params


def _conv_weight_to_mat(w):
    """(Cout, Cin, kh, kw) -> (kh*kw*Cin, Cout), matching the im2col order."""
    cout, cin, kh, kw = w.shape
    return jnp.transpose(w, (2, 3, 1, 0)).reshape(kh * kw * cin, cout)


def _convt_phase_matrix(w):
    """PyTorch ConvTranspose2d weight (Cin, Cout, 4, 4), stride 2 / pad 1 ->
    (4*Cin, 4*Cout).  Column group (a, b) (a,b in {0,1}) is the equivalent
    2x2 stride-1 kernel whose output lands at (2*qh-1+a, 2*qw-1+b) when
    applied at grid cell (qh, qw) of the 1-padded input, so the four parities
    interleave with one transpose+reshape+slice."""
    cin, cout = w.shape[0], w.shape[1]
    kmap = ((3, 1), (2, 0))         # kmap[parity][input-offset] -> kernel tap
    cols = []
    for a in range(2):
        rh = 1 - a
        for b in range(2):
            rw = 1 - b
            sub = jnp.stack(
                [jnp.stack([w[:, :, kmap[rh][dh], kmap[rw][dw]]
                            for dw in range(2)], axis=0)
                 for dh in range(2)], axis=0)            # (2, 2, Cin, Cout)
            cols.append(sub.reshape(4 * cin, cout))
    return jnp.concatenate(cols, axis=1)                 # (4*Cin, 4*Cout)


def prepare_params(raw, in_channels, hidden, ksizes, forget_bias):
    """Fold the three gate convs of each cell into one block-structured matmul
    weight (forget_bias folded into its bias), convert every conv weight to
    pre-padded im2col matrix layout and cast matmul weights to bf16."""
    layers = len(hidden)
    prep = {'cells': [], 'down': [], 'up': []}
    for i in range(layers):
        cin = in_channels if i == 0 else hidden[i - 1]
        ch = hidden[i]
        k = ksizes[i]
        rc = raw['cells'][i]
        ctot = 2 * (cin + ch)                 # combined input = [x, h, d, m]
        w_all = jnp.zeros((8 * ch, ctot, k, k), jnp.float32)
        w_all = w_all.at[0:4 * ch, 0:cin + ch].set(rc['W_xh'])
        w_all = w_all.at[4 * ch:7 * ch, cin + ch:2 * (cin + ch)].set(rc['W_dm'])
        w_all = w_all.at[7 * ch:8 * ch, cin + ch:cin + ch + cin].set(rc['W_d'])
        wg = _conv_weight_to_mat(w_all)                  # (k*k*ctot, 8*ch)
        K = k * k * ctot
        Kp = _round_up(K, 128)                           # lane-aligned K, padded once
        wg = jnp.pad(wg, ((0, Kp - K), (0, 0)))
        bg = jnp.concatenate([rc['b_xh'], rc['b_dm'], rc['b_d']])
        bg = (bg.at[ch:2 * ch].add(forget_bias)          # fold forget_bias (gf, df)
                .at[5 * ch:6 * ch].add(forget_bias))
        wf = rc['W_fuse'].reshape(ch, 2 * ch).T          # (2ch, ch)
        prep['cells'].append({
            'Wg': wg.astype(jnp.bfloat16),
            'bg': bg.reshape(1, 8 * ch).astype(jnp.float32),
            'Wf_c': wf[:ch].astype(jnp.bfloat16),
            'Wf_m': wf[ch:].astype(jnp.bfloat16),
        })
        if i + 1 < layers:
            prep['down'].append({
                'W': _conv_weight_to_mat(raw['down'][i]['W']).astype(jnp.bfloat16),
                'b': raw['down'][i]['b'].reshape(1, -1).astype(jnp.float32),
            })
            prep['up'].append({
                'W4': _convt_phase_matrix(raw['up'][i]['W']).astype(jnp.bfloat16),
                'b4': jnp.tile(raw['up'][i]['b'], 4).reshape(1, -1).astype(jnp.float32),
            })
    prep['last_W'] = raw['conv_last_W'].reshape(in_channels, hidden[0]
                                                ).T.astype(jnp.bfloat16)
    prep['last_b'] = jnp.zeros((1, in_channels), jnp.float32)  # conv_last: bias=False
    return prep


# ----------------------------------------------------------------------------
# Main
# ----------------------------------------------------------------------------

if __name__ == "__main__":
    key = jax.random.PRNGKey(0)
    kp, kx = jax.random.split(key)

    in_channels = 2
    hidden_channels_list = [8, 16]
    kernel_size_list = [3, 3]
    forget_bias = 0.01

    batch, seq, H, W = 2, 3, 16, 16
    out_len = 2

    raw_params = init_params(kp, in_channels, hidden_channels_list,
                             kernel_size_list)
    params = prepare_params(raw_params, in_channels, hidden_channels_list,
                            kernel_size_list, forget_bias)
    inputs = jax.random.normal(kx, (batch, seq, in_channels, H, W),
                               jnp.float32)

    forward = jax.jit(msmm_forward, static_argnames=("out_len", "ksizes"))
    out = forward(params, inputs, out_len=out_len,
                  ksizes=tuple(kernel_size_list))
    out = jax.block_until_ready(out)

    assert out.shape == (batch, out_len, in_channels, H, W), out.shape
    assert bool(jnp.all(jnp.isfinite(out)))
    print("KERNEL_OK")
</pallas_src>

<mosaic_0001>
module attributes {stable_mosaic.version = 11 : i64} {
  func.func @_fused_cell_kernel(%arg0: i32, %arg1: memref<256x256xbf16, #tpu.memory_space<vmem>>, %arg2: memref<256x64xbf16, #tpu.memory_space<vmem>>, %arg3: memref<1x64xf32, #tpu.memory_space<vmem>>, %arg4: memref<256x8xf32, #tpu.memory_space<vmem>>, %arg5: memref<256x8xbf16, #tpu.memory_space<vmem>>, %arg6: memref<8x8xbf16, #tpu.memory_space<vmem>>, %arg7: memref<8x8xbf16, #tpu.memory_space<vmem>>, %arg8: memref<256x8xbf16, #tpu.memory_space<vmem>>, %arg9: memref<256x8xf32, #tpu.memory_space<vmem>>, %arg10: memref<256x8xbf16, #tpu.memory_space<vmem>>, %arg11: memref<256x8xbf16, #tpu.memory_space<vmem>>) attributes {dimension_semantics = [#tpu.dimension_semantics<parallel>], iteration_bounds = array<i64: 2>, scalar_prefetch = 0 : i64, scratch_operands = 0 : i64, tpu.core_type = #tpu.core_type<tc>, window_params = [{transform_indices = @transform_0, window_bounds = array<i64: 256, 256>}, {pipeline_mode = #tpu.pipeline_mode<synchronous>, transform_indices = @transform_1, window_bounds = array<i64: 256, 64>}, {pipeline_mode = #tpu.pipeline_mode<synchronous>, transform_indices = @transform_2, window_bounds = array<i64: 1, 64>}, {transform_indices = @transform_3, window_bounds = array<i64: 256, 8>}, {transform_indices = @transform_4, window_bounds = array<i64: 256, 8>}, {pipeline_mode = #tpu.pipeline_mode<synchronous>, transform_indices = @transform_5, window_bounds = array<i64: 8, 8>}, {pipeline_mode = #tpu.pipeline_mode<synchronous>, transform_indices = @transform_6, window_bounds = array<i64: 8, 8>}, {transform_indices = @transform_7, window_bounds = array<i64: 256, 8>}, {transform_indices = @transform_8, window_bounds = array<i64: 256, 8>}, {transform_indices = @transform_9, window_bounds = array<i64: 256, 8>}, {transform_indices = @transform_10, window_bounds = array<i64: 256, 8>}]} {
    %c0 = arith.constant 0 : index
    %c0_0 = arith.constant 0 : index
    %0 = vector.load %arg1[%c0, %c0_0] : memref<256x256xbf16, #tpu.memory_space<vmem>>, vector<256x256xbf16>
    %c0_1 = arith.constant 0 : index
    %c0_2 = arith.constant 0 : index
    %1 = vector.load %arg2[%c0_1, %c0_2] : memref<256x64xbf16, #tpu.memory_space<vmem>>, vector<256x64xbf16>
    %cst = arith.constant dense<0.000000e+00> : vector<256x64xf32>
    %2 = tpu.matmul %0, %1, %cst {dimension_numbers = #tpu.dot_dimension_numbers<[1], [0], [0], [1], [0, 0, 1, 1], [], []>} : vector<256x256xbf16>, vector<256x64xbf16>, vector<256x64xf32> -> vector<256x64xf32>
    %c0_3 = arith.constant 0 : index
    %c0_4 = arith.constant 0 : index
    %3 = vector.load %arg3[%c0_3, %c0_4] : memref<1x64xf32, #tpu.memory_space<vmem>>, vector<1x64xf32>
    %4 = vector.broadcast %3 : vector<1x64xf32> to vector<256x64xf32>
    %5 = arith.addf %2, %4 : vector<256x64xf32>
    %6 = arith.negf %5 : vector<256x64xf32>
    %7 = math.exp %6 : vector<256x64xf32>
    %cst_5 = arith.constant 1.000000e+00 : f32
    %8 = vector.broadcast %cst_5 : f32 to vector<256x64xf32>
    %9 = arith.addf %8, %7 : vector<256x64xf32>
    %10 = arith.divf %8, %9 : vector<256x64xf32>
    %11 = math.tanh %5 : vector<256x64xf32>
    %12 = vector.extract_strided_slice %10 {offsets = [0, 8], sizes = [256, 8], strides = [1, 1]} : vector<256x64xf32> to vector<256x8xf32>
    %c0_6 = arith.constant 0 : index
    %c0_7 = arith.constant 0 : index
    %13 = vector.load %arg4[%c0_6, %c0_7] : memref<256x8xf32, #tpu.memory_space<vmem>>, vector<256x8xf32>
    %14 = arith.mulf %12, %13 : vector<256x8xf32>
    %15 = vector.extract_strided_slice %10 {offsets = [0, 0], sizes = [256, 8], strides = [1, 1]} : vector<256x64xf32> to vector<256x8xf32>
    %16 = vector.extract_strided_slice %11 {offsets = [0, 16], sizes = [256, 8], strides = [1, 1]} : vector<256x64xf32> to vector<256x8xf32>
    %17 = arith.mulf %15, %16 : vector<256x8xf32>
    %18 = arith.addf %14, %17 : vector<256x8xf32>
    %19 = vector.extract_strided_slice %10 {offsets = [0, 40], sizes = [256, 8], strides = [1, 1]} : vector<256x64xf32> to vector<256x8xf32>
    %c0_8 = arith.constant 0 : index
    %c0_9 = arith.constant 0 : index
    %20 = vector.load %arg5[%c0_8, %c0_9] : memref<256x8xbf16, #tpu.memory_space<vmem>>, vector<256x8xbf16>
    %21 = arith.extf %20 : vector<256x8xbf16> to vector<256x8xf32>
    %22 = arith.mulf %19, %21 : vector<256x8xf32>
    %23 = vector.extract_strided_slice %10 {offsets = [0, 32], sizes = [256, 8], strides = [1, 1]} : vector<256x64xf32> to vector<256x8xf32>
    %24 = vector.extract_strided_slice %11 {offsets = [0, 48], sizes = [256, 8], strides = [1, 1]} : vector<256x64xf32> to vector<256x8xf32>
    %25 = arith.mulf %23, %24 : vector<256x8xf32>
    %26 = arith.addf %22, %25 : vector<256x8xf32>
    %27 = arith.truncf %18 : vector<256x8xf32> to vector<256x8xbf16>
    %c0_10 = arith.constant 0 : index
    %c0_11 = arith.constant 0 : index
    %28 = vector.load %arg6[%c0_10, %c0_11] : memref<8x8xbf16, #tpu.memory_space<vmem>>, vector<8x8xbf16>
    %cst_12 = arith.constant dense<0.000000e+00> : vector<256x8xf32>
    %29 = tpu.matmul %27, %28, %cst_12 {dimension_numbers = #tpu.dot_dimension_numbers<[1], [0], [0], [1], [0, 0, 1, 1], [], []>} : vector<256x8xbf16>, vector<8x8xbf16>, vector<256x8xf32> -> vector<256x8xf32>
    %30 = arith.truncf %26 : vector<256x8xf32> to vector<256x8xbf16>
    %c0_13 = arith.constant 0 : index
    %c0_14 = arith.constant 0 : index
    %31 = vector.load %arg7[%c0_13, %c0_14] : memref<8x8xbf16, #tpu.memory_space<vmem>>, vector<8x8xbf16>
    %cst_15 = arith.constant dense<0.000000e+00> : vector<256x8xf32>
    %32 = tpu.matmul %30, %31, %cst_15 {dimension_numbers = #tpu.dot_dimension_numbers<[1], [0], [0], [1], [0, 0, 1, 1], [], []>} : vector<256x8xbf16>, vector<8x8xbf16>, vector<256x8xf32> -> vector<256x8xf32>
    %33 = arith.addf %29, %32 : vector<256x8xf32>
    %34 = vector.extract_strided_slice %10 {offsets = [0, 24], sizes = [256, 8], strides = [1, 1]} : vector<256x64xf32> to vector<256x8xf32>
    %35 = math.tanh %33 : vector<256x8xf32>
    %36 = arith.mulf %34, %35 : vector<256x8xf32>
    %37 = arith.truncf %36 : vector<256x8xf32> to vector<256x8xbf16>
    %c0_16 = arith.constant 0 : index
    %c0_17 = arith.constant 0 : index
    %38 = vector.load %arg8[%c0_16, %c0_17] : memref<256x8xbf16, #tpu.memory_space<vmem>>, vector<256x8xbf16>
    tpu.vector_store %arg8[%c0_16, %c0_17], %37 {strides = array<i32>} : memref<256x8xbf16, #tpu.memory_space<vmem>>, vector<256x8xbf16>,
    %c0_18 = arith.constant 0 : index
    %c0_19 = arith.constant 0 : index
    %39 = vector.load %arg9[%c0_18, %c0_19] : memref<256x8xf32, #tpu.memory_space<vmem>>, vector<256x8xf32>
    tpu.vector_store %arg9[%c0_18, %c0_19], %18 {strides = array<i32>} : memref<256x8xf32, #tpu.memory_space<vmem>>, vector<256x8xf32>,
    %40 = arith.truncf %26 : vector<256x8xf32> to vector<256x8xbf16>
    %c0_20 = arith.constant 0 : index
    %c0_21 = arith.constant 0 : index
    %41 = vector.load %arg10[%c0_20, %c0_21] : memref<256x8xbf16, #tpu.memory_space<vmem>>, vector<256x8xbf16>
    tpu.vector_store %arg10[%c0_20, %c0_21], %40 {strides = array<i32>} : memref<256x8xbf16, #tpu.memory_space<vmem>>, vector<256x8xbf16>,
    %42 = vector.extract_strided_slice %11 {offsets = [0, 56], sizes = [256, 8], strides = [1, 1]} : vector<256x64xf32> to vector<256x8xf32>
    %43 = arith.truncf %42 : vector<256x8xf32> to vector<256x8xbf16>
    %c0_22 = arith.constant 0 : index
    %c0_23 = arith.constant 0 : index
    %44 = vector.load %arg11[%c0_22, %c0_23] : memref<256x8xbf16, #tpu.memory_space<vmem>>, vector<256x8xbf16>
    tpu.vector_store %arg11[%c0_22, %c0_23], %43 {strides = array<i32>} : memref<256x8xbf16, #tpu.memory_space<vmem>>, vector<256x8xbf16>,
    return
  }
  func.func @transform_0(%arg0: i32) -> (i32, i32) {
    %c0_i32 = arith.constant 0 : i32
    %c0_i32_0 = arith.constant 0 : i32
    return %arg0, %c0_i32 : i32, i32
  }
  func.func @transform_1(%arg0: i32) -> (i32, i32) {
    %c0_i32 = arith.constant 0 : i32
    %c0_i32_0 = arith.constant 0 : i32
    %c0_i32_1 = arith.constant 0 : i32
    return %c0_i32, %c0_i32_0 : i32, i32
  }
  func.func @transform_2(%arg0: i32) -> (i32, i32) {
    %c0_i32 = arith.constant 0 : i32
    %c0_i32_0 = arith.constant 0 : i32
    %c0_i32_1 = arith.constant 0 : i32
    return %c0_i32, %c0_i32_0 : i32, i32
  }
  func.func @transform_3(%arg0: i32) -> (i32, i32) {
    %c0_i32 = arith.constant 0 : i32
    %c0_i32_0 = arith.constant 0 : i32
    return %arg0, %c0_i32 : i32, i32
  }
  func.func @transform_4(%arg0: i32) -> (i32, i32) {
    %c0_i32 = arith.constant 0 : i32
    %c0_i32_0 = arith.constant 0 : i32
    return %arg0, %c0_i32 : i32, i32
  }
  func.func @transform_5(%arg0: i32) -> (i32, i32) {
    %c0_i32 = arith.constant 0 : i32
    %c0_i32_0 = arith.constant 0 : i32
    %c0_i32_1 = arith.constant 0 : i32
    return %c0_i32, %c0_i32_0 : i32, i32
  }
  func.func @transform_6(%arg0: i32) -> (i32, i32) {
    %c0_i32 = arith.constant 0 : i32
    %c0_i32_0 = arith.constant 0 : i32
    %c0_i32_1 = arith.constant 0 : i32
    return %c0_i32, %c0_i32_0 : i32, i32
  }
  func.func @transform_7(%arg0: i32) -> (i32, i32) {
    %c0_i32 = arith.constant 0 : i32
    %c0_i32_0 = arith.constant 0 : i32
    return %arg0, %c0_i32 : i32, i32
  }
  func.func @transform_8(%arg0: i32) -> (i32, i32) {
    %c0_i32 = arith.constant 0 : i32
    %c0_i32_0 = arith.constant 0 : i32
    return %arg0, %c0_i32 : i32, i32
  }
  func.func @transform_9(%arg0: i32) -> (i32, i32) {
    %c0_i32 = arith.constant 0 : i32
    %c0_i32_0 = arith.constant 0 : i32
    return %arg0, %c0_i32 : i32, i32
  }
  func.func @transform_10(%arg0: i32) -> (i32, i32) {
    %c0_i32 = arith.constant 0 : i32
    %c0_i32_0 = arith.constant 0 : i32
    return %arg0, %c0_i32 : i32, i32
  }
}

module attributes {stable_mosaic.version = 11 : i64} {
  func.func @_mm_bias_kernel(%arg0: i32, %arg1: memref<64x128xbf16, #tpu.memory_space<vmem>>, %arg2: memref<128x16xbf16, #tpu.memory_space<vmem>>, %arg3: memref<1x16xf32, #tpu.memory_space<vmem>>, %arg4: memref<64x16xbf16, #tpu.memory_space<vmem>>) attributes {dimension_semantics = [#tpu.dimension_semantics<parallel>], iteration_bounds = array<i64: 2>, scalar_prefetch = 0 : i64, scratch_operands = 0 : i64, tpu.core_type = #tpu.core_type<tc>, window_params = [{transform_indices = @transform_0, window_bounds = array<i64: 64, 128>}, {pipeline_mode = #tpu.pipeline_mode<synchronous>, transform_indices = @transform_1, window_bounds = array<i64: 128, 16>}, {pipeline_mode = #tpu.pipeline_mode<synchronous>, transform_indices = @transform_2, window_bounds = array<i64: 1, 16>}, {transform_indices = @transform_3, window_bounds = array<i64: 64, 16>}]} {
    %c0 = arith.constant 0 : index
    %c0_0 = arith.constant 0 : index
    %0 = vector.load %arg1[%c0, %c0_0] : memref<64x128xbf16, #tpu.memory_space<vmem>>, vector<64x128xbf16>
    %c0_1 = arith.constant 0 : index
    %c0_2 = arith.constant 0 : index
    %1 = vector.load %arg2[%c0_1, %c0_2] : memref<128x16xbf16, #tpu.memory_space<vmem>>, vector<128x16xbf16>
    %cst = arith.constant dense<0.000000e+00> : vector<64x16xf32>
    %2 = tpu.matmul %0, %1, %cst {dimension_numbers = #tpu.dot_dimension_numbers<[1], [0], [0], [1], [0, 0, 1, 1], [], []>} : vector<64x128xbf16>, vector<128x16xbf16>, vector<64x16xf32> -> vector<64x16xf32>
    %c0_3 = arith.constant 0 : index
    %c0_4 = arith.constant 0 : index
    %3 = vector.load %arg3[%c0_3, %c0_4] : memref<1x16xf32, #tpu.memory_space<vmem>>, vector<1x16xf32>
    %4 = vector.broadcast %3 : vector<1x16xf32> to vector<64x16xf32>
    %5 = arith.addf %2, %4 : vector<64x16xf32>
    %6 = arith.truncf %5 : vector<64x16xf32> to vector<64x16xbf16>
    %c0_5 = arith.constant 0 : index
    %c0_6 = arith.constant 0 : index
    %7 = vector.load %arg4[%c0_5, %c0_6] : memref<64x16xbf16, #tpu.memory_space<vmem>>, vector<64x16xbf16>
    tpu.vector_store %arg4[%c0_5, %c0_6], %6 {strides = array<i32>} : memref<64x16xbf16, #tpu.memory_space<vmem>>, vector<64x16xbf16>,
    return
  }
  func.func @transform_0(%arg0: i32) -> (i32, i32) {
    %c0_i32 = arith.constant 0 : i32
    %c0_i32_0 = arith.constant 0 : i32
    return %arg0, %c0_i32 : i32, i32
  }
  func.func @transform_1(%arg0: i32) -> (i32, i32) {
    %c0_i32 = arith.constant 0 : i32
    %c0_i32_0 = arith.constant 0 : i32
    %c0_i32_1 = arith.constant 0 : i32
    return %c0_i32, %c0_i32_0 : i32, i32
  }
  func.func @transform_2(%arg0: i32) -> (i32, i32) {
    %c0_i32 = arith.constant 0 : i32
    %c0_i32_0 = arith.constant 0 : i32
    %c0_i32_1 = arith.constant 0 : i32
    return %c0_i32, %c0_i32_0 : i32, i32
  }
  func.func @transform_3(%arg0: i32) -> (i32, i32) {
    %c0_i32 = arith.constant 0 : i32
    %c0_i32_0 = arith.constant 0 : i32
    return %arg0, %c0_i32 : i32, i32
  }
}

module attributes {stable_mosaic.version = 11 : i64} {
  func.func @_fused_cell_kernel(%arg0: i32, %arg1: memref<64x512xbf16, #tpu.memory_space<vmem>>, %arg2: memref<512x128xbf16, #tpu.memory_space<vmem>>, %arg3: memref<1x128xf32, #tpu.memory_space<vmem>>, %arg4: memref<64x16xf32, #tpu.memory_space<vmem>>, %arg5: memref<64x16xbf16, #tpu.memory_space<vmem>>, %arg6: memref<16x16xbf16, #tpu.memory_space<vmem>>, %arg7: memref<16x16xbf16, #tpu.memory_space<vmem>>, %arg8: memref<64x16xbf16, #tpu.memory_space<vmem>>, %arg9: memref<64x16xf32, #tpu.memory_space<vmem>>, %arg10: memref<64x16xbf16, #tpu.memory_space<vmem>>, %arg11: memref<64x16xbf16, #tpu.memory_space<vmem>>) attributes {dimension_semantics = [#tpu.dimension_semantics<parallel>], iteration_bounds = array<i64: 2>, scalar_prefetch = 0 : i64, scratch_operands = 0 : i64, tpu.core_type = #tpu.core_type<tc>, window_params = [{transform_indices = @transform_0, window_bounds = array<i64: 64, 512>}, {pipeline_mode = #tpu.pipeline_mode<synchronous>, transform_indices = @transform_1, window_bounds = array<i64: 512, 128>}, {pipeline_mode = #tpu.pipeline_mode<synchronous>, transform_indices = @transform_2, window_bounds = array<i64: 1, 128>}, {transform_indices = @transform_3, window_bounds = array<i64: 64, 16>}, {transform_indices = @transform_4, window_bounds = array<i64: 64, 16>}, {pipeline_mode = #tpu.pipeline_mode<synchronous>, transform_indices = @transform_5, window_bounds = array<i64: 16, 16>}, {pipeline_mode = #tpu.pipeline_mode<synchronous>, transform_indices = @transform_6, window_bounds = array<i64: 16, 16>}, {transform_indices = @transform_7, window_bounds = array<i64: 64, 16>}, {transform_indices = @transform_8, window_bounds = array<i64: 64, 16>}, {transform_indices = @transform_9, window_bounds = array<i64: 64, 16>}, {transform_indices = @transform_10, window_bounds = array<i64: 64, 16>}]} {
    %c0 = arith.constant 0 : index
    %c0_0 = arith.constant 0 : index
    %0 = vector.load %arg1[%c0, %c0_0] : memref<64x512xbf16, #tpu.memory_space<vmem>>, vector<64x512xbf16>
    %c0_1 = arith.constant 0 : index
    %c0_2 = arith.constant 0 : index
    %1 = vector.load %arg2[%c0_1, %c0_2] : memref<512x128xbf16, #tpu.memory_space<vmem>>, vector<512x128xbf16>
    %cst = arith.constant dense<0.000000e+00> : vector<64x128xf32>
    %2 = tpu.matmul %0, %1, %cst {dimension_numbers = #tpu.dot_dimension_numbers<[1], [0], [0], [1], [0, 0, 1, 1], [], []>} : vector<64x512xbf16>, vector<512x128xbf16>, vector<64x128xf32> -> vector<64x128xf32>
    %c0_3 = arith.constant 0 : index
    %c0_4 = arith.constant 0 : index
    %3 = vector.load %arg3[%c0_3, %c0_4] : memref<1x128xf32, #tpu.memory_space<vmem>>, vector<1x128xf32>
    %4 = vector.broadcast %3 : vector<1x128xf32> to vector<64x128xf32>
    %5 = arith.addf %2, %4 : vector<64x128xf32>
    %6 = arith.negf %5 : vector<64x128xf32>
    %7 = math.exp %6 : vector<64x128xf32>
    %cst_5 = arith.constant 1.000000e+00 : f32
    %8 = vector.broadcast %cst_5 : f32 to vector<64x128xf32>
    %9 = arith.addf %8, %7 : vector<64x128xf32>
    %10 = arith.divf %8, %9 : vector<64x128xf32>
    %11 = math.tanh %5 : vector<64x128xf32>
    %12 = vector.extract_strided_slice %10 {offsets = [0, 16], sizes = [64, 16], strides = [1, 1]} : vector<64x128xf32> to vector<64x16xf32>
    %c0_6 = arith.constant 0 : index
    %c0_7 = arith.constant 0 : index
    %13 = vector.load %arg4[%c0_6, %c0_7] : memref<64x16xf32, #tpu.memory_space<vmem>>, vector<64x16xf32>
    %14 = arith.mulf %12, %13 : vector<64x16xf32>
    %15 = vector.extract_strided_slice %10 {offsets = [0, 0], sizes = [64, 16], strides = [1, 1]} : vector<64x128xf32> to vector<64x16xf32>
    %16 = vector.extract_strided_slice %11 {offsets = [0, 32], sizes = [64, 16], strides = [1, 1]} : vector<64x128xf32> to vector<64x16xf32>
    %17 = arith.mulf %15, %16 : vector<64x16xf32>
    %18 = arith.addf %14, %17 : vector<64x16xf32>
    %19 = vector.extract_strided_slice %10 {offsets = [0, 80], sizes = [64, 16], strides = [1, 1]} : vector<64x128xf32> to vector<64x16xf32>
    %c0_8 = arith.constant 0 : index
    %c0_9 = arith.constant 0 : index
    %20 = vector.load %arg5[%c0_8, %c0_9] : memref<64x16xbf16, #tpu.memory_space<vmem>>, vector<64x16xbf16>
    %21 = arith.extf %20 : vector<64x16xbf16> to vector<64x16xf32>
    %22 = arith.mulf %19, %21 : vector<64x16xf32>
    %23 = vector.extract_strided_slice %10 {offsets = [0, 64], sizes = [64, 16], strides = [1, 1]} : vector<64x128xf32> to vector<64x16xf32>
    %24 = vector.extract_strided_slice %11 {offsets = [0, 96], sizes = [64, 16], strides = [1, 1]} : vector<64x128xf32> to vector<64x16xf32>
    %25 = arith.mulf %23, %24 : vector<64x16xf32>
    %26 = arith.addf %22, %25 : vector<64x16xf32>
    %27 = arith.truncf %18 : vector<64x16xf32> to vector<64x16xbf16>
    %c0_10 = arith.constant 0 : index
    %c0_11 = arith.constant 0 : index
    %28 = vector.load %arg6[%c0_10, %c0_11] : memref<16x16xbf16, #tpu.memory_space<vmem>>, vector<16x16xbf16>
    %cst_12 = arith.constant dense<0.000000e+00> : vector<64x16xf32>
    %29 = tpu.matmul %27, %28, %cst_12 {dimension_numbers = #tpu.dot_dimension_numbers<[1], [0], [0], [1], [0, 0, 1, 1], [], []>} : vector<64x16xbf16>, vector<16x16xbf16>, vector<64x16xf32> -> vector<64x16xf32>
    %30 = arith.truncf %26 : vector<64x16xf32> to vector<64x16xbf16>
    %c0_13 = arith.constant 0 : index
    %c0_14 = arith.constant 0 : index
    %31 = vector.load %arg7[%c0_13, %c0_14] : memref<16x16xbf16, #tpu.memory_space<vmem>>, vector<16x16xbf16>
    %cst_15 = arith.constant dense<0.000000e+00> : vector<64x16xf32>
    %32 = tpu.matmul %30, %31, %cst_15 {dimension_numbers = #tpu.dot_dimension_numbers<[1], [0], [0], [1], [0, 0, 1, 1], [], []>} : vector<64x16xbf16>, vector<16x16xbf16>, vector<64x16xf32> -> vector<64x16xf32>
    %33 = arith.addf %29, %32 : vector<64x16xf32>
    %34 = vector.extract_strided_slice %10 {offsets = [0, 48], sizes = [64, 16], strides = [1, 1]} : vector<64x128xf32> to vector<64x16xf32>
    %35 = math.tanh %33 : vector<64x16xf32>
    %36 = arith.mulf %34, %35 : vector<64x16xf32>
    %37 = arith.truncf %36 : vector<64x16xf32> to vector<64x16xbf16>
    %c0_16 = arith.constant 0 : index
    %c0_17 = arith.constant 0 : index
    %38 = vector.load %arg8[%c0_16, %c0_17] : memref<64x16xbf16, #tpu.memory_space<vmem>>, vector<64x16xbf16>
    tpu.vector_store %arg8[%c0_16, %c0_17], %37 {strides = array<i32>} : memref<64x16xbf16, #tpu.memory_space<vmem>>, vector<64x16xbf16>,
    %c0_18 = arith.constant 0 : index
    %c0_19 = arith.constant 0 : index
    %39 = vector.load %arg9[%c0_18, %c0_19] : memref<64x16xf32, #tpu.memory_space<vmem>>, vector<64x16xf32>
    tpu.vector_store %arg9[%c0_18, %c0_19], %18 {strides = array<i32>} : memref<64x16xf32, #tpu.memory_space<vmem>>, vector<64x16xf32>,
    %40 = arith.truncf %26 : vector<64x16xf32> to vector<64x16xbf16>
    %c0_20 = arith.constant 0 : index
    %c0_21 = arith.constant 0 : index
    %41 = vector.load %arg10[%c0_20, %c0_21] : memref<64x16xbf16, #tpu.memory_space<vmem>>, vector<64x16xbf16>
    tpu.vector_store %arg10[%c0_20, %c0_21], %40 {strides = array<i32>} : memref<64x16xbf16, #tpu.memory_space<vmem>>, vector<64x16xbf16>,
    %42 = vector.extract_strided_slice %11 {offsets = [0, 112], sizes = [64, 16], strides = [1, 1]} : vector<64x128xf32> to vector<64x16xf32>
    %43 = arith.truncf %42 : vector<64x16xf32> to vector<64x16xbf16>
    %c0_22 = arith.constant 0 : index
    %c0_23 = arith.constant 0 : index
    %44 = vector.load %arg11[%c0_22, %c0_23] : memref<64x16xbf16, #tpu.memory_space<vmem>>, vector<64x16xbf16>
    tpu.vector_store %arg11[%c0_22, %c0_23], %43 {strides = array<i32>} : memref<64x16xbf16, #tpu.memory_space<vmem>>, vector<64x16xbf16>,
    return
  }
  func.func @transform_0(%arg0: i32) -> (i32, i32) {
    %c0_i32 = arith.constant 0 : i32
    %c0_i32_0 = arith.constant 0 : i32
    return %arg0, %c0_i32 : i32, i32
  }
  func.func @transform_1(%arg0: i32) -> (i32, i32) {
    %c0_i32 = arith.constant 0 : i32
    %c0_i32_0 = arith.constant 0 : i32
    %c0_i32_1 = arith.constant 0 : i32
    return %c0_i32, %c0_i32_0 : i32, i32
  }
  func.func @transform_2(%arg0: i32) -> (i32, i32) {
    %c0_i32 = arith.constant 0 : i32
    %c0_i32_0 = arith.constant 0 : i32
    %c0_i32_1 = arith.constant 0 : i32
    return %c0_i32, %c0_i32_0 : i32, i32
  }
  func.func @transform_3(%arg0: i32) -> (i32, i32) {
    %c0_i32 = arith.constant 0 : i32
    %c0_i32_0 = arith.constant 0 : i32
    return %arg0, %c0_i32 : i32, i32
  }
  func.func @transform_4(%arg0: i32) -> (i32, i32) {
    %c0_i32 = arith.constant 0 : i32
    %c0_i32_0 = arith.constant 0 : i32
    return %arg0, %c0_i32 : i32, i32
  }
  func.func @transform_5(%arg0: i32) -> (i32, i32) {
    %c0_i32 = arith.constant 0 : i32
    %c0_i32_0 = arith.constant 0 : i32
    %c0_i32_1 = arith.constant 0 : i32
    return %c0_i32, %c0_i32_0 : i32, i32
  }
  func.func @transform_6(%arg0: i32) -> (i32, i32) {
    %c0_i32 = arith.constant 0 : i32
    %c0_i32_0 = arith.constant 0 : i32
    %c0_i32_1 = arith.constant 0 : i32
    return %c0_i32, %c0_i32_0 : i32, i32
  }
  func.func @transform_7(%arg0: i32) -> (i32, i32) {
    %c0_i32 = arith.constant 0 : i32
    %c0_i32_0 = arith.constant 0 : i32
    return %arg0, %c0_i32 : i32, i32
  }
  func.func @transform_8(%arg0: i32) -> (i32, i32) {
    %c0_i32 = arith.constant 0 : i32
    %c0_i32_0 = arith.constant 0 : i32
    return %arg0, %c0_i32 : i32, i32
  }
  func.func @transform_9(%arg0: i32) -> (i32, i32) {
    %c0_i32 = arith.constant 0 : i32
    %c0_i32_0 = arith.constant 0 : i32
    return %arg0, %c0_i32 : i32, i32
  }
  func.func @transform_10(%arg0: i32) -> (i32, i32) {
    %c0_i32 = arith.constant 0 : i32
    %c0_i32_0 = arith.constant 0 : i32
    return %arg0, %c0_i32 : i32, i32
  }
}

module attributes {stable_mosaic.version = 11 : i64} {
  func.func @_mm_bias_kernel(%arg0: i32, %arg1: memref<88x64xbf16, #tpu.memory_space<vmem>>, %arg2: memref<64x32xbf16, #tpu.memory_space<vmem>>, %arg3: memref<1x32xf32, #tpu.memory_space<vmem>>, %arg4: memref<88x32xbf16, #tpu.memory_space<vmem>>) attributes {dimension_semantics = [#tpu.dimension_semantics<parallel>], iteration_bounds = array<i64: 2>, scalar_prefetch = 0 : i64, scratch_operands = 0 : i64, tpu.core_type = #tpu.core_type<tc>, window_params = [{transform_indices = @transform_0, window_bounds = array<i64: 88, 64>}, {pipeline_mode = #tpu.pipeline_mode<synchronous>, transform_indices = @transform_1, window_bounds = array<i64: 64, 32>}, {pipeline_mode = #tpu.pipeline_mode<synchronous>, transform_indices = @transform_2, window_bounds = array<i64: 1, 32>}, {transform_indices = @transform_3, window_bounds = array<i64: 88, 32>}]} {
    %c0 = arith.constant 0 : index
    %c0_0 = arith.constant 0 : index
    %0 = vector.load %arg1[%c0, %c0_0] : memref<88x64xbf16, #tpu.memory_space<vmem>>, vector<88x64xbf16>
    %c0_1 = arith.constant 0 : index
    %c0_2 = arith.constant 0 : index
    %1 = vector.load %arg2[%c0_1, %c0_2] : memref<64x32xbf16, #tpu.memory_space<vmem>>, vector<64x32xbf16>
    %cst = arith.constant dense<0.000000e+00> : vector<88x32xf32>
    %2 = tpu.matmul %0, %1, %cst {dimension_numbers = #tpu.dot_dimension_numbers<[1], [0], [0], [1], [0, 0, 1, 1], [], []>} : vector<88x64xbf16>, vector<64x32xbf16>, vector<88x32xf32> -> vector<88x32xf32>
    %c0_3 = arith.constant 0 : index
    %c0_4 = arith.constant 0 : index
    %3 = vector.load %arg3[%c0_3, %c0_4] : memref<1x32xf32, #tpu.memory_space<vmem>>, vector<1x32xf32>
    %4 = vector.broadcast %3 : vector<1x32xf32> to vector<88x32xf32>
    %5 = arith.addf %2, %4 : vector<88x32xf32>
    %6 = arith.truncf %5 : vector<88x32xf32> to vector<88x32xbf16>
    %c0_5 = arith.constant 0 : index
    %c0_6 = arith.constant 0 : index
    %7 = vector.load %arg4[%c0_5, %c0_6] : memref<88x32xbf16, #tpu.memory_space<vmem>>, vector<88x32xbf16>
    tpu.vector_store %arg4[%c0_5, %c0_6], %6 {strides = array<i32>} : memref<88x32xbf16, #tpu.memory_space<vmem>>, vector<88x32xbf16>,
    return
  }
  func.func @transform_0(%arg0: i32) -> (i32, i32) {
    %c0_i32 = arith.constant 0 : i32
    %c0_i32_0 = arith.constant 0 : i32
    return %arg0, %c0_i32 : i32, i32
  }
  func.func @transform_1(%arg0: i32) -> (i32, i32) {
    %c0_i32 = arith.constant 0 : i32
    %c0_i32_0 = arith.constant 0 : i32
    %c0_i32_1 = arith.constant 0 : i32
    return %c0_i32, %c0_i32_0 : i32, i32
  }
  func.func @transform_2(%arg0: i32) -> (i32, i32) {
    %c0_i32 = arith.constant 0 : i32
    %c0_i32_0 = arith.constant 0 : i32
    %c0_i32_1 = arith.constant 0 : i32
    return %c0_i32, %c0_i32_0 : i32, i32
  }
  func.func @transform_3(%arg0: i32) -> (i32, i32) {
    %c0_i32 = arith.constant 0 : i32
    %c0_i32_0 = arith.constant 0 : i32
    return %arg0, %c0_i32 : i32, i32
  }
}

module attributes {stable_mosaic.version = 11 : i64} {
  func.func @_mm_bias_kernel(%arg0: i32, %arg1: memref<256x8xbf16, #tpu.memory_space<vmem>>, %arg2: memref<8x2xbf16, #tpu.memory_space<vmem>>, %arg3: memref<1x2xf32, #tpu.memory_space<vmem>>, %arg4: memref<256x2xbf16, #tpu.memory_space<vmem>>) attributes {dimension_semantics = [#tpu.dimension_semantics<parallel>], iteration_bounds = array<i64: 2>, scalar_prefetch = 0 : i64, scratch_operands = 0 : i64, tpu.core_type = #tpu.core_type<tc>, window_params = [{transform_indices = @transform_0, window_bounds = array<i64: 256, 8>}, {pipeline_mode = #tpu.pipeline_mode<synchronous>, transform_indices = @transform_1, window_bounds = array<i64: 8, 2>}, {pipeline_mode = #tpu.pipeline_mode<synchronous>, transform_indices = @transform_2, window_bounds = array<i64: 1, 2>}, {transform_indices = @transform_3, window_bounds = array<i64: 256, 2>}]} {
    %c0 = arith.constant 0 : index
    %c0_0 = arith.constant 0 : index
    %0 = vector.load %arg1[%c0, %c0_0] : memref<256x8xbf16, #tpu.memory_space<vmem>>, vector<256x8xbf16>
    %c0_1 = arith.constant 0 : index
    %c0_2 = arith.constant 0 : index
    %1 = vector.load %arg2[%c0_1, %c0_2] : memref<8x2xbf16, #tpu.memory_space<vmem>>, vector<8x2xbf16>
    %cst = arith.constant dense<0.000000e+00> : vector<256x2xf32>
    %2 = tpu.matmul %0, %1, %cst {dimension_numbers = #tpu.dot_dimension_numbers<[1], [0], [0], [1], [0, 0, 1, 1], [], []>} : vector<256x8xbf16>, vector<8x2xbf16>, vector<256x2xf32> -> vector<256x2xf32>
    %c0_3 = arith.constant 0 : index
    %c0_4 = arith.constant 0 : index
    %3 = vector.load %arg3[%c0_3, %c0_4] : memref<1x2xf32, #tpu.memory_space<vmem>>, vector<1x2xf32>
    %4 = vector.broadcast %3 : vector<1x2xf32> to vector<256x2xf32>
    %5 = arith.addf %2, %4 : vector<256x2xf32>
    %6 = arith.truncf %5 : vector<256x2xf32> to vector<256x2xbf16>
    %c0_5 = arith.constant 0 : index
    %c0_6 = arith.constant 0 : index
    %7 = vector.load %arg4[%c0_5, %c0_6] : memref<256x2xbf16, #tpu.memory_space<vmem>>, vector<256x2xbf16>
    tpu.vector_store %arg4[%c0_5, %c0_6], %6 {strides = array<i32>} : memref<256x2xbf16, #tpu.memory_space<vmem>>, vector<256x2xbf16>,
    return
  }
  func.func @transform_0(%arg0: i32) -> (i32, i32) {
    %c0_i32 = arith.constant 0 : i32
    %c0_i32_0 = arith.constant 0 : i32
    return %arg0, %c0_i32 : i32, i32
  }
  func.func @transform_1(%arg0: i32) -> (i32, i32) {
    %c0_i32 = arith.constant 0 : i32
    %c0_i32_0 = arith.constant 0 : i32
    %c0_i32_1 = arith.constant 0 : i32
    return %c0_i32, %c0_i32_0 : i32, i32
  }
  func.func @transform_2(%arg0: i32) -> (i32, i32) {
    %c0_i32 = arith.constant 0 : i32
    %c0_i32_0 = arith.constant 0 : i32
    %c0_i32_1 = arith.constant 0 : i32
    return %c0_i32, %c0_i32_0 : i32, i32
  }
  func.func @transform_3(%arg0: i32) -> (i32, i32) {
    %c0_i32 = arith.constant 0 : i32
    %c0_i32_0 = arith.constant 0 : i32
    return %arg0, %c0_i32 : i32, i32
  }
}

module attributes {stable_mosaic.version = 11 : i64} {
  func.func @_fused_cell_kernel(%arg0: i32, %arg1: memref<256x256xbf16, #tpu.memory_space<vmem>>, %arg2: memref<256x64xbf16, #tpu.memory_space<vmem>>, %arg3: memref<1x64xf32, #tpu.memory_space<vmem>>, %arg4: memref<256x8xf32, #tpu.memory_space<vmem>>, %arg5: memref<256x8xbf16, #tpu.memory_space<vmem>>, %arg6: memref<8x8xbf16, #tpu.memory_space<vmem>>, %arg7: memref<8x8xbf16, #tpu.memory_space<vmem>>, %arg8: memref<256x8xbf16, #tpu.memory_space<vmem>>, %arg9: memref<256x8xf32, #tpu.memory_space<vmem>>, %arg10: memref<256x8xbf16, #tpu.memory_space<vmem>>, %arg11: memref<256x8xbf16, #tpu.memory_space<vmem>>) attributes {dimension_semantics = [#tpu.dimension_semantics<parallel>], iteration_bounds = array<i64: 2>, scalar_prefetch = 0 : i64, scratch_operands = 0 : i64, tpu.core_type = #tpu.core_type<tc>, window_params = [{transform_indices = @transform_0, window_bounds = array<i64: 256, 256>}, {pipeline_mode = #tpu.pipeline_mode<synchronous>, transform_indices = @transform_1, window_bounds = array<i64: 256, 64>}, {pipeline_mode = #tpu.pipeline_mode<synchronous>, transform_indices = @transform_2, window_bounds = array<i64: 1, 64>}, {transform_indices = @transform_3, window_bounds = array<i64: 256, 8>}, {transform_indices = @transform_4, window_bounds = array<i64: 256, 8>}, {pipeline_mode = #tpu.pipeline_mode<synchronous>, transform_indices = @transform_5, window_bounds = array<i64: 8, 8>}, {pipeline_mode = #tpu.pipeline_mode<synchronous>, transform_indices = @transform_6, window_bounds = array<i64: 8, 8>}, {transform_indices = @transform_7, window_bounds = array<i64: 256, 8>}, {transform_indices = @transform_8, window_bounds = array<i64: 256, 8>}, {transform_indices = @transform_9, window_bounds = array<i64: 256, 8>}, {transform_indices = @transform_10, window_bounds = array<i64: 256, 8>}]} {
    %c0 = arith.constant 0 : index
    %c0_0 = arith.constant 0 : index
    %0 = vector.load %arg1[%c0, %c0_0] : memref<256x256xbf16, #tpu.memory_space<vmem>>, vector<256x256xbf16>
    %c0_1 = arith.constant 0 : index
    %c0_2 = arith.constant 0 : index
    %1 = vector.load %arg2[%c0_1, %c0_2] : memref<256x64xbf16, #tpu.memory_space<vmem>>, vector<256x64xbf16>
    %cst = arith.constant dense<0.000000e+00> : vector<256x64xf32>
    %2 = tpu.matmul %0, %1, %cst {dimension_numbers = #tpu.dot_dimension_numbers<[1], [0], [0], [1], [0, 0, 1, 1], [], []>} : vector<256x256xbf16>, vector<256x64xbf16>, vector<256x64xf32> -> vector<256x64xf32>
    %c0_3 = arith.constant 0 : index
    %c0_4 = arith.constant 0 : index
    %3 = vector.load %arg3[%c0_3, %c0_4] : memref<1x64xf32, #tpu.memory_space<vmem>>, vector<1x64xf32>
    %4 = vector.broadcast %3 : vector<1x64xf32> to vector<256x64xf32>
    %5 = arith.addf %2, %4 : vector<256x64xf32>
    %6 = arith.negf %5 : vector<256x64xf32>
    %7 = math.exp %6 : vector<256x64xf32>
    %cst_5 = arith.constant 1.000000e+00 : f32
    %8 = vector.broadcast %cst_5 : f32 to vector<256x64xf32>
    %9 = arith.addf %8, %7 : vector<256x64xf32>
    %10 = arith.divf %8, %9 : vector<256x64xf32>
    %11 = math.tanh %5 : vector<256x64xf32>
    %12 = vector.extract_strided_slice %10 {offsets = [0, 8], sizes = [256, 8], strides = [1, 1]} : vector<256x64xf32> to vector<256x8xf32>
    %c0_6 = arith.constant 0 : index
    %c0_7 = arith.constant 0 : index
    %13 = vector.load %arg4[%c0_6, %c0_7] : memref<256x8xf32, #tpu.memory_space<vmem>>, vector<256x8xf32>
    %14 = arith.mulf %12, %13 : vector<256x8xf32>
    %15 = vector.extract_strided_slice %10 {offsets = [0, 0], sizes = [256, 8], strides = [1, 1]} : vector<256x64xf32> to vector<256x8xf32>
    %16 = vector.extract_strided_slice %11 {offsets = [0, 16], sizes = [256, 8], strides = [1, 1]} : vector<256x64xf32> to vector<256x8xf32>
    %17 = arith.mulf %15, %16 : vector<256x8xf32>
    %18 = arith.addf %14, %17 : vector<256x8xf32>
    %19 = vector.extract_strided_slice %10 {offsets = [0, 40], sizes = [256, 8], strides = [1, 1]} : vector<256x64xf32> to vector<256x8xf32>
    %c0_8 = arith.constant 0 : index
    %c0_9 = arith.constant 0 : index
    %20 = vector.load %arg5[%c0_8, %c0_9] : memref<256x8xbf16, #tpu.memory_space<vmem>>, vector<256x8xbf16>
    %21 = arith.extf %20 : vector<256x8xbf16> to vector<256x8xf32>
    %22 = arith.mulf %19, %21 : vector<256x8xf32>
    %23 = vector.extract_strided_slice %10 {offsets = [0, 32], sizes = [256, 8], strides = [1, 1]} : vector<256x64xf32> to vector<256x8xf32>
    %24 = vector.extract_strided_slice %11 {offsets = [0, 48], sizes = [256, 8], strides = [1, 1]} : vector<256x64xf32> to vector<256x8xf32>
    %25 = arith.mulf %23, %24 : vector<256x8xf32>
    %26 = arith.addf %22, %25 : vector<256x8xf32>
    %27 = arith.truncf %18 : vector<256x8xf32> to vector<256x8xbf16>
    %c0_10 = arith.constant 0 : index
    %c0_11 = arith.constant 0 : index
    %28 = vector.load %arg6[%c0_10, %c0_11] : memref<8x8xbf16, #tpu.memory_space<vmem>>, vector<8x8xbf16>
    %cst_12 = arith.constant dense<0.000000e+00> : vector<256x8xf32>
    %29 = tpu.matmul %27, %28, %cst_12 {dimension_numbers = #tpu.dot_dimension_numbers<[1], [0], [0], [1], [0, 0, 1, 1], [], []>} : vector<256x8xbf16>, vector<8x8xbf16>, vector<256x8xf32> -> vector<256x8xf32>
    %30 = arith.truncf %26 : vector<256x8xf32> to vector<256x8xbf16>
    %c0_13 = arith.constant 0 : index
    %c0_14 = arith.constant 0 : index
    %31 = vector.load %arg7[%c0_13, %c0_14] : memref<8x8xbf16, #tpu.memory_space<vmem>>, vector<8x8xbf16>
    %cst_15 = arith.constant dense<0.000000e+00> : vector<256x8xf32>
    %32 = tpu.matmul %30, %31, %cst_15 {dimension_numbers = #tpu.dot_dimension_numbers<[1], [0], [0], [1], [0, 0, 1, 1], [], []>} : vector<256x8xbf16>, vector<8x8xbf16>, vector<256x8xf32> -> vector<256x8xf32>
    %33 = arith.addf %29, %32 : vector<256x8xf32>
    %34 = vector.extract_strided_slice %10 {offsets = [0, 24], sizes = [256, 8], strides = [1, 1]} : vector<256x64xf32> to vector<256x8xf32>
    %35 = math.tanh %33 : vector<256x8xf32>
    %36 = arith.mulf %34, %35 : vector<256x8xf32>
    %37 = arith.truncf %36 : vector<256x8xf32> to vector<256x8xbf16>
    %c0_16 = arith.constant 0 : index
    %c0_17 = arith.constant 0 : index
    %38 = vector.load %arg8[%c0_16, %c0_17] : memref<256x8xbf16, #tpu.memory_space<vmem>>, vector<256x8xbf16>
    tpu.vector_store %arg8[%c0_16, %c0_17], %37 {strides = array<i32>} : memref<256x8xbf16, #tpu.memory_space<vmem>>, vector<256x8xbf16>,
    %c0_18 = arith.constant 0 : index
    %c0_19 = arith.constant 0 : index
    %39 = vector.load %arg9[%c0_18, %c0_19] : memref<256x8xf32, #tpu.memory_space<vmem>>, vector<256x8xf32>
    tpu.vector_store %arg9[%c0_18, %c0_19], %18 {strides = array<i32>} : memref<256x8xf32, #tpu.memory_space<vmem>>, vector<256x8xf32>,
    %40 = arith.truncf %26 : vector<256x8xf32> to vector<256x8xbf16>
    %c0_20 = arith.constant 0 : index
    %c0_21 = arith.constant 0 : index
    %41 = vector.load %arg10[%c0_20, %c0_21] : memref<256x8xbf16, #tpu.memory_space<vmem>>, vector<256x8xbf16>
    tpu.vector_store %arg10[%c0_20, %c0_21], %40 {strides = array<i32>} : memref<256x8xbf16, #tpu.memory_space<vmem>>, vector<256x8xbf16>,
    %42 = vector.extract_strided_slice %11 {offsets = [0, 56], sizes = [256, 8], strides = [1, 1]} : vector<256x64xf32> to vector<256x8xf32>
    %43 = arith.truncf %42 : vector<256x8xf32> to vector<256x8xbf16>
    %c0_22 = arith.constant 0 : index
    %c0_23 = arith.constant 0 : index
    %44 = vector.load %arg11[%c0_22, %c0_23] : memref<256x8xbf16, #tpu.memory_space<vmem>>, vector<256x8xbf16>
    tpu.vector_store %arg11[%c0_22, %c0_23], %43 {strides = array<i32>} : memref<256x8xbf16, #tpu.memory_space<vmem>>, vector<256x8xbf16>,
    return
  }
  func.func @transform_0(%arg0: i32) -> (i32, i32) {
    %c0_i32 = arith.constant 0 : i32
    %c0_i32_0 = arith.constant 0 : i32
    return %arg0, %c0_i32 : i32, i32
  }
  func.func @transform_1(%arg0: i32) -> (i32, i32) {
    %c0_i32 = arith.constant 0 : i32
    %c0_i32_0 = arith.constant 0 : i32
    %c0_i32_1 = arith.constant 0 : i32
    return %c0_i32, %c0_i32_0 : i32, i32
  }
  func.func @transform_2(%arg0: i32) -> (i32, i32) {
    %c0_i32 = arith.constant 0 : i32
    %c0_i32_0 = arith.constant 0 : i32
    %c0_i32_1 = arith.constant 0 : i32
    return %c0_i32, %c0_i32_0 : i32, i32
  }
  func.func @transform_3(%arg0: i32) -> (i32, i32) {
    %c0_i32 = arith.constant 0 : i32
    %c0_i32_0 = arith.constant 0 : i32
    return %arg0, %c0_i32 : i32, i32
  }
  func.func @transform_4(%arg0: i32) -> (i32, i32) {
    %c0_i32 = arith.constant 0 : i32
    %c0_i32_0 = arith.constant 0 : i32
    return %arg0, %c0_i32 : i32, i32
  }
  func.func @transform_5(%arg0: i32) -> (i32, i32) {
    %c0_i32 = arith.constant 0 : i32
    %c0_i32_0 = arith.constant 0 : i32
    %c0_i32_1 = arith.constant 0 : i32
    return %c0_i32, %c0_i32_0 : i32, i32
  }
  func.func @transform_6(%arg0: i32) -> (i32, i32) {
    %c0_i32 = arith.constant 0 : i32
    %c0_i32_0 = arith.constant 0 : i32
    %c0_i32_1 = arith.constant 0 : i32
    return %c0_i32, %c0_i32_0 : i32, i32
  }
  func.func @transform_7(%arg0: i32) -> (i32, i32) {
    %c0_i32 = arith.constant 0 : i32
    %c0_i32_0 = arith.constant 0 : i32
    return %arg0, %c0_i32 : i32, i32
  }
  func.func @transform_8(%arg0: i32) -> (i32, i32) {
    %c0_i32 = arith.constant 0 : i32
    %c0_i32_0 = arith.constant 0 : i32
    return %arg0, %c0_i32 : i32, i32
  }
  func.func @transform_9(%arg0: i32) -> (i32, i32) {
    %c0_i32 = arith.constant 0 : i32
    %c0_i32_0 = arith.constant 0 : i32
    return %arg0, %c0_i32 : i32, i32
  }
  func.func @transform_10(%arg0: i32) -> (i32, i32) {
    %c0_i32 = arith.constant 0 : i32
    %c0_i32_0 = arith.constant 0 : i32
    return %arg0, %c0_i32 : i32, i32
  }
}

module attributes {stable_mosaic.version = 11 : i64} {
  func.func @_fused_cell_kernel(%arg0: i32, %arg1: memref<64x512xbf16, #tpu.memory_space<vmem>>, %arg2: memref<512x128xbf16, #tpu.memory_space<vmem>>, %arg3: memref<1x128xf32, #tpu.memory_space<vmem>>, %arg4: memref<64x16xf32, #tpu.memory_space<vmem>>, %arg5: memref<64x16xbf16, #tpu.memory_space<vmem>>, %arg6: memref<16x16xbf16, #tpu.memory_space<vmem>>, %arg7: memref<16x16xbf16, #tpu.memory_space<vmem>>, %arg8: memref<64x16xbf16, #tpu.memory_space<vmem>>, %arg9: memref<64x16xf32, #tpu.memory_space<vmem>>, %arg10: memref<64x16xbf16, #tpu.memory_space<vmem>>, %arg11: memref<64x16xbf16, #tpu.memory_space<vmem>>) attributes {dimension_semantics = [#tpu.dimension_semantics<parallel>], iteration_bounds = array<i64: 2>, scalar_prefetch = 0 : i64, scratch_operands = 0 : i64, tpu.core_type = #tpu.core_type<tc>, window_params = [{transform_indices = @transform_0, window_bounds = array<i64: 64, 512>}, {pipeline_mode = #tpu.pipeline_mode<synchronous>, transform_indices = @transform_1, window_bounds = array<i64: 512, 128>}, {pipeline_mode = #tpu.pipeline_mode<synchronous>, transform_indices = @transform_2, window_bounds = array<i64: 1, 128>}, {transform_indices = @transform_3, window_bounds = array<i64: 64, 16>}, {transform_indices = @transform_4, window_bounds = array<i64: 64, 16>}, {pipeline_mode = #tpu.pipeline_mode<synchronous>, transform_indices = @transform_5, window_bounds = array<i64: 16, 16>}, {pipeline_mode = #tpu.pipeline_mode<synchronous>, transform_indices = @transform_6, window_bounds = array<i64: 16, 16>}, {transform_indices = @transform_7, window_bounds = array<i64: 64, 16>}, {transform_indices = @transform_8, window_bounds = array<i64: 64, 16>}, {transform_indices = @transform_9, window_bounds = array<i64: 64, 16>}, {transform_indices = @transform_10, window_bounds = array<i64: 64, 16>}]} {
    %c0 = arith.constant 0 : index
    %c0_0 = arith.constant 0 : index
    %0 = vector.load %arg1[%c0, %c0_0] : memref<64x512xbf16, #tpu.memory_space<vmem>>, vector<64x512xbf16>
    %c0_1 = arith.constant 0 : index
    %c0_2 = arith.constant 0 : index
    %1 = vector.load %arg2[%c0_1, %c0_2] : memref<512x128xbf16, #tpu.memory_space<vmem>>, vector<512x128xbf16>
    %cst = arith.constant dense<0.000000e+00> : vector<64x128xf32>
    %2 = tpu.matmul %0, %1, %cst {dimension_numbers = #tpu.dot_dimension_numbers<[1], [0], [0], [1], [0, 0, 1, 1], [], []>} : vector<64x512xbf16>, vector<512x128xbf16>, vector<64x128xf32> -> vector<64x128xf32>
    %c0_3 = arith.constant 0 : index
    %c0_4 = arith.constant 0 : index
    %3 = vector.load %arg3[%c0_3, %c0_4] : memref<1x128xf32, #tpu.memory_space<vmem>>, vector<1x128xf32>
    %4 = vector.broadcast %3 : vector<1x128xf32> to vector<64x128xf32>
    %5 = arith.addf %2, %4 : vector<64x128xf32>
    %6 = arith.negf %5 : vector<64x128xf32>
    %7 = math.exp %6 : vector<64x128xf32>
    %cst_5 = arith.constant 1.000000e+00 : f32
    %8 = vector.broadcast %cst_5 : f32 to vector<64x128xf32>
    %9 = arith.addf %8, %7 : vector<64x128xf32>
    %10 = arith.divf %8, %9 : vector<64x128xf32>
    %11 = math.tanh %5 : vector<64x128xf32>
    %12 = vector.extract_strided_slice %10 {offsets = [0, 16], sizes = [64, 16], strides = [1, 1]} : vector<64x128xf32> to vector<64x16xf32>
    %c0_6 = arith.constant 0 : index
    %c0_7 = arith.constant 0 : index
    %13 = vector.load %arg4[%c0_6, %c0_7] : memref<64x16xf32, #tpu.memory_space<vmem>>, vector<64x16xf32>
    %14 = arith.mulf %12, %13 : vector<64x16xf32>
    %15 = vector.extract_strided_slice %10 {offsets = [0, 0], sizes = [64, 16], strides = [1, 1]} : vector<64x128xf32> to vector<64x16xf32>
    %16 = vector.extract_strided_slice %11 {offsets = [0, 32], sizes = [64, 16], strides = [1, 1]} : vector<64x128xf32> to vector<64x16xf32>
    %17 = arith.mulf %15, %16 : vector<64x16xf32>
    %18 = arith.addf %14, %17 : vector<64x16xf32>
    %19 = vector.extract_strided_slice %10 {offsets = [0, 80], sizes = [64, 16], strides = [1, 1]} : vector<64x128xf32> to vector<64x16xf32>
    %c0_8 = arith.constant 0 : index
    %c0_9 = arith.constant 0 : index
    %20 = vector.load %arg5[%c0_8, %c0_9] : memref<64x16xbf16, #tpu.memory_space<vmem>>, vector<64x16xbf16>
    %21 = arith.extf %20 : vector<64x16xbf16> to vector<64x16xf32>
    %22 = arith.mulf %19, %21 : vector<64x16xf32>
    %23 = vector.extract_strided_slice %10 {offsets = [0, 64], sizes = [64, 16], strides = [1, 1]} : vector<64x128xf32> to vector<64x16xf32>
    %24 = vector.extract_strided_slice %11 {offsets = [0, 96], sizes = [64, 16], strides = [1, 1]} : vector<64x128xf32> to vector<64x16xf32>
    %25 = arith.mulf %23, %24 : vector<64x16xf32>
    %26 = arith.addf %22, %25 : vector<64x16xf32>
    %27 = arith.truncf %18 : vector<64x16xf32> to vector<64x16xbf16>
    %c0_10 = arith.constant 0 : index
    %c0_11 = arith.constant 0 : index
    %28 = vector.load %arg6[%c0_10, %c0_11] : memref<16x16xbf16, #tpu.memory_space<vmem>>, vector<16x16xbf16>
    %cst_12 = arith.constant dense<0.000000e+00> : vector<64x16xf32>
    %29 = tpu.matmul %27, %28, %cst_12 {dimension_numbers = #tpu.dot_dimension_numbers<[1], [0], [0], [1], [0, 0, 1, 1], [], []>} : vector<64x16xbf16>, vector<16x16xbf16>, vector<64x16xf32> -> vector<64x16xf32>
    %30 = arith.truncf %26 : vector<64x16xf32> to vector<64x16xbf16>
    %c0_13 = arith.constant 0 : index
    %c0_14 = arith.constant 0 : index
    %31 = vector.load %arg7[%c0_13, %c0_14] : memref<16x16xbf16, #tpu.memory_space<vmem>>, vector<16x16xbf16>
    %cst_15 = arith.constant dense<0.000000e+00> : vector<64x16xf32>
    %32 = tpu.matmul %30, %31, %cst_15 {dimension_numbers = #tpu.dot_dimension_numbers<[1], [0], [0], [1], [0, 0, 1, 1], [], []>} : vector<64x16xbf16>, vector<16x16xbf16>, vector<64x16xf32> -> vector<64x16xf32>
    %33 = arith.addf %29, %32 : vector<64x16xf32>
    %34 = vector.extract_strided_slice %10 {offsets = [0, 48], sizes = [64, 16], strides = [1, 1]} : vector<64x128xf32> to vector<64x16xf32>
    %35 = math.tanh %33 : vector<64x16xf32>
    %36 = arith.mulf %34, %35 : vector<64x16xf32>
    %37 = arith.truncf %36 : vector<64x16xf32> to vector<64x16xbf16>
    %c0_16 = arith.constant 0 : index
    %c0_17 = arith.constant 0 : index
    %38 = vector.load %arg8[%c0_16, %c0_17] : memref<64x16xbf16, #tpu.memory_space<vmem>>, vector<64x16xbf16>
    tpu.vector_store %arg8[%c0_16, %c0_17], %37 {strides = array<i32>} : memref<64x16xbf16, #tpu.memory_space<vmem>>, vector<64x16xbf16>,
    %c0_18 = arith.constant 0 : index
    %c0_19 = arith.constant 0 : index
    %39 = vector.load %arg9[%c0_18, %c0_19] : memref<64x16xf32, #tpu.memory_space<vmem>>, vector<64x16xf32>
    tpu.vector_store %arg9[%c0_18, %c0_19], %18 {strides = array<i32>} : memref<64x16xf32, #tpu.memory_space<vmem>>, vector<64x16xf32>,
    %40 = arith.truncf %26 : vector<64x16xf32> to vector<64x16xbf16>
    %c0_20 = arith.constant 0 : index
    %c0_21 = arith.constant 0 : index
    %41 = vector.load %arg10[%c0_20, %c0_21] : memref<64x16xbf16, #tpu.memory_space<vmem>>, vector<64x16xbf16>
    tpu.vector_store %arg10[%c0_20, %c0_21], %40 {strides = array<i32>} : memref<64x16xbf16, #tpu.memory_space<vmem>>, vector<64x16xbf16>,
    %42 = vector.extract_strided_slice %11 {offsets = [0, 112], sizes = [64, 16], strides = [1, 1]} : vector<64x128xf32> to vector<64x16xf32>
    %43 = arith.truncf %42 : vector<64x16xf32> to vector<64x16xbf16>
    %c0_22 = arith.constant 0 : index
    %c0_23 = arith.constant 0 : index
    %44 = vector.load %arg11[%c0_22, %c0_23] : memref<64x16xbf16, #tpu.memory_space<vmem>>, vector<64x16xbf16>
    tpu.vector_store %arg11[%c0_22, %c0_23], %43 {strides = array<i32>} : memref<64x16xbf16, #tpu.memory_space<vmem>>, vector<64x16xbf16>,
    return
  }
  func.func @transform_0(%arg0: i32) -> (i32, i32) {
    %c0_i32 = arith.constant 0 : i32
    %c0_i32_0 = arith.constant 0 : i32
    return %arg0, %c0_i32 : i32, i32
  }
  func.func @transform_1(%arg0: i32) -> (i32, i32) {
    %c0_i32 = arith.constant 0 : i32
    %c0_i32_0 = arith.constant 0 : i32
    %c0_i32_1 = arith.constant 0 : i32
    return %c0_i32, %c0_i32_0 : i32, i32
  }
  func.func @transform_2(%arg0: i32) -> (i32, i32) {
    %c0_i32 = arith.constant 0 : i32
    %c0_i32_0 = arith.constant 0 : i32
    %c0_i32_1 = arith.constant 0 : i32
    return %c0_i32, %c0_i32_0 : i32, i32
  }
  func.func @transform_3(%arg0: i32) -> (i32, i32) {
    %c0_i32 = arith.constant 0 : i32
    %c0_i32_0 = arith.constant 0 : i32
    return %arg0, %c0_i32 : i32, i32
  }
  func.func @transform_4(%arg0: i32) -> (i32, i32) {
    %c0_i32 = arith.constant 0 : i32
    %c0_i32_0 = arith.constant 0 : i32
    return %arg0, %c0_i32 : i32, i32
  }
  func.func @transform_5(%arg0: i32) -> (i32, i32) {
    %c0_i32 = arith.constant 0 : i32
    %c0_i32_0 = arith.constant 0 : i32
    %c0_i32_1 = arith.constant 0 : i32
    return %c0_i32, %c0_i32_0 : i32, i32
  }
  func.func @transform_6(%arg0: i32) -> (i32, i32) {
    %c0_i32 = arith.constant 0 : i32
    %c0_i32_0 = arith.constant 0 : i32
    %c0_i32_1 = arith.constant 0 : i32
    return %c0_i32, %c0_i32_0 : i32, i32
  }
  func.func @transform_7(%arg0: i32) -> (i32, i32) {
    %c0_i32 = arith.constant 0 : i32
    %c0_i32_0 = arith.constant 0 : i32
    return %arg0, %c0_i32 : i32, i32
  }
  func.func @transform_8(%arg0: i32) -> (i32, i32) {
    %c0_i32 = arith.constant 0 : i32
    %c0_i32_0 = arith.constant 0 : i32
    return %arg0, %c0_i32 : i32, i32
  }
  func.func @transform_9(%arg0: i32) -> (i32, i32) {
    %c0_i32 = arith.constant 0 : i32
    %c0_i32_0 = arith.constant 0 : i32
    return %arg0, %c0_i32 : i32, i32
  }
  func.func @transform_10(%arg0: i32) -> (i32, i32) {
    %c0_i32 = arith.constant 0 : i32
    %c0_i32_0 = arith.constant 0 : i32
    return %arg0, %c0_i32 : i32, i32
  }
}

</mosaic_0001>

<bundles_post_ra>
// kernel: msmm_forward.25
= control target key start
LH: loop header
LB: loop body
LE: loop exit
PB: predicated region body
PF: predicated region fallthrough
CT: control target
= control target key end

     0   :  { %s4804_s13 = smov 0   ;;  %s6632_s0 = inlined_call_operand.vmem [shape: bf16[512,256], index: 0, kind: input, shape index: {}]   ;;  %s6633_s1 = inlined_call_operand.vmem [shape: bf16[256,64], index: 1, kind: input, shape index: {}]   ;;  %s6634_s2 = inlined_call_operand.vmem [shape: f32[1,64], index: 2, kind: input, shape index: {}]   ;;  %s6635_s3 = inlined_call_operand.vmem [shape: f32[512,8], index: 3, kind: input, shape index: {}]   ;;  %s6636_s4 = inlined_call_operand.vmem [shape: bf16[512,8], index: 4, kind: input, shape index: {}]   ;;  %s6637_s5 = inlined_call_operand.vmem [shape: bf16[8,8], index: 5, kind: input, shape index: {}]   ;;  %s6638_s6 = inlined_call_operand.vmem [shape: bf16[8,8], index: 6, kind: input, shape index: {}]   ;;  %s6639_s7 = inlined_call_operand.vmem [shape: bf16[512,8], index: 7, kind: output, shape index: {0}]   ;;  %s6640_s8 = inlined_call_operand.vmem [shape: f32[512,8], index: 8, kind: output, shape index: {1}]   ;;  %s6641_s9 = inlined_call_operand.vmem [shape: bf16[512,8], index: 9, kind: output, shape index: {2}]   ;;  %s6642_s10 = inlined_call_operand.vmem [shape: bf16[512,8], index: 10, kind: output, shape index: {3}]  }
   0x1 LB: > { %s3662_s14 = sadd.s32 4294967295, %s4739_s13   ;;  %p3666_p0 = scmp.ge.s32.totalorder %s4739_s13, 1  ;;  %s4739_s13 = sphi %s4804_s13, %s21_s13  }
   0x2   : > { %p343_p1 = scmp.lt.s32.totalorder %s4739_s13, 3 }
   0x4   : > { %p344_p2 = pnand %p3666_p0, %p343_p1 }
   0x6   : > { %347 = sbr.rel (%p344_p2) target bundleno = 1333 (0x535), region = 48 }
   0xd   : > { %v4413_v0 = vld [vmem:[%s6633_s1 + $0x40] sm:$0xff]   ;;  %s3667_s17 = sshll.u32 %s3662_s14, 5  ;;  %v4415_v2 = vld [vmem:[%s6633_s1 + $0x48] sm:$0xff]   ;;  %v4417_v4 = vld [vmem:[%s6633_s1 + $0x50] sm:$0xff]   ;;  %s4742_s25 = smov 8   ;;  %vm2062_vm0 = vcmask 1043456  }
   0xe   : > { %v4414_v1 = vld [vmem:[%s6633_s1] sm:$0xff]   ;;  %4069 = vmatprep.subr.bf16.mxu0 %v4413_v0  ;;  %v4416_v3 = vld [vmem:[%s6633_s1 + $0x8] sm:$0xff]   ;;  %p408_p3 = scmp.lt.s32.totalorder %s3667_s17, 63  ;;  %v4418_v5 = vld [vmem:[%s6633_s1 + $0x10] sm:$0xff]   ;;  %s4744_s30 = smov 88   ;;  %vm2013_vm1 = vcmask 64512  }
   0xf   : > { %4070 = vmatpush3.bf16.msra.mxu0 %v4414_v1  ;;  %v4419_v6 = vld [vmem:[%s6633_s1 + $0x58] sm:$0xff]   ;;  %v4421_v8 = vld [vmem:[%s6633_s1 + $0x60] sm:$0xff]   ;;  %v4423_v10 = vld [vmem:[%s6633_s1 + $0x68] sm:$0xff]   ;;  %s4745_s15 = smov 120   ;;  %vm2871_vm2 = vcmask 60416   ;;  %s4747_s27 = smov 24  }
  0x10   : > { %4071 = vmatprep.subr.bf16.mxu0 %v4415_v2  ;;  %s6931_s17 = smov (!%p408_p3, %s3667_s17), 63  ;;  %v4420_v7 = vld [vmem:[%s6633_s1 + $0x18] sm:$0xff]   ;;  %v4422_v9 = vld [vmem:[%s6633_s1 + $0x20] sm:$0xff]   ;;  %v4424_v12 = vld [vmem:[%s6633_s1 + $0x28] sm:$0xff]  }
  0x11   : > { %s4836_s12 = sshll.u32 %s6931_s17, 3  ;;  %v4425_v13 = vld [vmem:[%s6633_s1 + $0x70] sm:$0xff]   ;;  %v4427_v15 = vld [vmem:[%s6633_s1 + $0x78] sm:$0xff]   ;;  %s4869_s16 = sshll.u32 %s6931_s17, 2 }
  0x12   : > { %s4845_s19 = scalar_lea.vmem %s6632_s0, %s4836_s12  ;;  %v4426_v14 = vld [vmem:[%s6633_s1 + $0x30] sm:$0xff]   ;;  %v4428_v16 = vld [vmem:[%s6633_s1 + $0x38] sm:$0xff]   ;;  %s4876_s21 = scalar_lea.vmem %s6636_s4, %s4869_s16 }
  0x13   : > { %4072 = vmatpush3.bf16.msra.mxu0 %v4416_v3  ;;  %v4431_v11 = vld [vmem:[%s4845_s19 + $0x4] ss:$8 sps:$4 sm:$0xff]   ;;  %v4429_v17 = vld [vmem:[%s4845_s19] ss:$8 sps:$4 sm:$0xff]   ;;  %v4432_v18 = vld [vmem:[%s4845_s19 + $0x14] ss:$8 sps:$4 sm:$0xff]   ;;  %s4921_s24 = scalar_lea.vmem %s6635_s3, %s4836_s12  ;;  %s6289_s23 = scalar_lea.vmem %s6641_s9, %s4869_s16 }
  0x14   : > { %4073 = vmatprep.subr.bf16.mxu0 %v4417_v4  ;;  %810 = vmatprep.mubr.bf16.mxu0 %v4431_v11  ;;  %v3991_v19 = vld [vmem:[%s4876_s21] sm:$0xff]   ;;  %v4054_v20 = vld [vmem:[%s4876_s21 + $0x8] sm:$0xff]   ;;  %v4055_v25 = vld [vmem:[%s4876_s21 + $0x10] sm:$0xff]   ;;  %s4741_s17 = smov 40   ;;  %s6383_s26 = scalar_lea.vmem %s6642_s10, %s4869_s16 }
  0x15   : > { %v3992_v21 = vunpack.c.l.bf16 %v3991_v19  ;;  %v3993_v22 = vunpack.c.h.bf16 %v3991_v19  ;;  %v3996_v23 = vunpack.c.l.bf16 %v4054_v20  ;;  %v3997_v24 = vunpack.c.h.bf16 %v4054_v20  ;;  %v4056_v26 = vld [vmem:[%s4876_s21 + $0x18] sm:$0xff]   ;;  %v4057_v31 = vld [vmem:[%s4876_s21 + $0x20] sm:$0xff]   ;;  %v4058_v34 = vld [vmem:[%s4876_s21 + $0x28] sm:$0xff]  }
  0x16   : > { %v4000_v27 = vunpack.c.l.bf16 %v4055_v25  ;;  %v4001_v28 = vunpack.c.h.bf16 %v4055_v25  ;;  %v4004_v29 = vunpack.c.l.bf16 %v4056_v26  ;;  %v4005_v30 = vunpack.c.h.bf16 %v4056_v26  ;;  %v4434_v35 = vld [vmem:[%s4845_s19 + $0x10] ss:$8 sps:$4 sm:$0xff]   ;;  %v4435_v39 = vld [vmem:[%s4845_s19 + $0x24] ss:$8 sps:$4 sm:$0xff]   ;;  %v4437_v53 = vld [vmem:[%s4845_s19 + $0x20] ss:$8 sps:$4 sm:$0xff]  }
  0x17   : > { %4074 = vmatpush3.bf16.msra.mxu0 %v4418_v5  ;;  %v4333_v32 = vpack.i.bf16 %v3993_v22, %v3992_v21  ;;  %v4338_v33 = vpack.i.bf16 %v3997_v24, %v3996_v23  ;;  %v4008_v37 = vunpack.c.l.bf16 %v4057_v31  ;;  %v4009_v38 = vunpack.c.h.bf16 %v4057_v31  ;;  %v4059_v43 = vld [vmem:[%s4876_s21 + $0x30] sm:$0xff]   ;;  %v4060_v44 = vld [vmem:[%s4876_s21 + $0x38] sm:$0xff]   ;;  %v4061_v51 = vld [vmem:[%s4876_s21 + $0x40] sm:$0xff]  }
  0x18   : > { %4075 = vmatprep.subr.bf16.mxu0 %v4419_v6  ;;  %v4343_v36 = vpack.i.bf16 %v4001_v28, %v4000_v27  ;;  %v4348_v40 = vpack.i.bf16 %v4005_v30, %v4004_v29  ;;  %v4012_v41 = vunpack.c.l.bf16 %v4058_v34  ;;  %v4013_v42 = vunpack.c.h.bf16 %v4058_v34  ;;  %v4062_v52 = vld [vmem:[%s4876_s21 + $0x48] sm:$0xff]   ;;  %v4438_v57 = vld [vmem:[%s4845_s19 + $0x34] ss:$8 sps:$4 sm:$0xff]   ;;  %v4065_v5 = vld [vmem:[%s4876_s21 + $0x60] sm:$0xff]  }
  0x19   : > { %4334 = vrot.lane.b32.xlu0 %v4333_v32, %s4741_s17  ;;  %4339 = vrot.lane.b32.xlu1 %v4338_v33, %s4741_s17  ;;  %v4353_v45 = vpack.i.bf16 %v4009_v38, %v4008_v37  ;;  %v4016_v46 = vunpack.c.l.bf16 %v4059_v43  ;;  %v4017_v47 = vunpack.c.h.bf16 %v4059_v43  ;;  %v4020_v49 = vunpack.c.l.bf16 %v4060_v44  ;;  %v4063_v61 = vld [vmem:[%s4876_s21 + $0x50] sm:$0xff]   ;;  %v4064_v62 = vld [vmem:[%s4876_s21 + $0x58] sm:$0xff]  }
  0x1a   : > { %v4358_v48 = vpack.i.bf16 %v4013_v42, %v4012_v41  ;;  %v4021_v50 = vunpack.c.h.bf16 %v4060_v44  ;;  %v4024_v55 = vunpack.c.l.bf16 %v4061_v51  ;;  %v4025_v56 = vunpack.c.h.bf16 %v4061_v51  ;;  %v4066_v6 = vld [vmem:[%s4876_s21 + $0x68] sm:$0xff]   ;;  %v4444_v25 = vld [vmem:[%s4845_s19 + $0x54] ss:$8 sps:$4 sm:$0xff]   ;;  %v1163_v27 = vld [vmem:[%s4921_s24] sm:$0xff] }
  0x1b   : > { %4076 = vmatpush3.bf16.msra.mxu0 %v4420_v7  ;;  %v4363_v54 = vpack.i.bf16 %v4017_v47, %v4016_v46  ;;  %v4028_v59 = vunpack.c.l.bf16 %v4062_v52  ;;  %v4029_v60 = vunpack.c.h.bf16 %v4062_v52  ;;  %v4032_v0 = vunpack.c.l.bf16 %v4063_v61  ;;  %v4440_v7 = vld [vmem:[%s4845_s19 + $0x30] ss:$8 sps:$4 sm:$0xff]   ;;  %v4441_v11 = vld [vmem:[%s4845_s19 + $0x44] ss:$8 sps:$4 sm:$0xff]   ;;  %v4443_v23 = vld [vmem:[%s4845_s19 + $0x40] ss:$8 sps:$4 sm:$0xff]  }
  0x1c   : > { %4077 = vmatprep.subr.bf16.mxu0 %v4421_v8  ;;  %v4368_v58 = vpack.i.bf16 %v4021_v50, %v4020_v49  ;;  %v4373_v63 = vpack.i.bf16 %v4025_v56, %v4024_v55  ;;  %v4033_v1 = vunpack.c.h.bf16 %v4063_v61  ;;  %v4036_v3 = vunpack.c.l.bf16 %v4064_v62  ;;  %v1164_v28 = vld [vmem:[%s4921_s24 + $0x8] sm:$0xff]  ;;  %v4446_v29 = vld [vmem:[%s4845_s19 + $0x50] ss:$8 sps:$4 sm:$0xff]   ;;  %v1167_v33 = vld [vmem:[%s4921_s24 + $0x20] sm:$0xff] }
  0x1d   : > { %4344 = vrot.lane.b32.xlu0 %v4343_v36, %s4741_s17  ;;  %4349 = vrot.lane.b32.xlu1 %v4348_v40, %s4741_s17  ;;  %v4378_v2 = vpack.i.bf16 %v4029_v60, %v4028_v59  ;;  %v4037_v4 = vunpack.c.h.bf16 %v4064_v62  ;;  %v4447_v30 = vld [vmem:[%s4845_s19 + $0x64] ss:$8 sps:$4 sm:$0xff]   ;;  %v1166_v31 = vld [vmem:[%s4921_s24 + $0x18] sm:$0xff] }
  0x1e   : > { %v4383_v8 = vpack.i.bf16 %v4033_v1, %v4032_v0  ;;  %v1165_v32 = vld [vmem:[%s4921_s24 + $0x10] sm:$0xff]  ;;  %v1168_v34 = vld [vmem:[%s4921_s24 + $0x28] sm:$0xff]  ;;  %v1170_v37 = vld [vmem:[%s4921_s24 + $0x38] sm:$0xff] }
  0x1f   : > { %4078 = vmatpush3.bf16.msra.mxu0 %v4422_v9  ;;  %v4040_v9 = vunpack.c.l.bf16 %v4065_v5  ;;  %v4450_v36 = vld [vmem:[%s4845_s19 + $0x74] ss:$8 sps:$4 sm:$0xff]   ;;  %v1172_v40 = vld [vmem:[%s4921_s24 + $0x48] sm:$0xff]  ;;  %v4452_v41 = vld [vmem:[%s4845_s19 + $0x70] ss:$8 sps:$4 sm:$0xff]  }
  0x20   : > { %4079 = vmatprep.subr.bf16.mxu0 %v4423_v10  ;;  %v4041_v10 = vunpack.c.h.bf16 %v4065_v5  ;;  %v1169_v38 = vld [vmem:[%s4921_s24 + $0x30] sm:$0xff]  ;;  %v4453_v42 = vld [vmem:[%s4845_s19 + $0x84] ss:$8 sps:$4 sm:$0xff]   ;;  %v1174_v43 = vld [vmem:[%s4921_s24 + $0x58] sm:$0xff] }
  0x21   : > { %4354 = vrot.lane.b32.xlu0 %v4353_v45, %s4741_s17  ;;  %4359 = vrot.lane.b32.xlu1 %v4358_v48, %s4741_s17  ;;  %v1173_v44 = vld [vmem:[%s4921_s24 + $0x50] sm:$0xff]  ;;  %v1175_v45 = vld [vmem:[%s4921_s24 + $0x60] sm:$0xff] }
  0x22   : > { %v1176_v46 = vld [vmem:[%s4921_s24 + $0x68] sm:$0xff]  ;;  %v4456_v48 = vld [vmem:[%s4845_s19 + $0x94] ss:$8 sps:$4 sm:$0xff]   ;;  %v4458_v51 = vld [vmem:[%s4845_s19 + $0x90] ss:$8 sps:$4 sm:$0xff]  }
  0x23   : > { %4080 = vmatpush3.bf16.msra.mxu0 %v4424_v12  ;;  %v4388_v12 = vpack.i.bf16 %v4037_v4, %v4036_v3  ;;  %v4455_v47 = vld [vmem:[%s4845_s19 + $0x80] ss:$8 sps:$4 sm:$0xff]   ;;  %v1178_v49 = vld [vmem:[%s4921_s24 + $0x78] sm:$0xff]  ;;  %v1177_v50 = vld [vmem:[%s4921_s24 + $0x70] sm:$0xff] }
  0x24   : > { %4081 = vmatprep.subr.bf16.mxu0 %v4425_v13  ;;  %v4044_v13 = vunpack.c.l.bf16 %v4066_v6  ;;  %v4459_v52 = vld [vmem:[%s4845_s19 + $0xa4] ss:$8 sps:$4 sm:$0xff]   ;;  %v4464_v55 = vld [vmem:[%s4845_s19 + $0xb0] ss:$8 sps:$4 sm:$0xff]   ;;  %v4473_v61 = vld [vmem:[%s4845_s19 + $0xe0] ss:$8 sps:$4 sm:$0xff]  }
  0x25   : > { %4364 = vrot.lane.b32.xlu0 %v4363_v54, %s4741_s17  ;;  %4369 = vrot.lane.b32.xlu1 %v4368_v58, %s4741_s17  ;;  %v4462_v54 = vld [vmem:[%s4845_s19 + $0xb4] ss:$8 sps:$4 sm:$0xff]   ;;  %v4465_v56 = vld [vmem:[%s4845_s19 + $0xc4] ss:$8 sps:$4 sm:$0xff]  }
  0x26   : > { %v4468_v58 = vld [vmem:[%s4845_s19 + $0xd4] ss:$8 sps:$4 sm:$0xff]   ;;  %v4470_v59 = vld [vmem:[%s4845_s19 + $0xd0] ss:$8 sps:$4 sm:$0xff]   ;;  %v4471_v60 = vld [vmem:[%s4845_s19 + $0xe4] ss:$8 sps:$4 sm:$0xff]  }
  0x27   : > { %4082 = vmatpush3.bf16.msra.mxu0 %v4426_v14  ;;  %v4045_v14 = vunpack.c.h.bf16 %v4066_v6  ;;  %v4474_v62 = vld [vmem:[%s4845_s19 + $0xf4] ss:$8 sps:$4 sm:$0xff]   ;;  %v4981_v1 = vld [vmem:[%s6634_s2] ss:$0 sm:$0xff] }
  0x28   : > { %4083 = vmatprep.subr.bf16.mxu0 %v4427_v15  ;;  %v4067_v15 = vld [vmem:[%s4876_s21 + $0x70] sm:$0xff]  }
  0x29   : > { %4374 = vrot.lane.b32.xlu0 %v4373_v63, %s4741_s17  ;;  %4379 = vrot.lane.b32.xlu1 %v4378_v2, %s4741_s17  ;;  %v4049_v19 = vunpack.c.h.bf16 %v4067_v15  ;;  %v4398_v20 = vpack.i.bf16 %v4045_v14, %v4044_v13  ;;  %v4476_v63 = vld [vmem:[%s4845_s19 + $0xf0] ss:$8 sps:$4 sm:$0xff]  }
  0x2b   : > { %4084 = vmatpush3.bf16.msra.mxu0 %v4428_v16  ;;  %v4068_v16 = vld [vmem:[%s4876_s21 + $0x78] sm:$0xff]   ;;  %s6130_s21 = scalar_lea.vmem %s6640_s8, %s4836_s12  ;;  %s4746_s12 = smov 72  }
  0x2c   : > { %v4052_v21 = vunpack.c.l.bf16 %v4068_v16  ;;  %v4053_v22 = vunpack.c.h.bf16 %v4068_v16 }
  0x2d   : > { %4384 = vrot.lane.b32.xlu0 %v4383_v8, %s4741_s17  ;;  %4389 = vrot.lane.b32.xlu1 %v4388_v12, %s4741_s17 }
  0x2e   : > { %811 = vmatmul.mubr.bf16.vlgmr.msra.gmra.mrb[0].mxu0 %v4429_v17  ;;  %v4393_v17 = vpack.i.bf16 %v4041_v10, %v4040_v9  ;;  %v4408_v26 = vpack.i.bf16 %v4053_v22, %v4052_v21 }
  0x2f   : > { %818 = vmatprep.mubr.bf16.mxu0 %v4432_v18  ;;  %v4048_v18 = vunpack.c.l.bf16 %v4067_v15 }
  0x31   : > { %4394 = vrot.lane.b32.xlu0 %v4393_v17, %s4741_s17  ;;  %v4403_v24 = vpack.i.bf16 %v4049_v19, %v4048_v18  ;;  %4399 = vrot.lane.b32.xlu1 %v4398_v20, %s4741_s17 }
  0x35   : > { %4404 = vrot.lane.b32.xlu0 %v4403_v24, %s4741_s17  ;;  %4409 = vrot.lane.b32.xlu1 %v4408_v26, %s4741_s17 }
  0x36   : > { %819 = vmatmul.mubr.bf16.gmra.mrb[4].mxu0 %v4434_v35  ;;  %v4449_v35 = vld [vmem:[%s4845_s19 + $0x60] ss:$8 sps:$4 sm:$0xff]  }
  0x37   : > { %826 = vmatprep.mubr.bf16.mxu0 %v4435_v39  ;;  %v1171_v39 = vld [vmem:[%s4921_s24 + $0x40] sm:$0xff] }
  0x39   : > { %1227 = vrot.lane.b32.xlu0 %v1163_v27, %s4742_s25  ;;  %1229 = vrot.lane.b32.xlu1 %v1164_v28, %s4742_s25 }
  0x3d   : > { %1233 = vrot.lane.b32.xlu0 %v1166_v31, %s4742_s25  ;;  %1231 = vrot.lane.b32.xlu1 %v1165_v32, %s4742_s25 }
  0x3e   : > { %827 = vmatmul.mubr.bf16.gmra.mrb[8].mxu0 %v4437_v53  ;;  %v4461_v53 = vld [vmem:[%s4845_s19 + $0xa0] ss:$8 sps:$4 sm:$0xff]  }
  0x3f   : > { %834 = vmatprep.mubr.bf16.mxu0 %v4438_v57  ;;  %v4467_v57 = vld [vmem:[%s4845_s19 + $0xc0] ss:$8 sps:$4 sm:$0xff]   ;;  %s4743_s19 = smov 112  }
  0x41   : > { %1235 = vrot.lane.b32.xlu0 %v1167_v33, %s4742_s25  ;;  %1237 = vrot.lane.b32.xlu1 %v1168_v34, %s4742_s25 }
  0x45   : > { %1241 = vrot.lane.b32.xlu0 %v1170_v37, %s4742_s25  ;;  %1239 = vrot.lane.b32.xlu1 %v1169_v38, %s4742_s25 }
  0x46   : > { %835 = vmatmul.mubr.bf16.gmra.mrb[12].mxu0 %v4440_v7 }
  0x47   : > { %842 = vmatprep.mubr.bf16.mxu0 %v4441_v11 }
  0x49   : > { %1243 = vrot.lane.b32.xlu0 %v1171_v39, %s4742_s25  ;;  %1245 = vrot.lane.b32.xlu1 %v1172_v40, %s4742_s25 }
  0x4d   : > { %1249 = vrot.lane.b32.xlu0 %v1174_v43, %s4742_s25  ;;  %1247 = vrot.lane.b32.xlu1 %v1173_v44, %s4742_s25 }
  0x4e   : > { %843 = vmatmul.mubr.bf16.gmra.mrb[16].mxu0 %v4443_v23 }
  0x4f   : > { %850 = vmatprep.mubr.bf16.mxu0 %v4444_v25 }
  0x51   : > { %1251 = vrot.lane.b32.xlu0 %v1175_v45, %s4742_s25  ;;  %1253 = vrot.lane.b32.xlu1 %v1176_v46, %s4742_s25 }
  0x55   : > { %1257 = vrot.lane.b32.xlu0 %v1178_v49, %s4742_s25  ;;  %1255 = vrot.lane.b32.xlu1 %v1177_v50, %s4742_s25 }
  0x56   : > { %851 = vmatmul.mubr.bf16.gmra.mrb[20].mxu0 %v4446_v29 }
  0x57   : > { %858 = vmatprep.mubr.bf16.mxu0 %v4447_v30 }
  0x5e   : > { %859 = vmatmul.mubr.bf16.gmra.mrb[24].mxu0 %v4449_v35 }
  0x5f   : > { %866 = vmatprep.mubr.bf16.mxu0 %v4450_v36 }
  0x66   : > { %867 = vmatmul.mubr.bf16.gmra.mrb[28].mxu0 %v4452_v41 }
  0x67   : > { %874 = vmatprep.mubr.bf16.mxu0 %v4453_v42 }
  0x6e   : > { %875 = vmatmul.mubr.bf16.gmra.mrb[32].mxu0 %v4455_v47 }
  0x6f   : > { %882 = vmatprep.mubr.bf16.mxu0 %v4456_v48 }
  0x76   : > { %883 = vmatmul.mubr.bf16.gmra.mrb[36].mxu0 %v4458_v51 }
  0x77   : > { %890 = vmatprep.mubr.bf16.mxu0 %v4459_v52 }
  0x7e   : > { %891 = vmatmul.mubr.bf16.gmra.mrb[40].mxu0 %v4461_v53 }
  0x7f   : > { %898 = vmatprep.mubr.bf16.mxu0 %v4462_v54 }
  0x86   : > { %899 = vmatmul.mubr.bf16.gmra.mrb[44].mxu0 %v4464_v55 }
  0x87   : > { %906 = vmatprep.mubr.bf16.mxu0 %v4465_v56 }
  0x8e   : > { %907 = vmatmul.mubr.bf16.gmra.mrb[48].mxu0 %v4467_v57 }
  0x8f   : > { %914 = vmatprep.mubr.bf16.mxu0 %v4468_v58 }
  0x96   : > { %915 = vmatmul.mubr.bf16.gmra.mrb[52].mxu0 %v4470_v59 }
  0x97   : > { %922 = vmatprep.mubr.bf16.mxu0 %v4471_v60 }
  0x9e   : > { %923 = vmatmul.mubr.bf16.gmra.mrb[56].mxu0 %v4473_v61 }
  0x9f   : > { %930 = vmatprep.mubr.bf16.mxu0 %v4474_v62 }
  0xa6   : > { %931 = vmatmul.mubr.bf16.gmra.mrb[60].mxu0 %v4476_v63  ;;  %v5069_v63 = vpop.permute.xlu0 %4334 }
 0x101   : > { %v4085_v0 = vpop.f32.mrb[0].mxu0 }
 0x102   : > { %v4086_v2 = vpop.f32.mrb[1].mxu0 }
 0x103   : > { %v4087_v3 = vadd.f32 %v4086_v2, %v4085_v0  ;;  %v4088_v4 = vpop.f32.mrb[2].mxu0 }
 0x104   : > { %v4089_v5 = vpop.f32.mrb[3].mxu0 }
 0x105   : > { %v4984_v6 = vadd.f32 %v4087_v3, %v4981_v1  ;;  %v4090_v7 = vadd.f32 %v4089_v5, %v4088_v4 }
 0x107   : > { %4477 = vtanh.f32 %v4984_v6  ;;  %v4988_v8 = vadd.f32 %v4090_v7, %v4981_v1 }
 0x109   : > { %v4091_v9 = vpop.f32.mrb[4].mxu0  ;;  %4479 = vtanh.f32 %v4988_v8 }
 0x10a   : > { %v4092_v10 = vpop.f32.mrb[5].mxu0 }
 0x10b   : > { %v4093_v11 = vadd.f32 %v4092_v10, %v4091_v9  ;;  %v4094_v12 = vpop.f32.mrb[6].mxu0  ;;  %v5082_v9 = vpop.permute.xlu0 %4344 }
 0x10c   : > { %v4095_v13 = vpop.f32.mrb[7].mxu0 }
 0x10d   : > { %v4992_v14 = vadd.f32 %v4093_v11, %v4981_v1  ;;  %v4096_v15 = vadd.f32 %v4095_v13, %v4094_v12  ;;  %v5087_v11 = vpop.permute.xlu1 %4339 }
 0x10f   : > { %4481 = vtanh.f32 %v4992_v14  ;;  %v4996_v16 = vadd.f32 %v4096_v15, %v4981_v1 }
 0x111   : > { %v4998_v17 = vpop.eup %4477  ;;  %v4097_v18 = vpop.f32.mrb[8].mxu0  ;;  %4483 = vtanh.f32 %v4996_v16 }
 0x112   : > { %6730 = vst [vmem:[#allocation2_spill] sm:$0xff] %v4998_v17  ;;  %v4098_v19 = vpop.f32.mrb[9].mxu0  ;;  %1387 = vrot.lane.b32.xlu0 %v4998_v17, %s4743_s19 }
 0x113   : > { %v4099_v20 = vadd.f32 %v4098_v19, %v4097_v18  ;;  %v4100_v21 = vpop.f32.mrb[10].mxu0  ;;  %v5003_v23 = vpop.eup %4479 }
 0x114   : > { %v4101_v22 = vpop.f32.mrb[11].mxu0  ;;  %6731 = vst [vmem:[#allocation3_spill] sm:$0xff] %v5003_v23 }
 0x115   : > { %v5006_v24 = vadd.f32 %v4099_v20, %v4981_v1  ;;  %v4102_v25 = vadd.f32 %v4101_v22, %v4100_v21  ;;  %v5100_v22 = vpop.permute.xlu0 %4354 }
 0x116   : > { %1389 = vrot.lane.b32.xlu0 %v5003_v23, %s4743_s19 }
 0x117   : > { %4485 = vtanh.f32 %v5006_v24  ;;  %v5012_v26 = vadd.f32 %v4102_v25, %v4981_v1 }
 0x119   : > { %v5014_v27 = vpop.eup %4481  ;;  %v4103_v28 = vpop.f32.mrb[12].mxu0  ;;  %4487 = vtanh.f32 %v5012_v26 }
 0x11a   : > { %6732 = vst [vmem:[#allocation4_spill] sm:$0xff] %v5014_v27  ;;  %v4104_v29 = vpop.f32.mrb[13].mxu0  ;;  %1391 = vrot.lane.b32.xlu1 %v5014_v27, %s4743_s19 }
 0x11b   : > { %v4105_v30 = vadd.f32 %v4104_v29, %v4103_v28  ;;  %v4106_v31 = vpop.f32.mrb[14].mxu0  ;;  %v5019_v33 = vpop.eup %4483 }
 0x11c   : > { %v4107_v32 = vpop.f32.mrb[15].mxu0  ;;  %6733 = vst [vmem:[#allocation5_spill] sm:$0xff] %v5019_v33  ;;  %v5104_v28 = vpop.permute.xlu1 %4349 }
 0x11d   : > { %v5022_v34 = vadd.f32 %v4105_v30, %v4981_v1  ;;  %v4108_v35 = vadd.f32 %v4107_v32, %v4106_v31 }
 0x11e   : > { %1393 = vrot.lane.b32.xlu1 %v5019_v33, %s4743_s19 }
 0x11f   : > { %4489 = vtanh.f32 %v5022_v34  ;;  %v5028_v36 = vadd.f32 %v4108_v35, %v4981_v1 }
 0x121   : > { %v5030_v37 = vpop.eup %4485  ;;  %v4109_v38 = vpop.f32.mrb[16].mxu0  ;;  %4491 = vtanh.f32 %v5028_v36 }
 0x122   : > { %6734 = vst [vmem:[#allocation6_spill] sm:$0xff] %v5030_v37  ;;  %v4110_v39 = vpop.f32.mrb[17].mxu0  ;;  %1395 = vrot.lane.b32.xlu0 %v5030_v37, %s4743_s19 }
 0x123   : > { %v4111_v40 = vadd.f32 %v4110_v39, %v4109_v38  ;;  %v4112_v41 = vpop.f32.mrb[18].mxu0  ;;  %v5035_v42 = vpop.eup %4487 }
 0x124   : > { %6735 = vst [vmem:[#allocation7_spill] sm:$0xff] %v5035_v42  ;;  %v4113_v43 = vpop.f32.mrb[19].mxu0  ;;  %1397 = vrot.lane.b32.xlu1 %v5035_v42, %s4743_s19 }
 0x125   : > { %v5038_v44 = vadd.f32 %v4111_v40, %v4981_v1  ;;  %v4114_v45 = vadd.f32 %v4113_v43, %v4112_v41  ;;  %v5116_v41 = vpop.permute.xlu0 %4364  ;;  %v5118_v43 = vpop.permute.xlu1 %4359 }
 0x127   : > { %4493 = vtanh.f32 %v5038_v44  ;;  %v5044_v46 = vadd.f32 %v4114_v45, %v4981_v1 }
 0x129   : > { %v5046_v47 = vpop.eup %4489  ;;  %v4115_v48 = vpop.f32.mrb[20].mxu0  ;;  %4495 = vtanh.f32 %v5044_v46 }
 0x12a   : > { %6736 = vst [vmem:[#allocation8_spill] sm:$0xff] %v5046_v47  ;;  %v4116_v49 = vpop.f32.mrb[21].mxu0  ;;  %1399 = vrot.lane.b32.xlu0 %v5046_v47, %s4743_s19 }
 0x12b   : > { %v4117_v50 = vadd.f32 %v4116_v49, %v4115_v48  ;;  %v4118_v51 = vpop.f32.mrb[22].mxu0  ;;  %v5051_v52 = vpop.eup %4491 }
 0x12c   : > { %6737 = vst [vmem:[#allocation9_spill] sm:$0xff] %v5051_v52  ;;  %v4119_v53 = vpop.f32.mrb[23].mxu0  ;;  %1401 = vrot.lane.b32.xlu1 %v5051_v52, %s4743_s19 }
 0x12d   : > { %v5054_v54 = vadd.f32 %v4117_v50, %v4981_v1  ;;  %v4120_v55 = vadd.f32 %v4119_v53, %v4118_v51 }
 0x12f   : > { %4497 = vtanh.f32 %v5054_v54  ;;  %v5060_v56 = vadd.f32 %v4120_v55, %v4981_v1 }
 0x131   : > { %v5062_v57 = vpop.eup %4493  ;;  %v4121_v58 = vpop.f32.mrb[24].mxu0  ;;  %4499 = vtanh.f32 %v5060_v56 }
 0x132   : > { %6738 = vst [vmem:[#allocation10_spill] sm:$0xff] %v5062_v57  ;;  %v4122_v59 = vpop.f32.mrb[25].mxu0  ;;  %1403 = vrot.lane.b32.xlu0 %v5062_v57, %s4743_s19 }
 0x133   : > { %v4123_v60 = vadd.f32 %v4122_v59, %v4121_v58  ;;  %v4124_v61 = vpop.f32.mrb[26].mxu0  ;;  %v5067_v62 = vpop.eup %4495 }
 0x134   : > { %6739 = vst [vmem:[#allocation11_spill] sm:$0xff] %v5067_v62  ;;  %v4125_v0 = vpop.f32.mrb[27].mxu0  ;;  %1405 = vrot.lane.b32.xlu1 %v5067_v62, %s4743_s19  ;;  %v5131_v58 = vpop.permute.xlu0 %4374 }
 0x135   : > { %v5072_v2 = vadd.f32 %v4123_v60, %v4981_v1  ;;  %v4126_v3 = vadd.f32 %v4125_v0, %v4124_v61  ;;  %v5133_v60 = vpop.permute.xlu1 %4369 }
 0x137   : > { %4501 = vtanh.f32 %v5072_v2  ;;  %v5078_v4 = vadd.f32 %v4126_v3, %v4981_v1 }
 0x139   : > { %v5080_v5 = vpop.eup %4497  ;;  %v4127_v7 = vpop.f32.mrb[28].mxu0  ;;  %4503 = vtanh.f32 %v5078_v4 }
 0x13a   : > { %6740 = vst [vmem:[#allocation12_spill] sm:$0xff] %v5080_v5  ;;  %v4128_v10 = vpop.f32.mrb[29].mxu0  ;;  %1407 = vrot.lane.b32.xlu0 %v5080_v5, %s4743_s19 }
 0x13b   : > { %v4129_v12 = vadd.f32 %v4128_v10, %v4127_v7  ;;  %v4130_v13 = vpop.f32.mrb[30].mxu0  ;;  %v5089_v15 = vpop.eup %4499 }
 0x13c   : > { %6741 = vst [vmem:[#allocation13_spill] sm:$0xff] %v5089_v15  ;;  %v4131_v18 = vpop.f32.mrb[31].mxu0  ;;  %1409 = vrot.lane.b32.xlu1 %v5089_v15, %s4743_s19 }
 0x13d   : > { %v5092_v19 = vadd.f32 %v4129_v12, %v4981_v1  ;;  %v4132_v20 = vadd.f32 %v4131_v18, %v4130_v13  ;;  %v5146_v12 = vpop.permute.xlu0 %4384  ;;  %v5151_v18 = vpop.permute.xlu1 %4379 }
 0x13f   : > { %4505 = vtanh.f32 %v5092_v19  ;;  %v5098_v21 = vadd.f32 %v4132_v20, %v4981_v1 }
 0x141   : > { %v5102_v25 = vpop.eup %4501  ;;  %v4133_v29 = vpop.f32.mrb[32].mxu0  ;;  %4507 = vtanh.f32 %v5098_v21 }
 0x142   : > { %6742 = vst [vmem:[#allocation14_spill] sm:$0xff] %v5102_v25  ;;  %v4134_v30 = vpop.f32.mrb[33].mxu0  ;;  %1411 = vrot.lane.b32.xlu0 %v5102_v25, %s4743_s19 }
 0x143   : > { %v4135_v31 = vadd.f32 %v4134_v30, %v4133_v29  ;;  %v4136_v32 = vpop.f32.mrb[34].mxu0  ;;  %v5109_v35 = vpop.eup %4503 }
 0x144   : > { %6743 = vst [vmem:[#allocation15_spill] sm:$0xff] %v5109_v35  ;;  %v4137_v38 = vpop.f32.mrb[35].mxu0  ;;  %1413 = vrot.lane.b32.xlu1 %v5109_v35, %s4743_s19 }
 0x145   : > { %v5112_v39 = vadd.f32 %v4135_v31, %v4981_v1  ;;  %v4138_v40 = vadd.f32 %v4137_v38, %v4136_v32 }
 0x147   : > { %4509 = vtanh.f32 %v5112_v39  ;;  %v5122_v45 = vadd.f32 %v4138_v40, %v4981_v1 }
 0x149   : > { %v5124_v48 = vpop.eup %4505  ;;  %v4139_v49 = vpop.f32.mrb[36].mxu0  ;;  %4511 = vtanh.f32 %v5122_v45 }
 0x14a   : > { %6744 = vst [vmem:[#allocation16_spill] sm:$0xff] %v5124_v48  ;;  %v4140_v50 = vpop.f32.mrb[37].mxu0  ;;  %1415 = vrot.lane.b32.xlu0 %v5124_v48, %s4743_s19 }
 0x14b   : > { %v4141_v51 = vadd.f32 %v4140_v50, %v4139_v49  ;;  %v4142_v53 = vpop.f32.mrb[38].mxu0  ;;  %v5129_v55 = vpop.eup %4507 }
 0x14c   : > { %6745 = vst [vmem:[#allocation17_spill] sm:$0xff] %v5129_v55  ;;  %v4143_v59 = vpop.f32.mrb[39].mxu0  ;;  %1417 = vrot.lane.b32.xlu1 %v5129_v55, %s4743_s19  ;;  %v5164_v49 = vpop.permute.xlu0 %4394 }
 0x14d   : > { %v5136_v61 = vadd.f32 %v4141_v51, %v4981_v1  ;;  %v4144_v0 = vadd.f32 %v4143_v59, %v4142_v53  ;;  %v5168_v51 = vpop.permute.xlu1 %4389 }
 0x14f   : > { %4513 = vtanh.f32 %v5136_v61  ;;  %v5142_v3 = vadd.f32 %v4144_v0, %v4981_v1 }
 0x151   : > { %v5144_v7 = vpop.eup %4509  ;;  %v4145_v10 = vpop.f32.mrb[40].mxu0  ;;  %4515 = vtanh.f32 %v5142_v3 }
 0x152   : > { %6746 = vst [vmem:[#allocation18_spill] sm:$0xff] %v5144_v7  ;;  %v4146_v13 = vpop.f32.mrb[41].mxu0  ;;  %1419 = vrot.lane.b32.xlu0 %v5144_v7, %s4743_s19 }
 0x153   : > { %v4147_v20 = vadd.f32 %v4146_v13, %v4145_v10  ;;  %v4148_v29 = vpop.f32.mrb[42].mxu0  ;;  %v5153_v30 = vpop.eup %4511 }
 0x154   : > { %6747 = vst [vmem:[#allocation19_spill] sm:$0xff] %v5153_v30  ;;  %v4149_v31 = vpop.f32.mrb[43].mxu0  ;;  %1421 = vrot.lane.b32.xlu1 %v5153_v30, %s4743_s19  ;;  %v5182_v30 = vpop.permute.xlu1 %4399 }
 0x155   : > { %v5156_v32 = vadd.f32 %v4147_v20, %v4981_v1  ;;  %v4150_v38 = vadd.f32 %v4149_v31, %v4148_v29 }
 0x157   : > { %4517 = vtanh.f32 %v5156_v32  ;;  %v5162_v40 = vadd.f32 %v4150_v38, %v4981_v1  ;;  %v5180_v38 = vpop.permute.xlu0 %4404 }
 0x159   : > { %v5166_v50 = vpop.eup %4513  ;;  %v4151_v53 = vpop.f32.mrb[44].mxu0  ;;  %4519 = vtanh.f32 %v5162_v40 }
 0x15a   : > { %6748 = vst [vmem:[#allocation20_spill] sm:$0xff] %v5166_v50  ;;  %v4152_v59 = vpop.f32.mrb[45].mxu0  ;;  %1423 = vrot.lane.b32.xlu0 %v5166_v50, %s4743_s19  ;;  %v3731_v50 = vmul.f32 -1.442695, %v4984_v6 }
 0x15b   : > { %v4153_v0 = vadd.f32 %v4152_v59, %v4151_v53  ;;  %v4154_v10 = vpop.f32.mrb[46].mxu0  ;;  %v5173_v13 = vpop.eup %4515 }
 0x15c   : > { %6749 = vst [vmem:[#allocation21_spill] sm:$0xff] %v5173_v13  ;;  %v4155_v20 = vpop.f32.mrb[47].mxu0  ;;  %1425 = vrot.lane.b32.xlu1 %v5173_v13, %s4743_s19  ;;  %v5196_v35 = vpop.permute.xlu0 %1227 }
 0x15d   : > { %v5176_v29 = vadd.f32 %v4153_v0, %v4981_v1  ;;  %v4156_v31 = vadd.f32 %v4155_v20, %v4154_v10 }
 0x15f   : > { %4521 = vtanh.f32 %v5176_v29  ;;  %v5186_v55 = vadd.f32 %v4156_v31, %v4981_v1  ;;  %v5198_v31 = vpop.permute.xlu1 %4409 }
 0x161   : > { %v5188_v53 = vpop.eup %4517  ;;  %v4157_v59 = vpop.f32.mrb[48].mxu0  ;;  %4523 = vtanh.f32 %v5186_v55 }
 0x162   : > { %6750 = vst [vmem:[#allocation22_spill] sm:$0xff] %v5188_v53  ;;  %v4158_v0 = vpop.f32.mrb[49].mxu0  ;;  %1427 = vrot.lane.b32.xlu0 %v5188_v53, %s4743_s19  ;;  %4525 = vpow2.f32 %v3731_v50  ;;  %v3732_v53 = vmul.f32 -1.442695, %v4988_v8 }
 0x163   : > { %v4159_v10 = vadd.f32 %v4158_v0, %v4157_v59  ;;  %v4160_v20 = vpop.f32.mrb[50].mxu0  ;;  %v5194_v13 = vpop.eup %4519 }
 0x164   : > { %6751 = vst [vmem:[#allocation23_spill] sm:$0xff] %v5194_v13  ;;  %v4161_v7 = vpop.f32.mrb[51].mxu0  ;;  %1429 = vrot.lane.b32.xlu1 %v5194_v13, %s4743_s19  ;;  %v5209_v59 = vpop.permute.xlu0 %1233 }
 0x165   : > { %v5201_v15 = vadd.f32 %v4159_v10, %v4981_v1  ;;  %v4162_v48 = vadd.f32 %v4161_v7, %v4160_v20  ;;  %6752 = vst [vmem:[#allocation24_spill] sm:$0xff] %v5209_v59  ;;  %v3733_v10 = vmul.f32 -1.442695, %v4992_v14  ;;  %v5218_v50 = vpop.permute.xlu1 %1229  ;;  %v1179_v59 = vld [vmem:[%s4921_s24 + $0x80] sm:$0xff] }
 0x167   : > { %4527 = vtanh.f32 %v5201_v15  ;;  %v5207_v6 = vadd.f32 %v4162_v48, %v4981_v1 }
 0x168   : > { %v5222_v25 = vpop.permute.xlu0 %1235 }
 0x169   : > { %v5211_v0 = vpop.eup %4521  ;;  %v4163_v62 = vpop.f32.mrb[52].mxu0  ;;  %4529 = vtanh.f32 %v5207_v6  ;;  %6755 = vst [vmem:[#allocation27_spill] sm:$0xff] %v5222_v25  ;;  %v1180_v25 = vld [vmem:[%s4921_s24 + $0x88] sm:$0xff] }
 0x16a   : > { %6753 = vst [vmem:[#allocation25_spill] sm:$0xff] %v5211_v0  ;;  %v4164_v7 = vpop.f32.mrb[53].mxu0  ;;  %1431 = vrot.lane.b32.xlu0 %v5211_v0, %s4743_s19  ;;  %4531 = vpow2.f32 %v3732_v53  ;;  %v5229_v5 = vpop.permute.xlu1 %1231  ;;  %v3734_v53 = vmul.f32 -1.442695, %v4996_v16  ;;  %v3735_v16 = vmul.f32 -1.442695, %v5006_v24 }
 0x16b   : > { %v4165_v20 = vadd.f32 %v4164_v7, %v4163_v62  ;;  %v4166_v48 = vpop.f32.mrb[54].mxu0  ;;  %v5220_v13 = vpop.eup %4523  ;;  %4533 = vpow2.f32 %v3733_v10  ;;  %6756 = vst [vmem:[#allocation28_spill] sm:$0xff] %v5229_v5 }
 0x16c   : > { %6754 = vst [vmem:[#allocation26_spill] sm:$0xff] %v5220_v13  ;;  %v4167_v52 = vpop.f32.mrb[55].mxu0  ;;  %1433 = vrot.lane.b32.xlu1 %v5220_v13, %s4743_s19  ;;  %v4526_v7 = vpop.eup %4525 }
 0x16d   : > { %v5225_v8 = vadd.f32 %v4165_v20, %v4981_v1  ;;  %v4168_v14 = vadd.f32 %v4167_v52, %v4166_v48  ;;  %v5235_v0 = vpop.permute.xlu0 %1241  ;;  %v1035_v57 = vadd.f32 1.0, %v4526_v7 }
 0x16e   : > { %6757 = vst [vmem:[#allocation29_spill] sm:$0xff] %v5235_v0  ;;  %v5243_v10 = vpop.permute.xlu1 %1237 }
 0x16f   : > { %4535 = vtanh.f32 %v5225_v8  ;;  %v5233_v62 = vadd.f32 %v4168_v14, %v4981_v1 }
 0x171   : > { %v5237_v42 = vpop.eup %4527  ;;  %v4169_v20 = vpop.f32.mrb[56].mxu0  ;;  %4537 = vtanh.f32 %v5233_v62 }
 0x172   : > { %6758 = vst [vmem:[#allocation30_spill] sm:$0xff] %v5237_v42  ;;  %v4170_v52 = vpop.f32.mrb[57].mxu0  ;;  %1435 = vrot.lane.b32.xlu0 %v5237_v42, %s4743_s19  ;;  %v5247_v33 = vpop.permute.xlu0 %1243  ;;  %4539 = vpow2.f32 %v3734_v53  ;;  %v3736_v53 = vmul.f32 -1.442695, %v5012_v26 }
 0x173   : > { %v4171_v48 = vadd.f32 %v4170_v52, %v4169_v20  ;;  %v4172_v13 = vpop.f32.mrb[58].mxu0  ;;  %v5245_v14 = vpop.eup %4529  ;;  %6760 = vst [vmem:[#allocation32_spill] sm:$0xff] %v5247_v33 }
 0x174   : > { %6759 = vst [vmem:[#allocation31_spill] sm:$0xff] %v5245_v14  ;;  %v4173_v47 = vpop.f32.mrb[59].mxu0  ;;  %1437 = vrot.lane.b32.xlu1 %v5245_v14, %s4743_s19  ;;  %v4532_v42 = vpop.eup %4531 }
 0x175   : > { %v5251_v23 = vadd.f32 %v4171_v48, %v4981_v1  ;;  %v4174_v37 = vadd.f32 %v4173_v47, %v4172_v13  ;;  %v5255_v27 = vpop.permute.xlu1 %1239  ;;  %v4534_v20 = vpop.eup %4533  ;;  %v1036_v13 = vadd.f32 1.0, %v4532_v42 }
 0x176   : > { %6761 = vst [vmem:[#allocation33_spill] sm:$0xff] %v5255_v27  ;;  %v5262_v24 = vpop.permute.xlu0 %1249  ;;  %v1037_v26 = vadd.f32 1.0, %v4534_v20  ;;  %v3738_v20 = vmul.f32 -1.442695, %v5028_v36 }
 0x177   : > { %4541 = vtanh.f32 %v5251_v23  ;;  %v5259_v7 = vadd.f32 %v4174_v37, %v4981_v1  ;;  %6762 = vst [vmem:[#allocation34_spill] sm:$0xff] %v5262_v24 }
 0x178   : > { %4543 = vrcp.f32 %v1035_v57 }
 0x179   : > { %v5264_v52 = vpop.eup %4535  ;;  %4545 = vpow2.f32 %v3735_v16  ;;  %v4175_v47 = vpop.f32.mrb[60].mxu0  ;;  %v3737_v16 = vmul.f32 -1.442695, %v5022_v34 }
 0x17a   : > { %6763 = vst [vmem:[#allocation35_spill] sm:$0xff] %v5264_v52  ;;  %4547 = vtanh.f32 %v5259_v7  ;;  %1439 = vrot.lane.b32.xlu0 %v5264_v52, %s4743_s19  ;;  %v4176_v48 = vpop.f32.mrb[61].mxu0  ;;  %v5269_v14 = vpop.permute.xlu1 %1245 }
 0x17b   : > { %6764 = vst [vmem:[#allocation36_spill] sm:$0xff] %v5269_v14  ;;  %v4177_v37 = vadd.f32 %v4176_v48, %v4175_v47  ;;  %v4178_v17 = vpop.f32.mrb[62].mxu0  ;;  %v5271_v57 = vpop.eup %4537  ;;  %4549 = vpow2.f32 %v3736_v53 }
 0x17c   : > { %6765 = vst [vmem:[#allocation37_spill] sm:$0xff] %v5271_v57  ;;  %v5273_v24 = vpop.permute.xlu0 %1251  ;;  %v4179_v27 = vpop.f32.mrb[63].mxu0  ;;  %1441 = vrot.lane.b32.xlu1 %v5271_v57, %s4743_s19  ;;  %4551 = vrcp.f32 %v1036_v13  ;;  %v3739_v13 = vmul.f32 -1.442695, %v5038_v44 }
 0x17d   : > { %6766 = vst [vmem:[#allocation38_spill] sm:$0xff] %v5273_v24  ;;  %v5277_v42 = vadd.f32 %v4177_v37, %v4981_v1  ;;  %v4180_v52 = vadd.f32 %v4179_v27, %v4178_v17  ;;  %v4540_v0 = vpop.eup %4539 }
 0x17e   : > { %v5286_v53 = vpop.permute.xlu1 %1247  ;;  %v1038_v17 = vadd.f32 1.0, %v4540_v0 }
 0x17f   : > { %4553 = vtanh.f32 %v5277_v42  ;;  %v5283_v47 = vadd.f32 %v4180_v52, %v4981_v1  ;;  %6767 = vst [vmem:[#allocation39_spill] sm:$0xff] %v5286_v53 }
 0x180   : > { %4555 = vrcp.f32 %v1037_v26  ;;  %v5288_v34 = vpop.permute.xlu0 %1257 }
 0x181   : > { %6768 = vst [vmem:[#allocation40_spill] sm:$0xff] %v5288_v34  ;;  %v5290_v48 = vpop.eup %4541  ;;  %4557 = vpow2.f32 %v3737_v16 }
 0x182   : > { %6769 = vst [vmem:[#allocation41_spill] sm:$0xff] %v5290_v48  ;;  %v5292_v37 = vpop.eup %4543  ;;  %4559 = vtanh.f32 %v5283_v47  ;;  %1443 = vrot.lane.b32.xlu0 %v5290_v48, %s4743_s19  ;;  %v5299_v36 = vpop.permute.xlu1 %1253  ;;  %v3740_v48 = vmul.f32 -1.442695, %v5044_v46 }
 0x183   : > { %6770 = vst [vmem:[#allocation42_spill] sm:$0xff] %v5292_v37  ;;  %v4546_v1 = vpop.eup %4545  ;;  %4561 = vpow2.f32 %v3738_v20  ;;  %6772 = vst [vmem:[#allocation44_spill] sm:$0xff] %v5299_v36 }
 0x184   : > { %v5297_v27 = vpop.eup %4547  ;;  %v1388_v52 = vpop.permute.xlu0 %1387  ;;  %4563 = vrcp.f32 %v1038_v17  ;;  %v1039_v16 = vadd.f32 1.0, %v4546_v1 }
 0x185   : > { %6771 = vst [vmem:[#allocation43_spill] sm:$0xff] %v5297_v27  ;;  %1445 = vrot.lane.b32.xlu1 %v5297_v27, %s4743_s19  ;;  %v1483_v26 = vmul.f32 %v5292_v37, %v1388_v52  ;;  %v4550_v0 = vpop.eup %4549  ;;  %4565 = vpow2.f32 %v3739_v13  ;;  %v3741_v52 = vmul.f32 -1.442695, %v5054_v54 }
 0x186   : > { %v5306_v57 = vpop.eup %4551  ;;  %v5309_v20 = vpop.permute.xlu1 %1255  ;;  %v1040_v44 = vadd.f32 1.0, %v4550_v0  ;;  %4567 = vrcp.f32 %v1039_v16  ;;  %v3742_v0 = vmul.f32 -1.442695, %v5060_v56 }
 0x187   : > { %1547 = vrot.lane.b32.xlu0 %v1483_v26, %s4742_s25  ;;  %6773 = vst [vmem:[#allocation45_spill] sm:$0xff] %v5306_v57  ;;  %6774 = vst [vmem:[#allocation46_spill] sm:$0xff] %v5309_v20  ;;  %4569 = vpow2.f32 %v3740_v48 }
 0x188   : > { %v1390_v34 = vpop.permute.xlu0 %1389  ;;  %4571 = vrcp.f32 %v1040_v44 }
 0x189   : > { %v5311_v53 = vpop.eup %4553  ;;  %v1484_v27 = vmul.f32 %v5306_v57, %v1390_v34  ;;  %4573 = vpow2.f32 %v3741_v52 }
 0x18a   : > { %6775 = vst [vmem:[#allocation47_spill] sm:$0xff] %v5311_v53  ;;  %v5314_v24 = vpop.eup %4555 }
 0x18b   : > { %v4558_v17 = vpop.eup %4557  ;;  %1549 = vrot.lane.b32.xlu1 %v1484_v27, %s4742_s25  ;;  %1447 = vrot.lane.b32.xlu0 %v5311_v53, %s4743_s19 }
 0x18c   : > { %v5319_v1 = vpop.eup %4559  ;;  %v1392_v46 = vpop.permute.xlu1 %1391  ;;  %v1041_v34 = vadd.f32 1.0, %v4558_v17 }
 0x18d   : > { %6776 = vst [vmem:[#allocation48_spill] sm:$0xff] %v5319_v1  ;;  %v1485_v13 = vmul.f32 %v5314_v24, %v1392_v46  ;;  %v4562_v26 = vpop.eup %4561  ;;  %v3743_v46 = vmul.f32 -1.442695, %v5072_v2 }
 0x18e   : > { %v5326_v27 = vpop.eup %4563  ;;  %v1042_v53 = vadd.f32 1.0, %v4562_v26  ;;  %4575 = vrcp.f32 %v1041_v34  ;;  %v3744_v26 = vmul.f32 -1.442695, %v5078_v4 }
 0x18f   : > { %1449 = vrot.lane.b32.xlu1 %v5319_v1, %s4743_s19  ;;  %1551 = vrot.lane.b32.xlu0 %v1485_v13, %s4742_s25  ;;  %v4566_v54 = vpop.eup %4565  ;;  %4577 = vpow2.f32 %v3742_v0  ;;  %s4748_s19 = smov 104  }
 0x190   : > { %v1394_v16 = vpop.permute.xlu1 %1393  ;;  %v5331_v44 = vpop.eup %4567  ;;  %4579 = vrcp.f32 %v1042_v53  ;;  %v1043_v56 = vadd.f32 1.0, %v4566_v54 }
 0x191   : > { %v1486_v48 = vmul.f32 %v5326_v27, %v1394_v16  ;;  %6777 = vst [vmem:[#allocation49_spill] sm:$0xff] %v5331_v44  ;;  %v4570_v1 = vpop.eup %4569  ;;  %4581 = vpow2.f32 %v3743_v46 }
 0x192   : > { %v5335_v20 = vpop.eup %4571  ;;  %v1044_v16 = vadd.f32 1.0, %v4570_v1  ;;  %4583 = vrcp.f32 %v1043_v56  ;;  %v3746_v1 = vmul.f32 -1.442695, %v5098_v21 }
 0x193   : > { %1553 = vrot.lane.b32.xlu1 %v1486_v48, %s4742_s25  ;;  %6778 = vst [vmem:[#allocation50_spill] sm:$0xff] %v5335_v20  ;;  %v4574_v53 = vpop.eup %4573  ;;  %4585 = vpow2.f32 %v3744_v26  ;;  %v3745_v48 = vmul.f32 -1.442695, %v5092_v19 }
 0x194   : > { %v1396_v17 = vpop.permute.xlu0 %1395  ;;  %4587 = vrcp.f32 %v1044_v16  ;;  %v3747_v16 = vmul.f32 -1.442695, %v5112_v39 }
 0x195   : > { %v1487_v13 = vmul.f32 %v5331_v44, %v1396_v17  ;;  %4589 = vpow2.f32 %v3745_v48  ;;  %v3748_v48 = vmul.f32 -1.442695, %v5122_v45 }
 0x196   : > { %v1398_v52 = vpop.permute.xlu1 %1397 }
 0x197   : > { %1555 = vrot.lane.b32.xlu0 %v1487_v13, %s4742_s25  ;;  %v1488_v34 = vmul.f32 %v5335_v20, %v1398_v52  ;;  %v1045_v13 = vadd.f32 1.0, %v4574_v53 }
 0x198   : > { %v5341_v2 = vpop.eup %4575 }
 0x199   : > { %1557 = vrot.lane.b32.xlu1 %v1488_v34, %s4742_s25  ;;  %6779 = vst [vmem:[#allocation51_spill] sm:$0xff] %v5341_v2  ;;  %v4578_v17 = vpop.eup %4577  ;;  %4591 = vrcp.f32 %v1045_v13 }
 0x19a   : > { %v5345_v4 = vpop.eup %4579  ;;  %v1046_v56 = vadd.f32 1.0, %v4578_v17  ;;  %4593 = vpow2.f32 %v3746_v1 }
 0x19b   : > { %6780 = vst [vmem:[#allocation52_spill] sm:$0xff] %v5345_v4  ;;  %v4582_v26 = vpop.eup %4581 }
 0x19c   : > { %v1400_v0 = vpop.permute.xlu0 %1399  ;;  %v5351_v19 = vpop.eup %4583  ;;  %4595 = vrcp.f32 %v1046_v56  ;;  %v3749_v56 = vmul.f32 -1.442695, %v5136_v61 }
 0x19d   : > { %v1489_v54 = vmul.f32 %v5341_v2, %v1400_v0  ;;  %6781 = vst [vmem:[#allocation53_spill] sm:$0xff] %v5351_v19  ;;  %v4586_v0 = vpop.eup %4585  ;;  %4597 = vpow2.f32 %v3747_v16  ;;  %v3750_v16 = vmul.f32 -1.442695, %v5142_v3 }
 0x19e   : > { %v1402_v52 = vpop.permute.xlu1 %1401  ;;  %v5355_v21 = vpop.eup %4587  ;;  %v1048_v13 = vadd.f32 1.0, %v4586_v0 }
 0x19f   : > { %1559 = vrot.lane.b32.xlu0 %v1489_v54, %s4742_s25  ;;  %v1490_v46 = vmul.f32 %v5345_v4, %v1402_v52  ;;  %v1047_v54 = vadd.f32 1.0, %v4582_v26  ;;  %6782 = vst [vmem:[#allocation54_spill] sm:$0xff] %v5355_v21  ;;  %v4590_v1 = vpop.eup %4589 }
 0x1a1   : > { %1561 = vrot.lane.b32.xlu1 %v1490_v46, %s4742_s25  ;;  %4599 = vrcp.f32 %v1047_v54 }
 0x1a2   : > { %4601 = vpow2.f32 %v3748_v48 }
 0x1a3   : > { %v5361_v39 = vpop.eup %4591  ;;  %4603 = vrcp.f32 %v1048_v13  ;;  %v3751_v13 = vmul.f32 -1.442695, %v5156_v32 }
 0x1a4   : > { %v1404_v34 = vpop.permute.xlu0 %1403  ;;  %4605 = vpow2.f32 %v3749_v56  ;;  %v3752_v56 = vmul.f32 -1.442695, %v5162_v40 }
 0x1a5   : > { %v1491_v53 = vmul.f32 %v5351_v19, %v1404_v34  ;;  %v4594_v34 = vpop.eup %4593 }
 0x1a6   : > { %v1406_v52 = vpop.permute.xlu1 %1405  ;;  %v5365_v45 = vpop.eup %4595  ;;  %v1050_v54 = vadd.f32 1.0, %v4594_v34 }
 0x1a7   : > { %1563 = vrot.lane.b32.xlu0 %v1491_v53, %s4742_s25  ;;  %v1492_v17 = vmul.f32 %v5355_v21, %v1406_v52  ;;  %v1049_v53 = vadd.f32 1.0, %v4590_v1  ;;  %v4598_v48 = vpop.eup %4597 }
 0x1a9   : > { %1565 = vrot.lane.b32.xlu1 %v1492_v17, %s4742_s25  ;;  %4607 = vrcp.f32 %v1049_v53 }
 0x1aa   : > { %4609 = vpow2.f32 %v3750_v16 }
 0x1ab   : > { %v5371_v61 = vpop.eup %4599  ;;  %4611 = vrcp.f32 %v1050_v54  ;;  %v3753_v54 = vmul.f32 -1.442695, %v5176_v29 }
 0x1ac   : > { %v1408_v46 = vpop.permute.xlu0 %1407  ;;  %4613 = vpow2.f32 %v3751_v13  ;;  %v3754_v13 = vmul.f32 -1.442695, %v5186_v55 }
 0x1ad   : > { %v1493_v26 = vmul.f32 %v5361_v39, %v1408_v46  ;;  %v4602_v46 = vpop.eup %4601 }
 0x1ae   : > { %v1410_v52 = vpop.permute.xlu1 %1409  ;;  %v5375_v3 = vpop.eup %4603  ;;  %v1052_v53 = vadd.f32 1.0, %v4602_v46 }
 0x1af   : > { %1567 = vrot.lane.b32.xlu0 %v1493_v26, %s4742_s25  ;;  %v1494_v0 = vmul.f32 %v5365_v45, %v1410_v52  ;;  %v1051_v26 = vadd.f32 1.0, %v4598_v48  ;;  %6783 = vst [vmem:[#allocation55_spill] sm:$0xff] %v5375_v3  ;;  %v4606_v16 = vpop.eup %4605 }
 0x1b1   : > { %1569 = vrot.lane.b32.xlu1 %v1494_v0, %s4742_s25  ;;  %4615 = vrcp.f32 %v1051_v26 }
 0x1b2   : > { %4617 = vpow2.f32 %v3752_v56 }
 0x1b3   : > { %v5381_v32 = vpop.eup %4607  ;;  %4619 = vrcp.f32 %v1052_v53  ;;  %v3755_v53 = vmul.f32 -1.442695, %v5201_v15 }
 0x1b4   : > { %v1412_v17 = vpop.permute.xlu0 %1411  ;;  %4621 = vpow2.f32 %v3753_v54  ;;  %v3756_v54 = vmul.f32 -1.442695, %v5207_v6 }
 0x1b5   : > { %v1495_v1 = vmul.f32 %v5371_v61, %v1412_v17  ;;  %v4610_v17 = vpop.eup %4609 }
 0x1b6   : > { %v1414_v52 = vpop.permute.xlu1 %1413  ;;  %v5385_v40 = vpop.eup %4611  ;;  %v1054_v26 = vadd.f32 1.0, %v4610_v17 }
 0x1b7   : > { %1571 = vrot.lane.b32.xlu0 %v1495_v1, %s4742_s25  ;;  %v1496_v34 = vmul.f32 %v5375_v3, %v1414_v52  ;;  %v1053_v1 = vadd.f32 1.0, %v4606_v16  ;;  %v4614_v56 = vpop.eup %4613 }
 0x1b9   : > { %1573 = vrot.lane.b32.xlu1 %v1496_v34, %s4742_s25  ;;  %4623 = vrcp.f32 %v1053_v1 }
 0x1ba   : > { %4625 = vpow2.f32 %v3754_v13 }
 0x1bb   : > { %v5391_v29 = vpop.eup %4615  ;;  %4627 = vrcp.f32 %v1054_v26 }
 0x1bc   : > { %v1416_v0 = vpop.permute.xlu0 %1415  ;;  %4629 = vpow2.f32 %v3755_v53  ;;  %v3758_v53 = vmul.f32 -1.442695, %v5233_v62 }
 0x1bd   : > { %v1497_v48 = vmul.f32 %v5381_v32, %v1416_v0  ;;  %v4618_v0 = vpop.eup %4617 }
 0x1be   : > { %v1418_v52 = vpop.permute.xlu1 %1417  ;;  %v5395_v55 = vpop.eup %4619  ;;  %v1056_v1 = vadd.f32 1.0, %v4618_v0 }
 0x1bf   : > { %1575 = vrot.lane.b32.xlu0 %v1497_v48, %s4742_s25  ;;  %v1498_v46 = vmul.f32 %v5385_v40, %v1418_v52  ;;  %v1055_v48 = vadd.f32 1.0, %v4614_v56  ;;  %v4622_v13 = vpop.eup %4621 }
 0x1c1   : > { %1577 = vrot.lane.b32.xlu1 %v1498_v46, %s4742_s25  ;;  %4631 = vrcp.f32 %v1055_v48  ;;  %v3757_v46 = vmul.f32 -1.442695, %v5225_v8 }
 0x1c2   : > { %4633 = vpow2.f32 %v3756_v54 }
 0x1c3   : > { %v5401_v15 = vpop.eup %4623  ;;  %4635 = vrcp.f32 %v1056_v1  ;;  %v3759_v1 = vmul.f32 -1.442695, %v5251_v23 }
 0x1c4   : > { %v1420_v34 = vpop.permute.xlu0 %1419  ;;  %4637 = vpow2.f32 %v3757_v46 }
 0x1c5   : > { %v1499_v16 = vmul.f32 %v5391_v29, %v1420_v34  ;;  %v4626_v34 = vpop.eup %4625 }
 0x1c6   : > { %v1422_v52 = vpop.permute.xlu1 %1421  ;;  %v5405_v6 = vpop.eup %4627  ;;  %v1058_v48 = vadd.f32 1.0, %v4626_v34  ;;  %v3760_v34 = vmul.f32 -1.442695, %v5259_v7 }
 0x1c7   : > { %1579 = vrot.lane.b32.xlu0 %v1499_v16, %s4742_s25  ;;  %v1500_v17 = vmul.f32 %v5395_v55, %v1422_v52  ;;  %v1057_v16 = vadd.f32 1.0, %v4622_v13  ;;  %v4630_v8 = vpop.eup %4629 }
 0x1c8   : > { %v1059_v46 = vadd.f32 1.0, %v4630_v8 }
 0x1c9   : > { %1581 = vrot.lane.b32.xlu1 %v1500_v17, %s4742_s25  ;;  %4639 = vrcp.f32 %v1057_v16 }
 0x1ca   : > { %4641 = vpow2.f32 %v3758_v53 }
 0x1cb   : > { %v5411_v54 = vpop.eup %4631  ;;  %4643 = vrcp.f32 %v1058_v48 }
 0x1cc   : > { %v1424_v26 = vpop.permute.xlu0 %1423  ;;  %4645 = vpow2.f32 %v3759_v1 }
 0x1cd   : > { %v1501_v56 = vmul.f32 %v5401_v15, %v1424_v26  ;;  %v4634_v26 = vpop.eup %4633  ;;  %4647 = vrcp.f32 %v1059_v46  ;;  %v3762_v46 = vmul.f32 -1.442695, %v5283_v47 }
 0x1ce   : > { %v1426_v52 = vpop.permute.xlu1 %1425  ;;  %4649 = vpow2.f32 %v3760_v34 }
 0x1cf   : > { %1583 = vrot.lane.b32.xlu0 %v1501_v56, %s4742_s25  ;;  %v1502_v0 = vmul.f32 %v5405_v6, %v1426_v52  ;;  %v5415_v56 = vpop.eup %4635  ;;  %v1060_v52 = vadd.f32 1.0, %v4634_v26 }
 0x1d0   : > { %6784 = vst [vmem:[#allocation56_spill] sm:$0xff] %v5415_v56  ;;  %v4638_v53 = vpop.eup %4637 }
 0x1d1   : > { %1585 = vrot.lane.b32.xlu1 %v1502_v0, %s4742_s25  ;;  %4651 = vrcp.f32 %v1060_v52  ;;  %v1061_v48 = vadd.f32 1.0, %v4638_v53 }
 0x1d3   : > { %v5421_v23 = vpop.eup %4639  ;;  %4653 = vrcp.f32 %v1061_v48 }
 0x1d4   : > { %v1428_v17 = vpop.permute.xlu0 %1427 }
 0x1d5   : > { %v1503_v13 = vmul.f32 %v5411_v54, %v1428_v17  ;;  %v4642_v17 = vpop.eup %4641 }
 0x1d6   : > { %v1430_v62 = vpop.permute.xlu1 %1429  ;;  %v5425_v7 = vpop.eup %4643  ;;  %v1062_v26 = vadd.f32 1.0, %v4642_v17 }
 0x1d7   : > { %1587 = vrot.lane.b32.xlu0 %v1503_v13, %s4742_s25  ;;  %v1504_v16 = vmul.f32 %v5415_v56, %v1430_v62  ;;  %v3761_v13 = vmul.f32 -1.442695, %v5277_v42  ;;  %v4646_v34 = vpop.eup %4645 }
 0x1d9   : > { %1589 = vrot.lane.b32.xlu1 %v1504_v16, %s4742_s25  ;;  %4655 = vpow2.f32 %v3761_v13  ;;  %v5431_v16 = vpop.eup %4647 }
 0x1da   : > { %6785 = vst [vmem:[#allocation57_spill] sm:$0xff] %v5431_v16  ;;  %4657 = vrcp.f32 %v1062_v26  ;;  %v4650_v53 = vpop.eup %4649 }
 0x1db   : > { %4659 = vpow2.f32 %v3762_v46  ;;  %v1064_v47 = vadd.f32 1.0, %v4650_v53 }
 0x1dc   : > { %v1432_v0 = vpop.permute.xlu0 %1431 }
 0x1dd   : > { %v1505_v8 = vmul.f32 %v5421_v23, %v1432_v0  ;;  %v1063_v0 = vadd.f32 1.0, %v4646_v34 }
 0x1de   : > { %v1434_v62 = vpop.permute.xlu1 %1433 }
 0x1df   : > { %1591 = vrot.lane.b32.xlu0 %v1505_v8, %s4742_s25  ;;  %v1506_v1 = vmul.f32 %v5425_v7, %v1434_v62  ;;  %v5434_v8 = vpop.eup %4651  ;;  %4661 = vrcp.f32 %v1063_v0 }
 0x1e0   : > { %6786 = vst [vmem:[#allocation58_spill] sm:$0xff] %v5434_v8  ;;  %v5439_v17 = vpop.eup %4653  ;;  %4663 = vrcp.f32 %v1064_v47 }
 0x1e1   : > { %1593 = vrot.lane.b32.xlu1 %v1506_v1, %s4742_s25 }
 0x1e3   : > { %v4656_v13 = vpop.eup %4655 }
 0x1e4   : > { %v1436_v52 = vpop.permute.xlu0 %1435  ;;  %v5442_v34 = vpop.eup %4657  ;;  %v1065_v46 = vadd.f32 1.0, %v4656_v13  ;;  %v4337_v13 = vunpack.i.h.bf16 %v5069_v63 }
 0x1e5   : > { %v1507_v42 = vmul.f32 %v5431_v16, %v1436_v52 }
 0x1e6   : > { %v1438_v62 = vpop.permute.xlu1 %1437  ;;  %4665 = vrcp.f32 %v1065_v46  ;;  %v4336_v46 = vunpack.i.l.bf16 %v5069_v63 }
 0x1e7   : > { %1595 = vrot.lane.b32.xlu0 %v1507_v42, %s4742_s25  ;;  %v1508_v48 = vmul.f32 %v5434_v8, %v1438_v62  ;;  %v4660_v42 = vpop.eup %4659 }
 0x1e8   : > { %v1066_v53 = vadd.f32 1.0, %v4660_v42  ;;  %v1964_v42 = vld [vmem:[%s6638_s6] sm:$0xf]  ;;  %v1867_v63 = vmul.f32 %v5292_v37, %v4336_v46 }
 0x1e9   : > { %1597 = vrot.lane.b32.xlu1 %v1508_v48, %s4742_s25  ;;  %v5447_v0 = vpop.eup %4661  ;;  %4315 = vmatprep.subr.msk.bf16.mxu1 %vm2062_vm0, %v1964_v42 }
 0x1ea   : > { %v5450_v36 = vpop.eup %4663  ;;  %4667 = vrcp.f32 %v1066_v53  ;;  %v2064_v53 = vsel %vm2062_vm0, %v1964_v42, 0 }
 0x1eb   : > { %4216 = vmatpush3.bf16.msra.mxu1 %v2064_v53  ;;  %v4341_v53 = vunpack.i.l.bf16 %v5087_v11 }
 0x1ec   : > { %v1440_v1 = vpop.permute.xlu0 %1439 }
 0x1ed   : > { %v1509_v26 = vmul.f32 %v5439_v17, %v1440_v1 }
 0x1ee   : > { %v1442_v52 = vpop.permute.xlu1 %1441 }
 0x1ef   : > { %1599 = vrot.lane.b32.xlu0 %v1509_v26, %s4742_s25  ;;  %v1510_v62 = vmul.f32 %v5442_v34, %v1442_v52 }
 0x1f1   : > { %1601 = vrot.lane.b32.xlu1 %v1510_v62, %s4742_s25  ;;  %v1868_v62 = vmul.f32 %v5306_v57, %v4337_v13  ;;  %v4342_v13 = vunpack.i.h.bf16 %v5087_v11  ;;  %v1869_v11 = vmul.f32 %v5314_v24, %v4341_v53 }
 0x1f4   : > { %v1444_v48 = vpop.permute.xlu0 %1443 }
 0x1f5   : > { %v1511_v47 = vmul.f32 %v5447_v0, %v1444_v48  ;;  %v5465_v48 = vpop.eup %4665 }
 0x1f6   : > { %v5479_v42 = vpop.eup %4667 }
 0x1f7   : > { %v1446_v1 = vpop.permute.xlu1 %1445  ;;  %1603 = vrot.lane.b32.xlu0 %v1511_v47, %s4742_s25 }
 0x1f8   : > { %v1512_v26 = vmul.f32 %v5450_v36, %v1446_v1 }
 0x1f9   : > { %v5455_v52 = vpop.permute.xlu0 %1547 }
 0x1fa   : > { %1605 = vrot.lane.b32.xlu1 %v1512_v26, %s4742_s25  ;;  %v5476_v5 = vadd.f32 %v1867_v63, %v5455_v52 }
 0x1fc   : > { %6788 = vst [vmem:[#allocation60_spill] sm:$0xff] %v5476_v5 }
 0x1fd   : > { %v5467_v47 = vpop.permute.xlu1 %1549  ;;  %v1448_v1 = vpop.permute.xlu0 %1447 }
 0x1fe   : > { %v5471_v26 = vadd.f32 %v1868_v62, %v5467_v47  ;;  %v1513_v33 = vmul.f32 %v5465_v48, %v1448_v1  ;;  %v1870_v1 = vmul.f32 %v5326_v27, %v4342_v13 }
 0x200   : > { %6787 = vst [vmem:[#allocation59_spill] sm:$0xff] %v5471_v26  ;;  %1607 = vrot.lane.b32.xlu0 %v1513_v33, %s4742_s25  ;;  %v1948_v62 = vpack.c.bf16 %v5471_v26, %v5476_v5  ;;  %v4347_v26 = vunpack.i.h.bf16 %v5082_v9 }
 0x201   : > { %v1450_v14 = vpop.permute.xlu1 %1449  ;;  %v5488_v63 = vpop.permute.xlu0 %1551 }
 0x202   : > { %v1514_v46 = vmul.f32 %v5479_v42, %v1450_v14  ;;  %6789 = vst [vmem:[#allocation61_spill] sm:$0xff] %v5488_v63 }
 0x204   : > { %1609 = vrot.lane.b32.xlu1 %v1514_v46, %s4742_s25  ;;  %1981 = vrot.lane.b32.xlu0 %v1948_v62, %s4744_s30  ;;  %v4346_v46 = vunpack.i.l.bf16 %v5082_v9  ;;  %v5501_v62 = vadd.f32 %v1869_v11, %v5488_v63  ;;  %v4352_v11 = vunpack.i.h.bf16 %v5104_v28 }
 0x205   : > { %v5490_v33 = vpop.permute.xlu1 %1553 }
 0x206   : > { %6790 = vst [vmem:[#allocation62_spill] sm:$0xff] %v5490_v33  ;;  %v5496_v14 = vadd.f32 %v1870_v1, %v5490_v33  ;;  %6792 = vst [vmem:[#allocation64_spill] sm:$0xff] %v5501_v62  ;;  %v1871_v53 = vmul.f32 %v5331_v44, %v4346_v46  ;;  %v1872_v1 = vmul.f32 %v5335_v20, %v4347_v26 }
 0x208   : > { %6791 = vst [vmem:[#allocation63_spill] sm:$0xff] %v5496_v14  ;;  %1261 = vrot.lane.b32.xlu1 %v1180_v25, %s4742_s25  ;;  %1259 = vrot.lane.b32.xlu0 %v1179_v59, %s4742_s25  ;;  %v1949_v13 = vpack.c.bf16 %v5496_v14, %v5501_v62  ;;  %v1181_v59 = vld [vmem:[%s4921_s24 + $0x90] sm:$0xff]  ;;  %v4351_v14 = vunpack.i.l.bf16 %v5104_v28 }
 0x209   : > { %v5507_v5 = vpop.permute.xlu0 %1555 }
 0x20a   : > { %v5515_v9 = vadd.f32 %v1871_v53, %v5507_v5  ;;  %v1873_v53 = vmul.f32 %v5341_v2, %v4351_v14 }
 0x20b   : > { %v5511_v33 = vpop.permute.xlu1 %1557 }
 0x20c   : > { %1983 = vrot.lane.b32.xlu1 %v1949_v13, %s4744_s30  ;;  %6793 = vst [vmem:[#allocation65_spill] sm:$0xff] %v5515_v9  ;;  %v5518_v25 = vadd.f32 %v1872_v1, %v5511_v33  ;;  %v1182_v13 = vld [vmem:[%s4921_s24 + $0x98] sm:$0xff]  ;;  %v1874_v1 = vmul.f32 %v5345_v4, %v4352_v11 }
 0x20e   : > { %6794 = vst [vmem:[#allocation66_spill] sm:$0xff] %v5518_v25  ;;  %v1950_v46 = vpack.c.bf16 %v5518_v25, %v5515_v9  ;;  %v1184_v25 = vld [vmem:[%s4921_s24 + $0xa8] sm:$0xff] }
 0x210   : > { %1263 = vrot.lane.b32.xlu1 %v1181_v59, %s4742_s25  ;;  %1985 = vrot.lane.b32.xlu0 %v1950_v46, %s4744_s30  ;;  %v4357_v59 = vunpack.i.h.bf16 %v5100_v22  ;;  %v4356_v46 = vunpack.i.l.bf16 %v5100_v22 }
 0x211   : > { %v5527_v26 = vpop.permute.xlu0 %1559 }
 0x212   : > { %6795 = vst [vmem:[#allocation67_spill] sm:$0xff] %v5527_v26  ;;  %v5535_v63 = vadd.f32 %v1873_v53, %v5527_v26  ;;  %v1875_v53 = vmul.f32 %v5351_v19, %v4356_v46 }
 0x213   : > { %v5532_v62 = vpop.permute.xlu1 %1561 }
 0x214   : > { %6796 = vst [vmem:[#allocation68_spill] sm:$0xff] %v5535_v63  ;;  %v5538_v28 = vadd.f32 %v1874_v1, %v5532_v62  ;;  %1265 = vrot.lane.b32.xlu0 %v1182_v13, %s4742_s25  ;;  %v1876_v1 = vmul.f32 %v5355_v21, %v4357_v59 }
 0x216   : > { %6797 = vst [vmem:[#allocation69_spill] sm:$0xff] %v5538_v28  ;;  %v1951_v14 = vpack.c.bf16 %v5538_v28, %v5535_v63  ;;  %v4362_v28 = vunpack.i.h.bf16 %v5118_v43  ;;  %v1183_v63 = vld [vmem:[%s4921_s24 + $0xa0] sm:$0xff] }
 0x218   : > { %1987 = vrot.lane.b32.xlu1 %v1951_v14, %s4744_s30  ;;  %v4361_v14 = vunpack.i.l.bf16 %v5118_v43 }
 0x219   : > { %v5546_v11 = vpop.permute.xlu0 %1563 }
 0x21a   : > { %v5554_v13 = vadd.f32 %v1875_v53, %v5546_v11  ;;  %v1877_v53 = vmul.f32 %v5361_v39, %v4361_v14 }
 0x21b   : > { %v5551_v9 = vpop.permute.xlu1 %1565 }
 0x21c   : > { %6798 = vst [vmem:[#allocation70_spill] sm:$0xff] %v5554_v13  ;;  %v5557_v22 = vadd.f32 %v1876_v1, %v5551_v9  ;;  %1269 = vrot.lane.b32.xlu1 %v1184_v25, %s4742_s25  ;;  %v1878_v1 = vmul.f32 %v5365_v45, %v4362_v28 }
 0x21e   : > { %6799 = vst [vmem:[#allocation71_spill] sm:$0xff] %v5557_v22  ;;  %v1952_v46 = vpack.c.bf16 %v5557_v22, %v5554_v13  ;;  %v4367_v22 = vunpack.i.h.bf16 %v5116_v41  ;;  %v1185_v13 = vld [vmem:[%s4921_s24 + $0xb0] sm:$0xff] }
 0x220   : > { %1989 = vrot.lane.b32.xlu0 %v1952_v46, %s4744_s30  ;;  %v4366_v46 = vunpack.i.l.bf16 %v5116_v41 }
 0x221   : > { %v5565_v59 = vpop.permute.xlu0 %1567 }
 0x222   : > { %6800 = vst [vmem:[#allocation72_spill] sm:$0xff] %v5565_v59  ;;  %v5573_v25 = vadd.f32 %v1877_v53, %v5565_v59  ;;  %v1879_v53 = vmul.f32 %v5371_v61, %v4366_v46 }
 0x223   : > { %v5570_v26 = vpop.permute.xlu1 %1569 }
 0x224   : > { %6801 = vst [vmem:[#allocation73_spill] sm:$0xff] %v5573_v25  ;;  %v5576_v43 = vadd.f32 %v1878_v1, %v5570_v26  ;;  %1267 = vrot.lane.b32.xlu0 %v1183_v63, %s4742_s25  ;;  %v1880_v1 = vmul.f32 %v5375_v3, %v4367_v22 }
 0x226   : > { %6802 = vst [vmem:[#allocation74_spill] sm:$0xff] %v5576_v43  ;;  %v1953_v14 = vpack.c.bf16 %v5576_v43, %v5573_v25  ;;  %v4372_v43 = vunpack.i.h.bf16 %v5133_v60  ;;  %v1186_v25 = vld [vmem:[%s4921_s24 + $0xb8] sm:$0xff] }
 0x228   : > { %1991 = vrot.lane.b32.xlu1 %v1953_v14, %s4744_s30  ;;  %v4371_v14 = vunpack.i.l.bf16 %v5133_v60 }
 0x229   : > { %v5584_v28 = vpop.permute.xlu0 %1571 }
 0x22a   : > { %6803 = vst [vmem:[#allocation75_spill] sm:$0xff] %v5584_v28  ;;  %v5592_v63 = vadd.f32 %v1879_v53, %v5584_v28  ;;  %v1881_v53 = vmul.f32 %v5381_v32, %v4371_v14 }
 0x22b   : > { %v5589_v59 = vpop.permute.xlu1 %1573 }
 0x22c   : > { %6804 = vst [vmem:[#allocation76_spill] sm:$0xff] %v5592_v63  ;;  %v5595_v41 = vadd.f32 %v1880_v1, %v5589_v59  ;;  %1271 = vrot.lane.b32.xlu1 %v1185_v13, %s4742_s25  ;;  %v1882_v1 = vmul.f32 %v5385_v40, %v4372_v43 }
 0x22e   : > { %6805 = vst [vmem:[#allocation77_spill] sm:$0xff] %v5595_v41  ;;  %v1954_v46 = vpack.c.bf16 %v5595_v41, %v5592_v63  ;;  %v4377_v41 = vunpack.i.h.bf16 %v5131_v58  ;;  %v1188_v63 = vld [vmem:[%s4921_s24 + $0xc8] sm:$0xff] }
 0x230   : > { %1993 = vrot.lane.b32.xlu0 %v1954_v46, %s4744_s30  ;;  %v4376_v46 = vunpack.i.l.bf16 %v5131_v58 }
 0x231   : > { %v5603_v22 = vpop.permute.xlu0 %1575 }
 0x232   : > { %6806 = vst [vmem:[#allocation78_spill] sm:$0xff] %v5603_v22  ;;  %v5611_v13 = vadd.f32 %v1881_v53, %v5603_v22  ;;  %v1883_v53 = vmul.f32 %v5391_v29, %v4376_v46 }
 0x233   : > { %v5608_v28 = vpop.permute.xlu1 %1577 }
 0x234   : > { %6807 = vst [vmem:[#allocation79_spill] sm:$0xff] %v5608_v28  ;;  %6808 = vst [vmem:[#allocation80_spill] sm:$0xff] %v5611_v13  ;;  %v5614_v60 = vadd.f32 %v1882_v1, %v5608_v28  ;;  %1273 = vrot.lane.b32.xlu0 %v1186_v25, %s4742_s25  ;;  %v1884_v1 = vmul.f32 %v5395_v55, %v4377_v41 }
 0x236   : > { %6809 = vst [vmem:[#allocation81_spill] sm:$0xff] %v5614_v60  ;;  %v1955_v14 = vpack.c.bf16 %v5614_v60, %v5611_v13  ;;  %v4382_v60 = vunpack.i.h.bf16 %v5151_v18  ;;  %v1187_v13 = vld [vmem:[%s4921_s24 + $0xc0] sm:$0xff] }
 0x238   : > { %1995 = vrot.lane.b32.xlu1 %v1955_v14, %s4744_s30  ;;  %v4381_v14 = vunpack.i.l.bf16 %v5151_v18 }
 0x239   : > { %v5622_v43 = vpop.permute.xlu0 %1579 }
 0x23a   : > { %v5630_v25 = vadd.f32 %v1883_v53, %v5622_v43  ;;  %v1885_v53 = vmul.f32 %v5401_v15, %v4381_v14 }
 0x23b   : > { %v5627_v22 = vpop.permute.xlu1 %1581 }
 0x23c   : > { %6810 = vst [vmem:[#allocation82_spill] sm:$0xff] %v5630_v25  ;;  %v5633_v58 = vadd.f32 %v1884_v1, %v5627_v22  ;;  %1277 = vrot.lane.b32.xlu1 %v1188_v63, %s4742_s25  ;;  %v1886_v1 = vmul.f32 %v5405_v6, %v4382_v60 }
 0x23e   : > { %6811 = vst [vmem:[#allocation83_spill] sm:$0xff] %v5633_v58  ;;  %v1956_v46 = vpack.c.bf16 %v5633_v58, %v5630_v25  ;;  %v4387_v58 = vunpack.i.h.bf16 %v5146_v12  ;;  %v1189_v25 = vld [vmem:[%s4921_s24 + $0xd0] sm:$0xff] }
 0x240   : > { %1997 = vrot.lane.b32.xlu0 %v1956_v46, %s4744_s30  ;;  %v4386_v46 = vunpack.i.l.bf16 %v5146_v12 }
 0x241   : > { %v5641_v41 = vpop.permute.xlu0 %1583 }
 0x242   : > { %6812 = vst [vmem:[#allocation84_spill] sm:$0xff] %v5641_v41  ;;  %v5649_v63 = vadd.f32 %v1885_v53, %v5641_v41  ;;  %v1887_v53 = vmul.f32 %v5411_v54, %v4386_v46 }
 0x243   : > { %v5646_v28 = vpop.permute.xlu1 %1585 }
 0x244   : > { %6813 = vst [vmem:[#allocation85_spill] sm:$0xff] %v5649_v63  ;;  %v5652_v18 = vadd.f32 %v1886_v1, %v5646_v28  ;;  %1275 = vrot.lane.b32.xlu0 %v1187_v13, %s4742_s25  ;;  %v1888_v1 = vmul.f32 %v5415_v56, %v4387_v58 }
 0x246   : > { %6814 = vst [vmem:[#allocation86_spill] sm:$0xff] %v5652_v18  ;;  %v1957_v14 = vpack.c.bf16 %v5652_v18, %v5649_v63  ;;  %v4392_v18 = vunpack.i.h.bf16 %v5168_v51  ;;  %v1190_v63 = vld [vmem:[%s4921_s24 + $0xd8] sm:$0xff] }
 0x248   : > { %1999 = vrot.lane.b32.xlu1 %v1957_v14, %s4744_s30  ;;  %v4391_v14 = vunpack.i.l.bf16 %v5168_v51 }
 0x249   : > { %v5660_v60 = vpop.permute.xlu0 %1587 }
 0x24a   : > { %6815 = vst [vmem:[#allocation87_spill] sm:$0xff] %v5660_v60  ;;  %v5668_v13 = vadd.f32 %v1887_v53, %v5660_v60  ;;  %v1889_v53 = vmul.f32 %v5421_v23, %v4391_v14 }
 0x24b   : > { %v5665_v41 = vpop.permute.xlu1 %1589 }
 0x24c   : > { %6816 = vst [vmem:[#allocation88_spill] sm:$0xff] %v5668_v13  ;;  %v5671_v12 = vadd.f32 %v1888_v1, %v5665_v41  ;;  %1279 = vrot.lane.b32.xlu1 %v1189_v25, %s4742_s25  ;;  %v1890_v1 = vmul.f32 %v5425_v7, %v4392_v18 }
 0x24e   : > { %6817 = vst [vmem:[#allocation89_spill] sm:$0xff] %v5671_v12  ;;  %v1958_v46 = vpack.c.bf16 %v5671_v12, %v5668_v13  ;;  %v4397_v12 = vunpack.i.h.bf16 %v5164_v49  ;;  %v1192_v13 = vld [vmem:[%s4921_s24 + $0xe8] sm:$0xff] }
 0x250   : > { %2001 = vrot.lane.b32.xlu0 %v1958_v46, %s4744_s30  ;;  %v4396_v46 = vunpack.i.l.bf16 %v5164_v49 }
 0x251   : > { %v5679_v58 = vpop.permute.xlu0 %1591 }
 0x252   : > { %v5687_v25 = vadd.f32 %v1889_v53, %v5679_v58  ;;  %v1891_v53 = vmul.f32 %v5431_v16, %v4396_v46 }
 0x253   : > { %v5684_v60 = vpop.permute.xlu1 %1593 }
 0x254   : > { %6818 = vst [vmem:[#allocation90_spill] sm:$0xff] %v5684_v60  ;;  %6819 = vst [vmem:[#allocation91_spill] sm:$0xff] %v5687_v25  ;;  %v5690_v51 = vadd.f32 %v1890_v1, %v5684_v60  ;;  %1281 = vrot.lane.b32.xlu0 %v1190_v63, %s4742_s25  ;;  %v1892_v1 = vmul.f32 %v5434_v8, %v4397_v12 }
 0x256   : > { %6820 = vst [vmem:[#allocation92_spill] sm:$0xff] %v5690_v51  ;;  %v1959_v14 = vpack.c.bf16 %v5690_v51, %v5687_v25  ;;  %v4402_v51 = vunpack.i.h.bf16 %v5182_v30  ;;  %v1191_v25 = vld [vmem:[%s4921_s24 + $0xe0] sm:$0xff] }
 0x258   : > { %2003 = vrot.lane.b32.xlu1 %v1959_v14, %s4744_s30  ;;  %v4401_v14 = vunpack.i.l.bf16 %v5182_v30 }
 0x259   : > { %v5698_v18 = vpop.permute.xlu0 %1595 }
 0x25a   : > { %6821 = vst [vmem:[#allocation93_spill] sm:$0xff] %v5698_v18  ;;  %v5706_v63 = vadd.f32 %v1891_v53, %v5698_v18  ;;  %v1893_v53 = vmul.f32 %v5439_v17, %v4401_v14  ;;  %v1193_v14 = vld [vmem:[%s4921_s24 + $0xf0] sm:$0xff] }
 0x25b   : > { %v5703_v60 = vpop.permute.xlu1 %1597 }
 0x25c   : > { %6822 = vst [vmem:[#allocation94_spill] sm:$0xff] %v5706_v63  ;;  %v5709_v49 = vadd.f32 %v1892_v1, %v5703_v60  ;;  %1285 = vrot.lane.b32.xlu1 %v1192_v13, %s4742_s25  ;;  %v1894_v1 = vmul.f32 %v5442_v34, %v4402_v51 }
 0x25e   : > { %6823 = vst [vmem:[#allocation95_spill] sm:$0xff] %v5709_v49  ;;  %v1960_v46 = vpack.c.bf16 %v5709_v49, %v5706_v63  ;;  %v4407_v49 = vunpack.i.h.bf16 %v5180_v38 }
 0x260   : > { %2005 = vrot.lane.b32.xlu0 %v1960_v46, %s4744_s30  ;;  %v4406_v46 = vunpack.i.l.bf16 %v5180_v38 }
 0x261   : > { %v5717_v12 = vpop.permute.xlu0 %1599 }
 0x262   : > { %v5725_v13 = vadd.f32 %v1893_v53, %v5717_v12  ;;  %v1895_v53 = vmul.f32 %v5447_v0, %v4406_v46  ;;  %v4411_v46 = vunpack.i.l.bf16 %v5198_v31 }
 0x263   : > { %v5722_v18 = vpop.permute.xlu1 %1601 }
 0x264   : > { %6824 = vst [vmem:[#allocation96_spill] sm:$0xff] %v5722_v18  ;;  %6825 = vst [vmem:[#allocation97_spill] sm:$0xff] %v5725_v13  ;;  %v5728_v30 = vadd.f32 %v1894_v1, %v5722_v18  ;;  %1283 = vrot.lane.b32.xlu0 %v1191_v25, %s4742_s25  ;;  %v1896_v1 = vmul.f32 %v5450_v36, %v4407_v49  ;;  %v1947_v25 = vld [vmem:[%s6637_s5] sm:$0xf]  ;;  %v4412_v49 = vunpack.i.h.bf16 %v5198_v31 }
 0x265   : > { %4316 = vmatprep.subr.msk.bf16.mxu1 %vm2062_vm0, %v1947_v25 }
 0x266   : > { %6826 = vst [vmem:[#allocation98_spill] sm:$0xff] %v5728_v30  ;;  %v1961_v63 = vpack.c.bf16 %v5728_v30, %v5725_v13  ;;  %v1324_v13 = vmul.f32 %v5306_v57, %v5218_v50  ;;  %v1897_v50 = vmul.f32 %v5465_v48, %v4411_v46  ;;  %v6830_v57 = vld [vmem:[#allocation24_spill] sm:$0xff] }
 0x268   : > { %2007 = vrot.lane.b32.xlu1 %v1961_v63, %s4744_s30 }
 0x269   : > { %v5736_v51 = vpop.permute.xlu0 %1603 }
 0x26a   : > { %6827 = vst [vmem:[#allocation99_spill] sm:$0xff] %v5736_v51  ;;  %v5747_v38 = vadd.f32 %v1895_v53, %v5736_v51  ;;  %v5767_v51 = vadd.f32 %v5467_v47, %v1324_v13 }
 0x26c   : > { %v5741_v18 = vpop.permute.xlu1 %1605  ;;  %6828 = vst [vmem:[#allocation100_spill] sm:$0xff] %v5747_v38  ;;  %1287 = vrot.lane.b32.xlu1 %v1193_v14, %s4742_s25  ;;  %v1323_v14 = vmul.f32 %v5292_v37, %v5196_v35  ;;  %v6831_v35 = vld [vmem:[#allocation27_spill] sm:$0xff] }
 0x26d   : > { %v5750_v30 = vadd.f32 %v1896_v1, %v5741_v18  ;;  %v1194_v1 = vld [vmem:[%s4921_s24 + $0xf8] sm:$0xff]  ;;  %v1327_v47 = vmul.f32 %v5331_v44, %v6831_v35 }
 0x26e   : > { %v5772_v31 = vadd.f32 %v5455_v52, %v1323_v14  ;;  %v6833_v14 = vld [vmem:[#allocation28_spill] sm:$0xff] }
 0x26f   : > { %6829 = vst [vmem:[#allocation101_spill] sm:$0xff] %v5750_v30  ;;  %v1962_v63 = vpack.c.bf16 %v5750_v30, %v5747_v38  ;;  %v1328_v30 = vmul.f32 %v5335_v20, %v5243_v10  ;;  %v1326_v38 = vmul.f32 %v5326_v27, %v6830_v57  ;;  %v6832_v57 = vld [vmem:[#allocation36_spill] sm:$0xff]  ;;  %v1325_v35 = vmul.f32 %v5314_v24, %v6833_v14  ;;  %v6834_v20 = vld [vmem:[#allocation62_spill] sm:$0xff]  ;;  %v6836_v14 = vld [vmem:[#allocation29_spill] sm:$0xff] }
 0x270   : > { %v1931_v10 = vpack.c.bf16 %v5767_v51, %v5772_v31 }
 0x271   : > { %2009 = vrot.lane.b32.xlu0 %v1962_v63, %s4744_s30  ;;  %v1898_v63 = vmul.f32 %v5479_v42, %v4412_v49  ;;  %v5786_v52 = vadd.f32 %v5511_v33, %v1328_v30  ;;  %v5800_v44 = vadd.f32 %v6834_v20, %v1326_v38  ;;  %v5803_v33 = vadd.f32 %v5507_v5, %v1327_v47  ;;  %v6837_v38 = vld [vmem:[#allocation61_spill] sm:$0xff] }
 0x272   : > { %v5761_v53 = vpop.permute.xlu0 %1607  ;;  %v1330_v20 = vmul.f32 %v5345_v4, %v6836_v14  ;;  %v6838_v47 = vld [vmem:[#allocation33_spill] sm:$0xff]  ;;  %v6841_v4 = vld [vmem:[#allocation38_spill] sm:$0xff] }
 0x273   : > { %v5789_v46 = vadd.f32 %v1897_v50, %v5761_v53  ;;  %v6835_v50 = vld [vmem:[#allocation32_spill] sm:$0xff]  ;;  %v1933_v5 = vpack.c.bf16 %v5786_v52, %v5803_v33 }
 0x275   : > { %1289 = vrot.lane.b32.xlu0 %v1194_v1, %s4742_s25  ;;  %v1332_v1 = vmul.f32 %v5355_v21, %v6832_v57  ;;  %v5816_v21 = vadd.f32 %v6837_v38, %v1325_v35  ;;  %v5831_v35 = vadd.f32 %v5532_v62, %v1330_v20  ;;  %v6840_v38 = vld [vmem:[#allocation34_spill] sm:$0xff] }
 0x276   : > { %v5781_v13 = vpop.permute.xlu1 %1609  ;;  %v1982_v37 = vpop.permute.xlu0 %1981 }
 0x277   : > { %v5792_v49 = vadd.f32 %v1898_v63, %v5781_v13  ;;  %4217 = vmatprep.mubr.msk.bf16.mxu1 %vm2013_vm1, %v1982_v37  ;;  %v1331_v37 = vmul.f32 %v5351_v19, %v6835_v50  ;;  %v5811_v63 = vadd.f32 %v5551_v9, %v1332_v1  ;;  %v6839_v1 = vld [vmem:[#allocation44_spill] sm:$0xff]  ;;  %v1932_v14 = vpack.c.bf16 %v5800_v44, %v5816_v21 }
 0x278   : > { %v1336_v19 = vmul.f32 %v5375_v3, %v6839_v1 }
 0x279   : > { %v1963_v30 = vpack.c.bf16 %v5792_v49, %v5789_v46  ;;  %2243 = vrot.lane.b32.xlu0 %v1931_v10, %s4745_s15  ;;  %v1329_v10 = vmul.f32 %v5341_v2, %v6838_v47  ;;  %v5824_v50 = vadd.f32 %v5546_v11, %v1331_v37  ;;  %v1334_v47 = vmul.f32 %v5365_v45, %v6840_v38  ;;  %v6842_v37 = vld [vmem:[#allocation67_spill] sm:$0xff] }
 0x27a   : > { %v1262_v57 = vpop.permute.xlu1 %1261  ;;  %v1260_v9 = vpop.permute.xlu0 %1259  ;;  %v1335_v11 = vmul.f32 %v5371_v61, %v6841_v4  ;;  %v5845_v62 = vadd.f32 %v5589_v59, %v1336_v19  ;;  %v6843_v4 = vld [vmem:[#allocation39_spill] sm:$0xff] }
 0x27b   : > { %2011 = vrot.lane.b32.xlu1 %v1963_v30, %s4744_s30  ;;  %v2324_v30 = vsel %vm2062_vm0, %v1947_v25, 0  ;;  %v5840_v2 = vadd.f32 %v6842_v37, %v1329_v10  ;;  %v1935_v1 = vpack.c.bf16 %v5811_v63, %v5824_v50  ;;  %v1340_v20 = vmul.f32 %v5395_v55, %v1262_v57  ;;  %v6844_v19 = vld [vmem:[#allocation75_spill] sm:$0xff]  ;;  %v6845_v57 = vld [vmem:[#allocation40_spill] sm:$0xff] }
 0x27c   : > { %v1339_v25 = vmul.f32 %v5391_v29, %v1260_v9  ;;  %v5856_v38 = vadd.f32 %v5570_v26, %v1334_v47  ;;  %v5859_v59 = vadd.f32 %v6844_v19, %v1335_v11  ;;  %v1338_v9 = vmul.f32 %v5385_v40, %v6845_v57  ;;  %v6848_v19 = vld [vmem:[#allocation79_spill] sm:$0xff] }
 0x27d   : > { %2247 = vrot.lane.b32.xlu0 %v1933_v5, %s4745_s15  ;;  %v1333_v5 = vmul.f32 %v5361_v39, %v6843_v4  ;;  %v1934_v10 = vpack.c.bf16 %v5831_v35, %v5840_v2  ;;  %v5870_v37 = vadd.f32 %v5627_v22, %v1340_v20  ;;  %v6849_v22 = vld [vmem:[#allocation78_spill] sm:$0xff] }
 0x27e   : > { %v1984_v3 = vpop.permute.xlu1 %1983  ;;  %v5873_v26 = vadd.f32 %v5622_v43, %v1339_v25  ;;  %v5882_v57 = vadd.f32 %v6848_v19, %v1338_v9 }
 0x27f   : > { %2245 = vrot.lane.b32.xlu1 %v1932_v14, %s4745_s15  ;;  %4218 = vmatmul.mubr.msk.bf16.vlgmr.msra.gmra.mrb[0].mxu1 %vm2013_vm1, %v1984_v3  ;;  %v6846_v14 = vld [vmem:[#allocation72_spill] sm:$0xff] }
 0x280   : > { %4250 = vmatpush3.bf16.msra.mxu1 %v2324_v30  ;;  %v5865_v3 = vadd.f32 %v6846_v14, %v1333_v5  ;;  %v1937_v30 = vpack.c.bf16 %v5845_v62, %v5859_v59  ;;  %v1939_v20 = vpack.c.bf16 %v5870_v37, %v5873_v26 }
 0x281   : > { %2251 = vrot.lane.b32.xlu0 %v1935_v1, %s4745_s15  ;;  %v6847_v1 = vld [vmem:[#allocation46_spill] sm:$0xff] }
 0x282   : > { %v1986_v47 = vpop.permute.xlu0 %1985  ;;  %v1264_v11 = vpop.permute.xlu1 %1263  ;;  %v1337_v4 = vmul.f32 %v5381_v32, %v6847_v1  ;;  %v1936_v5 = vpack.c.bf16 %v5856_v38, %v5865_v3 }
 0x283   : > { %2249 = vrot.lane.b32.xlu1 %v1934_v10, %s4745_s15  ;;  %4221 = vmatprep.mubr.msk.bf16.mxu1 %vm2013_vm1, %v1986_v47  ;;  %v1341_v25 = vmul.f32 %v5401_v15, %v1264_v11 }
 0x284   : > { %v5886_v43 = vadd.f32 %v6849_v22, %v1337_v4 }
 0x285   : > { %2255 = vrot.lane.b32.xlu0 %v1937_v30, %s4745_s15  ;;  %v6850_v30 = vld [vmem:[#allocation84_spill] sm:$0xff] }
 0x286   : > { %v1266_v10 = vpop.permute.xlu0 %1265  ;;  %v1938_v47 = vpack.c.bf16 %v5882_v57, %v5886_v43  ;;  %v5900_v1 = vadd.f32 %v6850_v30, %v1341_v25 }
 0x287   : > { %2253 = vrot.lane.b32.xlu1 %v1936_v5, %s4745_s15  ;;  %v1342_v14 = vmul.f32 %v5405_v6, %v1266_v10  ;;  %v6851_v10 = vld [vmem:[#allocation87_spill] sm:$0xff] }
 0x289   : > { %2259 = vrot.lane.b32.xlu0 %v1939_v20, %s4745_s15  ;;  %v5897_v9 = vadd.f32 %v5646_v28, %v1342_v14 }
 0x28a   : > { %v1988_v4 = vpop.permute.xlu1 %1987 }
 0x28b   : > { %2257 = vrot.lane.b32.xlu1 %v1938_v47, %s4745_s15  ;;  %4222 = vmatmul.mubr.msk.bf16.gmra.mrb[4].mxu1 %vm2013_vm1, %v1988_v4  ;;  %v1940_v11 = vpack.c.bf16 %v5897_v9, %v5900_v1 }
 0x28e   : > { %v1270_v5 = vpop.permute.xlu1 %1269 }
 0x28f   : > { %2261 = vrot.lane.b32.xlu1 %v1940_v11, %s4745_s15  ;;  %v1344_v28 = vmul.f32 %v5415_v56, %v1270_v5 }
 0x291   : > { %v5911_v25 = vadd.f32 %v5665_v41, %v1344_v28 }
 0x292   : > { %v1990_v19 = vpop.permute.xlu0 %1989 }
 0x293   : > { %4225 = vmatprep.mubr.msk.bf16.mxu1 %vm2013_vm1, %v1990_v19 }
 0x296   : > { %v1268_v22 = vpop.permute.xlu0 %1267 }
 0x297   : > { %v1343_v20 = vmul.f32 %v5411_v54, %v1268_v22  ;;  %v6852_v22 = vld [vmem:[#allocation90_spill] sm:$0xff] }
 0x299   : > { %v5914_v14 = vadd.f32 %v6851_v10, %v1343_v20 }
 0x29a   : > { %v1992_v47 = vpop.permute.xlu1 %1991 }
 0x29b   : > { %v1941_v30 = vpack.c.bf16 %v5911_v25, %v5914_v14  ;;  %4226 = vmatmul.mubr.msk.bf16.gmra.mrb[8].mxu1 %vm2013_vm1, %v1992_v47 }
 0x29d   : > { %2263 = vrot.lane.b32.xlu0 %v1941_v30, %s4745_s15 }
 0x29e   : > { %v1272_v4 = vpop.permute.xlu1 %1271 }
 0x29f   : > { %v1345_v5 = vmul.f32 %v5421_v23, %v1272_v4 }
 0x2a1   : > { %v5924_v28 = vadd.f32 %v5679_v58, %v1345_v5 }
 0x2a2   : > { %v1994_v11 = vpop.permute.xlu0 %1993 }
 0x2a3   : > { %4229 = vmatprep.mubr.msk.bf16.mxu1 %vm2013_vm1, %v1994_v11 }
 0x2a6   : > { %v1274_v19 = vpop.permute.xlu0 %1273 }
 0x2a7   : > { %v1346_v41 = vmul.f32 %v5425_v7, %v1274_v19 }
 0x2a9   : > { %v5927_v20 = vadd.f32 %v6852_v22, %v1346_v41  ;;  %v6853_v41 = vld [vmem:[#allocation93_spill] sm:$0xff] }
 0x2aa   : > { %v1996_v10 = vpop.permute.xlu1 %1995 }
 0x2ab   : > { %v1942_v47 = vpack.c.bf16 %v5927_v20, %v5924_v28  ;;  %4230 = vmatmul.mubr.msk.bf16.gmra.mrb[12].mxu1 %vm2013_vm1, %v1996_v10 }
 0x2ad   : > { %2265 = vrot.lane.b32.xlu1 %v1942_v47, %s4745_s15 }
 0x2ae   : > { %v1278_v30 = vpop.permute.xlu1 %1277 }
 0x2af   : > { %v1348_v4 = vmul.f32 %v5434_v8, %v1278_v30 }
 0x2b1   : > { %v5937_v5 = vadd.f32 %v5703_v60, %v1348_v4 }
 0x2b2   : > { %v1998_v11 = vpop.permute.xlu0 %1997 }
 0x2b3   : > { %4233 = vmatprep.mubr.msk.bf16.mxu1 %vm2013_vm1, %v1998_v11 }
 0x2b6   : > { %v1276_v19 = vpop.permute.xlu0 %1275 }
 0x2b7   : > { %v1347_v58 = vmul.f32 %v5431_v16, %v1276_v19 }
 0x2b9   : > { %v5940_v22 = vadd.f32 %v6853_v41, %v1347_v58  ;;  %v6854_v58 = vld [vmem:[#allocation96_spill] sm:$0xff] }
 0x2ba   : > { %v2000_v56 = vpop.permute.xlu1 %1999 }
 0x2bb   : > { %v1943_v10 = vpack.c.bf16 %v5937_v5, %v5940_v22  ;;  %4234 = vmatmul.mubr.msk.bf16.gmra.mrb[16].mxu1 %vm2013_vm1, %v2000_v56 }
 0x2bd   : > { %2267 = vrot.lane.b32.xlu0 %v1943_v10, %s4745_s15 }
 0x2be   : > { %v1280_v47 = vpop.permute.xlu1 %1279 }
 0x2bf   : > { %v1349_v30 = vmul.f32 %v5439_v17, %v1280_v47 }
 0x2c1   : > { %v5950_v4 = vadd.f32 %v5717_v12, %v1349_v30 }
 0x2c2   : > { %v2002_v11 = vpop.permute.xlu0 %2001 }
 0x2c3   : > { %4237 = vmatprep.mubr.msk.bf16.mxu1 %vm2013_vm1, %v2002_v11 }
 0x2c6   : > { %v1282_v19 = vpop.permute.xlu0 %1281 }
 0x2c7   : > { %v1350_v60 = vmul.f32 %v5442_v34, %v1282_v19 }
 0x2c9   : > { %v5953_v41 = vadd.f32 %v6854_v58, %v1350_v60  ;;  %v6855_v60 = vld [vmem:[#allocation99_spill] sm:$0xff] }
 0x2ca   : > { %v2004_v8 = vpop.permute.xlu1 %2003 }
 0x2cb   : > { %v1944_v56 = vpack.c.bf16 %v5953_v41, %v5950_v4  ;;  %4238 = vmatmul.mubr.msk.bf16.gmra.mrb[20].mxu1 %vm2013_vm1, %v2004_v8 }
 0x2cd   : > { %2269 = vrot.lane.b32.xlu1 %v1944_v56, %s4745_s15 }
 0x2ce   : > { %v1286_v10 = vpop.permute.xlu1 %1285 }
 0x2cf   : > { %v1352_v47 = vmul.f32 %v5450_v36, %v1286_v10 }
 0x2d1   : > { %v5963_v30 = vadd.f32 %v5741_v18, %v1352_v47 }
 0x2d2   : > { %v2006_v11 = vpop.permute.xlu0 %2005 }
 0x2d3   : > { %4241 = vmatprep.mubr.msk.bf16.mxu1 %vm2013_vm1, %v2006_v11 }
 0x2d6   : > { %v1284_v19 = vpop.permute.xlu0 %1283 }
 0x2d7   : > { %v1351_v12 = vmul.f32 %v5447_v0, %v1284_v19 }
 0x2d9   : > { %v5966_v58 = vadd.f32 %v6855_v60, %v1351_v12 }
 0x2da   : > { %v2008_v16 = vpop.permute.xlu1 %2007 }
 0x2db   : > { %v1945_v8 = vpack.c.bf16 %v5963_v30, %v5966_v58  ;;  %4242 = vmatmul.mubr.msk.bf16.gmra.mrb[24].mxu1 %vm2013_vm1, %v2008_v16 }
 0x2dd   : > { %2271 = vrot.lane.b32.xlu0 %v1945_v8, %s4745_s15 }
 0x2de   : > { %v1288_v56 = vpop.permute.xlu1 %1287 }
 0x2df   : > { %v1353_v18 = vmul.f32 %v5465_v48, %v1288_v56  ;;  %v6866_v56 = vld [vmem:[#allocation69_spill] sm:$0xff] }
 0x2e1   : > { %2936 = vrot.lane.b32.xlu0 %v5772_v31, %s4745_s15  ;;  %v1673_v19 = vadd.f32 %v5761_v53, %v1353_v18  ;;  %v6867_v18 = vld [vmem:[#allocation80_spill] sm:$0xff] }
 0x2e3   : > { %v2010_v10 = vpop.permute.xlu0 %2009 }
 0x2e4   : > { %4245 = vmatprep.mubr.msk.bf16.mxu1 %vm2013_vm1, %v2010_v10  ;;  %v3933_v10 = vpack.c.bf16 %v6866_v56, %v6866_v56 }
 0x2e5   : > { %2940 = vrot.lane.b32.xlu0 %v5816_v21, %s4745_s15 }
 0x2e7   : > { %v1290_v11 = vpop.permute.xlu0 %1289 }
 0x2e8   : > { %v1354_v47 = vmul.f32 %v5479_v42, %v1290_v11  ;;  %v3940_v11 = vpack.c.bf16 %v6867_v18, %v6867_v18  ;;  %v6884_v18 = vld [vmem:[#allocation2_spill] sm:$0xff] }
 0x2e9   : > { %2944 = vrot.lane.b32.xlu0 %v5803_v33, %s4745_s15 }
 0x2ea   : > { %v5981_v16 = vadd.f32 %v5781_v13, %v1354_v47  ;;  %v6868_v47 = vld [vmem:[#allocation71_spill] sm:$0xff] }
 0x2eb   : > { %v2244_v21 = vpop.permute.xlu0 %2243 }
 0x2ec   : > { %v1946_v31 = vpack.c.bf16 %v5981_v16, %v1673_v19 }
 0x2ed   : > { %v2012_v12 = vpop.permute.xlu1 %2011  ;;  %2948 = vrot.lane.b32.xlu0 %v5840_v2, %s4745_s15 }
 0x2ee   : > { %2273 = vrot.lane.b32.xlu1 %v1946_v31, %s4745_s15  ;;  %4246 = vmatmul.mubr.msk.bf16.gmra.mrb[28].mxu1 %vm2013_vm1, %v2012_v12 }
 0x2ef   : > { %4251 = vmatprep.mubr.msk.bf16.mxu1 %vm2013_vm1, %v2244_v21  ;;  %v2248_v13 = vpop.permute.xlu0 %2247  ;;  %v6870_v21 = vld [vmem:[#allocation74_spill] sm:$0xff] }
 0x2f1   : > { %2952 = vrot.lane.b32.xlu0 %v5824_v50, %s4745_s15  ;;  %v2246_v53 = vpop.permute.xlu1 %2245 }
 0x2f2   : > { %2938 = vrot.lane.b32.xlu1 %v5767_v51, %s4745_s15 }
 0x2f5   : > { %2956 = vrot.lane.b32.xlu0 %v5865_v3, %s4745_s15  ;;  %v2250_v2 = vpop.permute.xlu1 %2249  ;;  %v6857_v3 = vld [vmem:[#allocation64_spill] sm:$0xff] }
 0x2f6   : > { %2942 = vrot.lane.b32.xlu1 %v5800_v44, %s4745_s15  ;;  %4252 = vmatmul.mubr.msk.bf16.vlgmr.msra.gmra.mrb[0].mxu1 %vm2013_vm1, %v2246_v53  ;;  %v2252_v44 = vpop.permute.xlu0 %2251  ;;  %v3937_v53 = vpack.c.bf16 %v6870_v21, %v6870_v21  ;;  %v6887_v21 = vld [vmem:[#allocation101_spill] sm:$0xff] }
 0x2f7   : > { %4255 = vmatprep.mubr.msk.bf16.mxu1 %vm2013_vm1, %v2248_v13  ;;  %v6871_v13 = vld [vmem:[#allocation85_spill] sm:$0xff] }
 0x2f9   : > { %2960 = vrot.lane.b32.xlu0 %v5859_v59, %s4745_s15  ;;  %v2254_v51 = vpop.permute.xlu1 %2253 }
 0x2fa   : > { %2946 = vrot.lane.b32.xlu1 %v5786_v52, %s4745_s15  ;;  %v2256_v52 = vpop.permute.xlu0 %2255 }
 0x2fd   : > { %2964 = vrot.lane.b32.xlu0 %v5886_v43, %s4745_s15  ;;  %v2258_v33 = vpop.permute.xlu1 %2257  ;;  %v6859_v43 = vld [vmem:[#allocation68_spill] sm:$0xff] }
 0x2fe   : > { %2950 = vrot.lane.b32.xlu1 %v5831_v35, %s4745_s15  ;;  %4256 = vmatmul.mubr.msk.bf16.gmra.mrb[4].mxu1 %vm2013_vm1, %v2250_v2  ;;  %v3944_v2 = vpack.c.bf16 %v6871_v13, %v6871_v13 }
 0x2ff   : > { %4259 = vmatprep.mubr.msk.bf16.mxu1 %vm2013_vm1, %v2252_v44  ;;  %v6872_v44 = vld [vmem:[#allocation77_spill] sm:$0xff] }
 0x301   : > { %2968 = vrot.lane.b32.xlu0 %v5873_v26, %s4745_s15  ;;  %v2262_v50 = vpop.permute.xlu1 %2261  ;;  %v6858_v26 = vld [vmem:[#allocation65_spill] sm:$0xff] }
 0x302   : > { %2954 = vrot.lane.b32.xlu1 %v5811_v63, %s4745_s15  ;;  %v2260_v63 = vpop.permute.xlu0 %2259 }
 0x305   : > { %2972 = vrot.lane.b32.xlu0 %v5900_v1, %s4745_s15  ;;  %v6860_v1 = vld [vmem:[#allocation59_spill] sm:$0xff] }
 0x306   : > { %2958 = vrot.lane.b32.xlu1 %v5856_v38, %s4745_s15  ;;  %4260 = vmatmul.mubr.msk.bf16.gmra.mrb[8].mxu1 %vm2013_vm1, %v2254_v51  ;;  %v3939_v51 = vpack.c.bf16 %v6872_v44, %v6872_v44  ;;  %v6888_v44 = vld [vmem:[#allocation6_spill] sm:$0xff] }
 0x307   : > { %4263 = vmatprep.mubr.msk.bf16.mxu1 %vm2013_vm1, %v2256_v52  ;;  %v6873_v52 = vld [vmem:[#allocation88_spill] sm:$0xff] }
 0x309   : > { %2976 = vrot.lane.b32.xlu0 %v5914_v14, %s4745_s15  ;;  %v6861_v14 = vld [vmem:[#allocation70_spill] sm:$0xff] }
 0x30a   : > { %2962 = vrot.lane.b32.xlu1 %v5845_v62, %s4745_s15  ;;  %v6856_v62 = vld [vmem:[#allocation60_spill] sm:$0xff] }
 0x30b   : > { %v3926_v38 = vpack.c.bf16 %v6856_v62, %v6856_v62 }
 0x30d   : > { %2980 = vrot.lane.b32.xlu0 %v5924_v28, %s4745_s15  ;;  %v3934_v28 = vpack.c.bf16 %v6861_v14, %v6861_v14  ;;  %v6880_v14 = vld [vmem:[#allocation89_spill] sm:$0xff] }
 0x30e   : > { %2966 = vrot.lane.b32.xlu1 %v5882_v57, %s4745_s15  ;;  %4264 = vmatmul.mubr.msk.bf16.gmra.mrb[12].mxu1 %vm2013_vm1, %v2258_v33  ;;  %v3930_v57 = vpack.c.bf16 %v6858_v26, %v6858_v26  ;;  %v3946_v33 = vpack.c.bf16 %v6873_v52, %v6873_v52 }
 0x30f   : > { %4267 = vmatprep.mubr.msk.bf16.mxu1 %vm2013_vm1, %v2260_v63  ;;  %v2264_v35 = vpop.permute.xlu0 %2263  ;;  %v6874_v63 = vld [vmem:[#allocation81_spill] sm:$0xff] }
 0x311   : > { %2984 = vrot.lane.b32.xlu0 %v5940_v22, %s4745_s15 }
 0x312   : > { %2970 = vrot.lane.b32.xlu1 %v5870_v37, %s4745_s15  ;;  %v3928_v37 = vpack.c.bf16 %v6857_v3, %v6857_v3  ;;  %v6877_v3 = vld [vmem:[#allocation94_spill] sm:$0xff] }
 0x315   : > { %2988 = vrot.lane.b32.xlu0 %v5950_v4, %s4745_s15  ;;  %v6863_v4 = vld [vmem:[#allocation73_spill] sm:$0xff] }
 0x316   : > { %2974 = vrot.lane.b32.xlu1 %v5897_v9, %s4745_s15  ;;  %4268 = vmatmul.mubr.msk.bf16.gmra.mrb[16].mxu1 %vm2013_vm1, %v2262_v50  ;;  %v3932_v9 = vpack.c.bf16 %v6859_v43, %v6859_v43  ;;  %v3941_v50 = vpack.c.bf16 %v6874_v63, %v6874_v63  ;;  %v6889_v63 = vld [vmem:[#allocation3_spill] sm:$0xff] }
 0x317   : > { %4271 = vmatprep.mubr.msk.bf16.mxu1 %vm2013_vm1, %v2264_v35  ;;  %v6875_v35 = vld [vmem:[#allocation91_spill] sm:$0xff] }
 0x318   : > { %v3948_v62 = vpack.c.bf16 %v6875_v35, %v6875_v35  ;;  %v6890_v35 = vld [vmem:[#allocation8_spill] sm:$0xff] }
 0x319   : > { %2992 = vrot.lane.b32.xlu0 %v5966_v58, %s4745_s15  ;;  %v6865_v58 = vld [vmem:[#allocation76_spill] sm:$0xff] }
 0x31a   : > { %2978 = vrot.lane.b32.xlu1 %v5911_v25, %s4745_s15  ;;  %v3927_v25 = vpack.c.bf16 %v6860_v1, %v6860_v1  ;;  %v3938_v8 = vpack.c.bf16 %v6865_v58, %v6865_v58  ;;  %v6883_v58 = vld [vmem:[#allocation95_spill] sm:$0xff] }
 0x31d   : > { %2996 = vrot.lane.b32.xlu0 %v1673_v19, %s4745_s15  ;;  %v3935_v19 = vpack.c.bf16 %v6868_v47, %v6868_v47 }
 0x31e   : > { %2982 = vrot.lane.b32.xlu1 %v5927_v20, %s4745_s15 }
 0x31f   : > { %v2266_v59 = vpop.permute.xlu1 %2265 }
 0x320   : > { %4272 = vmatmul.mubr.msk.bf16.gmra.mrb[20].mxu1 %vm2013_vm1, %v2266_v59 }
 0x321   : > { %3128 = vrot.lane.b32.xlu0 %v3926_v38, %s4744_s30  ;;  %v6876_v38 = vld [vmem:[#allocation83_spill] sm:$0xff] }
 0x322   : > { %2986 = vrot.lane.b32.xlu1 %v5937_v5, %s4745_s15  ;;  %v6862_v5 = vld [vmem:[#allocation63_spill] sm:$0xff]  ;;  %v3943_v59 = vpack.c.bf16 %v6876_v38, %v6876_v38 }
 0x323   : > { %v3929_v22 = vpack.c.bf16 %v6862_v5, %v6862_v5 }
 0x325   : > { %3132 = vrot.lane.b32.xlu0 %v3928_v37, %s4744_s30  ;;  %v3950_v37 = vpack.c.bf16 %v6877_v3, %v6877_v3  ;;  %v6891_v3 = vld [vmem:[#allocation5_spill] sm:$0xff] }
 0x326   : > { %2990 = vrot.lane.b32.xlu1 %v5953_v41, %s4745_s15  ;;  %v3936_v41 = vpack.c.bf16 %v6863_v4, %v6863_v4  ;;  %v6882_v4 = vld [vmem:[#allocation92_spill] sm:$0xff] }
 0x329   : > { %3136 = vrot.lane.b32.xlu0 %v3930_v57, %s4744_s30  ;;  %v6878_v57 = vld [vmem:[#allocation86_spill] sm:$0xff] }
 0x32a   : > { %2994 = vrot.lane.b32.xlu1 %v5963_v30, %s4745_s15  ;;  %v6864_v30 = vld [vmem:[#allocation66_spill] sm:$0xff]  ;;  %v3945_v43 = vpack.c.bf16 %v6878_v57, %v6878_v57 }
 0x32b   : > { %v3931_v60 = vpack.c.bf16 %v6864_v30, %v6864_v30  ;;  %v3956_v30 = vpack.c.bf16 %v5789_v46, %v5789_v46  ;;  %v6885_v46 = vld [vmem:[#allocation98_spill] sm:$0xff] }
 0x32c   : > { %v3953_v47 = vpack.c.bf16 %v6885_v46, %v6885_v46 }
 0x32d   : > { %3140 = vrot.lane.b32.xlu0 %v3932_v9, %s4744_s30  ;;  %v6879_v9 = vld [vmem:[#allocation97_spill] sm:$0xff] }
 0x32e   : > { %2998 = vrot.lane.b32.xlu1 %v5981_v16, %s4745_s15  ;;  %v6869_v16 = vld [vmem:[#allocation82_spill] sm:$0xff]  ;;  %v3952_v1 = vpack.c.bf16 %v6879_v9, %v6879_v9 }
 0x32f   : > { %v2268_v20 = vpop.permute.xlu0 %2267  ;;  %v3942_v31 = vpack.c.bf16 %v6869_v16, %v6869_v16 }
 0x330   : > { %4275 = vmatprep.mubr.msk.bf16.mxu1 %vm2013_vm1, %v2268_v20  ;;  %v6881_v20 = vld [vmem:[#allocation100_spill] sm:$0xff] }
 0x331   : > { %3144 = vrot.lane.b32.xlu0 %v3934_v28, %s4744_s30  ;;  %v3947_v28 = vpack.c.bf16 %v6880_v14, %v6880_v14  ;;  %v3954_v5 = vpack.c.bf16 %v6881_v20, %v6881_v20  ;;  %v6894_v14 = vld [vmem:[#allocation12_spill] sm:$0xff] }
 0x332   : > { %3130 = vrot.lane.b32.xlu1 %v3927_v25, %s4744_s30 }
 0x335   : > { %3148 = vrot.lane.b32.xlu0 %v3936_v41, %s4744_s30  ;;  %v3949_v41 = vpack.c.bf16 %v6882_v4, %v6882_v4 }
 0x336   : > { %3134 = vrot.lane.b32.xlu1 %v3929_v22, %s4744_s30 }
 0x339   : > { %3152 = vrot.lane.b32.xlu0 %v3938_v8, %s4744_s30  ;;  %v3951_v8 = vpack.c.bf16 %v6883_v58, %v6883_v58 }
 0x33a   : > { %3138 = vrot.lane.b32.xlu1 %v3931_v60, %s4744_s30 }
 0x33d   : > { %3156 = vrot.lane.b32.xlu0 %v3940_v11, %s4744_s30  ;;  %v3958_v11 = vpack.c.bf16 %v6884_v18, %v6884_v18 }
 0x33e   : > { %3142 = vrot.lane.b32.xlu1 %v3933_v10, %s4744_s30 }
 0x33f   : > { %v2270_v12 = vpop.permute.xlu1 %2269 }
 0x340   : > { %4276 = vmatmul.mubr.msk.bf16.gmra.mrb[24].mxu1 %vm2013_vm1, %v2270_v12 }
 0x341   : > { %3160 = vrot.lane.b32.xlu0 %v3942_v31, %s4744_s30  ;;  %v6886_v31 = vld [vmem:[#allocation4_spill] sm:$0xff] }
 0x342   : > { %3146 = vrot.lane.b32.xlu1 %v3935_v19, %s4744_s30  ;;  %v3960_v12 = vpack.c.bf16 %v6886_v31, %v6886_v31 }
 0x345   : > { %3164 = vrot.lane.b32.xlu0 %v3944_v2, %s4744_s30 }
 0x346   : > { %3150 = vrot.lane.b32.xlu1 %v3937_v53, %s4744_s30  ;;  %v3955_v53 = vpack.c.bf16 %v6887_v21, %v6887_v21 }
 0x349   : > { %3168 = vrot.lane.b32.xlu0 %v3946_v33, %s4744_s30 }
 0x34a   : > { %3154 = vrot.lane.b32.xlu1 %v3939_v51, %s4744_s30  ;;  %v3962_v51 = vpack.c.bf16 %v6888_v44, %v6888_v44 }
 0x34d   : > { %3172 = vrot.lane.b32.xlu0 %v3948_v62, %s4744_s30  ;;  %v3964_v62 = vpack.c.bf16 %v6890_v35, %v6890_v35 }
 0x34e   : > { %3158 = vrot.lane.b32.xlu1 %v3941_v50, %s4744_s30  ;;  %v3959_v50 = vpack.c.bf16 %v6889_v63, %v6889_v63 }
 0x34f   : > { %v2272_v26 = vpop.permute.xlu0 %2271 }
 0x350   : > { %4279 = vmatprep.mubr.msk.bf16.mxu1 %vm2013_vm1, %v2272_v26  ;;  %v6892_v26 = vld [vmem:[#allocation10_spill] sm:$0xff] }
 0x351   : > { %3176 = vrot.lane.b32.xlu0 %v3950_v37, %s4744_s30  ;;  %v3961_v37 = vpack.c.bf16 %v6891_v3, %v6891_v3  ;;  %v3966_v57 = vpack.c.bf16 %v6892_v26, %v6892_v26 }
 0x352   : > { %3162 = vrot.lane.b32.xlu1 %v3943_v59, %s4744_s30 }
 0x353   : > { %v2937_v25 = vpop.permute.xlu0 %2936 }
 0x354   : > { %3032 = vst.msk [vmem:[%s6130_s21] sm:$0xff] %vm2013_vm1, %v2937_v25 }
 0x355   : > { %3180 = vrot.lane.b32.xlu0 %v3952_v1, %s4744_s30  ;;  %v6893_v1 = vld [vmem:[#allocation7_spill] sm:$0xff] }
 0x356   : > { %3166 = vrot.lane.b32.xlu1 %v3945_v43, %s4744_s30  ;;  %v3963_v25 = vpack.c.bf16 %v6893_v1, %v6893_v1 }
 0x357   : > { %v2941_v22 = vpop.permute.xlu0 %2940 }
 0x358   : > { %3034 = vst.msk [vmem:[%s6130_s21 + $0x10] sm:$0xff] %vm2013_vm1, %v2941_v22  ;;  %v6895_v22 = vld [vmem:[#allocation9_spill] sm:$0xff] }
 0x359   : > { %3184 = vrot.lane.b32.xlu0 %v3954_v5, %s4744_s30  ;;  %v3965_v4 = vpack.c.bf16 %v6895_v22, %v6895_v22 }
 0x35a   : > { %3170 = vrot.lane.b32.xlu1 %v3947_v28, %s4744_s30  ;;  %v3968_v28 = vpack.c.bf16 %v6894_v14, %v6894_v14 }
 0x35b   : > { %v2945_v60 = vpop.permute.xlu0 %2944 }
 0x35c   : > { %3036 = vst.msk [vmem:[%s6130_s21 + $0x20] sm:$0xff] %vm2013_vm1, %v2945_v60 }
 0x35d   : > { %3188 = vrot.lane.b32.xlu0 %v3956_v30, %s4744_s30 }
 0x35e   : > { %3174 = vrot.lane.b32.xlu1 %v3949_v41, %s4744_s30  ;;  %v6896_v41 = vld [vmem:[#allocation14_spill] sm:$0xff] }
 0x35f   : > { %v2949_v10 = vpop.permute.xlu0 %2948  ;;  %v3970_v30 = vpack.c.bf16 %v6896_v41, %v6896_v41 }
 0x360   : > { %v2274_v56 = vpop.permute.xlu1 %2273  ;;  %3038 = vst.msk [vmem:[%s6130_s21 + $0x30] sm:$0xff] %vm2013_vm1, %v2949_v10  ;;  %v6898_v10 = vld [vmem:[#allocation16_spill] sm:$0xff] }
 0x361   : > { %4280 = vmatmul.mubr.msk.bf16.gmra.mrb[28].mxu1 %vm2013_vm1, %v2274_v56  ;;  %3352 = vrot.lane.b32.xlu0 %v3958_v11, %s4746_s12  ;;  %v3972_v18 = vpack.c.bf16 %v6898_v10, %v6898_v10 }
 0x362   : > { %3178 = vrot.lane.b32.xlu1 %v3951_v8, %s4744_s30  ;;  %v6897_v8 = vld [vmem:[#allocation11_spill] sm:$0xff] }
 0x363   : > { %v2953_v16 = vpop.permute.xlu0 %2952  ;;  %v3967_v56 = vpack.c.bf16 %v6897_v8, %v6897_v8 }
 0x364   : > { %v2939_v19 = vpop.permute.xlu1 %2938  ;;  %3040 = vst.msk [vmem:[%s6130_s21 + $0x40] sm:$0xff] %vm2013_vm1, %v2953_v16  ;;  %v6900_v16 = vld [vmem:[#allocation18_spill] sm:$0xff] }
 0x365   : > { %3033 = vst.msk [vmem:[%s6130_s21 + $0x8] sm:$0xff] %vm2013_vm1, %v2939_v19  ;;  %3356 = vrot.lane.b32.xlu0 %v3960_v12, %s4746_s12  ;;  %v3974_v31 = vpack.c.bf16 %v6900_v16, %v6900_v16 }
 0x366   : > { %3182 = vrot.lane.b32.xlu1 %v3953_v47, %s4744_s30  ;;  %v6899_v47 = vld [vmem:[#allocation13_spill] sm:$0xff] }
 0x367   : > { %v2957_v2 = vpop.permute.xlu0 %2956  ;;  %v3969_v19 = vpack.c.bf16 %v6899_v47, %v6899_v47 }
 0x368   : > { %v2943_v13 = vpop.permute.xlu1 %2942  ;;  %3042 = vst.msk [vmem:[%s6130_s21 + $0x50] sm:$0xff] %vm2013_vm1, %v2957_v2  ;;  %v6902_v2 = vld [vmem:[#allocation20_spill] sm:$0xff] }
 0x369   : > { %3035 = vst.msk [vmem:[%s6130_s21 + $0x18] sm:$0xff] %vm2013_vm1, %v2943_v13  ;;  %3360 = vrot.lane.b32.xlu0 %v3962_v51, %s4746_s12  ;;  %v3976_v44 = vpack.c.bf16 %v6902_v2, %v6902_v2 }
 0x36a   : > { %3186 = vrot.lane.b32.xlu1 %v3955_v53, %s4744_s30  ;;  %v6901_v53 = vld [vmem:[#allocation15_spill] sm:$0xff] }
 0x36b   : > { %v2961_v33 = vpop.permute.xlu0 %2960  ;;  %v3971_v13 = vpack.c.bf16 %v6901_v53, %v6901_v53 }
 0x36c   : > { %v2947_v52 = vpop.permute.xlu1 %2946  ;;  %3044 = vst.msk [vmem:[%s6130_s21 + $0x60] sm:$0xff] %vm2013_vm1, %v2961_v33  ;;  %v6903_v33 = vld [vmem:[#allocation17_spill] sm:$0xff] }
 0x36d   : > { %3037 = vst.msk [vmem:[%s6130_s21 + $0x28] sm:$0xff] %vm2013_vm1, %v2947_v52  ;;  %3364 = vrot.lane.b32.xlu0 %v3964_v62, %s4746_s12  ;;  %v3973_v63 = vpack.c.bf16 %v6903_v33, %v6903_v33 }
 0x36e   : > { %3354 = vrot.lane.b32.xlu1 %v3959_v50, %s4746_s12  ;;  %v6904_v50 = vld [vmem:[#allocation22_spill] sm:$0xff] }
 0x36f   : > { %v2965_v59 = vpop.permute.xlu0 %2964  ;;  %v3978_v35 = vpack.c.bf16 %v6904_v50, %v6904_v50 }
 0x370   : > { %v2951_v38 = vpop.permute.xlu1 %2950  ;;  %3046 = vst.msk [vmem:[%s6130_s21 + $0x70] sm:$0xff] %vm2013_vm1, %v2965_v59  ;;  %v6905_v59 = vld [vmem:[#allocation19_spill] sm:$0xff] }
 0x371   : > { %3039 = vst.msk [vmem:[%s6130_s21 + $0x38] sm:$0xff] %vm2013_vm1, %v2951_v38  ;;  %3368 = vrot.lane.b32.xlu0 %v3966_v57, %s4746_s12  ;;  %v3975_v3 = vpack.c.bf16 %v6905_v59, %v6905_v59 }
 0x372   : > { %3358 = vrot.lane.b32.xlu1 %v3961_v37, %s4746_s12  ;;  %v6906_v37 = vld [vmem:[#allocation25_spill] sm:$0xff] }
 0x373   : > { %v2969_v9 = vpop.permute.xlu0 %2968  ;;  %v3980_v26 = vpack.c.bf16 %v6906_v37, %v6906_v37 }
 0x374   : > { %v2955_v43 = vpop.permute.xlu1 %2954  ;;  %3048 = vst.msk [vmem:[%s6130_s21 + $0x80] sm:$0xff] %vm2013_vm1, %v2969_v9  ;;  %v6907_v9 = vld [vmem:[#allocation21_spill] sm:$0xff] }
 0x375   : > { %3041 = vst.msk [vmem:[%s6130_s21 + $0x48] sm:$0xff] %vm2013_vm1, %v2955_v43  ;;  %3372 = vrot.lane.b32.xlu0 %v3968_v28, %s4746_s12  ;;  %v3977_v1 = vpack.c.bf16 %v6907_v9, %v6907_v9 }
 0x376   : > { %3362 = vrot.lane.b32.xlu1 %v3963_v25, %s4746_s12  ;;  %v6908_v25 = vld [vmem:[#allocation30_spill] sm:$0xff] }
 0x377   : > { %v2973_v5 = vpop.permute.xlu0 %2972  ;;  %v3982_v14 = vpack.c.bf16 %v6908_v25, %v6908_v25 }
 0x378   : > { %v2959_v20 = vpop.permute.xlu1 %2958  ;;  %3050 = vst.msk [vmem:[%s6130_s21 + $0x90] sm:$0xff] %vm2013_vm1, %v2973_v5  ;;  %v6909_v5 = vld [vmem:[#allocation23_spill] sm:$0xff] }
 0x379   : > { %3043 = vst.msk [vmem:[%s6130_s21 + $0x58] sm:$0xff] %vm2013_vm1, %v2959_v20  ;;  %3376 = vrot.lane.b32.xlu0 %v3970_v30, %s4746_s12  ;;  %v3979_v22 = vpack.c.bf16 %v6909_v5, %v6909_v5 }
 0x37a   : > { %3366 = vrot.lane.b32.xlu1 %v3965_v4, %s4746_s12  ;;  %v6910_v4 = vld [vmem:[#allocation35_spill] sm:$0xff] }
 0x37b   : > { %v2977_v58 = vpop.permute.xlu0 %2976  ;;  %v3984_v41 = vpack.c.bf16 %v6910_v4, %v6910_v4 }
 0x37c   : > { %v2963_v60 = vpop.permute.xlu1 %2962  ;;  %3052 = vst.msk [vmem:[%s6130_s21 + $0xa0] sm:$0xff] %vm2013_vm1, %v2977_v58  ;;  %v6911_v58 = vld [vmem:[#allocation26_spill] sm:$0xff] }
 0x37d   : > { %3045 = vst.msk [vmem:[%s6130_s21 + $0x68] sm:$0xff] %vm2013_vm1, %v2963_v60  ;;  %3380 = vrot.lane.b32.xlu0 %v3972_v18, %s4746_s12  ;;  %v3981_v8 = vpack.c.bf16 %v6911_v58, %v6911_v58 }
 0x37e   : > { %3370 = vrot.lane.b32.xlu1 %v3967_v56, %s4746_s12  ;;  %v6912_v56 = vld [vmem:[#allocation41_spill] sm:$0xff] }
 0x37f   : > { %v2981_v46 = vpop.permute.xlu0 %2980  ;;  %v3986_v10 = vpack.c.bf16 %v6912_v56, %v6912_v56 }
 0x380   : > { %v2967_v11 = vpop.permute.xlu1 %2966  ;;  %3054 = vst.msk [vmem:[%s6130_s21 + $0xb0] sm:$0xff] %vm2013_vm1, %v2981_v46  ;;  %v6913_v46 = vld [vmem:[#allocation31_spill] sm:$0xff] }
 0x381   : > { %3047 = vst.msk [vmem:[%s6130_s21 + $0x78] sm:$0xff] %vm2013_vm1, %v2967_v11  ;;  %3384 = vrot.lane.b32.xlu0 %v3974_v31, %s4746_s12  ;;  %v3983_v47 = vpack.c.bf16 %v6913_v46, %v6913_v46  ;;  %v6914_v31 = vld [vmem:[#allocation37_spill] sm:$0xff] }
 0x382   : > { %3374 = vrot.lane.b32.xlu1 %v3969_v19, %s4746_s12 }
 0x383   : > { %v2985_v21 = vpop.permute.xlu0 %2984 }
 0x384   : > { %v2971_v12 = vpop.permute.xlu1 %2970  ;;  %3056 = vst.msk [vmem:[%s6130_s21 + $0xc0] sm:$0xff] %vm2013_vm1, %v2985_v21 }
 0x385   : > { %3049 = vst.msk [vmem:[%s6130_s21 + $0x88] sm:$0xff] %vm2013_vm1, %v2971_v12  ;;  %3388 = vrot.lane.b32.xlu0 %v3976_v44, %s4746_s12  ;;  %v3985_v12 = vpack.c.bf16 %v6914_v31, %v6914_v31  ;;  %v3957_v44 = vpack.c.bf16 %v5792_v49, %v5792_v49 }
 0x386   : > { %3378 = vrot.lane.b32.xlu1 %v3971_v13, %s4746_s12  ;;  %v6915_v13 = vld [vmem:[#allocation43_spill] sm:$0xff] }
 0x387   : > { %v2989_v52 = vpop.permute.xlu0 %2988  ;;  %v3987_v2 = vpack.c.bf16 %v6915_v13, %v6915_v13 }
 0x388   : > { %v2975_v51 = vpop.permute.xlu1 %2974  ;;  %3058 = vst.msk [vmem:[%s6130_s21 + $0xd0] sm:$0xff] %vm2013_vm1, %v2989_v52 }
 0x389   : > { %3051 = vst.msk [vmem:[%s6130_s21 + $0x98] sm:$0xff] %vm2013_vm1, %v2975_v51  ;;  %3392 = vrot.lane.b32.xlu0 %v3978_v35, %s4746_s12 }
 0x38a   : > { %3382 = vrot.lane.b32.xlu1 %v3973_v63, %s4746_s12 }
 0x38b   : > { %v2993_v38 = vpop.permute.xlu0 %2992 }
 0x38c   : > { %v2979_v62 = vpop.permute.xlu1 %2978  ;;  %3060 = vst.msk [vmem:[%s6130_s21 + $0xe0] sm:$0xff] %vm2013_vm1, %v2993_v38 }
 0x38d   : > { %3053 = vst.msk [vmem:[%s6130_s21 + $0xa8] sm:$0xff] %vm2013_vm1, %v2979_v62  ;;  %3396 = vrot.lane.b32.xlu0 %v3980_v26, %s4746_s12 }
 0x38e   : > { %3386 = vrot.lane.b32.xlu1 %v3975_v3, %s4746_s12 }
 0x38f   : > { %v2997_v43 = vpop.permute.xlu0 %2996 }
 0x390   : > { %v2983_v57 = vpop.permute.xlu1 %2982  ;;  %3062 = vst.msk [vmem:[%s6130_s21 + $0xf0] sm:$0xff] %vm2013_vm1, %v2997_v43 }
 0x391   : > { %3055 = vst.msk [vmem:[%s6130_s21 + $0xb8] sm:$0xff] %vm2013_vm1, %v2983_v57  ;;  %3400 = vrot.lane.b32.xlu0 %v3982_v14, %s4746_s12 }
 0x392   : > { %3390 = vrot.lane.b32.xlu1 %v3977_v1, %s4746_s12 }
 0x393   : > { %v3129_v20 = vpop.permute.xlu0 %3128 }
 0x394   : > { %v2987_v28 = vpop.permute.xlu1 %2986  ;;  %3224 = vst.msk [vmem:[%s6289_s23] sm:$0xf] %vm2871_vm2, %v3129_v20 }
 0x395   : > { %3057 = vst.msk [vmem:[%s6130_s21 + $0xc8] sm:$0xff] %vm2013_vm1, %v2987_v28  ;;  %3404 = vrot.lane.b32.xlu0 %v3984_v41, %s4746_s12 }
 0x396   : > { %3394 = vrot.lane.b32.xlu1 %v3979_v22, %s4746_s12 }
 0x397   : > { %v3133_v60 = vpop.permute.xlu0 %3132 }
 0x398   : > { %v2991_v30 = vpop.permute.xlu1 %2990  ;;  %3226 = vst.msk [vmem:[%s6289_s23 + $0x8] sm:$0xf] %vm2871_vm2, %v3133_v60 }
 0x399   : > { %3059 = vst.msk [vmem:[%s6130_s21 + $0xd8] sm:$0xff] %vm2013_vm1, %v2991_v30  ;;  %3408 = vrot.lane.b32.xlu0 %v3986_v10, %s4746_s12 }
 0x39a   : > { %3398 = vrot.lane.b32.xlu1 %v3981_v8, %s4746_s12 }
 0x39b   : > { %v3137_v11 = vpop.permute.xlu0 %3136 }
 0x39c   : > { %v2995_v18 = vpop.permute.xlu1 %2994  ;;  %3228 = vst.msk [vmem:[%s6289_s23 + $0x10] sm:$0xf] %vm2871_vm2, %v3137_v11 }
 0x39d   : > { %3061 = vst.msk [vmem:[%s6130_s21 + $0xe8] sm:$0xff] %vm2013_vm1, %v2995_v18 }
 0x39e   : > { %3402 = vrot.lane.b32.xlu1 %v3983_v47, %s4746_s12 }
 0x39f   : > { %v3141_v16 = vpop.permute.xlu0 %3140 }
 0x3a0   : > { %v2999_v19 = vpop.permute.xlu1 %2998  ;;  %3230 = vst.msk [vmem:[%s6289_s23 + $0x18] sm:$0xf] %vm2871_vm2, %v3141_v16 }
 0x3a1   : > { %3063 = vst.msk [vmem:[%s6130_s21 + $0xf8] sm:$0xff] %vm2013_vm1, %v2999_v19 }
 0x3a2   : > { %3406 = vrot.lane.b32.xlu1 %v3985_v12, %s4746_s12 }
 0x3a3   : > { %v3145_v53 = vpop.permute.xlu0 %3144 }
 0x3a4   : > { %v3131_v21 = vpop.permute.xlu1 %3130  ;;  %3232 = vst.msk [vmem:[%s6289_s23 + $0x20] sm:$0xf] %vm2871_vm2, %v3145_v53 }
 0x3a5   : > { %3225 = vst.msk [vmem:[%s6289_s23 + $0x4] sm:$0xf] %vm2871_vm2, %v3131_v21 }
 0x3a6   : > { %3410 = vrot.lane.b32.xlu1 %v3987_v2, %s4746_s12 }
 0x3a7   : > { %v3149_v52 = vpop.permute.xlu0 %3148 }
 0x3a8   : > { %v3135_v51 = vpop.permute.xlu1 %3134  ;;  %3234 = vst.msk [vmem:[%s6289_s23 + $0x28] sm:$0xf] %vm2871_vm2, %v3149_v52 }
 0x3a9   : > { %3227 = vst.msk [vmem:[%s6289_s23 + $0xc] sm:$0xf] %vm2871_vm2, %v3135_v51 }
 0x3aa   : > { %3190 = vrot.lane.b32.xlu1 %v3957_v44, %s4744_s30  ;;  %s6555_s30 = scalar_lea.vmem %s6639_s7, %s4869_s16 }
 0x3ab   : > { %v3153_v63 = vpop.permute.xlu0 %3152 }
 0x3ac   : > { %v3139_v33 = vpop.permute.xlu1 %3138  ;;  %3236 = vst.msk [vmem:[%s6289_s23 + $0x30] sm:$0xf] %vm2871_vm2, %v3153_v63 }
 0x3ad   : > { %3229 = vst.msk [vmem:[%s6289_s23 + $0x14] sm:$0xf] %vm2871_vm2, %v3139_v33 }
 0x3af   : > { %v3157_v50 = vpop.permute.xlu0 %3156 }
 0x3b0   : > { %v3143_v49 = vpop.permute.xlu1 %3142  ;;  %3238 = vst.msk [vmem:[%s6289_s23 + $0x38] sm:$0xf] %vm2871_vm2, %v3157_v50 }
 0x3b1   : > { %3231 = vst.msk [vmem:[%s6289_s23 + $0x1c] sm:$0xf] %vm2871_vm2, %v3143_v49 }
 0x3b3   : > { %v3161_v62 = vpop.permute.xlu0 %3160 }
 0x3b4   : > { %v3147_v35 = vpop.permute.xlu1 %3146  ;;  %3240 = vst.msk [vmem:[%s6289_s23 + $0x40] sm:$0xf] %vm2871_vm2, %v3161_v62 }
 0x3b5   : > { %3233 = vst.msk [vmem:[%s6289_s23 + $0x24] sm:$0xf] %vm2871_vm2, %v3147_v35 }
 0x3b7   : > { %v3165_v59 = vpop.permute.xlu0 %3164 }
 0x3b8   : > { %v3151_v38 = vpop.permute.xlu1 %3150  ;;  %3242 = vst.msk [vmem:[%s6289_s23 + $0x48] sm:$0xf] %vm2871_vm2, %v3165_v59 }
 0x3b9   : > { %3235 = vst.msk [vmem:[%s6289_s23 + $0x2c] sm:$0xf] %vm2871_vm2, %v3151_v38 }
 0x3bb   : > { %v3169_v37 = vpop.permute.xlu0 %3168 }
 0x3bc   : > { %v3155_v3 = vpop.permute.xlu1 %3154  ;;  %3244 = vst.msk [vmem:[%s6289_s23 + $0x50] sm:$0xf] %vm2871_vm2, %v3169_v37 }
 0x3bd   : > { %3237 = vst.msk [vmem:[%s6289_s23 + $0x34] sm:$0xf] %vm2871_vm2, %v3155_v3 }
 0x3bf   : > { %v3173_v57 = vpop.permute.xlu0 %3172 }
 0x3c0   : > { %v3159_v26 = vpop.permute.xlu1 %3158  ;;  %3246 = vst.msk [vmem:[%s6289_s23 + $0x58] sm:$0xf] %vm2871_vm2, %v3173_v57 }
 0x3c1   : > { %3239 = vst.msk [vmem:[%s6289_s23 + $0x3c] sm:$0xf] %vm2871_vm2, %v3159_v26 }
 0x3c3   : > { %v3177_v9 = vpop.permute.xlu0 %3176 }
 0x3c4   : > { %v3163_v43 = vpop.permute.xlu1 %3162  ;;  %3248 = vst.msk [vmem:[%s6289_s23 + $0x60] sm:$0xf] %vm2871_vm2, %v3177_v9 }
 0x3c5   : > { %3241 = vst.msk [vmem:[%s6289_s23 + $0x44] sm:$0xf] %vm2871_vm2, %v3163_v43 }
 0x3c7   : > { %v3181_v25 = vpop.permute.xlu0 %3180 }
 0x3c8   : > { %v3167_v1 = vpop.permute.xlu1 %3166  ;;  %3250 = vst.msk [vmem:[%s6289_s23 + $0x68] sm:$0xf] %vm2871_vm2, %v3181_v25 }
 0x3c9   : > { %3243 = vst.msk [vmem:[%s6289_s23 + $0x4c] sm:$0xf] %vm2871_vm2, %v3167_v1  ;;  %v4253_v14 = vpop.f32.mrb[0].mxu1 }
 0x3ca   : > { %4669 = vtanh.f32 %v4253_v14  ;;  %v2360_v28 = vpop.f32.mrb[1].mxu1 }
 0x3cb   : > { %v4254_v5 = vpop.f32.mrb[2].mxu1  ;;  %v3185_v22 = vpop.permute.xlu0 %3184 }
 0x3cc   : > { %v3171_v20 = vpop.permute.xlu1 %3170  ;;  %4671 = vtanh.f32 %v4254_v5  ;;  %v2363_v4 = vpop.f32.mrb[3].mxu1  ;;  %3252 = vst.msk [vmem:[%s6289_s23 + $0x70] sm:$0xf] %vm2871_vm2, %v3185_v22 }
 0x3cd   : > { %3245 = vst.msk [vmem:[%s6289_s23 + $0x54] sm:$0xf] %vm2871_vm2, %v3171_v20  ;;  %4673 = vtanh.f32 %v2360_v28 }
 0x3ce   : > { %4675 = vtanh.f32 %v2363_v4 }
 0x3cf   : > { %v3189_v30 = vpop.permute.xlu0 %3188 }
 0x3d0   : > { %v3175_v41 = vpop.permute.xlu1 %3174  ;;  %3254 = vst.msk [vmem:[%s6289_s23 + $0x78] sm:$0xf] %vm2871_vm2, %v3189_v30 }
 0x3d1   : > { %3247 = vst.msk [vmem:[%s6289_s23 + $0x5c] sm:$0xf] %vm2871_vm2, %v3175_v41  ;;  %v4257_v60 = vpop.f32.mrb[4].mxu1 }
 0x3d2   : > { %4677 = vtanh.f32 %v4257_v60  ;;  %v2376_v58 = vpop.f32.mrb[5].mxu1 }
 0x3d3   : > { %v4258_v56 = vpop.f32.mrb[6].mxu1  ;;  %v3353_v18 = vpop.permute.xlu0 %3352 }
 0x3d4   : > { %v3179_v8 = vpop.permute.xlu1 %3178  ;;  %v4670_v10 = vpop.eup %4669  ;;  %4679 = vtanh.f32 %v4258_v56  ;;  %3448 = vst.msk [vmem:[%s6383_s26] sm:$0xf] %vm2871_vm2, %v3353_v18 }
 0x3d5   : > { %3249 = vst.msk [vmem:[%s6289_s23 + $0x64] sm:$0xf] %vm2871_vm2, %v3179_v8  ;;  %v2379_v11 = vpop.f32.mrb[7].mxu1  ;;  %2555 = vrot.lane.b32.xlu0 %v4670_v10, %s4747_s27  ;;  %4681 = vtanh.f32 %v2376_v58 }
 0x3d6   : > { %v4672_v46 = vpop.eup %4671  ;;  %4683 = vtanh.f32 %v2379_v11 }
 0x3d7   : > { %2557 = vrot.lane.b32.xlu1 %v4672_v46, %s4747_s27  ;;  %v4674_v19 = vpop.eup %4673  ;;  %v3357_v16 = vpop.permute.xlu0 %3356 }
 0x3d8   : > { %v3183_v47 = vpop.permute.xlu1 %3182  ;;  %3450 = vst.msk [vmem:[%s6383_s26 + $0x8] sm:$0xf] %vm2871_vm2, %v3357_v16  ;;  %v4676_v12 = vpop.eup %4675 }
 0x3d9   : > { %3251 = vst.msk [vmem:[%s6289_s23 + $0x6c] sm:$0xf] %vm2871_vm2, %v3183_v47  ;;  %v4261_v31 = vpop.f32.mrb[8].mxu1  ;;  %2551 = vrot.lane.b32.xlu0 %v4674_v19, %s4747_s27 }
 0x3da   : > { %4685 = vtanh.f32 %v4261_v31  ;;  %v2392_v21 = vpop.f32.mrb[9].mxu1 }
 0x3db   : > { %2553 = vrot.lane.b32.xlu1 %v4676_v12, %s4747_s27  ;;  %v4262_v13 = vpop.f32.mrb[10].mxu1  ;;  %v3361_v44 = vpop.permute.xlu0 %3360 }
 0x3dc   : > { %v3187_v53 = vpop.permute.xlu1 %3186  ;;  %v4678_v2 = vpop.eup %4677  ;;  %4687 = vtanh.f32 %v4262_v13  ;;  %3452 = vst.msk [vmem:[%s6383_s26 + $0x10] sm:$0xf] %vm2871_vm2, %v3361_v44 }
 0x3dd   : > { %3253 = vst.msk [vmem:[%s6289_s23 + $0x74] sm:$0xf] %vm2871_vm2, %v3187_v53  ;;  %v2395_v51 = vpop.f32.mrb[11].mxu1  ;;  %2563 = vrot.lane.b32.xlu0 %v4678_v2, %s4747_s27  ;;  %4689 = vtanh.f32 %v2392_v21 }
 0x3de   : > { %v4680_v52 = vpop.eup %4679  ;;  %4691 = vtanh.f32 %v2395_v51 }
 0x3df   : > { %2565 = vrot.lane.b32.xlu1 %v4680_v52, %s4747_s27  ;;  %v4682_v63 = vpop.eup %4681  ;;  %v3365_v49 = vpop.permute.xlu0 %3364 }
 0x3e0   : > { %v3355_v33 = vpop.permute.xlu1 %3354  ;;  %3454 = vst.msk [vmem:[%s6383_s26 + $0x18] sm:$0xf] %vm2871_vm2, %v3365_v49  ;;  %v4684_v35 = vpop.eup %4683 }
 0x3e1   : > { %3449 = vst.msk [vmem:[%s6383_s26 + $0x4] sm:$0xf] %vm2871_vm2, %v3355_v33  ;;  %v4265_v50 = vpop.f32.mrb[12].mxu1  ;;  %2559 = vrot.lane.b32.xlu0 %v4682_v63, %s4747_s27 }
 0x3e2   : > { %4693 = vtanh.f32 %v4265_v50  ;;  %v2408_v62 = vpop.f32.mrb[13].mxu1 }
 0x3e3   : > { %2561 = vrot.lane.b32.xlu1 %v4684_v35, %s4747_s27  ;;  %v4266_v59 = vpop.f32.mrb[14].mxu1  ;;  %v3369_v37 = vpop.permute.xlu0 %3368 }
 0x3e4   : > { %v3359_v38 = vpop.permute.xlu1 %3358  ;;  %v4686_v3 = vpop.eup %4685  ;;  %4695 = vtanh.f32 %v4266_v59  ;;  %3456 = vst.msk [vmem:[%s6383_s26 + $0x20] sm:$0xf] %vm2871_vm2, %v3369_v37 }
 0x3e5   : > { %3451 = vst.msk [vmem:[%s6383_s26 + $0xc] sm:$0xf] %vm2871_vm2, %v3359_v38  ;;  %v2411_v26 = vpop.f32.mrb[15].mxu1  ;;  %2571 = vrot.lane.b32.xlu0 %v4686_v3, %s4747_s27  ;;  %4697 = vtanh.f32 %v2408_v62 }
 0x3e6   : > { %v4688_v57 = vpop.eup %4687  ;;  %4699 = vtanh.f32 %v2411_v26 }
 0x3e7   : > { %2573 = vrot.lane.b32.xlu1 %v4688_v57, %s4747_s27  ;;  %v4690_v9 = vpop.eup %4689  ;;  %v3373_v1 = vpop.permute.xlu0 %3372 }
 0x3e8   : > { %v3363_v43 = vpop.permute.xlu1 %3362  ;;  %3458 = vst.msk [vmem:[%s6383_s26 + $0x28] sm:$0xf] %vm2871_vm2, %v3373_v1  ;;  %v4692_v14 = vpop.eup %4691 }
 0x3e9   : > { %3453 = vst.msk [vmem:[%s6383_s26 + $0x14] sm:$0xf] %vm2871_vm2, %v3363_v43  ;;  %v4269_v25 = vpop.f32.mrb[16].mxu1  ;;  %2567 = vrot.lane.b32.xlu0 %v4690_v9, %s4747_s27 }
 0x3ea   : > { %4701 = vtanh.f32 %v4269_v25  ;;  %v2424_v28 = vpop.f32.mrb[17].mxu1 }
 0x3eb   : > { %2569 = vrot.lane.b32.xlu1 %v4692_v14, %s4747_s27  ;;  %v4270_v5 = vpop.f32.mrb[18].mxu1  ;;  %v3377_v4 = vpop.permute.xlu0 %3376 }
 0x3ec   : > { %v3367_v20 = vpop.permute.xlu1 %3366  ;;  %v4694_v22 = vpop.eup %4693  ;;  %4703 = vtanh.f32 %v4270_v5  ;;  %3460 = vst.msk [vmem:[%s6383_s26 + $0x30] sm:$0xf] %vm2871_vm2, %v3377_v4 }
 0x3ed   : > { %3455 = vst.msk [vmem:[%s6383_s26 + $0x1c] sm:$0xf] %vm2871_vm2, %v3367_v20  ;;  %v2427_v41 = vpop.f32.mrb[19].mxu1  ;;  %2579 = vrot.lane.b32.xlu0 %v4694_v22, %s4747_s27  ;;  %4705 = vtanh.f32 %v2424_v28 }
 0x3ee   : > { %v4696_v30 = vpop.eup %4695  ;;  %4707 = vtanh.f32 %v2427_v41 }
 0x3ef   : > { %2581 = vrot.lane.b32.xlu1 %v4696_v30, %s4747_s27  ;;  %v4698_v58 = vpop.eup %4697  ;;  %v3381_v8 = vpop.permute.xlu0 %3380 }
 0x3f0   : > { %v3371_v60 = vpop.permute.xlu1 %3370  ;;  %3462 = vst.msk [vmem:[%s6383_s26 + $0x38] sm:$0xf] %vm2871_vm2, %v3381_v8  ;;  %v4700_v56 = vpop.eup %4699 }
 0x3f1   : > { %3457 = vst.msk [vmem:[%s6383_s26 + $0x24] sm:$0xf] %vm2871_vm2, %v3371_v60  ;;  %2575 = vrot.lane.b32.xlu0 %v4698_v58, %s4747_s27 }
 0x3f3   : > { %2577 = vrot.lane.b32.xlu1 %v4700_v56, %s4747_s27  ;;  %v4273_v18 = vpop.f32.mrb[20].mxu1  ;;  %v3385_v46 = vpop.permute.xlu0 %3384 }
 0x3f4   : > { %v3375_v10 = vpop.permute.xlu1 %3374  ;;  %v4702_v11 = vpop.eup %4701  ;;  %4709 = vtanh.f32 %v4273_v18  ;;  %3464 = vst.msk [vmem:[%s6383_s26 + $0x40] sm:$0xf] %vm2871_vm2, %v3385_v46 }
 0x3f5   : > { %3459 = vst.msk [vmem:[%s6383_s26 + $0x2c] sm:$0xf] %vm2871_vm2, %v3375_v10  ;;  %v2440_v47 = vpop.f32.mrb[21].mxu1  ;;  %2587 = vrot.lane.b32.xlu0 %v4702_v11, %s4747_s27 }
 0x3f6   : > { %v4274_v19 = vpop.f32.mrb[22].mxu1  ;;  %v4704_v16 = vpop.eup %4703 }
 0x3f7   : > { %4711 = vtanh.f32 %v4274_v19  ;;  %v2443_v31 = vpop.f32.mrb[23].mxu1  ;;  %2589 = vrot.lane.b32.xlu1 %v4704_v16, %s4747_s27  ;;  %v4706_v21 = vpop.eup %4705 }
 0x3f8   : > { %v3379_v12 = vpop.permute.xlu1 %3378  ;;  %4713 = vtanh.f32 %v2440_v47  ;;  %v3389_v53 = vpop.permute.xlu0 %3388 }
 0x3f9   : > { %3461 = vst.msk [vmem:[%s6383_s26 + $0x34] sm:$0xf] %vm2871_vm2, %v3379_v12  ;;  %3466 = vst.msk [vmem:[%s6383_s26 + $0x48] sm:$0xf] %vm2871_vm2, %v3389_v53  ;;  %2583 = vrot.lane.b32.xlu0 %v4706_v21, %s4747_s27  ;;  %v4708_v13 = vpop.eup %4707  ;;  %4715 = vtanh.f32 %v2443_v31  ;;  %v6916_v21 = vld [vmem:[#allocation42_spill] sm:$0xff] }
 0x3fb   : > { %2585 = vrot.lane.b32.xlu1 %v4708_v13, %s4747_s27 }
 0x3fc   : > { %v3383_v2 = vpop.permute.xlu1 %3382  ;;  %v3393_v44 = vpop.permute.xlu0 %3392 }
 0x3fd   : > { %3463 = vst.msk [vmem:[%s6383_s26 + $0x3c] sm:$0xf] %vm2871_vm2, %v3383_v2  ;;  %3468 = vst.msk [vmem:[%s6383_s26 + $0x50] sm:$0xf] %vm2871_vm2, %v3393_v44  ;;  %v6917_v44 = vld [vmem:[#allocation45_spill] sm:$0xff] }
 0x3fe   : > { %v4710_v51 = vpop.eup %4709 }
 0x3ff   : > { %2595 = vrot.lane.b32.xlu0 %v4710_v51, %s4747_s27 }
 0x400   : > { %v3387_v52 = vpop.permute.xlu1 %3386  ;;  %v3397_v63 = vpop.permute.xlu0 %3396 }
 0x401   : > { %v4712_v33 = vpop.eup %4711  ;;  %3465 = vst.msk [vmem:[%s6383_s26 + $0x44] sm:$0xf] %vm2871_vm2, %v3387_v52  ;;  %3470 = vst.msk [vmem:[%s6383_s26 + $0x58] sm:$0xf] %vm2871_vm2, %v3397_v63 }
 0x402   : > { %2597 = vrot.lane.b32.xlu1 %v4712_v33, %s4747_s27  ;;  %v4714_v49 = vpop.eup %4713 }
 0x403   : > { %2591 = vrot.lane.b32.xlu0 %v4714_v49, %s4747_s27  ;;  %v4716_v35 = vpop.eup %4715 }
 0x404   : > { %v3391_v50 = vpop.permute.xlu1 %3390  ;;  %v3401_v62 = vpop.permute.xlu0 %3400 }
 0x405   : > { %3467 = vst.msk [vmem:[%s6383_s26 + $0x4c] sm:$0xf] %vm2871_vm2, %v3391_v50  ;;  %3472 = vst.msk [vmem:[%s6383_s26 + $0x60] sm:$0xf] %vm2871_vm2, %v3401_v62  ;;  %v6919_v50 = vld [vmem:[#allocation52_spill] sm:$0xff] }
 0x406   : > { %2593 = vrot.lane.b32.xlu1 %v4716_v35, %s4747_s27 }
 0x408   : > { %v3395_v38 = vpop.permute.xlu1 %3394  ;;  %v3405_v59 = vpop.permute.xlu0 %3404 }
 0x409   : > { %3469 = vst.msk [vmem:[%s6383_s26 + $0x54] sm:$0xf] %vm2871_vm2, %v3395_v38  ;;  %3474 = vst.msk [vmem:[%s6383_s26 + $0x68] sm:$0xf] %vm2871_vm2, %v3405_v59  ;;  %v6920_v59 = vld [vmem:[#allocation49_spill] sm:$0xff] }
 0x40c   : > { %v3399_v3 = vpop.permute.xlu1 %3398  ;;  %v3409_v37 = vpop.permute.xlu0 %3408 }
 0x40d   : > { %3471 = vst.msk [vmem:[%s6383_s26 + $0x5c] sm:$0xf] %vm2871_vm2, %v3399_v3  ;;  %3476 = vst.msk [vmem:[%s6383_s26 + $0x70] sm:$0xf] %vm2871_vm2, %v3409_v37 }
 0x410   : > { %v3403_v26 = vpop.permute.xlu1 %3402 }
 0x411   : > { %3473 = vst.msk [vmem:[%s6383_s26 + $0x64] sm:$0xf] %vm2871_vm2, %v3403_v26 }
 0x413   : > { %v4277_v43 = vpop.f32.mrb[24].mxu1 }
 0x414   : > { %v3407_v57 = vpop.permute.xlu1 %3406  ;;  %4717 = vtanh.f32 %v4277_v43  ;;  %v2456_v9 = vpop.f32.mrb[25].mxu1 }
 0x415   : > { %3475 = vst.msk [vmem:[%s6383_s26 + $0x6c] sm:$0xf] %vm2871_vm2, %v3407_v57  ;;  %v4278_v1 = vpop.f32.mrb[26].mxu1  ;;  %v6921_v57 = vld [vmem:[#allocation50_spill] sm:$0xff] }
 0x416   : > { %4719 = vtanh.f32 %v4278_v1  ;;  %v2459_v25 = vpop.f32.mrb[27].mxu1 }
 0x417   : > { %4721 = vtanh.f32 %v2456_v9 }
 0x418   : > { %v3411_v14 = vpop.permute.xlu1 %3410  ;;  %4723 = vtanh.f32 %v2459_v25 }
 0x419   : > { %3477 = vst.msk [vmem:[%s6383_s26 + $0x74] sm:$0xf] %vm2871_vm2, %v3411_v14 }
 0x41c   : > { %v3191_v28 = vpop.permute.xlu1 %3190 }
 0x41d   : > { %3255 = vst.msk [vmem:[%s6289_s23 + $0x7c] sm:$0xf] %vm2871_vm2, %v3191_v28 }
 0x41e   : > { %v4718_v20 = vpop.eup %4717 }
 0x41f   : > { %2603 = vrot.lane.b32.xlu0 %v4718_v20, %s4747_s27 }
 0x420   : > { %v4720_v5 = vpop.eup %4719 }
 0x421   : > { %2605 = vrot.lane.b32.xlu1 %v4720_v5, %s4747_s27  ;;  %v4722_v22 = vpop.eup %4721 }
 0x422   : > { %v4724_v4 = vpop.eup %4723 }
 0x423   : > { %2599 = vrot.lane.b32.xlu0 %v4722_v22, %s4747_s27 }
 0x425   : > { %2601 = vrot.lane.b32.xlu1 %v4724_v4, %s4747_s27  ;;  %v6922_v4 = vld [vmem:[#allocation53_spill] sm:$0xff] }
 0x434   : > { %v4281_v41 = vpop.f32.mrb[28].mxu1 }
 0x435   : > { %4725 = vtanh.f32 %v4281_v41  ;;  %v2472_v30 = vpop.f32.mrb[29].mxu1 }
 0x436   : > { %v4282_v60 = vpop.f32.mrb[30].mxu1 }
 0x437   : > { %4727 = vtanh.f32 %v4282_v60  ;;  %v2475_v58 = vpop.f32.mrb[31].mxu1 }
 0x438   : > { %4729 = vtanh.f32 %v2472_v30 }
 0x439   : > { %4731 = vtanh.f32 %v2475_v58  ;;  %v6923_v58 = vld [vmem:[#allocation54_spill] sm:$0xff] }
 0x43f   : > { %v4726_v8 = vpop.eup %4725 }
 0x440   : > { %2611 = vrot.lane.b32.xlu0 %v4726_v8, %s4747_s27 }
 0x441   : > { %v4728_v56 = vpop.eup %4727 }
 0x442   : > { %2613 = vrot.lane.b32.xlu1 %v4728_v56, %s4747_s27  ;;  %v4730_v10 = vpop.eup %4729 }
 0x443   : > { %v4732_v18 = vpop.eup %4731 }
 0x444   : > { %2607 = vrot.lane.b32.xlu0 %v4730_v10, %s4747_s27 }
 0x446   : > { %2609 = vrot.lane.b32.xlu1 %v4732_v18, %s4747_s27 }
 0x447   : > { %v2556_v11 = vpop.permute.xlu0 %2555 }
 0x448   : > { %v2649_v46 = vmul.f32 %v5314_v24, %v2556_v11  ;;  %v6918_v24 = vld [vmem:[#allocation51_spill] sm:$0xff] }
 0x449   : > { %v2558_v47 = vpop.permute.xlu1 %2557 }
 0x44a   : > { %v3896_v19 = vpack.c.bf16 %v2649_v46, %v2649_v46  ;;  %v2650_v16 = vmul.f32 %v5326_v27, %v2558_v47 }
 0x44b   : > { %v2552_v31 = vpop.permute.xlu0 %2551 }
 0x44c   : > { %v3897_v12 = vpack.c.bf16 %v2650_v16, %v2650_v16  ;;  %v2647_v53 = vmul.f32 %v6916_v21, %v2552_v31  ;;  %2779 = vrot.lane.b32.xlu0 %v3896_v19, %s4748_s19 }
 0x44d   : > { %v2554_v13 = vpop.permute.xlu1 %2553 }
 0x44e   : > { %v3894_v2 = vpack.c.bf16 %v2647_v53, %v2647_v53  ;;  %v2648_v51 = vmul.f32 %v6917_v44, %v2554_v13  ;;  %2781 = vrot.lane.b32.xlu1 %v3897_v12, %s4748_s19  ;;  %v6924_v12 = vld [vmem:[#allocation55_spill] sm:$0xff] }
 0x44f   : > { %v2564_v52 = vpop.permute.xlu0 %2563 }
 0x450   : > { %v3895_v33 = vpack.c.bf16 %v2648_v51, %v2648_v51  ;;  %v2653_v63 = vmul.f32 %v6918_v24, %v2564_v52  ;;  %2775 = vrot.lane.b32.xlu0 %v3894_v2, %s4748_s19 }
 0x451   : > { %v2566_v27 = vpop.permute.xlu1 %2565 }
 0x452   : > { %v3900_v49 = vpack.c.bf16 %v2653_v63, %v2653_v63  ;;  %v2654_v35 = vmul.f32 %v6919_v50, %v2566_v27  ;;  %2777 = vrot.lane.b32.xlu1 %v3895_v33, %s4748_s19 }
 0x453   : > { %v2560_v62 = vpop.permute.xlu0 %2559 }
 0x454   : > { %v3901_v38 = vpack.c.bf16 %v2654_v35, %v2654_v35  ;;  %v2651_v3 = vmul.f32 %v6920_v59, %v2560_v62  ;;  %2787 = vrot.lane.b32.xlu0 %v3900_v49, %s4748_s19 }
 0x455   : > { %v2562_v37 = vpop.permute.xlu1 %2561 }
 0x456   : > { %v3898_v26 = vpack.c.bf16 %v2651_v3, %v2651_v3  ;;  %v2652_v43 = vmul.f32 %v6921_v57, %v2562_v37  ;;  %2789 = vrot.lane.b32.xlu1 %v3901_v38, %s4748_s19  ;;  %v6925_v3 = vld [vmem:[#allocation56_spill] sm:$0xff] }
 0x457   : > { %v2572_v9 = vpop.permute.xlu0 %2571 }
 0x458   : > { %v3899_v1 = vpack.c.bf16 %v2652_v43, %v2652_v43  ;;  %v2657_v25 = vmul.f32 %v5361_v39, %v2572_v9  ;;  %2783 = vrot.lane.b32.xlu0 %v3898_v26, %s4748_s19 }
 0x459   : > { %v2574_v14 = vpop.permute.xlu1 %2573 }
 0x45a   : > { %v3904_v28 = vpack.c.bf16 %v2657_v25, %v2657_v25  ;;  %v2658_v20 = vmul.f32 %v5365_v45, %v2574_v14  ;;  %2785 = vrot.lane.b32.xlu1 %v3899_v1, %s4748_s19  ;;  %v6926_v25 = vld [vmem:[#allocation57_spill] sm:$0xff] }
 0x45b   : > { %v2568_v5 = vpop.permute.xlu0 %2567 }
 0x45c   : > { %v3905_v22 = vpack.c.bf16 %v2658_v20, %v2658_v20  ;;  %v2655_v41 = vmul.f32 %v6922_v4, %v2568_v5  ;;  %2795 = vrot.lane.b32.xlu0 %v3904_v28, %s4748_s19  ;;  %v6927_v5 = vld [vmem:[#allocation58_spill] sm:$0xff] }
 0x45d   : > { %v2570_v30 = vpop.permute.xlu1 %2569 }
 0x45e   : > { %v3902_v60 = vpack.c.bf16 %v2655_v41, %v2655_v41  ;;  %v2656_v8 = vmul.f32 %v6923_v58, %v2570_v30  ;;  %2797 = vrot.lane.b32.xlu1 %v3905_v22, %s4748_s19 }
 0x45f   : > { %v2580_v39 = vpop.permute.xlu0 %2579 }
 0x460   : > { %v3903_v56 = vpack.c.bf16 %v2656_v8, %v2656_v8  ;;  %v2661_v10 = vmul.f32 %v5381_v32, %v2580_v39  ;;  %2791 = vrot.lane.b32.xlu0 %v3902_v60, %s4748_s19 }
 0x461   : > { %v2582_v45 = vpop.permute.xlu1 %2581 }
 0x462   : > { %v3908_v18 = vpack.c.bf16 %v2661_v10, %v2661_v10  ;;  %v2662_v11 = vmul.f32 %v5385_v40, %v2582_v45  ;;  %2793 = vrot.lane.b32.xlu1 %v3903_v56, %s4748_s19 }
 0x463   : > { %v2576_v46 = vpop.permute.xlu0 %2575 }
 0x464   : > { %v3909_v47 = vpack.c.bf16 %v2662_v11, %v2662_v11  ;;  %v2659_v19 = vmul.f32 %v5371_v61, %v2576_v46  ;;  %2803 = vrot.lane.b32.xlu0 %v3908_v18, %s4748_s19 }
 0x465   : > { %v2578_v16 = vpop.permute.xlu1 %2577 }
 0x466   : > { %v3906_v31 = vpack.c.bf16 %v2659_v19, %v2659_v19  ;;  %v2660_v21 = vmul.f32 %v6924_v12, %v2578_v16  ;;  %2805 = vrot.lane.b32.xlu1 %v3909_v47, %s4748_s19 }
 0x467   : > { %v2588_v32 = vpop.permute.xlu0 %2587 }
 0x468   : > { %v3907_v53 = vpack.c.bf16 %v2660_v21, %v2660_v21  ;;  %v2665_v13 = vmul.f32 %v5401_v15, %v2588_v32  ;;  %2799 = vrot.lane.b32.xlu0 %v3906_v31, %s4748_s19 }
 0x469   : > { %v2590_v40 = vpop.permute.xlu1 %2589 }
 0x46a   : > { %v3912_v2 = vpack.c.bf16 %v2665_v13, %v2665_v13  ;;  %v2666_v44 = vmul.f32 %v5405_v6, %v2590_v40  ;;  %2801 = vrot.lane.b32.xlu1 %v3907_v53, %s4748_s19 }
 0x46b   : > { %v2584_v61 = vpop.permute.xlu0 %2583 }
 0x46c   : > { %v3913_v51 = vpack.c.bf16 %v2666_v44, %v2666_v44  ;;  %v2663_v52 = vmul.f32 %v5391_v29, %v2584_v61  ;;  %2811 = vrot.lane.b32.xlu0 %v3912_v2, %s4748_s19 }
 0x46d   : > { %v2586_v33 = vpop.permute.xlu1 %2585 }
 0x46e   : > { %v3910_v24 = vpack.c.bf16 %v2663_v52, %v2663_v52  ;;  %v2664_v63 = vmul.f32 %v5395_v55, %v2586_v33  ;;  %2813 = vrot.lane.b32.xlu1 %v3913_v51, %s4748_s19 }
 0x470   : > { %v3911_v15 = vpack.c.bf16 %v2664_v63, %v2664_v63  ;;  %2807 = vrot.lane.b32.xlu0 %v3910_v24, %s4748_s19 }
 0x471   : > { %v2596_v27 = vpop.permute.xlu0 %2595 }
 0x472   : > { %v2669_v6 = vmul.f32 %v5421_v23, %v2596_v27  ;;  %2809 = vrot.lane.b32.xlu1 %v3911_v15, %s4748_s19 }
 0x474   : > { %v2598_v49 = vpop.permute.xlu1 %2597  ;;  %v3916_v50 = vpack.c.bf16 %v2669_v6, %v2669_v6 }
 0x475   : > { %v2670_v29 = vmul.f32 %v5425_v7, %v2598_v49  ;;  %v2592_v35 = vpop.permute.xlu0 %2591 }
 0x476   : > { %v2667_v38 = vmul.f32 %v5411_v54, %v2592_v35  ;;  %2819 = vrot.lane.b32.xlu0 %v3916_v50, %s4748_s19 }
 0x477   : > { %v3917_v62 = vpack.c.bf16 %v2670_v29, %v2670_v29 }
 0x478   : > { %v2594_v55 = vpop.permute.xlu1 %2593  ;;  %v3914_v59 = vpack.c.bf16 %v2667_v38, %v2667_v38 }
 0x479   : > { %v2668_v37 = vmul.f32 %v6925_v3, %v2594_v55  ;;  %2821 = vrot.lane.b32.xlu1 %v3917_v62, %s4748_s19 }
 0x47a   : > { %2815 = vrot.lane.b32.xlu0 %v3914_v59, %s4748_s19 }
 0x47b   : > { %v3915_v26 = vpack.c.bf16 %v2668_v37, %v2668_v37 }
 0x47d   : > { %2817 = vrot.lane.b32.xlu1 %v3915_v26, %s4748_s19 }
 0x491   : > { %v2604_v23 = vpop.permute.xlu0 %2603 }
 0x492   : > { %v2673_v7 = vmul.f32 %v5439_v17, %v2604_v23 }
 0x493   : > { %v2606_v57 = vpop.permute.xlu1 %2605 }
 0x494   : > { %v3920_v43 = vpack.c.bf16 %v2673_v7, %v2673_v7  ;;  %v2674_v54 = vmul.f32 %v5442_v34, %v2606_v57 }
 0x495   : > { %v2600_v9 = vpop.permute.xlu0 %2599 }
 0x496   : > { %v3921_v1 = vpack.c.bf16 %v2674_v54, %v2674_v54  ;;  %v2671_v14 = vmul.f32 %v6926_v25, %v2600_v9  ;;  %2827 = vrot.lane.b32.xlu0 %v3920_v43, %s4748_s19 }
 0x497   : > { %v2602_v28 = vpop.permute.xlu1 %2601 }
 0x498   : > { %v3918_v20 = vpack.c.bf16 %v2671_v14, %v2671_v14  ;;  %v2672_v22 = vmul.f32 %v6927_v5, %v2602_v28  ;;  %2829 = vrot.lane.b32.xlu1 %v3921_v1, %s4748_s19 }
 0x49a   : > { %v3919_v4 = vpack.c.bf16 %v2672_v22, %v2672_v22  ;;  %2823 = vrot.lane.b32.xlu0 %v3918_v20, %s4748_s19 }
 0x49c   : > { %2825 = vrot.lane.b32.xlu1 %v3919_v4, %s4748_s19 }
 0x4b2   : > { %v2612_v17 = vpop.permute.xlu0 %2611 }
 0x4b3   : > { %v2677_v34 = vmul.f32 %v5465_v48, %v2612_v17  ;;  %v6928_v48 = vld [vmem:[#allocation47_spill] sm:$0xff] }
 0x4b4   : > { %v2614_v41 = vpop.permute.xlu1 %2613 }
 0x4b5   : > { %v3924_v30 = vpack.c.bf16 %v2677_v34, %v2677_v34  ;;  %v2678_v60 = vmul.f32 %v5479_v42, %v2614_v41  ;;  %v3988_v42 = vpack.c.bf16 %v6928_v48, %v6928_v48 }
 0x4b6   : > { %v2608_v58 = vpop.permute.xlu0 %2607 }
 0x4b7   : > { %v3925_v8 = vpack.c.bf16 %v2678_v60, %v2678_v60  ;;  %v2675_v39 = vmul.f32 %v5447_v0, %v2608_v58  ;;  %2835 = vrot.lane.b32.xlu0 %v3924_v30, %s4748_s19  ;;  %v6929_v0 = vld [vmem:[#allocation48_spill] sm:$0xff] }
 0x4b8   : > { %v2610_v56 = vpop.permute.xlu1 %2609  ;;  %v3989_v11 = vpack.c.bf16 %v6929_v0, %v6929_v0 }
 0x4b9   : > { %v3922_v10 = vpack.c.bf16 %v2675_v39, %v2675_v39  ;;  %v2676_v45 = vmul.f32 %v5450_v36, %v2610_v56  ;;  %2837 = vrot.lane.b32.xlu1 %v3925_v8, %s4748_s19 }
 0x4bb   : > { %v3923_v18 = vpack.c.bf16 %v2676_v45, %v2676_v45  ;;  %2831 = vrot.lane.b32.xlu0 %v3922_v10, %s4748_s19 }
 0x4bd   : > { %2833 = vrot.lane.b32.xlu1 %v3923_v18, %s4748_s19 }
 0x4be   : > { %v2780_v36 = vpop.permute.xlu0 %2779 }
 0x4bf   : > { %3412 = vrot.lane.b32.xlu0 %v3988_v42, %s4746_s12  ;;  %2874 = vst.msk [vmem:[%s6555_s30 + $0x8] sm:$0xf] %vm2871_vm2, %v2780_v36 }
 0x4c0   : > { %v2782_v46 = vpop.permute.xlu1 %2781 }
 0x4c1   : > { %3414 = vrot.lane.b32.xlu1 %v3989_v11, %s4746_s12  ;;  %2875 = vst.msk [vmem:[%s6555_s30 + $0xc] sm:$0xf] %vm2871_vm2, %v2782_v46 }
 0x4c2   : > { %v2776_v47 = vpop.permute.xlu0 %2775 }
 0x4c3   : > { %2872 = vst.msk [vmem:[%s6555_s30] sm:$0xf] %vm2871_vm2, %v2776_v47 }
 0x4c4   : > { %v2778_v19 = vpop.permute.xlu1 %2777 }
 0x4c5   : > { %2873 = vst.msk [vmem:[%s6555_s30 + $0x4] sm:$0xf] %vm2871_vm2, %v2778_v19 }
 0x4c6   : > { %v2788_v16 = vpop.permute.xlu0 %2787 }
 0x4c7   : > { %2878 = vst.msk [vmem:[%s6555_s30 + $0x18] sm:$0xf] %vm2871_vm2, %v2788_v16 }
 0x4c8   : > { %v2790_v31 = vpop.permute.xlu1 %2789 }
 0x4c9   : > { %2879 = vst.msk [vmem:[%s6555_s30 + $0x1c] sm:$0xf] %vm2871_vm2, %v2790_v31 }
 0x4ca   : > { %v2784_v12 = vpop.permute.xlu0 %2783 }
 0x4cb   : > { %2876 = vst.msk [vmem:[%s6555_s30 + $0x10] sm:$0xf] %vm2871_vm2, %v2784_v12 }
 0x4cc   : > { %v2786_v21 = vpop.permute.xlu1 %2785 }
 0x4cd   : > { %2877 = vst.msk [vmem:[%s6555_s30 + $0x14] sm:$0xf] %vm2871_vm2, %v2786_v21 }
 0x4ce   : > { %v2796_v32 = vpop.permute.xlu0 %2795 }
 0x4cf   : > { %2882 = vst.msk [vmem:[%s6555_s30 + $0x28] sm:$0xf] %vm2871_vm2, %v2796_v32 }
 0x4d0   : > { %v2798_v53 = vpop.permute.xlu1 %2797 }
 0x4d1   : > { %2883 = vst.msk [vmem:[%s6555_s30 + $0x2c] sm:$0xf] %vm2871_vm2, %v2798_v53 }
 0x4d2   : > { %v2792_v13 = vpop.permute.xlu0 %2791 }
 0x4d3   : > { %2880 = vst.msk [vmem:[%s6555_s30 + $0x20] sm:$0xf] %vm2871_vm2, %v2792_v13 }
 0x4d4   : > { %v2794_v40 = vpop.permute.xlu1 %2793 }
 0x4d5   : > { %2881 = vst.msk [vmem:[%s6555_s30 + $0x24] sm:$0xf] %vm2871_vm2, %v2794_v40 }
 0x4d6   : > { %v2804_v2 = vpop.permute.xlu0 %2803 }
 0x4d7   : > { %2886 = vst.msk [vmem:[%s6555_s30 + $0x38] sm:$0xf] %vm2871_vm2, %v2804_v2 }
 0x4d8   : > { %v2806_v44 = vpop.permute.xlu1 %2805 }
 0x4d9   : > { %2887 = vst.msk [vmem:[%s6555_s30 + $0x3c] sm:$0xf] %vm2871_vm2, %v2806_v44 }
 0x4da   : > { %v2800_v61 = vpop.permute.xlu0 %2799 }
 0x4db   : > { %2884 = vst.msk [vmem:[%s6555_s30 + $0x30] sm:$0xf] %vm2871_vm2, %v2800_v61 }
 0x4dc   : > { %v2802_v51 = vpop.permute.xlu1 %2801 }
 0x4dd   : > { %2885 = vst.msk [vmem:[%s6555_s30 + $0x34] sm:$0xf] %vm2871_vm2, %v2802_v51 }
 0x4de   : > { %v2812_v52 = vpop.permute.xlu0 %2811 }
 0x4df   : > { %2890 = vst.msk [vmem:[%s6555_s30 + $0x48] sm:$0xf] %vm2871_vm2, %v2812_v52 }
 0x4e0   : > { %v2814_v33 = vpop.permute.xlu1 %2813 }
 0x4e1   : > { %2891 = vst.msk [vmem:[%s6555_s30 + $0x4c] sm:$0xf] %vm2871_vm2, %v2814_v33 }
 0x4e2   : > { %v2808_v24 = vpop.permute.xlu0 %2807 }
 0x4e3   : > { %2888 = vst.msk [vmem:[%s6555_s30 + $0x40] sm:$0xf] %vm2871_vm2, %v2808_v24 }
 0x4e4   : > { %v2810_v63 = vpop.permute.xlu1 %2809 }
 0x4e5   : > { %2889 = vst.msk [vmem:[%s6555_s30 + $0x44] sm:$0xf] %vm2871_vm2, %v2810_v63 }
 0x4e8   : > { %v2820_v15 = vpop.permute.xlu0 %2819 }
 0x4e9   : > { %2894 = vst.msk [vmem:[%s6555_s30 + $0x58] sm:$0xf] %vm2871_vm2, %v2820_v15 }
 0x4eb   : > { %v2822_v27 = vpop.permute.xlu1 %2821 }
 0x4ec   : > { %2895 = vst.msk [vmem:[%s6555_s30 + $0x5c] sm:$0xf] %vm2871_vm2, %v2822_v27  ;;  %v2816_v6 = vpop.permute.xlu0 %2815 }
 0x4ed   : > { %2892 = vst.msk [vmem:[%s6555_s30 + $0x50] sm:$0xf] %vm2871_vm2, %v2816_v6 }
 0x4ef   : > { %v2818_v49 = vpop.permute.xlu1 %2817 }
 0x4f0   : > { %2893 = vst.msk [vmem:[%s6555_s30 + $0x54] sm:$0xf] %vm2871_vm2, %v2818_v49 }
 0x508   : > { %v2828_v50 = vpop.permute.xlu0 %2827 }
 0x509   : > { %2898 = vst.msk [vmem:[%s6555_s30 + $0x68] sm:$0xf] %vm2871_vm2, %v2828_v50 }
 0x50a   : > { %v2830_v29 = vpop.permute.xlu1 %2829 }
 0x50b   : > { %2899 = vst.msk [vmem:[%s6555_s30 + $0x6c] sm:$0xf] %vm2871_vm2, %v2830_v29 }
 0x50c   : > { %v2824_v35 = vpop.permute.xlu0 %2823 }
 0x50d   : > { %2896 = vst.msk [vmem:[%s6555_s30 + $0x60] sm:$0xf] %vm2871_vm2, %v2824_v35 }
 0x50e   : > { %v2826_v62 = vpop.permute.xlu1 %2825 }
 0x50f   : > { %2897 = vst.msk [vmem:[%s6555_s30 + $0x64] sm:$0xf] %vm2871_vm2, %v2826_v62 }
 0x529   : > { %v2836_v38 = vpop.permute.xlu0 %2835 }
 0x52a   : > { %2902 = vst.msk [vmem:[%s6555_s30 + $0x78] sm:$0xf] %vm2871_vm2, %v2836_v38 }
 0x52b   : > { %v2838_v55 = vpop.permute.xlu1 %2837 }
 0x52c   : > { %2903 = vst.msk [vmem:[%s6555_s30 + $0x7c] sm:$0xf] %vm2871_vm2, %v2838_v55 }
 0x52d   : > { %v2832_v59 = vpop.permute.xlu0 %2831 }
 0x52e   : > { %2900 = vst.msk [vmem:[%s6555_s30 + $0x70] sm:$0xf] %vm2871_vm2, %v2832_v59 }
 0x52f   : > { %v2834_v3 = vpop.permute.xlu1 %2833 }
 0x530   : > { %2901 = vst.msk [vmem:[%s6555_s30 + $0x74] sm:$0xf] %vm2871_vm2, %v2834_v3 }
 0x531   : > { %v3413_v37 = vpop.permute.xlu0 %3412 }
 0x532   : > { %3478 = vst.msk [vmem:[%s6383_s26 + $0x78] sm:$0xf] %vm2871_vm2, %v3413_v37 }
 0x533   : > { %v3415_v26 = vpop.permute.xlu1 %3414 }
 0x534   : > { %3479 = vst.msk [vmem:[%s6383_s26 + $0x7c] sm:$0xf] %vm2871_vm2, %v3415_v26 }
 0x535 PF: > { %s21_s13 = sadd.s32 1, %s4739_s13  }
 0x536   : > { %p18_p4 = scmp.ge.s32.totalorder %s21_s13, 4  }
 0x538   :  { %20 = sbr.rel (!%p18_p4) target bundleno = 1 (0x1), region = 120 }

// kernel: msmm_forward.26
= control target key start
LH: loop header
LB: loop body
LE: loop exit
PB: predicated region body
PF: predicated region fallthrough
CT: control target
= control target key end

     0   :  { %s580_s12 = smov 0   ;;  %s645_s0 = inlined_call_operand.vmem [shape: bf16[128,128], index: 0, kind: input, shape index: {}]   ;;  %s646_s1 = inlined_call_operand.vmem [shape: bf16[128,16], index: 1, kind: input, shape index: {}]   ;;  %s647_s2 = inlined_call_operand.vmem [shape: f32[1,16], index: 2, kind: input, shape index: {}]   ;;  %s648_s3 = inlined_call_operand.vmem [shape: bf16[128,16], index: 3, kind: output, shape index: {}]  }
   0x1 LB: > { %s440_s13 = sadd.s32 4294967295, %s558_s12   ;;  %p444_p0 = scmp.ge.s32.totalorder %s558_s12, 1  ;;  %s558_s12 = sphi %s580_s12, %s13_s12  }
   0x2   : > { %p138_p1 = scmp.lt.s32.totalorder %s558_s12, 3 }
   0x4   : > { %p139_p2 = pnand %p444_p0, %p138_p1 }
   0x5   : > { %v540_v0 = vld [vmem:[%s646_s1] sm:$0xff] (!%p139_p2)   ;;  %s445_s16 = sshll.u32 (!%p139_p2), %s440_s13, 3  ;;  %v541_v1 = vld [vmem:[%s646_s1 + $0x8] sm:$0xff] (!%p139_p2)   ;;  %v542_v2 = vld [vmem:[%s646_s1 + $0x10] sm:$0xff] (!%p139_p2)   ;;  %vm375_vm0 = vcmask (!%p139_p2), 125952  }
   0x6   : > { %142 = sbr.rel (%p139_p2) target bundleno = 258 (0x102), region = 32  ;;  %p163_p3 = scmp.lt.s32.totalorder (!%p139_p2), %s445_s16, 15  ;;  %492 = vmatprep.subr.bf16.mxu0 (!%p139_p2), %v540_v0  ;;  %516 = vmatprep.subr.bf16.mxu1 (!%p139_p2), %v540_v0  ;;  %v543_v3 = vld [vmem:[%s646_s1 + $0x18] sm:$0xff] (!%p139_p2)   ;;  %v544_v6 = vld [vmem:[%s646_s1 + $0x20] sm:$0xff] (!%p139_p2)   ;;  %v545_v7 = vld [vmem:[%s646_s1 + $0x28] sm:$0xff] (!%p139_p2)  }
   0x7   : > { %493 = vmatpush3.bf16.msra.mxu0 (!%p139_p2), %v540_v0  ;;  %524 = vmatpush3.bf16.msra.mxu1 (!%p139_p2), %v540_v0  ;;  %v546_v8 = vld [vmem:[%s646_s1 + $0x30] sm:$0xff] (!%p139_p2)   ;;  %v547_v9 = vld [vmem:[%s646_s1 + $0x38] sm:$0xff] (!%p139_p2)   ;;  %v449_v12 = vld [vmem:[%s647_s2] ss:$0 sm:$0xff] (!%p139_p2) }
   0x8   : > { %494 = vmatprep.subr.bf16.mxu0 (!%p139_p2), %v541_v1  ;;  %517 = vmatprep.subr.bf16.mxu1 (!%p139_p2), %v541_v1 }
   0xb   : > { %495 = vmatpush3.bf16.msra.mxu0 (!%p139_p2), %v541_v1  ;;  %525 = vmatpush3.bf16.msra.mxu1 (!%p139_p2), %v541_v1 }
   0xc   : > { %496 = vmatprep.subr.bf16.mxu0 (!%p139_p2), %v542_v2  ;;  %518 = vmatprep.subr.bf16.mxu1 (!%p139_p2), %v542_v2 }
   0xd   : > { %s650_s16 = smov (!%p163_p3, %s445_s16), 15 }
   0xe   : > { %s446_s21 = sshll.u32 %s650_s16, 2 }
   0xf   : > { %s605_s24 = scalar_lea.vmem %s645_s0, %s446_s21  ;;  %497 = vmatpush3.bf16.msra.mxu0 %v542_v2  ;;  %526 = vmatpush3.bf16.msra.mxu1 %v542_v2  ;;  %s172_s13 = scalar_lea.vmem %s648_s3, %s446_s21 }
  0x10   : > { %v548_v4 = vld [vmem:[%s605_s24] sm:$0xff]   ;;  %v549_v5 = vld [vmem:[%s605_s24 + $0x10] sm:$0xff]   ;;  %498 = vmatprep.subr.bf16.mxu0 %v543_v3  ;;  %519 = vmatprep.subr.bf16.mxu1 %v543_v3  ;;  %v550_v10 = vld [vmem:[%s605_s24 + $0x8] sm:$0xff]  }
  0x11   : > { %508 = vmatprep.mubr.bf16.mxu0 %v548_v4  ;;  %512 = vmatprep.mubr.bf16.mxu1 %v549_v5  ;;  %v551_v11 = vld [vmem:[%s605_s24 + $0x18] sm:$0xff]  }
  0x13   : > { %499 = vmatpush3.bf16.msra.mxu0 %v543_v3  ;;  %527 = vmatpush3.bf16.msra.mxu1 %v543_v3 }
  0x14   : > { %500 = vmatprep.subr.bf16.mxu0 %v544_v6  ;;  %520 = vmatprep.subr.bf16.mxu1 %v544_v6 }
  0x17   : > { %501 = vmatpush3.bf16.msra.mxu0 %v544_v6  ;;  %528 = vmatpush3.bf16.msra.mxu1 %v544_v6 }
  0x18   : > { %502 = vmatprep.subr.bf16.mxu0 %v545_v7  ;;  %521 = vmatprep.subr.bf16.mxu1 %v545_v7 }
  0x1b   : > { %503 = vmatpush3.bf16.msra.mxu0 %v545_v7  ;;  %529 = vmatpush3.bf16.msra.mxu1 %v545_v7 }
  0x1c   : > { %504 = vmatprep.subr.bf16.mxu0 %v546_v8  ;;  %522 = vmatprep.subr.bf16.mxu1 %v546_v8 }
  0x1f   : > { %505 = vmatpush3.bf16.msra.mxu0 %v546_v8  ;;  %530 = vmatpush3.bf16.msra.mxu1 %v546_v8 }
  0x20   : > { %506 = vmatprep.subr.bf16.mxu0 %v547_v9  ;;  %523 = vmatprep.subr.bf16.mxu1 %v547_v9 }
  0x23   : > { %507 = vmatpush3.bf16.msra.mxu0 %v547_v9  ;;  %531 = vmatpush3.bf16.msra.mxu1 %v547_v9 }
  0x26   : > { %509 = vmatmul.mubr.bf16.vlgmr.msra.gmra.mrb[0].mxu0 %v550_v10  ;;  %513 = vmatmul.mubr.bf16.vlgmr.msra.gmra.mrb[0].mxu1 %v551_v11 }
  0xf9   : > { %v510_v13 = vpop.f32.mrb[0].mxu0  ;;  %v514_v14 = vpop.f32.mrb[0].mxu1 }
  0xfa   : > { %v321_v15 = vadd.f32 %v510_v13, %v449_v12  ;;  %v337_v16 = vadd.f32 %v514_v14, %v449_v12  ;;  %v312_v17 = vpop.f32.mrb[1].mxu0  ;;  %v328_v18 = vpop.f32.mrb[1].mxu1 }
  0xfb   : > { %v313_v19 = vadd.f32 %v449_v12, %v312_v17  ;;  %v329_v20 = vadd.f32 %v449_v12, %v328_v18  ;;  %v511_v21 = vpop.f32.mrb[2].mxu0  ;;  %v515_v22 = vpop.f32.mrb[2].mxu1 }
  0xfc   : > { %v474_v23 = vpack.c.bf16 %v321_v15, %v321_v15  ;;  %v478_v24 = vpack.c.bf16 %v337_v16, %v337_v16  ;;  %v324_v25 = vadd.f32 %v511_v21, %v449_v12  ;;  %v340_v26 = vadd.f32 %v515_v22, %v449_v12  ;;  %v315_v27 = vpop.f32.mrb[3].mxu0  ;;  %v331_v28 = vpop.f32.mrb[3].mxu1 }
  0xfd   : > { %v472_v29 = vpack.c.bf16 %v313_v19, %v313_v19  ;;  %v476_v30 = vpack.c.bf16 %v329_v20, %v329_v20  ;;  %v316_v31 = vadd.f32 %v449_v12, %v315_v27  ;;  %v332_v32 = vadd.f32 %v449_v12, %v331_v28 }
  0xfe   : > { %378 = vst.msk [vmem:[%s172_s13 + $0x8] sm:$0xf] %vm375_vm0, %v474_v23  ;;  %382 = vst.msk [vmem:[%s172_s13 + $0x18] sm:$0xf] %vm375_vm0, %v478_v24  ;;  %v475_v33 = vpack.c.bf16 %v324_v25, %v324_v25  ;;  %v479_v34 = vpack.c.bf16 %v340_v26, %v340_v26 }
  0xff   : > { %376 = vst.msk [vmem:[%s172_s13] sm:$0xf] %vm375_vm0, %v472_v29  ;;  %380 = vst.msk [vmem:[%s172_s13 + $0x10] sm:$0xf] %vm375_vm0, %v476_v30  ;;  %v473_v35 = vpack.c.bf16 %v316_v31, %v316_v31  ;;  %v477_v36 = vpack.c.bf16 %v332_v32, %v332_v32 }
 0x100   : > { %379 = vst.msk [vmem:[%s172_s13 + $0xc] sm:$0xf] %vm375_vm0, %v475_v33  ;;  %383 = vst.msk [vmem:[%s172_s13 + $0x1c] sm:$0xf] %vm375_vm0, %v479_v34 }
 0x101   : > { %377 = vst.msk [vmem:[%s172_s13 + $0x4] sm:$0xf] %vm375_vm0, %v473_v35  ;;  %381 = vst.msk [vmem:[%s172_s13 + $0x14] sm:$0xf] %vm375_vm0, %v477_v36 }
 0x102 PF: > { %s13_s12 = sadd.s32 1, %s558_s12  }
 0x103   : > { %p10_p4 = scmp.ge.s32.totalorder %s13_s12, 4  }
 0x105   :  { %12 = sbr.rel (!%p10_p4) target bundleno = 1 (0x1), region = 62 }

// kernel: msmm_forward.27
= control target key start
LH: loop header
LB: loop body
LE: loop exit
PB: predicated region body
PF: predicated region fallthrough
CT: control target
= control target key end

     0   :  { %s3044_s0 = inlined_call_operand.vmem [shape: bf16[128,512], index: 0, kind: input, shape index: {}]   ;;  %s3045_s1 = inlined_call_operand.vmem [shape: bf16[512,128], index: 1, kind: input, shape index: {}]   ;;  %s3046_s2 = inlined_call_operand.vmem [shape: f32[1,128], index: 2, kind: input, shape index: {}]   ;;  %s3047_s3 = inlined_call_operand.vmem [shape: f32[128,16], index: 3, kind: input, shape index: {}]   ;;  %s3048_s4 = inlined_call_operand.vmem [shape: bf16[128,16], index: 4, kind: input, shape index: {}]   ;;  %s3049_s5 = inlined_call_operand.vmem [shape: bf16[16,16], index: 5, kind: input, shape index: {}]   ;;  %s3050_s6 = inlined_call_operand.vmem [shape: bf16[16,16], index: 6, kind: input, shape index: {}]   ;;  %s3051_s7 = inlined_call_operand.vmem [shape: bf16[128,16], index: 7, kind: output, shape index: {0}]   ;;  %s3052_s8 = inlined_call_operand.vmem [shape: f32[128,16], index: 8, kind: output, shape index: {1}]   ;;  %s3053_s9 = inlined_call_operand.vmem [shape: bf16[128,16], index: 9, kind: output, shape index: {2}]   ;;  %s3054_s10 = inlined_call_operand.hbm [shape: bf16[128,16], index: 10, kind: output, shape index: {3}]  }
   0x1   :  { %3055 = sst [smem:[#allocation6_spill]] %s3044_s0 }
   0x2   :  { %16 = vsyncpa [#allocation3], 0 }
   0x3   :  { %18 = vsyncpa [#allocation3 + $0x1], 0  ;;  %s2432_s13 = smov 0   ;;  %s2434_s14 = smov 0  }
   0x4   :  { %s2436_s15 = smov 0   ;;  %s2438_s16 = smov 0  }
   0x5 LB: > { %s2453_s17 = sadd.s32 4294967295, %s2367_s16   ;;  %s1840_s18 = sadd.s32 4294967294, %s2367_s16   ;;  %s2367_s16 = sphi %s2438_s16, %s3064_s16   ;;  %s2363_s15 = sphi %s2436_s15, %s3063_s15   ;;  %s2359_s14 = sphi %s2434_s14, %s3062_s14   ;;  %s2355_s13 = sphi %s2432_s13, %s3061_s13  }
   0x6   : > { %s2457_s19 = sadd.s32 1, %s2367_s16   ;;  %s271_s20 = sadd.s32 1, %s2363_s15 }
   0x7   : > { %s268_s21 = ssub.s32 %s2367_s16, %s2457_s19  ;;  %p281_p0 = scmp.ne.s32.totalorder %s2363_s15, %s2359_s14 }
   0x8   : > { %p269_p1 = scmp.eq.s32.totalorder %s268_s21, 0  ;;  %p282_p2 = scmp.eq.s32.totalorder %s2453_s17, 1 }
   0x9   : > { %p287_p3 = scmp.ne.s32.totalorder %s2359_s14, %s2355_s13  ;;  %p288_p4 = scmp.eq.s32.totalorder %s1840_s18, 1 }
   0xa   : > { %s2468_s22 = scalar_select %p269_p1, %s2363_s15, %s271_s20  }
   0xb   : > { %p2470_p5 = por %p282_p2, %p281_p0  ;;  %p2474_p6 = por %p288_p4, %p287_p3 }
   0xc   : > { %3056 = sst [smem:[#allocation5_spill]] %s2468_s22  ;;  %p1843_p7 = scmp.ge.s32.totalorder %s2367_s16, 1 }
   0xd   : > { %p346_p8 = scmp.lt.s32.totalorder %s2367_s16, 3 }
   0xf   : > { %p347_p9 = pnand %p1843_p7, %p346_p8 }
  0x10   : > { %v2183_v0 = vld [vmem:[%s3045_s1 + $0x40] sm:$0xff] (!%p347_p9)   ;;  %v2187_v4 = vld [vmem:[%s3045_s1 + $0x48] sm:$0xff] (!%p347_p9)   ;;  %v2191_v8 = vld [vmem:[%s3045_s1 + $0x50] sm:$0xff] (!%p347_p9)   ;;  %s1845_s21 = sshll.u32 (!%p347_p9), %s2453_s17, 3  ;;  %s3059_s0 = sld [smem:[#allocation6_spill]] (!%p347_p9)  ;;  %vm1216_vm0 = vcmask (!%p347_p9), 130048  }
  0x11   : > { %350 = sbr.rel (%p347_p9) target bundleno = 1129 (0x469), region = 48  ;;  %v2184_v1 = vld [vmem:[%s3045_s1 + $0xc0] sm:$0xff] (!%p347_p9)   ;;  %1999 = vmatprep.subr.bf16.mxu0 (!%p347_p9), %v2183_v0  ;;  %v2188_v5 = vld [vmem:[%s3045_s1 + $0xc8] sm:$0xff] (!%p347_p9)   ;;  %v2192_v9 = vld [vmem:[%s3045_s1 + $0xd0] sm:$0xff] (!%p347_p9)   ;;  %p411_p10 = scmp.lt.s32.totalorder (!%p347_p9), %s1845_s21, 15  ;;  %vm1485_vm1 = vcmask (!%p347_p9), 125952  }
  0x12   : > { %v2185_v2 = vld [vmem:[%s3045_s1] sm:$0xff] (!%p347_p9)   ;;  %2039 = vmatprep.subr.bf16.mxu1 (!%p347_p9), %v2184_v1  ;;  %v2189_v6 = vld [vmem:[%s3045_s1 + $0x8] sm:$0xff] (!%p347_p9)   ;;  %v2193_v10 = vld [vmem:[%s3045_s1 + $0x10] sm:$0xff] (!%p347_p9)   ;;  %s2369_s11 = smov (!%p347_p9), 96   ;;  %s2370_s22 = smov (!%p347_p9), 16  }
  0x13   : > { %v2186_v3 = vld [vmem:[%s3045_s1 + $0x80] sm:$0xff] (!%p347_p9)   ;;  %2000 = vmatpush3.bf16.msra.mxu0 (!%p347_p9), %v2185_v2  ;;  %v2190_v7 = vld [vmem:[%s3045_s1 + $0x88] sm:$0xff] (!%p347_p9)   ;;  %v2194_v11 = vld [vmem:[%s3045_s1 + $0x90] sm:$0xff] (!%p347_p9)   ;;  %s2372_s28 = smov (!%p347_p9), 48   ;;  %s2373_s29 = smov (!%p347_p9), 112  }
  0x14   : > { %2040 = vmatpush3.bf16.msra.mxu1 (!%p347_p9), %v2186_v3  ;;  %2001 = vmatprep.subr.bf16.mxu0 (!%p347_p9), %v2187_v4  ;;  %v2195_v12 = vld [vmem:[%s3045_s1 + $0x58] sm:$0xff] (!%p347_p9)   ;;  %v2199_v16 = vld [vmem:[%s3045_s1 + $0x60] sm:$0xff] (!%p347_p9)   ;;  %v2203_v20 = vld [vmem:[%s3045_s1 + $0x68] sm:$0xff] (!%p347_p9)  }
  0x15   : > { %2041 = vmatprep.subr.bf16.mxu1 (!%p347_p9), %v2188_v5  ;;  %v2196_v13 = vld [vmem:[%s3045_s1 + $0xd8] sm:$0xff] (!%p347_p9)   ;;  %v2200_v17 = vld [vmem:[%s3045_s1 + $0xe0] sm:$0xff] (!%p347_p9)   ;;  %v2204_v21 = vld [vmem:[%s3045_s1 + $0xe8] sm:$0xff] (!%p347_p9)  }
  0x16   : > { %v2197_v14 = vld [vmem:[%s3045_s1 + $0x18] sm:$0xff] (!%p347_p9)   ;;  %v2201_v18 = vld [vmem:[%s3045_s1 + $0x20] sm:$0xff] (!%p347_p9)   ;;  %v2205_v22 = vld [vmem:[%s3045_s1 + $0x28] sm:$0xff] (!%p347_p9)  }
  0x17   : > { %2002 = vmatpush3.bf16.msra.mxu0 (!%p347_p9), %v2189_v6  ;;  %v2198_v15 = vld [vmem:[%s3045_s1 + $0x98] sm:$0xff] (!%p347_p9)   ;;  %v2202_v19 = vld [vmem:[%s3045_s1 + $0xa0] sm:$0xff] (!%p347_p9)   ;;  %v2206_v23 = vld [vmem:[%s3045_s1 + $0xa8] sm:$0xff] (!%p347_p9)  }
  0x18   : > { %2042 = vmatpush3.bf16.msra.mxu1 %v2190_v7  ;;  %2003 = vmatprep.subr.bf16.mxu0 %v2191_v8  ;;  %s3066_s21 = smov (!%p411_p10, %s1845_s21), 15  ;;  %v2207_v24 = vld [vmem:[%s3045_s1 + $0x70] sm:$0xff]   ;;  %v2211_v28 = vld [vmem:[%s3045_s1 + $0x78] sm:$0xff]   ;;  %v2604_v50 = vld [vmem:[%s3046_s2] ss:$0 sm:$0xff] }
  0x19   : > { %2043 = vmatprep.subr.bf16.mxu1 %v2192_v9  ;;  %v2208_v25 = vld [vmem:[%s3045_s1 + $0xf0] sm:$0xff]   ;;  %s1954_s27 = sshll.u32 %s3066_s21, 4  ;;  %v2212_v29 = vld [vmem:[%s3045_s1 + $0xf8] sm:$0xff]   ;;  %s2656_s12 = sshll.u32 %s3066_s21, 2 }
  0x1a   : > { %v2209_v26 = vld [vmem:[%s3045_s1 + $0x30] sm:$0xff]   ;;  %s2577_s25 = scalar_lea.vmem %s3059_s0, %s1954_s27  ;;  %v2213_v30 = vld [vmem:[%s3045_s1 + $0x38] sm:$0xff]   ;;  %s1849_s26 = sshll.u32 %s3066_s21, 3 }
  0x1b   : > { %2004 = vmatpush3.bf16.msra.mxu0 %v2193_v10  ;;  %v2210_v27 = vld [vmem:[%s3045_s1 + $0xb0] sm:$0xff]   ;;  %v2214_v31 = vld [vmem:[%s3045_s1 + $0xb8] sm:$0xff]   ;;  %s2678_s30 = scalar_lea.vmem %s3047_s3, %s1849_s26  ;;  %s2371_s27 = smov 80  }
  0x1c   : > { %2044 = vmatpush3.bf16.msra.mxu1 %v2194_v11  ;;  %2005 = vmatprep.subr.bf16.mxu0 %v2195_v12  ;;  %v2215_v32 = vld [vmem:[%s2577_s25] ss:$16 sps:$4 sm:$0xff]   ;;  %v2217_v33 = vld [vmem:[%s2577_s25 + $0x4] ss:$16 sps:$4 sm:$0xff]   ;;  %v2218_v34 = vld [vmem:[%s2577_s25 + $0x8] ss:$16 sps:$4 sm:$0xff]  }
  0x1d   : > { %2045 = vmatprep.subr.bf16.mxu1 %v2196_v13  ;;  %v2220_v35 = vld [vmem:[%s2577_s25 + $0xc] ss:$16 sps:$4 sm:$0xff]   ;;  %840 = vmatprep.mubr.bf16.mxu0 %v2217_v33  ;;  %v2221_v36 = vld [vmem:[%s2577_s25 + $0x24] ss:$16 sps:$4 sm:$0xff]   ;;  %v2225_v38 = vld [vmem:[%s2577_s25 + $0x20] ss:$16 sps:$4 sm:$0xff]  }
  0x1e   : > { %905 = vmatprep.mubr.bf16.mxu1 %v2220_v35  ;;  %v2223_v37 = vld [vmem:[%s2577_s25 + $0x2c] ss:$16 sps:$4 sm:$0xff]   ;;  %v2226_v39 = vld [vmem:[%s2577_s25 + $0x28] ss:$16 sps:$4 sm:$0xff]   ;;  %v2227_v40 = vld [vmem:[%s2577_s25 + $0x44] ss:$16 sps:$4 sm:$0xff]  }
  0x1f   : > { %2006 = vmatpush3.bf16.msra.mxu0 %v2197_v14  ;;  %v2229_v41 = vld [vmem:[%s2577_s25 + $0x4c] ss:$16 sps:$4 sm:$0xff]   ;;  %v2231_v42 = vld [vmem:[%s2577_s25 + $0x40] ss:$16 sps:$4 sm:$0xff]   ;;  %v2232_v43 = vld [vmem:[%s2577_s25 + $0x48] ss:$16 sps:$4 sm:$0xff]  }
  0x20   : > { %2046 = vmatpush3.bf16.msra.mxu1 %v2198_v15  ;;  %2007 = vmatprep.subr.bf16.mxu0 %v2199_v16  ;;  %v2233_v44 = vld [vmem:[%s2577_s25 + $0x64] ss:$16 sps:$4 sm:$0xff]   ;;  %v2235_v45 = vld [vmem:[%s2577_s25 + $0x6c] ss:$16 sps:$4 sm:$0xff]   ;;  %v2237_v46 = vld [vmem:[%s2577_s25 + $0x60] ss:$16 sps:$4 sm:$0xff]  }
  0x21   : > { %2047 = vmatprep.subr.bf16.mxu1 %v2200_v17  ;;  %v2238_v47 = vld [vmem:[%s2577_s25 + $0x68] ss:$16 sps:$4 sm:$0xff]   ;;  %s2667_s25 = scalar_lea.vmem %s3048_s4, %s2656_s12 }
  0x23   : > { %2008 = vmatpush3.bf16.msra.mxu0 %v2201_v18 }
  0x24   : > { %2048 = vmatpush3.bf16.msra.mxu1 %v2202_v19  ;;  %2009 = vmatprep.subr.bf16.mxu0 %v2203_v20 }
  0x25   : > { %2049 = vmatprep.subr.bf16.mxu1 %v2204_v21 }
  0x27   : > { %2010 = vmatpush3.bf16.msra.mxu0 %v2205_v22 }
  0x28   : > { %2050 = vmatpush3.bf16.msra.mxu1 %v2206_v23  ;;  %2011 = vmatprep.subr.bf16.mxu0 %v2207_v24 }
  0x29   : > { %2051 = vmatprep.subr.bf16.mxu1 %v2208_v25 }
  0x2b   : > { %2012 = vmatpush3.bf16.msra.mxu0 %v2209_v26 }
  0x2c   : > { %2052 = vmatpush3.bf16.msra.mxu1 %v2210_v27  ;;  %2013 = vmatprep.subr.bf16.mxu0 %v2211_v28 }
  0x2d   : > { %2053 = vmatprep.subr.bf16.mxu1 %v2212_v29 }
  0x2f   : > { %2014 = vmatpush3.bf16.msra.mxu0 %v2213_v30 }
  0x30   : > { %2054 = vmatpush3.bf16.msra.mxu1 %v2214_v31 }
  0x32   : > { %841 = vmatmul.mubr.bf16.vlgmr.msra.gmra.mrb[0].mxu0 %v2215_v32 }
  0x33   : > { %906 = vmatmul.mubr.bf16.vlgmr.msra.gmra.mrb[0].mxu1 %v2218_v34  ;;  %848 = vmatprep.mubr.bf16.mxu0 %v2221_v36 }
  0x34   : > { %913 = vmatprep.mubr.bf16.mxu1 %v2223_v37 }
  0x3a   : > { %849 = vmatmul.mubr.bf16.gmra.mrb[4].mxu0 %v2225_v38 }
  0x3b   : > { %914 = vmatmul.mubr.bf16.gmra.mrb[4].mxu1 %v2226_v39  ;;  %856 = vmatprep.mubr.bf16.mxu0 %v2227_v40 }
  0x3c   : > { %921 = vmatprep.mubr.bf16.mxu1 %v2229_v41 }
  0x42   : > { %857 = vmatmul.mubr.bf16.gmra.mrb[8].mxu0 %v2231_v42 }
  0x43   : > { %922 = vmatmul.mubr.bf16.gmra.mrb[8].mxu1 %v2232_v43  ;;  %864 = vmatprep.mubr.bf16.mxu0 %v2233_v44 }
  0x44   : > { %929 = vmatprep.mubr.bf16.mxu1 %v2235_v45 }
  0x4a   : > { %865 = vmatmul.mubr.bf16.gmra.mrb[12].mxu0 %v2237_v46 }
  0x4b   : > { %930 = vmatmul.mubr.bf16.gmra.mrb[12].mxu1 %v2238_v47 }
 0x105   : > { %v2015_v48 = vpop.f32.mrb[0].mxu0 }
 0x106   : > { %v2055_v49 = vpop.f32.mrb[0].mxu1  ;;  %v2016_v51 = vpop.f32.mrb[1].mxu0 }
 0x107   : > { %v2017_v52 = vadd.f32 %v2016_v51, %v2015_v48  ;;  %v2056_v53 = vpop.f32.mrb[1].mxu1  ;;  %v2018_v54 = vpop.f32.mrb[2].mxu0 }
 0x108   : > { %v2057_v55 = vadd.f32 %v2056_v53, %v2055_v49  ;;  %v2058_v56 = vpop.f32.mrb[2].mxu1  ;;  %v2019_v57 = vpop.f32.mrb[3].mxu0 }
 0x109   : > { %v843_v58 = vadd.f32 %v2017_v52, %v2604_v50  ;;  %v2020_v59 = vadd.f32 %v2019_v57, %v2018_v54  ;;  %v2059_v60 = vpop.f32.mrb[3].mxu1 }
 0x10a   : > { %v2060_v61 = vadd.f32 %v2059_v60, %v2058_v56 }
 0x10b   : > { %v2607_v62 = vadd.f32 %v2057_v55, %v843_v58  ;;  %v846_v63 = vadd.f32 %v2020_v59, %v2604_v50  ;;  %v994_v59 = vld [vmem:[%s2678_s30] sm:$0xff] }
 0x10d   : > { %2241 = vtanh.f32 %v2607_v62  ;;  %v2611_v0 = vadd.f32 %v2060_v61, %v846_v63  ;;  %v2021_v1 = vpop.f32.mrb[4].mxu0  ;;  %v995_v61 = vld [vmem:[%s2678_s30 + $0x8] sm:$0xff] }
 0x10e   : > { %v2061_v2 = vpop.f32.mrb[4].mxu1  ;;  %v2022_v3 = vpop.f32.mrb[5].mxu0 }
 0x10f   : > { %v2023_v4 = vadd.f32 %v2022_v3, %v2021_v1  ;;  %v2062_v5 = vpop.f32.mrb[5].mxu1  ;;  %v2024_v6 = vpop.f32.mrb[6].mxu0  ;;  %2243 = vtanh.f32 %v2611_v0  ;;  %v1996_v1 = vld [vmem:[%s2667_s25 + $0x8] sm:$0xff]  }
 0x110   : > { %v2063_v7 = vadd.f32 %v2062_v5, %v2061_v2  ;;  %v2064_v8 = vpop.f32.mrb[6].mxu1  ;;  %v2025_v9 = vpop.f32.mrb[7].mxu0  ;;  %v1986_v2 = vunpack.c.l.bf16 %v1996_v1  ;;  %v1987_v3 = vunpack.c.h.bf16 %v1996_v1  ;;  %v997_v5 = vld [vmem:[%s2678_s30 + $0x18] sm:$0xff] }
 0x111   : > { %v851_v10 = vadd.f32 %v2023_v4, %v2604_v50  ;;  %v2026_v11 = vadd.f32 %v2025_v9, %v2024_v6  ;;  %v2065_v12 = vpop.f32.mrb[7].mxu1  ;;  %v996_v4 = vld [vmem:[%s2678_s30 + $0x10] sm:$0xff] }
 0x112   : > { %v2066_v13 = vadd.f32 %v2065_v12, %v2064_v8  ;;  %v1997_v6 = vld [vmem:[%s2667_s25 + $0x10] sm:$0xff]  }
 0x113   : > { %v2615_v14 = vadd.f32 %v2063_v7, %v851_v10  ;;  %v854_v15 = vadd.f32 %v2026_v11, %v2604_v50  ;;  %v2168_v7 = vpack.i.bf16 %v1987_v3, %v1986_v2  ;;  %v1990_v8 = vunpack.c.l.bf16 %v1997_v6  ;;  %v998_v10 = vld [vmem:[%s2678_s30 + $0x20] sm:$0xff]  ;;  %v999_v11 = vld [vmem:[%s2678_s30 + $0x28] sm:$0xff] }
 0x114   : > { %v1991_v9 = vunpack.c.h.bf16 %v1997_v6  ;;  %v2240_v6 = vld [vmem:[%s3049_s5] sm:$0xff]  }
 0x115   : > { %2245 = vtanh.f32 %v2615_v14  ;;  %v2619_v16 = vadd.f32 %v2066_v13, %v854_v15  ;;  %v2027_v17 = vpop.f32.mrb[8].mxu0  ;;  %v1998_v13 = vld [vmem:[%s2667_s25 + $0x18] sm:$0xff]   ;;  %2099 = vmatprep.subr.bf16.mxu0 %v2240_v6 }
 0x116   : > { %v2067_v18 = vpop.f32.mrb[8].mxu1  ;;  %v2028_v19 = vpop.f32.mrb[9].mxu0  ;;  %v2173_v12 = vpack.i.bf16 %v1991_v9, %v1990_v8  ;;  %v1994_v15 = vunpack.c.l.bf16 %v1998_v13  ;;  %2100 = vmatpush3.bf16.msra.mxu0 %v2240_v6 }
 0x117   : > { %v2621_v20 = vpop.eup %2241  ;;  %v2029_v21 = vadd.f32 %v2028_v19, %v2027_v17  ;;  %v2068_v22 = vpop.f32.mrb[9].mxu1  ;;  %2247 = vtanh.f32 %v2619_v16  ;;  %v1995_v17 = vunpack.c.h.bf16 %v1998_v13  ;;  %v1001_v19 = vld [vmem:[%s2678_s30 + $0x38] sm:$0xff] }
 0x118   : > { %v2030_v23 = vpop.f32.mrb[10].mxu0  ;;  %v2069_v24 = vadd.f32 %v2068_v22, %v2067_v18  ;;  %v2070_v25 = vpop.f32.mrb[10].mxu1  ;;  %1050 = vrot.lane.b32.xlu0 %v2621_v20, %s2369_s11  ;;  %v1000_v18 = vld [vmem:[%s2678_s30 + $0x30] sm:$0xff]  ;;  %v1907_v22 = vmul.f32 -1.442695, %v2607_v62  ;;  %s407_s30 = sand.u32 1, %s2359_s14  }
 0x119   : > { %v2031_v26 = vpop.f32.mrb[11].mxu0  ;;  %v859_v27 = vadd.f32 %v2029_v21, %v2604_v50  ;;  %v2071_v29 = vpop.f32.mrb[11].mxu1  ;;  %v2178_v21 = vpack.i.bf16 %v1995_v17, %v1994_v15 }
 0x11a   : > { %v2032_v28 = vadd.f32 %v2031_v26, %v2030_v23  ;;  %v2072_v30 = vadd.f32 %v2071_v29, %v2070_v25  ;;  %v2627_v31 = vpop.eup %2243  ;;  %v1908_v23 = vmul.f32 -1.442695, %v2611_v0  ;;  %v1910_v25 = vmul.f32 -1.442695, %v2619_v16 }
 0x11b   : > { %v2629_v32 = vadd.f32 %v2069_v24, %v859_v27  ;;  %v1909_v24 = vmul.f32 -1.442695, %v2615_v14 }
 0x11c   : > { %v862_v33 = vadd.f32 %v2032_v28, %v2604_v50  ;;  %1052 = vrot.lane.b32.xlu0 %v2627_v31, %s2369_s11 }
 0x11d   : > { %2249 = vtanh.f32 %v2629_v32  ;;  %v2033_v35 = vpop.f32.mrb[12].mxu0  ;;  %v1911_v27 = vmul.f32 -1.442695, %v2629_v32 }
 0x11e   : > { %v2635_v34 = vadd.f32 %v2072_v30, %v862_v33  ;;  %v2073_v36 = vpop.f32.mrb[12].mxu1  ;;  %v2034_v37 = vpop.f32.mrb[13].mxu0 }
 0x11f   : > { %v2637_v38 = vpop.eup %2245  ;;  %v2035_v39 = vadd.f32 %v2034_v37, %v2033_v35  ;;  %v2074_v40 = vpop.f32.mrb[13].mxu1 }
 0x120   : > { %v2036_v41 = vpop.f32.mrb[14].mxu0  ;;  %2251 = vtanh.f32 %v2635_v34  ;;  %v2075_v42 = vadd.f32 %v2074_v40, %v2073_v36  ;;  %v2076_v43 = vpop.f32.mrb[14].mxu1  ;;  %1054 = vrot.lane.b32.xlu1 %v2637_v38, %s2369_s11  ;;  %v1912_v30 = vmul.f32 -1.442695, %v2635_v34 }
 0x121   : > { %v2037_v44 = vpop.f32.mrb[15].mxu0  ;;  %v867_v45 = vadd.f32 %v2035_v39, %v2604_v50  ;;  %v2077_v47 = vpop.f32.mrb[15].mxu1 }
 0x122   : > { %v2038_v46 = vadd.f32 %v2037_v44, %v2036_v41  ;;  %v2078_v48 = vadd.f32 %v2077_v47, %v2076_v43  ;;  %v2643_v49 = vpop.eup %2247 }
 0x123   : > { %v2645_v51 = vadd.f32 %v2075_v42, %v867_v45 }
 0x124   : > { %v870_v52 = vadd.f32 %v2038_v46, %v2604_v50  ;;  %1056 = vrot.lane.b32.xlu1 %v2643_v49, %s2369_s11  ;;  %v1981_v50 = vld [vmem:[%s2667_s25] sm:$0xff]   ;;  %s2374_s25 = smov [#allocation2]  }
 0x125   : > { %2253 = vtanh.f32 %v2645_v51  ;;  %v1982_v57 = vunpack.c.l.bf16 %v1981_v50  ;;  %v1983_v58 = vunpack.c.h.bf16 %v1981_v50  ;;  %v1913_v0 = vmul.f32 -1.442695, %v2645_v51  ;;  %s2309_s0 = sshll.u32 %s2374_s25, 4  ;;  %s2310_s0 = int_to_ptr.vmem [resolvable:$false] %s2309_s0 }
 0x126   : > { %v2651_v53 = vadd.f32 %v2078_v48, %v870_v52  ;;  %s2311_s21 = scalar_lea.vmem %s2310_s0, 1024 }
 0x127   : > { %v2653_v54 = vpop.eup %2249  ;;  %v2163_v63 = vpack.i.bf16 %v1983_v58, %v1982_v57 }
 0x128   : > { %2255 = vtanh.f32 %v2651_v53  ;;  %1058 = vrot.lane.b32.xlu0 %v2653_v54, %s2369_s11  ;;  %v1914_v16 = vmul.f32 -1.442695, %v2651_v53 }
 0x129   : > { %2257 = vpow2.f32 %v1907_v22 }
 0x12a   : > { %v2661_v55 = vpop.eup %2251  ;;  %2259 = vpow2.f32 %v1908_v23 }
 0x12b   : > { %1060 = vrot.lane.b32.xlu1 %v2661_v55, %s2369_s11  ;;  %2261 = vpow2.f32 %v1909_v24 }
 0x12c   : > { %2263 = vpow2.f32 %v1910_v25 }
 0x12d   : > { %2265 = vpow2.f32 %v1911_v27 }
 0x12f   : > { %v2680_v56 = vpop.eup %2253 }
 0x130   : > { %1062 = vrot.lane.b32.xlu0 %v2680_v56, %s2369_s11 }
 0x132   : > { %v2685_v60 = vpop.eup %2255 }
 0x133   : > { %1064 = vrot.lane.b32.xlu1 %v2685_v60, %s2369_s11  ;;  %v2258_v26 = vpop.eup %2257 }
 0x134   : > { %1010 = vrot.lane.b32.xlu0 %v994_v59, %s2370_s22  ;;  %v962_v28 = vadd.f32 1.0, %v2258_v26  ;;  %v2260_v29 = vpop.eup %2259 }
 0x135   : > { %v963_v62 = vadd.f32 1.0, %v2260_v29  ;;  %v2262_v33 = vpop.eup %2261 }
 0x136   : > { %2267 = vrcp.f32 %v962_v28  ;;  %v964_v14 = vadd.f32 1.0, %v2262_v33  ;;  %v2264_v35 = vpop.eup %2263 }
 0x137   : > { %1012 = vrot.lane.b32.xlu1 %v995_v61, %s2370_s22  ;;  %2269 = vpow2.f32 %v1912_v30  ;;  %v965_v36 = vadd.f32 1.0, %v2264_v35  ;;  %v2266_v32 = vpop.eup %2265 }
 0x138   : > { %2164 = vrot.lane.b32.xlu0 %v2163_v63, %s2371_s27  ;;  %2271 = vrcp.f32 %v963_v62  ;;  %v966_v41 = vadd.f32 1.0, %v2266_v32 }
 0x139   : > { %2273 = vpow2.f32 %v1913_v0 }
 0x13a   : > { %2275 = vrcp.f32 %v964_v14 }
 0x13b   : > { %1014 = vrot.lane.b32.xlu1 %v996_v4, %s2370_s22  ;;  %2277 = vpow2.f32 %v1914_v16 }
 0x13c   : > { %1016 = vrot.lane.b32.xlu0 %v997_v5, %s2370_s22  ;;  %2279 = vrcp.f32 %v965_v36  ;;  %v2239_v5 = vld [vmem:[%s3050_s6] sm:$0xff]  }
 0x13d   : > { %2281 = vrcp.f32 %v966_v41  ;;  %2089 = vmatprep.subr.bf16.mxu1 %v2239_v5 }
 0x13e   : > { %2090 = vmatpush3.bf16.msra.mxu1 %v2239_v5 }
 0x13f   : > { %2169 = vrot.lane.b32.xlu1 %v2168_v7, %s2371_s27 }
 0x140   : > { %1018 = vrot.lane.b32.xlu0 %v998_v10, %s2370_s22  ;;  %v2719_v37 = vpop.eup %2267 }
 0x141   : > { %v2270_v40 = vpop.eup %2269 }
 0x142   : > { %v2723_v42 = vpop.eup %2271  ;;  %v967_v44 = vadd.f32 1.0, %v2270_v40 }
 0x143   : > { %1020 = vrot.lane.b32.xlu1 %v999_v11, %s2370_s22  ;;  %v2274_v46 = vpop.eup %2273 }
 0x144   : > { %2174 = vrot.lane.b32.xlu0 %v2173_v12, %s2371_s27  ;;  %v2727_v47 = vpop.eup %2275  ;;  %2283 = vrcp.f32 %v967_v44  ;;  %v968_v53 = vadd.f32 1.0, %v2274_v46 }
 0x145   : > { %v2278_v52 = vpop.eup %2277 }
 0x146   : > { %v2731_v50 = vpop.eup %2279  ;;  %v969_v58 = vadd.f32 1.0, %v2278_v52  ;;  %2285 = vrcp.f32 %v968_v53 }
 0x147   : > { %1022 = vrot.lane.b32.xlu1 %v1000_v18, %s2370_s22  ;;  %v2735_v61 = vpop.eup %2281 }
 0x148   : > { %1024 = vrot.lane.b32.xlu0 %v1001_v19, %s2370_s22  ;;  %2287 = vrcp.f32 %v969_v58 }
 0x14b   : > { %2179 = vrot.lane.b32.xlu1 %v2178_v21, %s2371_s27 }
 0x14e   : > { %v2738_v2 = vpop.eup %2283 }
 0x150   : > { %v2749_v7 = vpop.eup %2285 }
 0x152   : > { %v2752_v10 = vpop.eup %2287 }
 0x18a   : > { %v1051_v34 = vpop.permute.xlu0 %1050 }
 0x18b   : > { %v1074_v39 = vmul.f32 %v2719_v37, %v1051_v34 }
 0x18d   : > { %1090 = vrot.lane.b32.xlu0 %v1074_v39, %s2370_s22 }
 0x18e   : > { %v1053_v43 = vpop.permute.xlu0 %1052 }
 0x18f   : > { %v1075_v45 = vmul.f32 %v2723_v42, %v1053_v43 }
 0x191   : > { %1092 = vrot.lane.b32.xlu1 %v1075_v45, %s2370_s22 }
 0x192   : > { %v1055_v48 = vpop.permute.xlu1 %1054 }
 0x193   : > { %v1076_v51 = vmul.f32 %v2727_v47, %v1055_v48 }
 0x195   : > { %1094 = vrot.lane.b32.xlu0 %v1076_v51, %s2370_s22 }
 0x196   : > { %v1057_v57 = vpop.permute.xlu1 %1056 }
 0x197   : > { %v1077_v59 = vmul.f32 %v2731_v50, %v1057_v57 }
 0x199   : > { %1096 = vrot.lane.b32.xlu1 %v1077_v59, %s2370_s22 }
 0x19a   : > { %v1059_v63 = vpop.permute.xlu0 %1058 }
 0x19b   : > { %v1078_v1 = vmul.f32 %v2735_v61, %v1059_v63 }
 0x19d   : > { %v1061_v3 = vpop.permute.xlu1 %1060  ;;  %1098 = vrot.lane.b32.xlu0 %v1078_v1, %s2370_s22 }
 0x19e   : > { %v1079_v4 = vmul.f32 %v2738_v2, %v1061_v3 }
 0x1a0   : > { %1100 = vrot.lane.b32.xlu1 %v1079_v4, %s2370_s22 }
 0x1a2   : > { %v1063_v8 = vpop.permute.xlu0 %1062 }
 0x1a3   : > { %v1080_v9 = vmul.f32 %v2749_v7, %v1063_v8 }
 0x1a5   : > { %v1065_v11 = vpop.permute.xlu1 %1064  ;;  %1102 = vrot.lane.b32.xlu0 %v1080_v9, %s2370_s22 }
 0x1a6   : > { %v1081_v12 = vmul.f32 %v2752_v10, %v1065_v11  ;;  %v1011_v13 = vpop.permute.xlu0 %1010 }
 0x1a7   : > { %v1034_v62 = vmul.f32 %v2719_v37, %v1011_v13 }
 0x1a8   : > { %1104 = vrot.lane.b32.xlu1 %v1081_v12, %s2370_s22 }
 0x1a9   : > { %v1013_v15 = vpop.permute.xlu1 %1012 }
 0x1aa   : > { %v2165_v17 = vpop.permute.xlu0 %2164  ;;  %v1035_v33 = vmul.f32 %v2723_v42, %v1013_v15 }
 0x1ab   : > { %v2167_v27 = vunpack.i.h.bf16 %v2165_v17  ;;  %v2166_v28 = vunpack.i.l.bf16 %v2165_v17 }
 0x1ad   : > { %v1015_v18 = vpop.permute.xlu1 %1014  ;;  %v1170_v0 = vmul.f32 %v2719_v37, %v2166_v28  ;;  %v1171_v14 = vmul.f32 %v2723_v42, %v2167_v27 }
 0x1ae   : > { %v1017_v19 = vpop.permute.xlu0 %1016  ;;  %v1036_v45 = vmul.f32 %v2727_v47, %v1015_v18 }
 0x1af   : > { %v1037_v46 = vmul.f32 %v2731_v50, %v1017_v19 }
 0x1b1   : > { %v2170_v21 = vpop.permute.xlu1 %2169 }
 0x1b2   : > { %v1019_v22 = vpop.permute.xlu0 %1018  ;;  %v2172_v39 = vunpack.i.h.bf16 %v2170_v21  ;;  %v2171_v40 = vunpack.i.l.bf16 %v2170_v21 }
 0x1b3   : > { %v1038_v6 = vmul.f32 %v2735_v61, %v1019_v22 }
 0x1b4   : > { %v1172_v48 = vmul.f32 %v2727_v47, %v2171_v40  ;;  %v1173_v51 = vmul.f32 %v2731_v50, %v2172_v39 }
 0x1b5   : > { %v1021_v23 = vpop.permute.xlu1 %1020 }
 0x1b6   : > { %v2175_v24 = vpop.permute.xlu0 %2174  ;;  %v1039_v8 = vmul.f32 %v2738_v2, %v1021_v23 }
 0x1b7   : > { %v2177_v63 = vunpack.i.h.bf16 %v2175_v24  ;;  %v2176_v1 = vunpack.i.l.bf16 %v2175_v24 }
 0x1b9   : > { %v1023_v25 = vpop.permute.xlu1 %1022  ;;  %v1174_v9 = vmul.f32 %v2735_v61, %v2176_v1  ;;  %v1175_v11 = vmul.f32 %v2738_v2, %v2177_v63 }
 0x1ba   : > { %v1025_v26 = vpop.permute.xlu0 %1024  ;;  %v1040_v27 = vmul.f32 %v2749_v7, %v1023_v25 }
 0x1bb   : > { %v1041_v28 = vmul.f32 %v2752_v10, %v1025_v26 }
 0x1bd   : > { %v2180_v29 = vpop.permute.xlu1 %2179 }
 0x1be   : > { %v2182_v19 = vunpack.i.h.bf16 %v2180_v29  ;;  %v2181_v21 = vunpack.i.l.bf16 %v2180_v29 }
 0x1ff   : > { %v1091_v30 = vpop.permute.xlu0 %1090 }
 0x200   : > { %v2761_v16 = vadd.f32 %v1091_v30, %v1034_v62  ;;  %v2763_v36 = vadd.f32 %v1170_v0, %v1091_v30  ;;  %v1176_v30 = vmul.f32 %v2749_v7, %v2181_v21  ;;  %v1177_v62 = vmul.f32 %v2752_v10, %v2182_v19 }
 0x203   : > { %v1093_v35 = vpop.permute.xlu1 %1092 }
 0x204   : > { %v2765_v32 = vadd.f32 %v1093_v35, %v1035_v33  ;;  %v2767_v34 = vadd.f32 %v1171_v14, %v1093_v35 }
 0x206   : > { %v1186_v41 = vpack.c.bf16 %v2765_v32, %v2761_v16  ;;  %v1192_v43 = vpack.c.bf16 %v2767_v34, %v2763_v36 }
 0x207   : > { %v1095_v44 = vpop.permute.xlu0 %1094 }
 0x208   : > { %1202 = vrot.lane.b32.xlu0 %v1192_v43, %s2372_s28  ;;  %1298 = vrot.lane.b32.xlu1 %v1186_v41, %s2373_s29  ;;  %v2779_v53 = vadd.f32 %v1095_v44, %v1036_v45  ;;  %v2781_v57 = vadd.f32 %v1172_v48, %v1095_v44 }
 0x20b   : > { %v1097_v52 = vpop.permute.xlu1 %1096 }
 0x20c   : > { %v2783_v58 = vadd.f32 %v1097_v52, %v1037_v46  ;;  %v2785_v59 = vadd.f32 %v1173_v51, %v1097_v52 }
 0x20e   : > { %v1187_v3 = vpack.c.bf16 %v2783_v58, %v2779_v53  ;;  %v1193_v4 = vpack.c.bf16 %v2785_v59, %v2781_v57 }
 0x20f   : > { %v1099_v5 = vpop.permute.xlu0 %1098 }
 0x210   : > { %1204 = vrot.lane.b32.xlu0 %v1193_v4, %s2372_s28  ;;  %1300 = vrot.lane.b32.xlu1 %v1187_v3, %s2373_s29  ;;  %v2797_v13 = vadd.f32 %v1099_v5, %v1038_v6  ;;  %v2799_v15 = vadd.f32 %v1174_v9, %v1099_v5 }
 0x212   : > { %v1101_v12 = vpop.permute.xlu1 %1100 }
 0x213   : > { %v2801_v17 = vadd.f32 %v1101_v12, %v1039_v8  ;;  %v2803_v18 = vadd.f32 %v1175_v11, %v1101_v12 }
 0x215   : > { %v1188_v22 = vpack.c.bf16 %v2801_v17, %v2797_v13  ;;  %v1194_v23 = vpack.c.bf16 %v2803_v18, %v2799_v15 }
 0x217   : > { %1206 = vrot.lane.b32.xlu0 %v1194_v23, %s2372_s28  ;;  %1302 = vrot.lane.b32.xlu1 %v1188_v22, %s2373_s29  ;;  %v1103_v24 = vpop.permute.xlu0 %1102 }
 0x218   : > { %v2815_v33 = vadd.f32 %v1103_v24, %v1040_v27  ;;  %v2817_v0 = vadd.f32 %v1176_v30, %v1103_v24 }
 0x21a   : > { %v1105_v29 = vpop.permute.xlu1 %1104 }
 0x21b   : > { %v2819_v14 = vadd.f32 %v1105_v29, %v1041_v28  ;;  %v2821_v35 = vadd.f32 %v1177_v62, %v1105_v29 }
 0x21d   : > { %v1189_v39 = vpack.c.bf16 %v2819_v14, %v2815_v33  ;;  %v1195_v25 = vpack.c.bf16 %v2821_v35, %v2817_v0 }
 0x21f   : > { %1208 = vrot.lane.b32.xlu0 %v1195_v25, %s2372_s28  ;;  %1304 = vrot.lane.b32.xlu1 %v1189_v39, %s2373_s29 }
 0x27a   : > { %v1203_v26 = vpop.permute.xlu0 %1202  ;;  %v1299_v40 = vpop.permute.xlu1 %1298 }
 0x27b   : > { %2091 = vmatprep.mubr.msk.bf16.mxu1 %vm1216_vm0, %v1203_v26  ;;  %2101 = vmatprep.mubr.msk.bf16.mxu0 %vm1216_vm0, %v1299_v40 }
 0x282   : > { %v1205_v41 = vpop.permute.xlu0 %1204  ;;  %v1301_v43 = vpop.permute.xlu1 %1300 }
 0x283   : > { %2092 = vmatmul.mubr.msk.bf16.vlgmr.msra.gmra.mrb[16].mxu1 %vm1216_vm0, %v1205_v41  ;;  %2102 = vmatmul.mubr.msk.bf16.vlgmr.msra.gmra.mrb[16].mxu0 %vm1216_vm0, %v1301_v43 }
 0x289   : > { %v1207_v44 = vpop.permute.xlu0 %1206  ;;  %v1303_v45 = vpop.permute.xlu1 %1302 }
 0x28a   : > { %2095 = vmatprep.mubr.msk.bf16.mxu1 %vm1216_vm0, %v1207_v44  ;;  %2105 = vmatprep.mubr.msk.bf16.mxu0 %vm1216_vm0, %v1303_v45 }
 0x291   : > { %v1209_v46 = vpop.permute.xlu0 %1208  ;;  %v1305_v48 = vpop.permute.xlu1 %1304 }
 0x292   : > { %2096 = vmatmul.mubr.msk.bf16.gmra.mrb[20].mxu1 %vm1216_vm0, %v1209_v46  ;;  %2106 = vmatmul.mubr.msk.bf16.gmra.mrb[20].mxu0 %vm1216_vm0, %v1305_v48 }
 0x356   : > { %v2093_v51 = vpop.f32.mrb[16].mxu1  ;;  %v2103_v52 = vpop.f32.mrb[16].mxu0 }
 0x357   : > { %v1367_v63 = vadd.f32 %v2103_v52, %v2093_v51  ;;  %v1263_v1 = vpop.f32.mrb[17].mxu1  ;;  %v1358_v3 = vpop.f32.mrb[17].mxu0  ;;  %v1972_v51 = vpack.c.bf16 %v2627_v31, %v2627_v31  ;;  %v1971_v52 = vpack.c.bf16 %v2621_v20, %v2621_v20  ;;  %v1976_v31 = vpack.c.bf16 %v2661_v55, %v2661_v55 }
 0x358   : > { %v1359_v4 = vadd.f32 %v1358_v3, %v1263_v1  ;;  %v2094_v5 = vpop.f32.mrb[18].mxu1  ;;  %v2104_v6 = vpop.f32.mrb[18].mxu0  ;;  %v1973_v1 = vpack.c.bf16 %v2637_v38, %v2637_v38  ;;  %v1975_v20 = vpack.c.bf16 %v2653_v54, %v2653_v54  ;;  %v1977_v38 = vpack.c.bf16 %v2680_v56, %v2680_v56 }
 0x359   : > { %2289 = vtanh.f32 %v1367_v63  ;;  %v1370_v8 = vadd.f32 %v2104_v6, %v2094_v5  ;;  %v1266_v9 = vpop.f32.mrb[19].mxu1  ;;  %v1361_v11 = vpop.f32.mrb[19].mxu0  ;;  %v1974_v63 = vpack.c.bf16 %v2643_v49, %v2643_v49  ;;  %v1978_v49 = vpack.c.bf16 %v2685_v60, %v2685_v60 }
 0x35a   : > { %v1362_v12 = vadd.f32 %v1361_v11, %v1266_v9  ;;  %v1963_v54 = vpack.c.bf16 %v2763_v36, %v2763_v36  ;;  %v1964_v55 = vpack.c.bf16 %v2767_v34, %v2767_v34  ;;  %v1965_v56 = vpack.c.bf16 %v2781_v57, %v2781_v57 }
 0x35b   : > { %2291 = vtanh.f32 %v1370_v8  ;;  %v1966_v60 = vpack.c.bf16 %v2785_v59, %v2785_v59  ;;  %v1968_v36 = vpack.c.bf16 %v2803_v18, %v2803_v18 }
 0x35c   : > { %2293 = vtanh.f32 %v1359_v4 }
 0x35d   : > { %2295 = vtanh.f32 %v1362_v12 }
 0x363   : > { %v2290_v19 = vpop.eup %2289 }
 0x364   : > { %1409 = vrot.lane.b32.xlu0 %v2290_v19, %s2372_s28 }
 0x365   : > { %v2292_v21 = vpop.eup %2291  ;;  %v2097_v22 = vpop.f32.mrb[20].mxu1 }
 0x366   : > { %v2107_v23 = vpop.f32.mrb[20].mxu0  ;;  %v1279_v27 = vpop.f32.mrb[21].mxu1  ;;  %1411 = vrot.lane.b32.xlu1 %v2292_v21, %s2372_s28 }
 0x367   : > { %v1383_v24 = vadd.f32 %v2107_v23, %v2097_v22  ;;  %v1374_v28 = vpop.f32.mrb[21].mxu0  ;;  %v2294_v30 = vpop.eup %2293 }
 0x368   : > { %v1375_v62 = vadd.f32 %v1374_v28, %v1279_v27  ;;  %v2098_v29 = vpop.f32.mrb[22].mxu1  ;;  %v2108_v39 = vpop.f32.mrb[22].mxu0  ;;  %1405 = vrot.lane.b32.xlu0 %v2294_v30, %s2372_s28 }
 0x369   : > { %2297 = vtanh.f32 %v1383_v24  ;;  %v1386_v25 = vadd.f32 %v2108_v39, %v2098_v29  ;;  %v1282_v26 = vpop.f32.mrb[23].mxu1  ;;  %v1377_v40 = vpop.f32.mrb[23].mxu0 }
 0x36a   : > { %v2296_v41 = vpop.eup %2295  ;;  %v1378_v43 = vadd.f32 %v1377_v40, %v1282_v26 }
 0x36b   : > { %2299 = vtanh.f32 %v1386_v25  ;;  %1407 = vrot.lane.b32.xlu1 %v2296_v41, %s2372_s28 }
 0x36c   : > { %2301 = vtanh.f32 %v1375_v62 }
 0x36d   : > { %2303 = vtanh.f32 %v1378_v43 }
 0x373   : > { %v2298_v44 = vpop.eup %2297 }
 0x374   : > { %1417 = vrot.lane.b32.xlu0 %v2298_v44, %s2372_s28 }
 0x375   : > { %v2300_v45 = vpop.eup %2299 }
 0x376   : > { %1419 = vrot.lane.b32.xlu1 %v2300_v45, %s2372_s28  ;;  %v2302_v46 = vpop.eup %2301 }
 0x377   : > { %v2304_v48 = vpop.eup %2303 }
 0x378   : > { %1413 = vrot.lane.b32.xlu0 %v2302_v46, %s2372_s28 }
 0x37a   : > { %1415 = vrot.lane.b32.xlu1 %v2304_v48, %s2372_s28 }
 0x37c   : > { %1608 = vrot.lane.b32.xlu0 %v1972_v51, %s2370_s22 }
 0x37e   : > { %1606 = vrot.lane.b32.xlu1 %v1971_v52, %s2370_s22 }
 0x380   : > { %1612 = vrot.lane.b32.xlu0 %v1974_v63, %s2370_s22 }
 0x382   : > { %1610 = vrot.lane.b32.xlu1 %v1973_v1, %s2370_s22 }
 0x384   : > { %1616 = vrot.lane.b32.xlu0 %v1976_v31, %s2370_s22 }
 0x386   : > { %1614 = vrot.lane.b32.xlu1 %v1975_v20, %s2370_s22 }
 0x388   : > { %1620 = vrot.lane.b32.xlu0 %v1978_v49, %s2370_s22 }
 0x38a   : > { %1618 = vrot.lane.b32.xlu1 %v1977_v38, %s2370_s22  ;;  %s1844_s22 = sshll.u32 %s407_s30, 5 }
 0x38b   : > { %s409_s11 = scalar_lea.vmem [#allocation2], %s1844_s22  ;;  %s2948_s22 = scalar_lea.vmem %s3052_s8, %s1849_s26 }
 0x38c   : > { %1502 = vrot.lane.b32.xlu0 %v2761_v16, %s2373_s29  ;;  %v1967_v16 = vpack.c.bf16 %v2799_v15, %v2799_v15  ;;  %s1679_s18 = sshll.u32 %s409_s11, 4  ;;  %s2940_s18 = int_to_ptr.vmem [resolvable:$true] %s1679_s18 }
 0x38d   : > { %s2305_s20 = scalar_lea.vmem %s2940_s18, 512  ;;  %p2312_p0 = scmp.lt.s32.totalorder %s2940_s18, %s2310_s0 }
 0x38e   : > { %1504 = vrot.lane.b32.xlu1 %v2765_v32, %s2373_s29  ;;  %p2306_p11 = scmp.ne.s32.totalorder %s2940_s18, %s2305_s20  ;;  %p2313_p1 = scmp.lt.s32.totalorder %s2311_s21, %s2305_s20 }
 0x390   : > { %1506 = vrot.lane.b32.xlu0 %v2779_v53, %s2373_s29  ;;  %p2307_p12 = pnand %p2306_p11, %p2470_p5  ;;  %p2314_p2 = por %p2313_p1, %p2312_p0 }
 0x392   : > { %1508 = vrot.lane.b32.xlu1 %v2783_v58, %s2373_s29  ;;  %p2308_p13 = pneg %p2307_p12 }
 0x394   : > { %1510 = vrot.lane.b32.xlu0 %v2797_v13, %s2373_s29  ;;  %p2315_p3 = pnand %p2314_p2, %p2308_p13 }
 0x396   : > { %1512 = vrot.lane.b32.xlu1 %v2801_v17, %s2373_s29 }
 0x398   : > { %1514 = vrot.lane.b32.xlu0 %v2815_v33, %s2373_s29 }
 0x39a   : > { %1516 = vrot.lane.b32.xlu1 %v2819_v14, %s2373_s29 }
 0x39c   : > { %1550 = vrot.lane.b32.xlu0 %v1963_v54, %s2372_s28 }
 0x39e   : > { %1552 = vrot.lane.b32.xlu1 %v1964_v55, %s2372_s28 }
 0x3a0   : > { %1554 = vrot.lane.b32.xlu0 %v1965_v56, %s2372_s28 }
 0x3a2   : > { %1556 = vrot.lane.b32.xlu1 %v1966_v60, %s2372_s28 }
 0x3a4   : > { %1558 = vrot.lane.b32.xlu0 %v1967_v16, %s2372_s28 }
 0x3a6   : > { %1560 = vrot.lane.b32.xlu1 %v1968_v36, %s2372_s28 }
 0x3d6   : > { %v1410_v32 = vpop.permute.xlu0 %1409 }
 0x3d7   : > { %v1431_v34 = vmul.f32 %v2727_v47, %v1410_v32 }
 0x3d8   : > { %v1412_v53 = vpop.permute.xlu1 %1411 }
 0x3d9   : > { %v1957_v57 = vpack.c.bf16 %v1431_v34, %v1431_v34  ;;  %v1432_v58 = vmul.f32 %v2731_v50, %v1412_v53 }
 0x3da   : > { %v1406_v59 = vpop.permute.xlu0 %1405 }
 0x3db   : > { %v1958_v13 = vpack.c.bf16 %v1432_v58, %v1432_v58  ;;  %v1429_v15 = vmul.f32 %v2719_v37, %v1406_v59  ;;  %1465 = vrot.lane.b32.xlu0 %v1957_v57, %s2371_s27 }
 0x3dd   : > { %v1408_v17 = vpop.permute.xlu1 %1407  ;;  %v1955_v18 = vpack.c.bf16 %v1429_v15, %v1429_v15  ;;  %1467 = vrot.lane.b32.xlu1 %v1958_v13, %s2371_s27 }
 0x3de   : > { %v1430_v33 = vmul.f32 %v2723_v42, %v1408_v17 }
 0x3df   : > { %1461 = vrot.lane.b32.xlu0 %v1955_v18, %s2371_s27 }
 0x3e0   : > { %v1956_v14 = vpack.c.bf16 %v1430_v33, %v1430_v33 }
 0x3e2   : > { %1463 = vrot.lane.b32.xlu1 %v1956_v14, %s2371_s27 }
 0x3e6   : > { %v1418_v47 = vpop.permute.xlu0 %1417 }
 0x3e7   : > { %v1435_v50 = vmul.f32 %v2749_v7, %v1418_v47 }
 0x3e8   : > { %v1420_v3 = vpop.permute.xlu1 %1419 }
 0x3e9   : > { %v1961_v4 = vpack.c.bf16 %v1435_v50, %v1435_v50  ;;  %v1436_v37 = vmul.f32 %v2752_v10, %v1420_v3 }
 0x3ea   : > { %v1414_v5 = vpop.permute.xlu0 %1413 }
 0x3eb   : > { %v1962_v6 = vpack.c.bf16 %v1436_v37, %v1436_v37  ;;  %v1433_v42 = vmul.f32 %v2735_v61, %v1414_v5  ;;  %1473 = vrot.lane.b32.xlu0 %v1961_v4, %s2371_s27  ;;  %v1969_v61 = vpack.c.bf16 %v2817_v0, %v2817_v0 }
 0x3ec   : > { %v1416_v8 = vpop.permute.xlu1 %1415 }
 0x3ed   : > { %v1959_v9 = vpack.c.bf16 %v1433_v42, %v1433_v42  ;;  %v1434_v11 = vmul.f32 %v2738_v2, %v1416_v8  ;;  %1475 = vrot.lane.b32.xlu1 %v1962_v6, %s2371_s27  ;;  %v1970_v2 = vpack.c.bf16 %v2821_v35, %v2821_v35 }
 0x3ee   : > { %v1609_v7 = vpop.permute.xlu0 %1608 }
 0x3ef   : > { %v1960_v12 = vpack.c.bf16 %v1434_v11, %v1434_v11  ;;  %1631 = vst.msk [vmem:[%s409_s11 + $0x4] sm:$0xf] %vm1485_vm1, %v1609_v7  ;;  %1469 = vrot.lane.b32.xlu0 %v1959_v9, %s2371_s27 }
 0x3f0   : > { %v1607_v10 = vpop.permute.xlu1 %1606 }
 0x3f1   : > { %1630 = vst.msk [vmem:[%s409_s11] sm:$0xf] %vm1485_vm1, %v1607_v10  ;;  %1471 = vrot.lane.b32.xlu1 %v1960_v12, %s2371_s27  ;;  %s1979_s27 = sshll.u32 %s2453_s17, 9 }
 0x3f2   : > { %v1613_v19 = vpop.permute.xlu0 %1612  ;;  %s2938_s29 = scalar_lea.hbm %s3054_s10, %s1979_s27  ;;  %s2953_s27 = scalar_lea.sflag [#allocation3], %s407_s30 }
 0x3f3   : > { %1633 = vst.msk [vmem:[%s409_s11 + $0xc] sm:$0xf] %vm1485_vm1, %v1613_v19  ;;  %1562 = vrot.lane.b32.xlu0 %v1969_v61, %s2372_s28 }
 0x3f4   : > { %v1611_v21 = vpop.permute.xlu1 %1610 }
 0x3f5   : > { %1632 = vst.msk [vmem:[%s409_s11 + $0x8] sm:$0xf] %vm1485_vm1, %v1611_v21  ;;  %1564 = vrot.lane.b32.xlu1 %v1970_v2, %s2372_s28 }
 0x3f6   : > { %v1617_v0 = vpop.permute.xlu0 %1616 }
 0x3f7   : > { %1635 = vst.msk [vmem:[%s409_s11 + $0x14] sm:$0xf] %vm1485_vm1, %v1617_v0 }
 0x3f8   : > { %v1615_v22 = vpop.permute.xlu1 %1614 }
 0x3f9   : > { %1634 = vst.msk [vmem:[%s409_s11 + $0x10] sm:$0xf] %vm1485_vm1, %v1615_v22 }
 0x3fa   : > { %v1621_v35 = vpop.permute.xlu0 %1620 }
 0x3fb   : > { %1637 = vst.msk [vmem:[%s409_s11 + $0x1c] sm:$0xf] %vm1485_vm1, %v1621_v35 }
 0x3fc   : > { %v1619_v23 = vpop.permute.xlu1 %1618 }
 0x3fd   : > { %1636 = vst.msk [vmem:[%s409_s11 + $0x18] sm:$0xf] %vm1485_vm1, %v1619_v23 }
 0x3fe   : > { %v1503_v24 = vpop.permute.xlu0 %1502 }
 0x3ff   : > { %2318 = shalt.err (!%p2315_p3)
}
 0x400   : > { %s2319_s26 = scalar_lea.hbm %s2938_s29, 512  ;;  %s2323_s17 = scalar_lea.hbm %s3054_s10, 1024 }
 0x401   : > { %p2320_p4 = scmp.ne.s32.totalorder %s2938_s29, %s2319_s26  ;;  %p2324_p9 = scmp.lt.u32.totalorder %s2938_s29, %s3054_s10 }
 0x402   : > { %p2325_p10 = scmp.lt.u32.totalorder %s2323_s17, %s2319_s26  ;;  %p2327_p12 = scmp.lt.u32.totalorder %s2319_s26, %s2938_s29 }
 0x403   : > { %p2321_p7 = pnand %p2320_p4, %p2470_p5 }
 0x404   : > { %p2326_p11 = por %p2325_p10, %p2324_p9 }
 0x405   : > { %p2322_p8 = pneg %p2321_p7 }
 0x406   : > { %p2328_p13 = por %p2327_p12, %p2326_p11 }
 0x408   : > { %p2329_p0 = pnand %p2328_p13, %p2322_p8 }
 0x40a   : > { %2332 = shalt.err (!%p2329_p0)
}
 0x40b   : > { %s2375_s20 = smov 64   ;;  %s2376_s25 = smov 4   ;;  %1526 = vst.msk [vmem:[%s2948_s22] sm:$0xff] %vm1216_vm0, %v1503_v24  ;;  %v1505_v27 = vpop.permute.xlu1 %1504  ;;  %v1507_v28 = vpop.permute.xlu0 %1506 }
 0x40c   : > { %2117 = dma.vmem_to_hbm [thread:$0]  (%p2470_p5), %s2940_s18, 512, %s2938_s29, %s2953_s27, %s2375_s20, %s2375_s20, %s2376_s25  }
 0x40d   : > { %1527 = vst.msk [vmem:[%s2948_s22 + $0x8] sm:$0xff] %vm1216_vm0, %v1505_v27  ;;  %1528 = vst.msk [vmem:[%s2948_s22 + $0x10] sm:$0xff] %vm1216_vm0, %v1507_v28  ;;  %s2995_s29 = scalar_lea.vmem %s3053_s9, %s2656_s12  ;;  %s433_s21 = scalar_lea.vmem %s3051_s7, %s2656_s12 }
 0x40f   : > { %v1509_v30 = vpop.permute.xlu1 %1508  ;;  %v1511_v62 = vpop.permute.xlu0 %1510 }
 0x410   : > { %1529 = vst.msk [vmem:[%s2948_s22 + $0x18] sm:$0xff] %vm1216_vm0, %v1509_v30  ;;  %1530 = vst.msk [vmem:[%s2948_s22 + $0x20] sm:$0xff] %vm1216_vm0, %v1511_v62 }
 0x413   : > { %v1513_v29 = vpop.permute.xlu1 %1512  ;;  %v1515_v39 = vpop.permute.xlu0 %1514 }
 0x414   : > { %1531 = vst.msk [vmem:[%s2948_s22 + $0x28] sm:$0xff] %vm1216_vm0, %v1513_v29  ;;  %1532 = vst.msk [vmem:[%s2948_s22 + $0x30] sm:$0xff] %vm1216_vm0, %v1515_v39 }
 0x417   : > { %v1517_v25 = vpop.permute.xlu1 %1516  ;;  %v1551_v26 = vpop.permute.xlu0 %1550 }
 0x418   : > { %1533 = vst.msk [vmem:[%s2948_s22 + $0x38] sm:$0xff] %vm1216_vm0, %v1517_v25 }
 0x419   : > { %1574 = vst.msk [vmem:[%s2995_s29] sm:$0xf] %vm1485_vm1, %v1551_v26 }
 0x41b   : > { %v1553_v40 = vpop.permute.xlu1 %1552  ;;  %v1555_v41 = vpop.permute.xlu0 %1554 }
 0x41c   : > { %1575 = vst.msk [vmem:[%s2995_s29 + $0x4] sm:$0xf] %vm1485_vm1, %v1553_v40  ;;  %1576 = vst.msk [vmem:[%s2995_s29 + $0x8] sm:$0xf] %vm1485_vm1, %v1555_v41 }
 0x41f   : > { %v1557_v43 = vpop.permute.xlu1 %1556  ;;  %v1559_v44 = vpop.permute.xlu0 %1558 }
 0x420   : > { %1577 = vst.msk [vmem:[%s2995_s29 + $0xc] sm:$0xf] %vm1485_vm1, %v1557_v43  ;;  %1578 = vst.msk [vmem:[%s2995_s29 + $0x10] sm:$0xf] %vm1485_vm1, %v1559_v44 }
 0x423   : > { %v1561_v45 = vpop.permute.xlu1 %1560 }
 0x424   : > { %1579 = vst.msk [vmem:[%s2995_s29 + $0x14] sm:$0xf] %vm1485_vm1, %v1561_v45 }
 0x44d   : > { %v1466_v46 = vpop.permute.xlu0 %1465 }
 0x44e   : > { %1488 = vst.msk [vmem:[%s433_s21 + $0x8] sm:$0xf] %vm1485_vm1, %v1466_v46 }
 0x44f   : > { %v1468_v48 = vpop.permute.xlu1 %1467 }
 0x450   : > { %1489 = vst.msk [vmem:[%s433_s21 + $0xc] sm:$0xf] %vm1485_vm1, %v1468_v48 }
 0x451   : > { %v1462_v51 = vpop.permute.xlu0 %1461 }
 0x452   : > { %1486 = vst.msk [vmem:[%s433_s21] sm:$0xf] %vm1485_vm1, %v1462_v51 }
 0x454   : > { %v1464_v52 = vpop.permute.xlu1 %1463 }
 0x455   : > { %1487 = vst.msk [vmem:[%s433_s21 + $0x4] sm:$0xf] %vm1485_vm1, %v1464_v52 }
 0x45d   : > { %v1474_v63 = vpop.permute.xlu0 %1473 }
 0x45e   : > { %1492 = vst.msk [vmem:[%s433_s21 + $0x18] sm:$0xf] %vm1485_vm1, %v1474_v63 }
 0x45f   : > { %v1476_v1 = vpop.permute.xlu1 %1475 }
 0x460   : > { %1493 = vst.msk [vmem:[%s433_s21 + $0x1c] sm:$0xf] %vm1485_vm1, %v1476_v1 }
 0x461   : > { %v1470_v31 = vpop.permute.xlu0 %1469 }
 0x462   : > { %1490 = vst.msk [vmem:[%s433_s21 + $0x10] sm:$0xf] %vm1485_vm1, %v1470_v31 }
 0x463   : > { %v1472_v20 = vpop.permute.xlu1 %1471 }
 0x464   : > { %1491 = vst.msk [vmem:[%s433_s21 + $0x14] sm:$0xf] %vm1485_vm1, %v1472_v20 }
 0x465   : > { %v1563_v49 = vpop.permute.xlu0 %1562 }
 0x466   : > { %1580 = vst.msk [vmem:[%s2995_s29 + $0x18] sm:$0xf] %vm1485_vm1, %v1563_v49 }
 0x467   : > { %v1565_v38 = vpop.permute.xlu1 %1564 }
 0x468   : > { %1581 = vst.msk [vmem:[%s2995_s29 + $0x1c] sm:$0xf] %vm1485_vm1, %v1565_v38 }
 0x469 PF: > { %p2123_p5 = scmp.ge.s32.totalorder %s2367_s16, 2  ;;  %s1718_s12 = sand.u32 1, %s2355_s13  }
 0x46a   : > { %s1719_s26 = scalar_lea.sflag [#allocation3], %s1718_s12 }
 0x46b   : > { %p2120_p1 = pnand %p2123_p5, %p2474_p6 }
 0x46d   : > { %2350 = dma.done.wait (!%p2120_p1), %s1719_s26, 512  }
 0x46e   : > { %2352 = vsyncadd (!%p2120_p1), %s1719_s26, 4294966784  ;;  %s3060_s30 = sld [smem:[#allocation5_spill]]  ;;  %p21_p2 = scmp.ge.s32.totalorder %s2457_s19, 4  }
 0x46f   : > { %s3061_s13 = smov %s2359_s14  ;;  %s3062_s14 = smov %s2363_s15 }
 0x470   : > { %s3064_s16 = smov %s2457_s19  ;;  %23 = sbr.rel (!%p21_p2) target bundleno = 5 (0x5), region = 125 }
 0x474   : > { %s3063_s15 = smov %s3060_s30 }
 0x477   :  { %1724 = vsyncpa [#allocation3], 1 }
 0x478   :  { %1726 = vsyncpa [#allocation3 + $0x1], 1 }

// kernel: msmm_forward.28
= control target key start
LH: loop header
LB: loop body
LE: loop exit
PB: predicated region body
PF: predicated region fallthrough
CT: control target
= control target key end

     0   :  { %s597_s12 = smov 0   ;;  %s666_s0 = inlined_call_operand.vmem [shape: bf16[176,64], index: 0, kind: input, shape index: {}]   ;;  %s667_s1 = inlined_call_operand.vmem [shape: bf16[64,32], index: 1, kind: input, shape index: {}]   ;;  %s668_s2 = inlined_call_operand.vmem [shape: f32[1,32], index: 2, kind: input, shape index: {}]   ;;  %s669_s3 = inlined_call_operand.vmem [shape: bf16[176,32], index: 3, kind: output, shape index: {}]  }
   0x1 LB: > { %s465_s13 = sadd.s32 4294967295, %s575_s12   ;;  %p469_p0 = scmp.ge.s32.totalorder %s575_s12, 1  ;;  %s575_s12 = sphi %s597_s12, %s13_s12  }
   0x2   : > { %p138_p1 = scmp.lt.s32.totalorder %s575_s12, 3 }
   0x4   : > { %p139_p2 = pnand %p469_p0, %p138_p1 }
   0x5   : > { %v559_v0 = vld [vmem:[%s667_s1] sm:$0xff] (!%p139_p2)   ;;  %s162_s16 = smul.u32 (!%p139_p2), 11, %s465_s13  ;;  %v560_v1 = vld [vmem:[%s667_s1 + $0x8] sm:$0xff] (!%p139_p2)   ;;  %v561_v2 = vld [vmem:[%s667_s1 + $0x10] sm:$0xff] (!%p139_p2)   ;;  %vm253_vm0 = vcmask (!%p139_p2), 523264   ;;  %vm397_vm1 = vcmask (!%p139_p2), 257024  }
   0x6   : > { %142 = sbr.rel (%p139_p2) target bundleno = 250 (0xfa), region = 32  ;;  %543 = vmatprep.subr.bf16.mxu1 (!%p139_p2), %v559_v0  ;;  %523 = vmatprep.subr.bf16.mxu0 (!%p139_p2), %v559_v0  ;;  %v562_v3 = vld [vmem:[%s667_s1 + $0x18] sm:$0xff] (!%p139_p2)   ;;  %v472_v10 = vld [vmem:[%s668_s2] ss:$0 sm:$0xff] (!%p139_p2) }
   0x7   : > { %p163_p3 = scmp.lt.s32.totalorder (!%p139_p2), %s162_s16, 21  ;;  %547 = vmatpush3.bf16.msra.mxu1 (!%p139_p2), %v559_v0  ;;  %524 = vmatpush3.bf16.msra.mxu0 (!%p139_p2), %v559_v0 }
   0x8   : > { %544 = vmatprep.subr.bf16.mxu1 (!%p139_p2), %v560_v1  ;;  %525 = vmatprep.subr.bf16.mxu0 (!%p139_p2), %v560_v1 }
   0xb   : > { %548 = vmatpush3.bf16.msra.mxu1 (!%p139_p2), %v560_v1  ;;  %526 = vmatpush3.bf16.msra.mxu0 (!%p139_p2), %v560_v1 }
   0xc   : > { %545 = vmatprep.subr.bf16.mxu1 (!%p139_p2), %v561_v2  ;;  %527 = vmatprep.subr.bf16.mxu0 (!%p139_p2), %v561_v2 }
   0xd   : > { %s671_s16 = smov (!%p163_p3, %s162_s16), 21 }
   0xe   : > { %s470_s21 = sshll.u32 %s671_s16, 2 }
   0xf   : > { %s166_s26 = scalar_lea.vmem %s666_s0, %s470_s21  ;;  %549 = vmatpush3.bf16.msra.mxu1 %v561_v2  ;;  %528 = vmatpush3.bf16.msra.mxu0 %v561_v2  ;;  %s639_s4 = scalar_lea.vmem %s669_s3, %s470_s21 }
  0x10   : > { %v563_v4 = vld [vmem:[%s166_s26 + $0x10] sm:$0xff]   ;;  %v565_v5 = vld [vmem:[%s166_s26] sm:$0xff]   ;;  %546 = vmatprep.subr.bf16.mxu1 %v562_v3  ;;  %529 = vmatprep.subr.bf16.mxu0 %v562_v3  ;;  %v564_v6 = vld [vmem:[%s166_s26 + $0x18] sm:$0xff]  }
  0x11   : > { %535 = vmatprep.mubr.msk.bf16.mxu1 %vm253_vm0, %v563_v4  ;;  %531 = vmatprep.mubr.msk.bf16.mxu0 %vm253_vm0, %v565_v5  ;;  %v566_v7 = vld [vmem:[%s166_s26 + $0x8] sm:$0xff]   ;;  %v567_v8 = vld [vmem:[%s166_s26 + $0x20] sm:$0xff]  }
  0x12   : > { %v568_v9 = vld [vmem:[%s166_s26 + $0x28] ss:$0 sps:$4 sm:$0xff]  }
  0x13   : > { %550 = vmatpush3.bf16.msra.mxu1 %v562_v3  ;;  %530 = vmatpush3.bf16.msra.mxu0 %v562_v3 }
  0x16   : > { %536 = vmatmul.mubr.msk.bf16.vlgmr.msra.gmra.mrb[0].mxu1 %vm253_vm0, %v564_v6  ;;  %532 = vmatmul.mubr.msk.bf16.vlgmr.msra.gmra.mrb[0].mxu0 %vm253_vm0, %v566_v7 }
  0x17   : > { %539 = vmatprep.mubr.msk.bf16.mxu1 %vm253_vm0, %v567_v8 }
  0x1e   : > { %540 = vmatmul.mubr.msk.bf16.gmra.mrb[4].mxu1 %vm253_vm0, %v568_v9 }
  0xe9   : > { %v537_v11 = vpop.f32.mrb[0].mxu1  ;;  %v533_v12 = vpop.f32.mrb[0].mxu0 }
  0xea   : > { %v331_v13 = vadd.f32 %v537_v11, %v472_v10  ;;  %v322_v14 = vpop.f32.mrb[1].mxu1  ;;  %v315_v15 = vadd.f32 %v533_v12, %v472_v10  ;;  %v306_v16 = vpop.f32.mrb[1].mxu0 }
  0xeb   : > { %v323_v17 = vadd.f32 %v472_v10, %v322_v14  ;;  %v538_v18 = vpop.f32.mrb[2].mxu1  ;;  %v307_v19 = vadd.f32 %v472_v10, %v306_v16  ;;  %v534_v20 = vpop.f32.mrb[2].mxu0 }
  0xec   : > { %v508_v21 = vpack.c.bf16 %v331_v13, %v331_v13  ;;  %v334_v22 = vadd.f32 %v538_v18, %v472_v10  ;;  %v325_v23 = vpop.f32.mrb[3].mxu1  ;;  %v504_v24 = vpack.c.bf16 %v315_v15, %v315_v15  ;;  %v318_v25 = vadd.f32 %v534_v20, %v472_v10  ;;  %v309_v26 = vpop.f32.mrb[3].mxu0 }
  0xed   : > { %v506_v27 = vpack.c.bf16 %v323_v17, %v323_v17  ;;  %v326_v28 = vadd.f32 %v472_v10, %v325_v23  ;;  %v502_v29 = vpack.c.bf16 %v307_v19, %v307_v19  ;;  %v310_v30 = vadd.f32 %v472_v10, %v309_v26 }
  0xee   : > { %404 = vst.msk [vmem:[%s639_s4 + $0x18] sm:$0xf] %vm397_vm1, %v508_v21  ;;  %v509_v31 = vpack.c.bf16 %v334_v22, %v334_v22  ;;  %400 = vst.msk [vmem:[%s639_s4 + $0x8] sm:$0xf] %vm397_vm1, %v504_v24  ;;  %v505_v32 = vpack.c.bf16 %v318_v25, %v318_v25 }
  0xef   : > { %402 = vst.msk [vmem:[%s639_s4 + $0x10] sm:$0xf] %vm397_vm1, %v506_v27  ;;  %v507_v33 = vpack.c.bf16 %v326_v28, %v326_v28  ;;  %398 = vst.msk [vmem:[%s639_s4] sm:$0xf] %vm397_vm1, %v502_v29  ;;  %v503_v34 = vpack.c.bf16 %v310_v30, %v310_v30 }
  0xf0   : > { %405 = vst.msk [vmem:[%s639_s4 + $0x1c] sm:$0xf] %vm397_vm1, %v509_v31  ;;  %401 = vst.msk [vmem:[%s639_s4 + $0xc] sm:$0xf] %vm397_vm1, %v505_v32 }
  0xf1   : > { %403 = vst.msk [vmem:[%s639_s4 + $0x14] sm:$0xf] %vm397_vm1, %v507_v33  ;;  %399 = vst.msk [vmem:[%s639_s4 + $0x4] sm:$0xf] %vm397_vm1, %v503_v34  ;;  %v541_v35 = vpop.f32.mrb[4].mxu1 }
  0xf2   : > { %v347_v36 = vadd.f32 %v541_v35, %v472_v10  ;;  %v338_v37 = vpop.f32.mrb[5].mxu1 }
  0xf3   : > { %v339_v38 = vadd.f32 %v472_v10, %v338_v37  ;;  %v542_v39 = vpop.f32.mrb[6].mxu1 }
  0xf4   : > { %v512_v40 = vpack.c.bf16 %v347_v36, %v347_v36  ;;  %v341_v41 = vpop.f32.mrb[7].mxu1 }
  0xf5   : > { %v510_v42 = vpack.c.bf16 %v339_v38, %v339_v38  ;;  %v342_v43 = vadd.f32 %v472_v10, %v341_v41 }
  0xf6   : > { %408 = vst.msk [vmem:[%s639_s4 + $0x28] sm:$0xf] %vm397_vm1, %v512_v40 }
  0xf7   : > { %406 = vst.msk [vmem:[%s639_s4 + $0x20] sm:$0xf] %vm397_vm1, %v510_v42  ;;  %v511_v44 = vpack.c.bf16 %v342_v43, %v342_v43 }
  0xf9   : > { %407 = vst.msk [vmem:[%s639_s4 + $0x24] sm:$0xf] %vm397_vm1, %v511_v44 }
  0xfa PF: > { %s13_s12 = sadd.s32 1, %s575_s12  }
  0xfb   : > { %p10_p4 = scmp.ge.s32.totalorder %s13_s12, 4  }
  0xfd   :  { %12 = sbr.rel (!%p10_p4) target bundleno = 1 (0x1), region = 62 }

// kernel: msmm_forward.37
= control target key start
LH: loop header
LB: loop body
LE: loop exit
PB: predicated region body
PF: predicated region fallthrough
CT: control target
= control target key end

     0   :  { %s941_s12 = smov 0   ;;  %s1105_s0 = inlined_call_operand.vmem [shape: bf16[512,8], index: 0, kind: input, shape index: {}]   ;;  %s1106_s1 = inlined_call_operand.vmem [shape: bf16[8,2], index: 1, kind: input, shape index: {}]   ;;  %s1107_s2 = inlined_call_operand.vmem [shape: f32[1,2], index: 2, kind: input, shape index: {}]   ;;  %s1108_s3 = inlined_call_operand.vmem [shape: bf16[512,2], index: 3, kind: output, shape index: {}]  }
   0x1 LB: > { %s726_s13 = sadd.s32 4294967295, %s919_s12   ;;  %p730_p0 = scmp.ge.s32.totalorder %s919_s12, 1  ;;  %s919_s12 = sphi %s941_s12, %s13_s12  }
   0x2   : > { %p138_p1 = scmp.lt.s32.totalorder %s919_s12, 3 }
   0x4   : > { %p139_p2 = pnand %p730_p0, %p138_p1 }
   0x5   : > { %v207_v0 = vld [vmem:[%s1106_s1] sm:$0xf] (!%p139_p2)  ;;  %vm344_vm0 = vcmask (!%p139_p2), 1043456   ;;  %s731_s16 = sshll.u32 (!%p139_p2), %s726_s13, 5  ;;  %vm295_vm1 = vcmask (!%p139_p2), 64512   ;;  %vm637_vm2 = vcmask (!%p139_p2), 11264  }
   0x6   : > { %142 = sbr.rel (%p139_p2) target bundleno = 263 (0x107), region = 32  ;;  %887 = vmatprep.subr.msk.bf16.mxu0 (!%p139_p2), %vm344_vm0, %v207_v0  ;;  %888 = vmatprep.subr.msk.bf16.mxu1 (!%p139_p2), %vm344_vm0, %v207_v0  ;;  %v346_v1 = vsel (!%p139_p2), %vm344_vm0, %v207_v0, 0  ;;  %p163_p3 = scmp.lt.s32.totalorder (!%p139_p2), %s731_s16, 63  ;;  %v997_v18 = vld [vmem:[%s1107_s2] ss:$0 sm:$0xff] (!%p139_p2) }
   0x7   : > { %852 = vmatpush3.bf16.msra.mxu0 (!%p139_p2), %v346_v1  ;;  %886 = vmatpush3.bf16.msra.mxu1 (!%p139_p2), %v346_v1 }
   0xd   : > { %s1110_s16 = smov (!%p163_p3, %s731_s16), 63 }
   0xe   : > { %s732_s17 = sshll.u32 %s1110_s16, 2 }
   0xf   : > { %s960_s20 = scalar_lea.vmem %s1105_s0, %s732_s17  ;;  %s1005_s25 = scalar_lea.vmem %s1108_s3, %s732_s17 }
  0x10   : > { %v897_v2 = vld [vmem:[%s960_s20] sm:$0xff]   ;;  %v899_v4 = vld [vmem:[%s960_s20 + $0x8] sm:$0xff]   ;;  %v901_v6 = vld [vmem:[%s960_s20 + $0x10] sm:$0xff]  }
  0x11   : > { %v898_v3 = vld [vmem:[%s960_s20 + $0x40] sm:$0xff]   ;;  %853 = vmatprep.mubr.msk.bf16.mxu0 %vm295_vm1, %v897_v2  ;;  %v900_v5 = vld [vmem:[%s960_s20 + $0x48] sm:$0xff]   ;;  %v902_v7 = vld [vmem:[%s960_s20 + $0x50] sm:$0xff]  }
  0x12   : > { %869 = vmatprep.mubr.msk.bf16.mxu1 %vm295_vm1, %v898_v3  ;;  %854 = vmatmul.mubr.msk.bf16.vlgmr.msra.gmra.mrb[0].mxu0 %vm295_vm1, %v899_v4  ;;  %v903_v8 = vld [vmem:[%s960_s20 + $0x18] sm:$0xff]   ;;  %v905_v10 = vld [vmem:[%s960_s20 + $0x20] sm:$0xff]   ;;  %v907_v12 = vld [vmem:[%s960_s20 + $0x28] sm:$0xff]  }
  0x13   : > { %870 = vmatmul.mubr.msk.bf16.vlgmr.msra.gmra.mrb[0].mxu1 %vm295_vm1, %v900_v5  ;;  %857 = vmatprep.mubr.msk.bf16.mxu0 %vm295_vm1, %v901_v6  ;;  %v904_v9 = vld [vmem:[%s960_s20 + $0x58] sm:$0xff]   ;;  %v906_v11 = vld [vmem:[%s960_s20 + $0x60] sm:$0xff]   ;;  %v908_v13 = vld [vmem:[%s960_s20 + $0x68] sm:$0xff]  }
  0x14   : > { %873 = vmatprep.mubr.msk.bf16.mxu1 %vm295_vm1, %v902_v7  ;;  %v909_v14 = vld [vmem:[%s960_s20 + $0x30] sm:$0xff]   ;;  %v911_v16 = vld [vmem:[%s960_s20 + $0x38] sm:$0xff]  }
  0x15   : > { %v910_v15 = vld [vmem:[%s960_s20 + $0x70] sm:$0xff]   ;;  %v912_v17 = vld [vmem:[%s960_s20 + $0x78] sm:$0xff]  }
  0x1a   : > { %858 = vmatmul.mubr.msk.bf16.gmra.mrb[4].mxu0 %vm295_vm1, %v903_v8 }
  0x1b   : > { %874 = vmatmul.mubr.msk.bf16.gmra.mrb[4].mxu1 %vm295_vm1, %v904_v9  ;;  %861 = vmatprep.mubr.msk.bf16.mxu0 %vm295_vm1, %v905_v10 }
  0x1c   : > { %877 = vmatprep.mubr.msk.bf16.mxu1 %vm295_vm1, %v906_v11 }
  0x22   : > { %862 = vmatmul.mubr.msk.bf16.gmra.mrb[8].mxu0 %vm295_vm1, %v907_v12 }
  0x23   : > { %878 = vmatmul.mubr.msk.bf16.gmra.mrb[8].mxu1 %vm295_vm1, %v908_v13  ;;  %865 = vmatprep.mubr.msk.bf16.mxu0 %vm295_vm1, %v909_v14 }
  0x24   : > { %881 = vmatprep.mubr.msk.bf16.mxu1 %vm295_vm1, %v910_v15 }
  0x2a   : > { %866 = vmatmul.mubr.msk.bf16.gmra.mrb[12].mxu0 %vm295_vm1, %v911_v16 }
  0x2b   : > { %882 = vmatmul.mubr.msk.bf16.gmra.mrb[12].mxu1 %vm295_vm1, %v912_v17 }
  0xe5   : > { %v855_v19 = vpop.f32.mrb[0].mxu0 }
  0xe6   : > { %v391_v20 = vadd.f32 %v855_v19, %v997_v18  ;;  %v871_v21 = vpop.f32.mrb[0].mxu1  ;;  %v382_v22 = vpop.f32.mrb[1].mxu0 }
  0xe7   : > { %v455_v23 = vadd.f32 %v871_v21, %v997_v18  ;;  %v383_v24 = vadd.f32 %v997_v18, %v382_v22  ;;  %v446_v25 = vpop.f32.mrb[1].mxu1  ;;  %v856_v26 = vpop.f32.mrb[2].mxu0 }
  0xe8   : > { %v804_v27 = vpack.c.bf16 %v391_v20, %v391_v20  ;;  %v447_v28 = vadd.f32 %v997_v18, %v446_v25  ;;  %v394_v29 = vadd.f32 %v856_v26, %v997_v18  ;;  %v872_v30 = vpop.f32.mrb[2].mxu1  ;;  %v385_v31 = vpop.f32.mrb[3].mxu0 }
  0xe9   : > { %v820_v32 = vpack.c.bf16 %v455_v23, %v455_v23  ;;  %v802_v33 = vpack.c.bf16 %v383_v24, %v383_v24  ;;  %v458_v34 = vadd.f32 %v872_v30, %v997_v18  ;;  %v386_v35 = vadd.f32 %v997_v18, %v385_v31  ;;  %v449_v36 = vpop.f32.mrb[3].mxu1 }
  0xea   : > { %640 = vst.msk [vmem:[%s1005_s25 + $0x8] sm:$0xf] %vm637_vm2, %v804_v27  ;;  %v818_v37 = vpack.c.bf16 %v447_v28, %v447_v28  ;;  %v805_v38 = vpack.c.bf16 %v394_v29, %v394_v29  ;;  %v450_v39 = vadd.f32 %v997_v18, %v449_v36 }
  0xeb   : > { %656 = vst.msk [vmem:[%s1005_s25 + $0x48] sm:$0xf] %vm637_vm2, %v820_v32  ;;  %638 = vst.msk [vmem:[%s1005_s25] sm:$0xf] %vm637_vm2, %v802_v33  ;;  %v821_v40 = vpack.c.bf16 %v458_v34, %v458_v34  ;;  %v803_v41 = vpack.c.bf16 %v386_v35, %v386_v35 }
  0xec   : > { %654 = vst.msk [vmem:[%s1005_s25 + $0x40] sm:$0xf] %vm637_vm2, %v818_v37  ;;  %641 = vst.msk [vmem:[%s1005_s25 + $0xc] sm:$0xf] %vm637_vm2, %v805_v38  ;;  %v819_v42 = vpack.c.bf16 %v450_v39, %v450_v39 }
  0xed   : > { %657 = vst.msk [vmem:[%s1005_s25 + $0x4c] sm:$0xf] %vm637_vm2, %v821_v40  ;;  %639 = vst.msk [vmem:[%s1005_s25 + $0x4] sm:$0xf] %vm637_vm2, %v803_v41  ;;  %v859_v43 = vpop.f32.mrb[4].mxu0 }
  0xee   : > { %655 = vst.msk [vmem:[%s1005_s25 + $0x44] sm:$0xf] %vm637_vm2, %v819_v42  ;;  %v407_v44 = vadd.f32 %v859_v43, %v997_v18  ;;  %v875_v45 = vpop.f32.mrb[4].mxu1  ;;  %v398_v46 = vpop.f32.mrb[5].mxu0 }
  0xef   : > { %v471_v47 = vadd.f32 %v875_v45, %v997_v18  ;;  %v399_v48 = vadd.f32 %v997_v18, %v398_v46  ;;  %v462_v49 = vpop.f32.mrb[5].mxu1  ;;  %v860_v50 = vpop.f32.mrb[6].mxu0 }
  0xf0   : > { %v808_v51 = vpack.c.bf16 %v407_v44, %v407_v44  ;;  %v463_v52 = vadd.f32 %v997_v18, %v462_v49  ;;  %v410_v53 = vadd.f32 %v860_v50, %v997_v18  ;;  %v876_v54 = vpop.f32.mrb[6].mxu1  ;;  %v401_v55 = vpop.f32.mrb[7].mxu0 }
  0xf1   : > { %v824_v56 = vpack.c.bf16 %v471_v47, %v471_v47  ;;  %v806_v57 = vpack.c.bf16 %v399_v48, %v399_v48  ;;  %v474_v58 = vadd.f32 %v876_v54, %v997_v18  ;;  %v402_v59 = vadd.f32 %v997_v18, %v401_v55  ;;  %v465_v60 = vpop.f32.mrb[7].mxu1 }
  0xf2   : > { %644 = vst.msk [vmem:[%s1005_s25 + $0x18] sm:$0xf] %vm637_vm2, %v808_v51  ;;  %v822_v61 = vpack.c.bf16 %v463_v52, %v463_v52  ;;  %v809_v62 = vpack.c.bf16 %v410_v53, %v410_v53  ;;  %v466_v63 = vadd.f32 %v997_v18, %v465_v60 }
  0xf3   : > { %660 = vst.msk [vmem:[%s1005_s25 + $0x58] sm:$0xf] %vm637_vm2, %v824_v56  ;;  %642 = vst.msk [vmem:[%s1005_s25 + $0x10] sm:$0xf] %vm637_vm2, %v806_v57  ;;  %v825_v0 = vpack.c.bf16 %v474_v58, %v474_v58  ;;  %v807_v1 = vpack.c.bf16 %v402_v59, %v402_v59 }
  0xf4   : > { %658 = vst.msk [vmem:[%s1005_s25 + $0x50] sm:$0xf] %vm637_vm2, %v822_v61  ;;  %645 = vst.msk [vmem:[%s1005_s25 + $0x1c] sm:$0xf] %vm637_vm2, %v809_v62  ;;  %v823_v2 = vpack.c.bf16 %v466_v63, %v466_v63 }
  0xf5   : > { %661 = vst.msk [vmem:[%s1005_s25 + $0x5c] sm:$0xf] %vm637_vm2, %v825_v0  ;;  %643 = vst.msk [vmem:[%s1005_s25 + $0x14] sm:$0xf] %vm637_vm2, %v807_v1  ;;  %v863_v3 = vpop.f32.mrb[8].mxu0 }
  0xf6   : > { %659 = vst.msk [vmem:[%s1005_s25 + $0x54] sm:$0xf] %vm637_vm2, %v823_v2  ;;  %v423_v4 = vadd.f32 %v863_v3, %v997_v18  ;;  %v879_v5 = vpop.f32.mrb[8].mxu1  ;;  %v414_v6 = vpop.f32.mrb[9].mxu0 }
  0xf7   : > { %v487_v7 = vadd.f32 %v879_v5, %v997_v18  ;;  %v415_v8 = vadd.f32 %v997_v18, %v414_v6  ;;  %v478_v9 = vpop.f32.mrb[9].mxu1  ;;  %v864_v10 = vpop.f32.mrb[10].mxu0 }
  0xf8   : > { %v812_v11 = vpack.c.bf16 %v423_v4, %v423_v4  ;;  %v479_v12 = vadd.f32 %v997_v18, %v478_v9  ;;  %v426_v13 = vadd.f32 %v864_v10, %v997_v18  ;;  %v880_v14 = vpop.f32.mrb[10].mxu1  ;;  %v417_v15 = vpop.f32.mrb[11].mxu0 }
  0xf9   : > { %v828_v16 = vpack.c.bf16 %v487_v7, %v487_v7  ;;  %v810_v17 = vpack.c.bf16 %v415_v8, %v415_v8  ;;  %v490_v19 = vadd.f32 %v880_v14, %v997_v18  ;;  %v418_v20 = vadd.f32 %v997_v18, %v417_v15  ;;  %v481_v21 = vpop.f32.mrb[11].mxu1 }
  0xfa   : > { %648 = vst.msk [vmem:[%s1005_s25 + $0x28] sm:$0xf] %vm637_vm2, %v812_v11  ;;  %v826_v22 = vpack.c.bf16 %v479_v12, %v479_v12  ;;  %v813_v23 = vpack.c.bf16 %v426_v13, %v426_v13  ;;  %v482_v24 = vadd.f32 %v997_v18, %v481_v21 }
  0xfb   : > { %664 = vst.msk [vmem:[%s1005_s25 + $0x68] sm:$0xf] %vm637_vm2, %v828_v16  ;;  %646 = vst.msk [vmem:[%s1005_s25 + $0x20] sm:$0xf] %vm637_vm2, %v810_v17  ;;  %v829_v25 = vpack.c.bf16 %v490_v19, %v490_v19  ;;  %v811_v26 = vpack.c.bf16 %v418_v20, %v418_v20 }
  0xfc   : > { %662 = vst.msk [vmem:[%s1005_s25 + $0x60] sm:$0xf] %vm637_vm2, %v826_v22  ;;  %649 = vst.msk [vmem:[%s1005_s25 + $0x2c] sm:$0xf] %vm637_vm2, %v813_v23  ;;  %v827_v27 = vpack.c.bf16 %v482_v24, %v482_v24 }
  0xfd   : > { %665 = vst.msk [vmem:[%s1005_s25 + $0x6c] sm:$0xf] %vm637_vm2, %v829_v25  ;;  %647 = vst.msk [vmem:[%s1005_s25 + $0x24] sm:$0xf] %vm637_vm2, %v811_v26  ;;  %v867_v28 = vpop.f32.mrb[12].mxu0 }
  0xfe   : > { %663 = vst.msk [vmem:[%s1005_s25 + $0x64] sm:$0xf] %vm637_vm2, %v827_v27  ;;  %v439_v29 = vadd.f32 %v867_v28, %v997_v18  ;;  %v883_v30 = vpop.f32.mrb[12].mxu1  ;;  %v430_v31 = vpop.f32.mrb[13].mxu0 }
  0xff   : > { %v503_v32 = vadd.f32 %v883_v30, %v997_v18  ;;  %v431_v33 = vadd.f32 %v997_v18, %v430_v31  ;;  %v494_v34 = vpop.f32.mrb[13].mxu1  ;;  %v868_v35 = vpop.f32.mrb[14].mxu0 }
 0x100   : > { %v816_v36 = vpack.c.bf16 %v439_v29, %v439_v29  ;;  %v495_v37 = vadd.f32 %v997_v18, %v494_v34  ;;  %v442_v38 = vadd.f32 %v868_v35, %v997_v18  ;;  %v884_v39 = vpop.f32.mrb[14].mxu1  ;;  %v433_v40 = vpop.f32.mrb[15].mxu0 }
 0x101   : > { %v832_v41 = vpack.c.bf16 %v503_v32, %v503_v32  ;;  %v814_v42 = vpack.c.bf16 %v431_v33, %v431_v33  ;;  %v506_v43 = vadd.f32 %v884_v39, %v997_v18  ;;  %v434_v44 = vadd.f32 %v997_v18, %v433_v40  ;;  %v497_v45 = vpop.f32.mrb[15].mxu1 }
 0x102   : > { %652 = vst.msk [vmem:[%s1005_s25 + $0x38] sm:$0xf] %vm637_vm2, %v816_v36  ;;  %v830_v46 = vpack.c.bf16 %v495_v37, %v495_v37  ;;  %v817_v47 = vpack.c.bf16 %v442_v38, %v442_v38  ;;  %v498_v48 = vadd.f32 %v997_v18, %v497_v45 }
 0x103   : > { %668 = vst.msk [vmem:[%s1005_s25 + $0x78] sm:$0xf] %vm637_vm2, %v832_v41  ;;  %650 = vst.msk [vmem:[%s1005_s25 + $0x30] sm:$0xf] %vm637_vm2, %v814_v42  ;;  %v833_v49 = vpack.c.bf16 %v506_v43, %v506_v43  ;;  %v815_v50 = vpack.c.bf16 %v434_v44, %v434_v44 }
 0x104   : > { %666 = vst.msk [vmem:[%s1005_s25 + $0x70] sm:$0xf] %vm637_vm2, %v830_v46  ;;  %653 = vst.msk [vmem:[%s1005_s25 + $0x3c] sm:$0xf] %vm637_vm2, %v817_v47  ;;  %v831_v51 = vpack.c.bf16 %v498_v48, %v498_v48 }
 0x105   : > { %669 = vst.msk [vmem:[%s1005_s25 + $0x7c] sm:$0xf] %vm637_vm2, %v833_v49  ;;  %651 = vst.msk [vmem:[%s1005_s25 + $0x34] sm:$0xf] %vm637_vm2, %v815_v50 }
 0x106   : > { %667 = vst.msk [vmem:[%s1005_s25 + $0x74] sm:$0xf] %vm637_vm2, %v831_v51 }
 0x107 PF: > { %s13_s12 = sadd.s32 1, %s919_s12  }
 0x108   : > { %p10_p4 = scmp.ge.s32.totalorder %s13_s12, 4  }
 0x10a   :  { %12 = sbr.rel (!%p10_p4) target bundleno = 1 (0x1), region = 62 }

// kernel: sub.2
= control target key start
LH: loop header
LB: loop body
LE: loop exit
PB: predicated region body
PF: predicated region fallthrough
CT: control target
= control target key end

     0   :  { %v1150_v25 = vmov 0.0   ;;  %s1614_s0 = inlined_call_operand.vmem [shape: bf16[512,2], index: 0, kind: input, shape index: {}]   ;;  %s1615_s1 = inlined_call_operand.vmem [shape: bf16[512,2], index: 1, kind: input, shape index: {}]   ;;  %s1616_s2 = inlined_call_operand.vmem [shape: bf16[512,2], index: 2, kind: output, shape index: {}]  }
   0x1   :  { %v3_v0 = vld [vmem:[%s1614_s0] sm:$0xff]   ;;  %v963_v2 = vld [vmem:[%s1614_s0 + $0x8] sm:$0xff]   ;;  %v969_v8 = vld [vmem:[%s1614_s0 + $0x10] sm:$0xff]  }
   0x2   :  { %v6_v1 = vld [vmem:[%s1615_s1] sm:$0xff]   ;;  %v4_v3 = vunpack.c.l.bf16 %v3_v0  ;;  %v17_v5 = vunpack.c.h.bf16 %v3_v0  ;;  %v964_v7 = vld [vmem:[%s1615_s1 + $0x8] sm:$0xff]   ;;  %v970_v9 = vld [vmem:[%s1615_s1 + $0x10] sm:$0xff]   ;;  %v32_v10 = vunpack.c.l.bf16 %v963_v2  ;;  %v47_v12 = vunpack.c.h.bf16 %v963_v2 }
   0x3   :  { %v7_v4 = vunpack.c.l.bf16 %v6_v1  ;;  %v21_v6 = vunpack.c.h.bf16 %v6_v1  ;;  %v36_v11 = vunpack.c.l.bf16 %v964_v7  ;;  %v51_v13 = vunpack.c.h.bf16 %v964_v7  ;;  %v975_v14 = vld [vmem:[%s1614_s0 + $0x18] sm:$0xff]   ;;  %v981_v24 = vld [vmem:[%s1614_s0 + $0x20] sm:$0xff]   ;;  %v987_v35 = vld [vmem:[%s1614_s0 + $0x28] sm:$0xff]  }
   0x4   :  { %v62_v17 = vunpack.c.l.bf16 %v969_v8  ;;  %v66_v18 = vunpack.c.l.bf16 %v970_v9  ;;  %v976_v19 = vld [vmem:[%s1615_s1 + $0x18] sm:$0xff]   ;;  %v77_v22 = vunpack.c.h.bf16 %v969_v8  ;;  %v81_v23 = vunpack.c.h.bf16 %v970_v9  ;;  %v982_v30 = vld [vmem:[%s1615_s1 + $0x20] sm:$0xff]   ;;  %v988_v36 = vld [vmem:[%s1615_s1 + $0x28] sm:$0xff]  }
   0x5   :  { %v11_v15 = vsub.f32 %v4_v3, %v7_v4  ;;  %v25_v16 = vsub.f32 %v17_v5, %v21_v6  ;;  %v40_v20 = vsub.f32 %v32_v10, %v36_v11  ;;  %v55_v21 = vsub.f32 %v47_v12, %v51_v13  ;;  %v993_v45 = vld [vmem:[%s1614_s0 + $0x30] sm:$0xff]   ;;  %v999_v55 = vld [vmem:[%s1614_s0 + $0x38] sm:$0xff]   ;;  %v1005_v1 = vld [vmem:[%s1614_s0 + $0x40] sm:$0xff]  }
   0x6   :  { %v70_v28 = vsub.f32 %v62_v17, %v66_v18  ;;  %v92_v29 = vunpack.c.l.bf16 %v975_v14  ;;  %v85_v33 = vsub.f32 %v77_v22, %v81_v23  ;;  %v96_v34 = vunpack.c.l.bf16 %v976_v19  ;;  %v994_v50 = vld [vmem:[%s1615_s1 + $0x30] sm:$0xff]   ;;  %v1000_v60 = vld [vmem:[%s1615_s1 + $0x38] sm:$0xff]   ;;  %v1006_v2 = vld [vmem:[%s1615_s1 + $0x40] sm:$0xff]  }
   0x7   :  { %v13_v26 = vpack.c.bf16 %v1150_v25, %v11_v15  ;;  %v28_v27 = vpack.c.bf16 %v1150_v25, %v25_v16  ;;  %v43_v31 = vpack.c.bf16 %v1150_v25, %v40_v20  ;;  %v58_v32 = vpack.c.bf16 %v1150_v25, %v55_v21  ;;  %v1011_v11 = vld [vmem:[%s1614_s0 + $0x48] sm:$0xff]   ;;  %v1017_v21 = vld [vmem:[%s1614_s0 + $0x50] sm:$0xff]  }
   0x8   :  { %v73_v37 = vpack.c.bf16 %v1150_v25, %v70_v28  ;;  %v107_v38 = vunpack.c.h.bf16 %v975_v14  ;;  %v111_v39 = vunpack.c.h.bf16 %v976_v19  ;;  %v122_v40 = vunpack.c.l.bf16 %v981_v24  ;;  %v1012_v16 = vld [vmem:[%s1615_s1 + $0x48] sm:$0xff]  }
   0x9   :  { %14 = vst [vmem:[%s1616_s2] sm:$0xf] %v13_v26  ;;  %962 = vst [vmem:[%s1616_s2 + $0x4] sm:$0xf] %v28_v27  ;;  %v88_v41 = vpack.c.bf16 %v1150_v25, %v85_v33  ;;  %v100_v42 = vsub.f32 %v92_v29, %v96_v34  ;;  %v126_v43 = vunpack.c.l.bf16 %v982_v30  ;;  %v137_v44 = vunpack.c.h.bf16 %v981_v24  ;;  %v1018_v27 = vld [vmem:[%s1615_s1 + $0x50] sm:$0xff]   ;;  %v1024_v33 = vld [vmem:[%s1615_s1 + $0x58] sm:$0xff]  }
   0xa   :  { %965 = vst [vmem:[%s1616_s2 + $0x8] sm:$0xf] %v43_v31  ;;  %968 = vst [vmem:[%s1616_s2 + $0xc] sm:$0xf] %v58_v32  ;;  %v115_v46 = vsub.f32 %v107_v38, %v111_v39  ;;  %v141_v47 = vunpack.c.h.bf16 %v982_v30  ;;  %v152_v48 = vunpack.c.l.bf16 %v987_v35  ;;  %v156_v49 = vunpack.c.l.bf16 %v988_v36  ;;  %v1023_v32 = vld [vmem:[%s1614_s0 + $0x58] sm:$0xff]  }
   0xb   :  { %971 = vst [vmem:[%s1616_s2 + $0x10] sm:$0xf] %v73_v37  ;;  %974 = vst [vmem:[%s1616_s2 + $0x14] sm:$0xf] %v88_v41  ;;  %v103_v51 = vpack.c.bf16 %v1150_v25, %v100_v42  ;;  %v130_v52 = vsub.f32 %v122_v40, %v126_v43  ;;  %v167_v53 = vunpack.c.h.bf16 %v987_v35  ;;  %v171_v54 = vunpack.c.h.bf16 %v988_v36  ;;  %v1029_v42 = vld [vmem:[%s1614_s0 + $0x60] sm:$0xff]  }
   0xc   :  { %v118_v56 = vpack.c.bf16 %v1150_v25, %v115_v46  ;;  %v145_v57 = vsub.f32 %v137_v44, %v141_v47  ;;  %v160_v58 = vsub.f32 %v152_v48, %v156_v49  ;;  %v182_v59 = vunpack.c.l.bf16 %v993_v45  ;;  %v1030_v47 = vld [vmem:[%s1615_s1 + $0x60] sm:$0xff]  }
   0xd   :  { %977 = vst [vmem:[%s1616_s2 + $0x18] sm:$0xf] %v103_v51  ;;  %v133_v61 = vpack.c.bf16 %v1150_v25, %v130_v52  ;;  %v175_v62 = vsub.f32 %v167_v53, %v171_v54  ;;  %v186_v63 = vunpack.c.l.bf16 %v994_v50  ;;  %v197_v0 = vunpack.c.h.bf16 %v993_v45  ;;  %v1035_v52 = vld [vmem:[%s1614_s0 + $0x68] sm:$0xff]  }
   0xe   :  { %980 = vst [vmem:[%s1616_s2 + $0x1c] sm:$0xf] %v118_v56  ;;  %v148_v3 = vpack.c.bf16 %v1150_v25, %v145_v57  ;;  %v163_v4 = vpack.c.bf16 %v1150_v25, %v160_v58  ;;  %v201_v5 = vunpack.c.h.bf16 %v994_v50  ;;  %v212_v6 = vunpack.c.l.bf16 %v999_v55  ;;  %v1036_v57 = vld [vmem:[%s1615_s1 + $0x68] sm:$0xff]  }
   0xf   :  { %983 = vst [vmem:[%s1616_s2 + $0x20] sm:$0xf] %v133_v61  ;;  %v178_v7 = vpack.c.bf16 %v1150_v25, %v175_v62  ;;  %v190_v8 = vsub.f32 %v182_v59, %v186_v63  ;;  %v216_v9 = vunpack.c.l.bf16 %v1000_v60  ;;  %v227_v10 = vunpack.c.h.bf16 %v999_v55  ;;  %v1041_v62 = vld [vmem:[%s1614_s0 + $0x70] sm:$0xff]  }
  0x10   :  { %986 = vst [vmem:[%s1616_s2 + $0x24] sm:$0xf] %v148_v3  ;;  %989 = vst [vmem:[%s1616_s2 + $0x28] sm:$0xf] %v163_v4  ;;  %v205_v12 = vsub.f32 %v197_v0, %v201_v5  ;;  %v231_v13 = vunpack.c.h.bf16 %v1000_v60  ;;  %v242_v14 = vunpack.c.l.bf16 %v1005_v1  ;;  %v246_v15 = vunpack.c.l.bf16 %v1006_v2  ;;  %v1042_v63 = vld [vmem:[%s1615_s1 + $0x70] sm:$0xff]  }
  0x11   :  { %992 = vst [vmem:[%s1616_s2 + $0x2c] sm:$0xf] %v178_v7  ;;  %v193_v17 = vpack.c.bf16 %v1150_v25, %v190_v8  ;;  %v220_v18 = vsub.f32 %v212_v6, %v216_v9  ;;  %v257_v19 = vunpack.c.h.bf16 %v1005_v1  ;;  %v261_v20 = vunpack.c.h.bf16 %v1006_v2  ;;  %v1047_v8 = vld [vmem:[%s1614_s0 + $0x78] sm:$0xff]  }
  0x12   :  { %v208_v22 = vpack.c.bf16 %v1150_v25, %v205_v12  ;;  %v235_v23 = vsub.f32 %v227_v10, %v231_v13  ;;  %v250_v24 = vsub.f32 %v242_v14, %v246_v15  ;;  %v272_v26 = vunpack.c.l.bf16 %v1011_v11  ;;  %v1048_v13 = vld [vmem:[%s1615_s1 + $0x78] sm:$0xff]  }
  0x13   :  { %995 = vst [vmem:[%s1616_s2 + $0x30] sm:$0xf] %v193_v17  ;;  %v223_v28 = vpack.c.bf16 %v1150_v25, %v220_v18  ;;  %v265_v29 = vsub.f32 %v257_v19, %v261_v20  ;;  %v276_v30 = vunpack.c.l.bf16 %v1012_v16  ;;  %v287_v31 = vunpack.c.h.bf16 %v1011_v11  ;;  %v1053_v18 = vld [vmem:[%s1614_s0 + $0x80] sm:$0xff]  }
  0x14   :  { %998 = vst [vmem:[%s1616_s2 + $0x34] sm:$0xf] %v208_v22  ;;  %v238_v34 = vpack.c.bf16 %v1150_v25, %v235_v23  ;;  %v253_v35 = vpack.c.bf16 %v1150_v25, %v250_v24  ;;  %v291_v36 = vunpack.c.h.bf16 %v1012_v16  ;;  %v302_v37 = vunpack.c.l.bf16 %v1017_v21  ;;  %v1054_v23 = vld [vmem:[%s1615_s1 + $0x80] sm:$0xff]  }
  0x15   :  { %1001 = vst [vmem:[%s1616_s2 + $0x38] sm:$0xf] %v223_v28  ;;  %v268_v38 = vpack.c.bf16 %v1150_v25, %v265_v29  ;;  %v280_v39 = vsub.f32 %v272_v26, %v276_v30  ;;  %v306_v40 = vunpack.c.l.bf16 %v1018_v27  ;;  %v317_v41 = vunpack.c.h.bf16 %v1017_v21  ;;  %v1059_v29 = vld [vmem:[%s1614_s0 + $0x88] sm:$0xff]  }
  0x16   :  { %1004 = vst [vmem:[%s1616_s2 + $0x3c] sm:$0xf] %v238_v34  ;;  %1007 = vst [vmem:[%s1616_s2 + $0x40] sm:$0xf] %v253_v35  ;;  %v295_v43 = vsub.f32 %v287_v31, %v291_v36  ;;  %v321_v44 = vunpack.c.h.bf16 %v1018_v27  ;;  %v332_v45 = vunpack.c.l.bf16 %v1023_v32  ;;  %v336_v46 = vunpack.c.l.bf16 %v1024_v33  ;;  %v1060_v30 = vld [vmem:[%s1615_s1 + $0x88] sm:$0xff]  }
  0x17   :  { %1010 = vst [vmem:[%s1616_s2 + $0x44] sm:$0xf] %v268_v38  ;;  %v283_v48 = vpack.c.bf16 %v1150_v25, %v280_v39  ;;  %v310_v49 = vsub.f32 %v302_v37, %v306_v40  ;;  %v347_v50 = vunpack.c.h.bf16 %v1023_v32  ;;  %v351_v51 = vunpack.c.h.bf16 %v1024_v33  ;;  %v1065_v39 = vld [vmem:[%s1614_s0 + $0x90] sm:$0xff]  }
  0x18   :  { %v298_v53 = vpack.c.bf16 %v1150_v25, %v295_v43  ;;  %v325_v54 = vsub.f32 %v317_v41, %v321_v44  ;;  %v340_v55 = vsub.f32 %v332_v45, %v336_v46  ;;  %v362_v56 = vunpack.c.l.bf16 %v1029_v42  ;;  %v1066_v44 = vld [vmem:[%s1615_s1 + $0x90] sm:$0xff]  }
  0x19   :  { %1013 = vst [vmem:[%s1616_s2 + $0x48] sm:$0xf] %v283_v48  ;;  %v313_v58 = vpack.c.bf16 %v1150_v25, %v310_v49  ;;  %v355_v59 = vsub.f32 %v347_v50, %v351_v51  ;;  %v366_v60 = vunpack.c.l.bf16 %v1030_v47  ;;  %v377_v61 = vunpack.c.h.bf16 %v1029_v42  ;;  %v1071_v49 = vld [vmem:[%s1614_s0 + $0x98] sm:$0xff]  }
  0x1a   :  { %1016 = vst [vmem:[%s1616_s2 + $0x4c] sm:$0xf] %v298_v53  ;;  %v328_v0 = vpack.c.bf16 %v1150_v25, %v325_v54  ;;  %v343_v1 = vpack.c.bf16 %v1150_v25, %v340_v55  ;;  %v381_v2 = vunpack.c.h.bf16 %v1030_v47  ;;  %v392_v3 = vunpack.c.l.bf16 %v1035_v52  ;;  %v1072_v54 = vld [vmem:[%s1615_s1 + $0x98] sm:$0xff]  }
  0x1b   :  { %1019 = vst [vmem:[%s1616_s2 + $0x50] sm:$0xf] %v313_v58  ;;  %v358_v4 = vpack.c.bf16 %v1150_v25, %v355_v59  ;;  %v370_v5 = vsub.f32 %v362_v56, %v366_v60  ;;  %v396_v6 = vunpack.c.l.bf16 %v1036_v57  ;;  %v407_v7 = vunpack.c.h.bf16 %v1035_v52  ;;  %v1077_v59 = vld [vmem:[%s1614_s0 + $0xa0] sm:$0xff]  }
  0x1c   :  { %1022 = vst [vmem:[%s1616_s2 + $0x54] sm:$0xf] %v328_v0  ;;  %1025 = vst [vmem:[%s1616_s2 + $0x58] sm:$0xf] %v343_v1  ;;  %v385_v9 = vsub.f32 %v377_v61, %v381_v2  ;;  %v411_v10 = vunpack.c.h.bf16 %v1036_v57  ;;  %v422_v11 = vunpack.c.l.bf16 %v1041_v62  ;;  %v426_v12 = vunpack.c.l.bf16 %v1042_v63  ;;  %v1078_v60 = vld [vmem:[%s1615_s1 + $0xa0] sm:$0xff]  }
  0x1d   :  { %1028 = vst [vmem:[%s1616_s2 + $0x5c] sm:$0xf] %v358_v4  ;;  %v373_v14 = vpack.c.bf16 %v1150_v25, %v370_v5  ;;  %v400_v15 = vsub.f32 %v392_v3, %v396_v6  ;;  %v437_v16 = vunpack.c.h.bf16 %v1041_v62  ;;  %v441_v17 = vunpack.c.h.bf16 %v1042_v63  ;;  %v1083_v5 = vld [vmem:[%s1614_s0 + $0xa8] sm:$0xff]  }
  0x1e   :  { %v388_v19 = vpack.c.bf16 %v1150_v25, %v385_v9  ;;  %v415_v20 = vsub.f32 %v407_v7, %v411_v10  ;;  %v430_v21 = vsub.f32 %v422_v11, %v426_v12  ;;  %v452_v22 = vunpack.c.l.bf16 %v1047_v8  ;;  %v1084_v10 = vld [vmem:[%s1615_s1 + $0xa8] sm:$0xff]  }
  0x1f   :  { %1031 = vst [vmem:[%s1616_s2 + $0x60] sm:$0xf] %v373_v14  ;;  %v403_v24 = vpack.c.bf16 %v1150_v25, %v400_v15  ;;  %v445_v26 = vsub.f32 %v437_v16, %v441_v17  ;;  %v456_v27 = vunpack.c.l.bf16 %v1048_v13  ;;  %v467_v28 = vunpack.c.h.bf16 %v1047_v8  ;;  %v1089_v15 = vld [vmem:[%s1614_s0 + $0xb0] sm:$0xff]  }
  0x20   :  { %1034 = vst [vmem:[%s1616_s2 + $0x64] sm:$0xf] %v388_v19  ;;  %v418_v31 = vpack.c.bf16 %v1150_v25, %v415_v20  ;;  %v433_v32 = vpack.c.bf16 %v1150_v25, %v430_v21  ;;  %v471_v33 = vunpack.c.h.bf16 %v1048_v13  ;;  %v482_v34 = vunpack.c.l.bf16 %v1053_v18  ;;  %v1090_v20 = vld [vmem:[%s1615_s1 + $0xb0] sm:$0xff]  }
  0x21   :  { %1037 = vst [vmem:[%s1616_s2 + $0x68] sm:$0xf] %v403_v24  ;;  %v448_v35 = vpack.c.bf16 %v1150_v25, %v445_v26  ;;  %v460_v36 = vsub.f32 %v452_v22, %v456_v27  ;;  %v486_v37 = vunpack.c.l.bf16 %v1054_v23  ;;  %v497_v38 = vunpack.c.h.bf16 %v1053_v18  ;;  %v1095_v26 = vld [vmem:[%s1614_s0 + $0xb8] sm:$0xff]  }
  0x22   :  { %1040 = vst [vmem:[%s1616_s2 + $0x6c] sm:$0xf] %v418_v31  ;;  %1043 = vst [vmem:[%s1616_s2 + $0x70] sm:$0xf] %v433_v32  ;;  %v475_v40 = vsub.f32 %v467_v28, %v471_v33  ;;  %v501_v41 = vunpack.c.h.bf16 %v1054_v23  ;;  %v512_v42 = vunpack.c.l.bf16 %v1059_v29  ;;  %v516_v43 = vunpack.c.l.bf16 %v1060_v30  ;;  %v1096_v27 = vld [vmem:[%s1615_s1 + $0xb8] sm:$0xff]  }
  0x23   :  { %1046 = vst [vmem:[%s1616_s2 + $0x74] sm:$0xf] %v448_v35  ;;  %v463_v45 = vpack.c.bf16 %v1150_v25, %v460_v36  ;;  %v490_v46 = vsub.f32 %v482_v34, %v486_v37  ;;  %v527_v47 = vunpack.c.h.bf16 %v1059_v29  ;;  %v531_v48 = vunpack.c.h.bf16 %v1060_v30  ;;  %v1101_v36 = vld [vmem:[%s1614_s0 + $0xc0] sm:$0xff]  }
  0x24   :  { %v478_v50 = vpack.c.bf16 %v1150_v25, %v475_v40  ;;  %v505_v51 = vsub.f32 %v497_v38, %v501_v41  ;;  %v520_v52 = vsub.f32 %v512_v42, %v516_v43  ;;  %v542_v53 = vunpack.c.l.bf16 %v1065_v39  ;;  %v1102_v41 = vld [vmem:[%s1615_s1 + $0xc0] sm:$0xff]  }
  0x25   :  { %1049 = vst [vmem:[%s1616_s2 + $0x78] sm:$0xf] %v463_v45  ;;  %v493_v55 = vpack.c.bf16 %v1150_v25, %v490_v46  ;;  %v535_v56 = vsub.f32 %v527_v47, %v531_v48  ;;  %v546_v57 = vunpack.c.l.bf16 %v1066_v44  ;;  %v557_v58 = vunpack.c.h.bf16 %v1065_v39  ;;  %v1107_v46 = vld [vmem:[%s1614_s0 + $0xc8] sm:$0xff]  }
  0x26   :  { %1052 = vst [vmem:[%s1616_s2 + $0x7c] sm:$0xf] %v478_v50  ;;  %v508_v61 = vpack.c.bf16 %v1150_v25, %v505_v51  ;;  %v523_v62 = vpack.c.bf16 %v1150_v25, %v520_v52  ;;  %v561_v63 = vunpack.c.h.bf16 %v1066_v44  ;;  %v572_v0 = vunpack.c.l.bf16 %v1071_v49  ;;  %v1108_v51 = vld [vmem:[%s1615_s1 + $0xc8] sm:$0xff]  }
  0x27   :  { %1055 = vst [vmem:[%s1616_s2 + $0x80] sm:$0xf] %v493_v55  ;;  %v538_v1 = vpack.c.bf16 %v1150_v25, %v535_v56  ;;  %v550_v2 = vsub.f32 %v542_v53, %v546_v57  ;;  %v576_v3 = vunpack.c.l.bf16 %v1072_v54  ;;  %v587_v4 = vunpack.c.h.bf16 %v1071_v49  ;;  %v1113_v56 = vld [vmem:[%s1614_s0 + $0xd0] sm:$0xff]  }
  0x28   :  { %1058 = vst [vmem:[%s1616_s2 + $0x84] sm:$0xf] %v508_v61  ;;  %1061 = vst [vmem:[%s1616_s2 + $0x88] sm:$0xf] %v523_v62  ;;  %v565_v6 = vsub.f32 %v557_v58, %v561_v63  ;;  %v591_v7 = vunpack.c.h.bf16 %v1072_v54  ;;  %v602_v8 = vunpack.c.l.bf16 %v1077_v59  ;;  %v606_v9 = vunpack.c.l.bf16 %v1078_v60  ;;  %v1114_v57 = vld [vmem:[%s1615_s1 + $0xd0] sm:$0xff]  }
  0x29   :  { %1064 = vst [vmem:[%s1616_s2 + $0x8c] sm:$0xf] %v538_v1  ;;  %v553_v11 = vpack.c.bf16 %v1150_v25, %v550_v2  ;;  %v580_v12 = vsub.f32 %v572_v0, %v576_v3  ;;  %v617_v13 = vunpack.c.h.bf16 %v1077_v59  ;;  %v621_v14 = vunpack.c.h.bf16 %v1078_v60  ;;  %v1119_v2 = vld [vmem:[%s1614_s0 + $0xd8] sm:$0xff]  }
  0x2a   :  { %v568_v16 = vpack.c.bf16 %v1150_v25, %v565_v6  ;;  %v595_v17 = vsub.f32 %v587_v4, %v591_v7  ;;  %v610_v18 = vsub.f32 %v602_v8, %v606_v9  ;;  %v632_v19 = vunpack.c.l.bf16 %v1083_v5  ;;  %v1120_v7 = vld [vmem:[%s1615_s1 + $0xd8] sm:$0xff]  }
  0x2b   :  { %1067 = vst [vmem:[%s1616_s2 + $0x90] sm:$0xf] %v553_v11  ;;  %v583_v21 = vpack.c.bf16 %v1150_v25, %v580_v12  ;;  %v625_v22 = vsub.f32 %v617_v13, %v621_v14  ;;  %v636_v23 = vunpack.c.l.bf16 %v1084_v10  ;;  %v647_v24 = vunpack.c.h.bf16 %v1083_v5  ;;  %v1125_v12 = vld [vmem:[%s1614_s0 + $0xe0] sm:$0xff]  }
  0x2c   :  { %1070 = vst [vmem:[%s1616_s2 + $0x94] sm:$0xf] %v568_v16  ;;  %v598_v28 = vpack.c.bf16 %v1150_v25, %v595_v17  ;;  %v613_v29 = vpack.c.bf16 %v1150_v25, %v610_v18  ;;  %v651_v30 = vunpack.c.h.bf16 %v1084_v10  ;;  %v662_v31 = vunpack.c.l.bf16 %v1089_v15  ;;  %v1126_v17 = vld [vmem:[%s1615_s1 + $0xe0] sm:$0xff]  }
  0x2d   :  { %1073 = vst [vmem:[%s1616_s2 + $0x98] sm:$0xf] %v583_v21  ;;  %v628_v32 = vpack.c.bf16 %v1150_v25, %v625_v22  ;;  %v640_v33 = vsub.f32 %v632_v19, %v636_v23  ;;  %v666_v34 = vunpack.c.l.bf16 %v1090_v20  ;;  %v677_v35 = vunpack.c.h.bf16 %v1089_v15  ;;  %v1131_v22 = vld [vmem:[%s1614_s0 + $0xe8] sm:$0xff]  }
  0x2e   :  { %1076 = vst [vmem:[%s1616_s2 + $0x9c] sm:$0xf] %v598_v28  ;;  %1079 = vst [vmem:[%s1616_s2 + $0xa0] sm:$0xf] %v613_v29  ;;  %v655_v37 = vsub.f32 %v647_v24, %v651_v30  ;;  %v681_v38 = vunpack.c.h.bf16 %v1090_v20  ;;  %v692_v39 = vunpack.c.l.bf16 %v1095_v26  ;;  %v696_v40 = vunpack.c.l.bf16 %v1096_v27  ;;  %v1132_v23 = vld [vmem:[%s1615_s1 + $0xe8] sm:$0xff]  }
  0x2f   :  { %1082 = vst [vmem:[%s1616_s2 + $0xa4] sm:$0xf] %v628_v32  ;;  %v643_v42 = vpack.c.bf16 %v1150_v25, %v640_v33  ;;  %v670_v43 = vsub.f32 %v662_v31, %v666_v34  ;;  %v707_v44 = vunpack.c.h.bf16 %v1095_v26  ;;  %v711_v45 = vunpack.c.h.bf16 %v1096_v27  ;;  %v1137_v33 = vld [vmem:[%s1614_s0 + $0xf0] sm:$0xff]  }
  0x30   :  { %v658_v47 = vpack.c.bf16 %v1150_v25, %v655_v37  ;;  %v685_v48 = vsub.f32 %v677_v35, %v681_v38  ;;  %v700_v49 = vsub.f32 %v692_v39, %v696_v40  ;;  %v722_v50 = vunpack.c.l.bf16 %v1101_v36  ;;  %v1138_v38 = vld [vmem:[%s1615_s1 + $0xf0] sm:$0xff]  }
  0x31   :  { %1085 = vst [vmem:[%s1616_s2 + $0xa8] sm:$0xf] %v643_v42  ;;  %v673_v52 = vpack.c.bf16 %v1150_v25, %v670_v43  ;;  %v715_v53 = vsub.f32 %v707_v44, %v711_v45  ;;  %v726_v54 = vunpack.c.l.bf16 %v1102_v41  ;;  %v737_v55 = vunpack.c.h.bf16 %v1101_v36  ;;  %v1143_v43 = vld [vmem:[%s1614_s0 + $0xf8] sm:$0xff]  }
  0x32   :  { %1088 = vst [vmem:[%s1616_s2 + $0xac] sm:$0xf] %v658_v47  ;;  %v688_v58 = vpack.c.bf16 %v1150_v25, %v685_v48  ;;  %v703_v59 = vpack.c.bf16 %v1150_v25, %v700_v49  ;;  %v741_v60 = vunpack.c.h.bf16 %v1102_v41  ;;  %v752_v61 = vunpack.c.l.bf16 %v1107_v46  ;;  %v1144_v48 = vld [vmem:[%s1615_s1 + $0xf8] sm:$0xff]  }
  0x33   :  { %1091 = vst [vmem:[%s1616_s2 + $0xb0] sm:$0xf] %v673_v52  ;;  %v718_v62 = vpack.c.bf16 %v1150_v25, %v715_v53  ;;  %v730_v63 = vsub.f32 %v722_v50, %v726_v54  ;;  %v756_v0 = vunpack.c.l.bf16 %v1108_v51  ;;  %v767_v1 = vunpack.c.h.bf16 %v1107_v46 }
  0x34   :  { %1094 = vst [vmem:[%s1616_s2 + $0xb4] sm:$0xf] %v688_v58  ;;  %1097 = vst [vmem:[%s1616_s2 + $0xb8] sm:$0xf] %v703_v59  ;;  %v745_v3 = vsub.f32 %v737_v55, %v741_v60  ;;  %v771_v4 = vunpack.c.h.bf16 %v1108_v51  ;;  %v782_v5 = vunpack.c.l.bf16 %v1113_v56  ;;  %v786_v6 = vunpack.c.l.bf16 %v1114_v57 }
  0x35   :  { %1100 = vst [vmem:[%s1616_s2 + $0xbc] sm:$0xf] %v718_v62  ;;  %v733_v8 = vpack.c.bf16 %v1150_v25, %v730_v63  ;;  %v760_v9 = vsub.f32 %v752_v61, %v756_v0  ;;  %v797_v10 = vunpack.c.h.bf16 %v1113_v56  ;;  %v801_v11 = vunpack.c.h.bf16 %v1114_v57 }
  0x36   :  { %v748_v13 = vpack.c.bf16 %v1150_v25, %v745_v3  ;;  %v775_v14 = vsub.f32 %v767_v1, %v771_v4  ;;  %v790_v15 = vsub.f32 %v782_v5, %v786_v6  ;;  %v812_v16 = vunpack.c.l.bf16 %v1119_v2 }
  0x37   :  { %1103 = vst [vmem:[%s1616_s2 + $0xc0] sm:$0xf] %v733_v8  ;;  %v763_v18 = vpack.c.bf16 %v1150_v25, %v760_v9  ;;  %v805_v19 = vsub.f32 %v797_v10, %v801_v11  ;;  %v816_v20 = vunpack.c.l.bf16 %v1120_v7  ;;  %v827_v21 = vunpack.c.h.bf16 %v1119_v2 }
  0x38   :  { %1106 = vst [vmem:[%s1616_s2 + $0xc4] sm:$0xf] %v748_v13  ;;  %v778_v24 = vpack.c.bf16 %v1150_v25, %v775_v14  ;;  %v793_v26 = vpack.c.bf16 %v1150_v25, %v790_v15  ;;  %v831_v27 = vunpack.c.h.bf16 %v1120_v7  ;;  %v842_v28 = vunpack.c.l.bf16 %v1125_v12 }
  0x39   :  { %1109 = vst [vmem:[%s1616_s2 + $0xc8] sm:$0xf] %v763_v18  ;;  %v808_v29 = vpack.c.bf16 %v1150_v25, %v805_v19  ;;  %v820_v30 = vsub.f32 %v812_v16, %v816_v20  ;;  %v846_v31 = vunpack.c.l.bf16 %v1126_v17  ;;  %v857_v32 = vunpack.c.h.bf16 %v1125_v12 }
  0x3a   :  { %1112 = vst [vmem:[%s1616_s2 + $0xcc] sm:$0xf] %v778_v24  ;;  %1115 = vst [vmem:[%s1616_s2 + $0xd0] sm:$0xf] %v793_v26  ;;  %v835_v34 = vsub.f32 %v827_v21, %v831_v27  ;;  %v861_v35 = vunpack.c.h.bf16 %v1126_v17  ;;  %v872_v36 = vunpack.c.l.bf16 %v1131_v22  ;;  %v876_v37 = vunpack.c.l.bf16 %v1132_v23 }
  0x3b   :  { %1118 = vst [vmem:[%s1616_s2 + $0xd4] sm:$0xf] %v808_v29  ;;  %v823_v39 = vpack.c.bf16 %v1150_v25, %v820_v30  ;;  %v850_v40 = vsub.f32 %v842_v28, %v846_v31  ;;  %v887_v41 = vunpack.c.h.bf16 %v1131_v22  ;;  %v891_v42 = vunpack.c.h.bf16 %v1132_v23 }
  0x3c   :  { %v838_v44 = vpack.c.bf16 %v1150_v25, %v835_v34  ;;  %v865_v45 = vsub.f32 %v857_v32, %v861_v35  ;;  %v880_v46 = vsub.f32 %v872_v36, %v876_v37  ;;  %v902_v47 = vunpack.c.l.bf16 %v1137_v33 }
  0x3d   :  { %1121 = vst [vmem:[%s1616_s2 + $0xd8] sm:$0xf] %v823_v39  ;;  %v853_v49 = vpack.c.bf16 %v1150_v25, %v850_v40  ;;  %v895_v50 = vsub.f32 %v887_v41, %v891_v42  ;;  %v906_v51 = vunpack.c.l.bf16 %v1138_v38  ;;  %v917_v52 = vunpack.c.h.bf16 %v1137_v33 }
  0x3e   :  { %1124 = vst [vmem:[%s1616_s2 + $0xdc] sm:$0xf] %v838_v44  ;;  %v868_v53 = vpack.c.bf16 %v1150_v25, %v865_v45  ;;  %v883_v54 = vpack.c.bf16 %v1150_v25, %v880_v46  ;;  %v921_v55 = vunpack.c.h.bf16 %v1138_v38  ;;  %v932_v56 = vunpack.c.l.bf16 %v1143_v43 }
  0x3f   :  { %1127 = vst [vmem:[%s1616_s2 + $0xe0] sm:$0xf] %v853_v49  ;;  %v898_v57 = vpack.c.bf16 %v1150_v25, %v895_v50  ;;  %v910_v58 = vsub.f32 %v902_v47, %v906_v51  ;;  %v936_v59 = vunpack.c.l.bf16 %v1144_v48  ;;  %v947_v60 = vunpack.c.h.bf16 %v1143_v43 }
  0x40   :  { %1130 = vst [vmem:[%s1616_s2 + $0xe4] sm:$0xf] %v868_v53  ;;  %1133 = vst [vmem:[%s1616_s2 + $0xe8] sm:$0xf] %v883_v54  ;;  %v925_v61 = vsub.f32 %v917_v52, %v921_v55  ;;  %v951_v62 = vunpack.c.h.bf16 %v1144_v48 }
  0x41   :  { %1136 = vst [vmem:[%s1616_s2 + $0xec] sm:$0xf] %v898_v57  ;;  %v913_v63 = vpack.c.bf16 %v1150_v25, %v910_v58  ;;  %v940_v0 = vsub.f32 %v932_v56, %v936_v59 }
  0x42   :  { %v928_v1 = vpack.c.bf16 %v1150_v25, %v925_v61  ;;  %v955_v2 = vsub.f32 %v947_v60, %v951_v62 }
  0x43   :  { %1139 = vst [vmem:[%s1616_s2 + $0xf0] sm:$0xf] %v913_v63  ;;  %v943_v3 = vpack.c.bf16 %v1150_v25, %v940_v0 }
  0x44   :  { %1142 = vst [vmem:[%s1616_s2 + $0xf4] sm:$0xf] %v928_v1  ;;  %v958_v25 = vpack.c.bf16 %v1150_v25, %v955_v2 }
  0x45   :  { %1145 = vst [vmem:[%s1616_s2 + $0xf8] sm:$0xf] %v943_v3 }
  0x46   :  { %1148 = vst [vmem:[%s1616_s2 + $0xfc] sm:$0xf] %v958_v25 }

// kernel: sub.7
= control target key start
LH: loop header
LB: loop body
LE: loop exit
PB: predicated region body
PF: predicated region fallthrough
CT: control target
= control target key end

     0   :  { %v142_v24 = vmov 0.0   ;;  %s206_s0 = inlined_call_operand.vmem [shape: bf16[2,16,16,2], index: 0, kind: input, shape index: {}]   ;;  %s207_s1 = inlined_call_operand.vmem [shape: bf16[2,16,16,2], index: 1, kind: input, shape index: {}]   ;;  %s208_s2 = inlined_call_operand.vmem [shape: bf16[2,16,16,2], index: 2, kind: output, shape index: {}]  }
   0x1   :  { %v3_v0 = vld [vmem:[%s206_s0] sm:$0xff]   ;;  %v120_v2 = vld [vmem:[%s206_s0 + $0x10] sm:$0xff]   ;;  %v123_v7 = vld [vmem:[%s206_s0 + $0x8] sm:$0xff]  }
   0x2   :  { %v6_v1 = vld [vmem:[%s207_s1] sm:$0xff]   ;;  %v4_v3 = vunpack.c.l.bf16 %v3_v0  ;;  %v17_v5 = vunpack.c.l.bf16 %v120_v2  ;;  %v121_v6 = vld [vmem:[%s207_s1 + $0x10] sm:$0xff]   ;;  %v124_v8 = vld [vmem:[%s207_s1 + $0x8] sm:$0xff]   ;;  %v62_v9 = vunpack.c.h.bf16 %v3_v0  ;;  %v32_v11 = vunpack.c.l.bf16 %v123_v7 }
   0x3   :  { %v7_v4 = vunpack.c.l.bf16 %v6_v1  ;;  %v21_v10 = vunpack.c.l.bf16 %v121_v6  ;;  %v36_v12 = vunpack.c.l.bf16 %v124_v8  ;;  %v126_v13 = vld [vmem:[%s206_s0 + $0x18] sm:$0xff]   ;;  %v66_v15 = vunpack.c.h.bf16 %v6_v1 }
   0x4   :  { %v127_v14 = vld [vmem:[%s207_s1 + $0x18] sm:$0xff]   ;;  %v47_v17 = vunpack.c.l.bf16 %v126_v13  ;;  %v77_v19 = vunpack.c.h.bf16 %v120_v2  ;;  %v81_v23 = vunpack.c.h.bf16 %v121_v6  ;;  %v92_v27 = vunpack.c.h.bf16 %v123_v7 }
   0x5   :  { %v11_v16 = vsub.f32 %v4_v3, %v7_v4  ;;  %v51_v18 = vunpack.c.l.bf16 %v127_v14  ;;  %v25_v20 = vsub.f32 %v17_v5, %v21_v10  ;;  %v40_v21 = vsub.f32 %v32_v11, %v36_v12 }
   0x6   :  { %v70_v22 = vsub.f32 %v62_v9, %v66_v15  ;;  %v96_v28 = vunpack.c.h.bf16 %v124_v8  ;;  %v85_v32 = vsub.f32 %v77_v19, %v81_v23  ;;  %v107_v35 = vunpack.c.h.bf16 %v126_v13 }
   0x7   :  { %v13_v25 = vpack.c.bf16 %v142_v24, %v11_v16  ;;  %v55_v26 = vsub.f32 %v47_v17, %v51_v18  ;;  %v28_v29 = vpack.c.bf16 %v142_v24, %v25_v20  ;;  %v43_v30 = vpack.c.bf16 %v142_v24, %v40_v21 }
   0x8   :  { %v73_v31 = vpack.c.bf16 %v142_v24, %v70_v22  ;;  %v100_v34 = vsub.f32 %v92_v27, %v96_v28  ;;  %v111_v36 = vunpack.c.h.bf16 %v127_v14  ;;  %v88_v37 = vpack.c.bf16 %v142_v24, %v85_v32 }
   0x9   :  { %14 = vst [vmem:[%s208_s2] sm:$0xf] %v13_v25  ;;  %v58_v33 = vpack.c.bf16 %v142_v24, %v55_v26  ;;  %122 = vst [vmem:[%s208_s2 + $0x10] sm:$0xf] %v28_v29 }
   0xa   :  { %125 = vst [vmem:[%s208_s2 + $0x8] sm:$0xf] %v43_v30  ;;  %131 = vst [vmem:[%s208_s2 + $0x4] sm:$0xf] %v73_v31  ;;  %v103_v38 = vpack.c.bf16 %v142_v24, %v100_v34  ;;  %v115_v39 = vsub.f32 %v107_v35, %v111_v36 }
   0xb   :  { %128 = vst [vmem:[%s208_s2 + $0x18] sm:$0xf] %v58_v33  ;;  %134 = vst [vmem:[%s208_s2 + $0x14] sm:$0xf] %v88_v37 }
   0xc   :  { %137 = vst [vmem:[%s208_s2 + $0xc] sm:$0xf] %v103_v38  ;;  %v118_v40 = vpack.c.bf16 %v142_v24, %v115_v39 }
   0xe   :  { %140 = vst [vmem:[%s208_s2 + $0x1c] sm:$0xf] %v118_v40 }

// kernel: msmm_forward.47
= control target key start
LH: loop header
LB: loop body
LE: loop exit
PB: predicated region body
PF: predicated region fallthrough
CT: control target
= control target key end

     0   :  { %s3205_s0 = inlined_call_operand.vmem [shape: bf16[128,512], index: 0, kind: input, shape index: {}]   ;;  %s3206_s1 = inlined_call_operand.vmem [shape: bf16[512,128], index: 1, kind: input, shape index: {}]   ;;  %s3207_s2 = inlined_call_operand.vmem [shape: f32[1,128], index: 2, kind: input, shape index: {}]   ;;  %s3208_s3 = inlined_call_operand.vmem [shape: f32[128,16], index: 3, kind: input, shape index: {}]   ;;  %s3209_s4 = inlined_call_operand.vmem [shape: bf16[128,16], index: 4, kind: input, shape index: {}]   ;;  %s3210_s5 = inlined_call_operand.vmem [shape: bf16[16,16], index: 5, kind: input, shape index: {}]   ;;  %s3211_s6 = inlined_call_operand.vmem [shape: bf16[16,16], index: 6, kind: input, shape index: {}]   ;;  %s3212_s7 = inlined_call_operand.vmem [shape: bf16[128,16], index: 7, kind: output, shape index: {0}]   ;;  %s3213_s8 = inlined_call_operand.hbm [shape: f32[128,16], index: 8, kind: output, shape index: {1}]   ;;  %s3214_s9 = inlined_call_operand.hbm [shape: bf16[128,16], index: 9, kind: output, shape index: {2}]   ;;  %s3215_s10 = inlined_call_operand.hbm [shape: bf16[128,16], index: 10, kind: output, shape index: {3}]  }
   0x1   :  { %3222 = sst [smem:[#allocation10_spill]] %s3205_s0 }
   0x2   :  { %3223 = sst [smem:[#allocation11_spill]] %s3206_s1 }
   0x3   :  { %16 = vsyncpa [#allocation3], 0 }
   0x4   :  { %18 = vsyncpa [#allocation3 + $0x1], 0 }
   0x5   :  { %19 = vsyncpa [#allocation5], 0 }
   0x6   :  { %21 = vsyncpa [#allocation5 + $0x1], 0  ;;  %s2542_s13 = smov 0   ;;  %s2544_s14 = smov 0  }
   0x7   :  { %s2546_s15 = smov 0   ;;  %s2548_s16 = smov 0  }
   0x8 LB: > { %s2563_s17 = sadd.s32 4294967295, %s2473_s16   ;;  %s3216_s18 = sadd.s32 4294967294, %s2473_s16   ;;  %s2473_s16 = sphi %s2548_s16, %s3241_s16   ;;  %s2469_s15 = sphi %s2546_s15, %s3240_s15   ;;  %s2465_s14 = sphi %s2544_s14, %s3239_s14   ;;  %s2461_s13 = sphi %s2542_s13, %s3238_s13  }
   0x9   : > { %s2567_s19 = sadd.s32 1, %s2473_s16   ;;  %s222_s20 = sadd.s32 1, %s2469_s15 }
   0xa   : > { %s219_s21 = ssub.s32 %s2473_s16, %s2567_s19  ;;  %p232_p0 = scmp.ne.s32.totalorder %s2469_s15, %s2465_s14 }
   0xb   : > { %p220_p1 = scmp.eq.s32.totalorder %s219_s21, 0  ;;  %p233_p2 = scmp.eq.s32.totalorder %s2563_s17, 1 }
   0xc   : > { %p238_p3 = scmp.ne.s32.totalorder %s2465_s14, %s2461_s13  ;;  %p239_p4 = scmp.eq.s32.totalorder %s3216_s18, 1 }
   0xd   : > { %s2580_s22 = scalar_select %p220_p1, %s2469_s15, %s222_s20  }
   0xe   : > { %p2582_p5 = por %p233_p2, %p232_p0  ;;  %p2586_p6 = por %p239_p4, %p238_p3 }
   0xf   : > { %3224 = sst [smem:[#allocation9_spill]] %s2580_s22  ;;  %p1871_p7 = scmp.ge.s32.totalorder %s2473_s16, 1 }
  0x10   : > { %p349_p8 = scmp.lt.s32.totalorder %s2473_s16, 3 }
  0x12   : > { %p350_p9 = pnand %p1871_p7, %p349_p8 }
  0x13   : > { %s3227_s1 = sld [smem:[#allocation11_spill]] (!%p350_p9)  ;;  %s1875_s27 = sshll.u32 (!%p350_p9), %s2563_s17, 3  ;;  %v2716_v50 = vld [vmem:[%s3207_s2] ss:$0 sm:$0xff] (!%p350_p9)  ;;  %vm1209_vm0 = vcmask (!%p350_p9), 130048   ;;  %vm1478_vm1 = vcmask (!%p350_p9), 125952  }
  0x14   : > { %353 = sbr.rel (%p350_p9) target bundleno = 1138 (0x472), region = 48  ;;  %p414_p10 = scmp.lt.s32.totalorder (!%p350_p9), %s1875_s27, 15 }
  0x15   : > { %s3228_s0 = sld [smem:[#allocation10_spill]] (!%p350_p9)  ;;  %s2475_s25 = smov (!%p350_p9), 96  }
  0x16   : > { %s2476_s22 = smov (!%p350_p9), 16   ;;  %s2479_s11 = smov (!%p350_p9), 112  }
  0x17   : > { %s3027_s20 = sand.u32 (!%p350_p9), 1, %s2465_s14   ;;  %s3219_s28 = sshll.u32 (!%p350_p9), %s2563_s17, 9 }
  0x19   : > { %v2229_v0 = vld [vmem:[%s3227_s1 + $0x40] sm:$0xff] (!%p350_p9)   ;;  %v2233_v4 = vld [vmem:[%s3227_s1 + $0x48] sm:$0xff] (!%p350_p9)   ;;  %v2237_v8 = vld [vmem:[%s3227_s1 + $0x50] sm:$0xff] (!%p350_p9)  }
  0x1a   : > { %v2230_v1 = vld [vmem:[%s3227_s1 + $0xc0] sm:$0xff] (!%p350_p9)   ;;  %2033 = vmatprep.subr.bf16.mxu0 (!%p350_p9), %v2229_v0  ;;  %v2234_v5 = vld [vmem:[%s3227_s1 + $0xc8] sm:$0xff] (!%p350_p9)   ;;  %v2238_v9 = vld [vmem:[%s3227_s1 + $0xd0] sm:$0xff] (!%p350_p9)  }
  0x1b   : > { %v2231_v2 = vld [vmem:[%s3227_s1] sm:$0xff]   ;;  %2073 = vmatprep.subr.bf16.mxu1 %v2230_v1  ;;  %v2235_v6 = vld [vmem:[%s3227_s1 + $0x8] sm:$0xff]   ;;  %v2239_v10 = vld [vmem:[%s3227_s1 + $0x10] sm:$0xff]   ;;  %s3243_s27 = smov (!%p414_p10, %s1875_s27), 15 }
  0x1c   : > { %v2232_v3 = vld [vmem:[%s3227_s1 + $0x80] sm:$0xff]   ;;  %2034 = vmatpush3.bf16.msra.mxu0 %v2231_v2  ;;  %v2236_v7 = vld [vmem:[%s3227_s1 + $0x88] sm:$0xff]   ;;  %v2240_v11 = vld [vmem:[%s3227_s1 + $0x90] sm:$0xff]   ;;  %s1986_s12 = sshll.u32 %s3243_s27, 4  ;;  %s3217_s26 = sshll.u32 %s3243_s27, 2 }
  0x1d   : > { %2074 = vmatpush3.bf16.msra.mxu1 %v2232_v3  ;;  %2035 = vmatprep.subr.bf16.mxu0 %v2233_v4  ;;  %v2241_v12 = vld [vmem:[%s3227_s1 + $0x58] sm:$0xff]   ;;  %v2245_v16 = vld [vmem:[%s3227_s1 + $0x60] sm:$0xff]   ;;  %v2249_v20 = vld [vmem:[%s3227_s1 + $0x68] sm:$0xff]   ;;  %s2689_s30 = scalar_lea.vmem %s3228_s0, %s1986_s12  ;;  %s1879_s18 = sshll.u32 %s3243_s27, 3 }
  0x1e   : > { %2075 = vmatprep.subr.bf16.mxu1 %v2234_v5  ;;  %v2242_v13 = vld [vmem:[%s3227_s1 + $0xd8] sm:$0xff]   ;;  %v2246_v17 = vld [vmem:[%s3227_s1 + $0xe0] sm:$0xff]   ;;  %v2250_v21 = vld [vmem:[%s3227_s1 + $0xe8] sm:$0xff]   ;;  %s2787_s21 = scalar_lea.vmem %s3208_s3, %s1879_s18  ;;  %s2477_s12 = smov 80  }
  0x1f   : > { %v2243_v14 = vld [vmem:[%s3227_s1 + $0x18] sm:$0xff]   ;;  %v2247_v18 = vld [vmem:[%s3227_s1 + $0x20] sm:$0xff]   ;;  %v2251_v22 = vld [vmem:[%s3227_s1 + $0x28] sm:$0xff]   ;;  %s2478_s18 = smov 48  }
  0x20   : > { %2036 = vmatpush3.bf16.msra.mxu0 %v2235_v6  ;;  %v2244_v15 = vld [vmem:[%s3227_s1 + $0x98] sm:$0xff]   ;;  %v2248_v19 = vld [vmem:[%s3227_s1 + $0xa0] sm:$0xff]   ;;  %v2252_v23 = vld [vmem:[%s3227_s1 + $0xa8] sm:$0xff]  }
  0x21   : > { %2076 = vmatpush3.bf16.msra.mxu1 %v2236_v7  ;;  %2037 = vmatprep.subr.bf16.mxu0 %v2237_v8  ;;  %v2253_v24 = vld [vmem:[%s3227_s1 + $0x70] sm:$0xff]   ;;  %v2257_v28 = vld [vmem:[%s3227_s1 + $0x78] sm:$0xff]  }
  0x22   : > { %2077 = vmatprep.subr.bf16.mxu1 %v2238_v9  ;;  %v2254_v25 = vld [vmem:[%s3227_s1 + $0xf0] sm:$0xff]   ;;  %v2258_v29 = vld [vmem:[%s3227_s1 + $0xf8] sm:$0xff]  }
  0x23   : > { %v2255_v26 = vld [vmem:[%s3227_s1 + $0x30] sm:$0xff]   ;;  %v2259_v30 = vld [vmem:[%s3227_s1 + $0x38] sm:$0xff]  }
  0x24   : > { %2038 = vmatpush3.bf16.msra.mxu0 %v2239_v10  ;;  %v2256_v27 = vld [vmem:[%s3227_s1 + $0xb0] sm:$0xff]   ;;  %v2260_v31 = vld [vmem:[%s3227_s1 + $0xb8] sm:$0xff]  }
  0x25   : > { %2078 = vmatpush3.bf16.msra.mxu1 %v2240_v11  ;;  %2039 = vmatprep.subr.bf16.mxu0 %v2241_v12  ;;  %v2261_v32 = vld [vmem:[%s2689_s30] ss:$16 sps:$4 sm:$0xff]   ;;  %v2263_v33 = vld [vmem:[%s2689_s30 + $0x4] ss:$16 sps:$4 sm:$0xff]   ;;  %v2264_v34 = vld [vmem:[%s2689_s30 + $0x8] ss:$16 sps:$4 sm:$0xff]  }
  0x26   : > { %2079 = vmatprep.subr.bf16.mxu1 %v2242_v13  ;;  %v2266_v35 = vld [vmem:[%s2689_s30 + $0xc] ss:$16 sps:$4 sm:$0xff]   ;;  %833 = vmatprep.mubr.bf16.mxu0 %v2263_v33  ;;  %v2267_v36 = vld [vmem:[%s2689_s30 + $0x24] ss:$16 sps:$4 sm:$0xff]   ;;  %v2271_v38 = vld [vmem:[%s2689_s30 + $0x20] ss:$16 sps:$4 sm:$0xff]  }
  0x27   : > { %898 = vmatprep.mubr.bf16.mxu1 %v2266_v35  ;;  %v2269_v37 = vld [vmem:[%s2689_s30 + $0x2c] ss:$16 sps:$4 sm:$0xff]   ;;  %v2272_v39 = vld [vmem:[%s2689_s30 + $0x28] ss:$16 sps:$4 sm:$0xff]   ;;  %v2273_v40 = vld [vmem:[%s2689_s30 + $0x44] ss:$16 sps:$4 sm:$0xff]  }
  0x28   : > { %2040 = vmatpush3.bf16.msra.mxu0 %v2243_v14  ;;  %v2275_v41 = vld [vmem:[%s2689_s30 + $0x4c] ss:$16 sps:$4 sm:$0xff]   ;;  %v2277_v42 = vld [vmem:[%s2689_s30 + $0x40] ss:$16 sps:$4 sm:$0xff]   ;;  %v2278_v43 = vld [vmem:[%s2689_s30 + $0x48] ss:$16 sps:$4 sm:$0xff]  }
  0x29   : > { %2080 = vmatpush3.bf16.msra.mxu1 %v2244_v15  ;;  %2041 = vmatprep.subr.bf16.mxu0 %v2245_v16  ;;  %v2279_v44 = vld [vmem:[%s2689_s30 + $0x64] ss:$16 sps:$4 sm:$0xff]   ;;  %v2281_v45 = vld [vmem:[%s2689_s30 + $0x6c] ss:$16 sps:$4 sm:$0xff]   ;;  %v2283_v46 = vld [vmem:[%s2689_s30 + $0x60] ss:$16 sps:$4 sm:$0xff]  }
  0x2a   : > { %2081 = vmatprep.subr.bf16.mxu1 %v2246_v17  ;;  %v2284_v47 = vld [vmem:[%s2689_s30 + $0x68] ss:$16 sps:$4 sm:$0xff]   ;;  %s2778_s30 = scalar_lea.vmem %s3209_s4, %s3217_s26  ;;  %s3054_s26 = scalar_lea.hbm %s3214_s9, %s3219_s28 }
  0x2c   : > { %2042 = vmatpush3.bf16.msra.mxu0 %v2247_v18 }
  0x2d   : > { %2082 = vmatpush3.bf16.msra.mxu1 %v2248_v19  ;;  %2043 = vmatprep.subr.bf16.mxu0 %v2249_v20 }
  0x2e   : > { %2083 = vmatprep.subr.bf16.mxu1 %v2250_v21 }
  0x30   : > { %2044 = vmatpush3.bf16.msra.mxu0 %v2251_v22 }
  0x31   : > { %2084 = vmatpush3.bf16.msra.mxu1 %v2252_v23  ;;  %2045 = vmatprep.subr.bf16.mxu0 %v2253_v24 }
  0x32   : > { %2085 = vmatprep.subr.bf16.mxu1 %v2254_v25 }
  0x34   : > { %2046 = vmatpush3.bf16.msra.mxu0 %v2255_v26 }
  0x35   : > { %2086 = vmatpush3.bf16.msra.mxu1 %v2256_v27  ;;  %2047 = vmatprep.subr.bf16.mxu0 %v2257_v28 }
  0x36   : > { %2087 = vmatprep.subr.bf16.mxu1 %v2258_v29 }
  0x38   : > { %2048 = vmatpush3.bf16.msra.mxu0 %v2259_v30 }
  0x39   : > { %2088 = vmatpush3.bf16.msra.mxu1 %v2260_v31 }
  0x3b   : > { %834 = vmatmul.mubr.bf16.vlgmr.msra.gmra.mrb[0].mxu0 %v2261_v32 }
  0x3c   : > { %899 = vmatmul.mubr.bf16.vlgmr.msra.gmra.mrb[0].mxu1 %v2264_v34  ;;  %841 = vmatprep.mubr.bf16.mxu0 %v2267_v36 }
  0x3d   : > { %906 = vmatprep.mubr.bf16.mxu1 %v2269_v37 }
  0x43   : > { %842 = vmatmul.mubr.bf16.gmra.mrb[4].mxu0 %v2271_v38 }
  0x44   : > { %907 = vmatmul.mubr.bf16.gmra.mrb[4].mxu1 %v2272_v39  ;;  %849 = vmatprep.mubr.bf16.mxu0 %v2273_v40 }
  0x45   : > { %914 = vmatprep.mubr.bf16.mxu1 %v2275_v41 }
  0x4b   : > { %850 = vmatmul.mubr.bf16.gmra.mrb[8].mxu0 %v2277_v42 }
  0x4c   : > { %915 = vmatmul.mubr.bf16.gmra.mrb[8].mxu1 %v2278_v43  ;;  %857 = vmatprep.mubr.bf16.mxu0 %v2279_v44 }
  0x4d   : > { %922 = vmatprep.mubr.bf16.mxu1 %v2281_v45 }
  0x53   : > { %858 = vmatmul.mubr.bf16.gmra.mrb[12].mxu0 %v2283_v46 }
  0x54   : > { %923 = vmatmul.mubr.bf16.gmra.mrb[12].mxu1 %v2284_v47 }
 0x10e   : > { %v2049_v48 = vpop.f32.mrb[0].mxu0 }
 0x10f   : > { %v2089_v49 = vpop.f32.mrb[0].mxu1  ;;  %v2050_v51 = vpop.f32.mrb[1].mxu0 }
 0x110   : > { %v2051_v52 = vadd.f32 %v2050_v51, %v2049_v48  ;;  %v2090_v53 = vpop.f32.mrb[1].mxu1  ;;  %v2052_v54 = vpop.f32.mrb[2].mxu0 }
 0x111   : > { %v2091_v55 = vadd.f32 %v2090_v53, %v2089_v49  ;;  %v2092_v56 = vpop.f32.mrb[2].mxu1  ;;  %v2053_v57 = vpop.f32.mrb[3].mxu0 }
 0x112   : > { %v836_v58 = vadd.f32 %v2051_v52, %v2716_v50  ;;  %v2054_v59 = vadd.f32 %v2053_v57, %v2052_v54  ;;  %v2093_v60 = vpop.f32.mrb[3].mxu1 }
 0x113   : > { %v2094_v61 = vadd.f32 %v2093_v60, %v2092_v56 }
 0x114   : > { %v2719_v62 = vadd.f32 %v2091_v55, %v836_v58  ;;  %v839_v63 = vadd.f32 %v2054_v59, %v2716_v50  ;;  %v987_v59 = vld [vmem:[%s2787_s21] sm:$0xff] }
 0x116   : > { %2287 = vtanh.f32 %v2719_v62  ;;  %v2723_v0 = vadd.f32 %v2094_v61, %v839_v63  ;;  %v2055_v1 = vpop.f32.mrb[4].mxu0  ;;  %v988_v61 = vld [vmem:[%s2787_s21 + $0x8] sm:$0xff] }
 0x117   : > { %v2095_v2 = vpop.f32.mrb[4].mxu1  ;;  %v2056_v3 = vpop.f32.mrb[5].mxu0 }
 0x118   : > { %v2057_v4 = vadd.f32 %v2056_v3, %v2055_v1  ;;  %v2096_v5 = vpop.f32.mrb[5].mxu1  ;;  %v2058_v6 = vpop.f32.mrb[6].mxu0  ;;  %2289 = vtanh.f32 %v2723_v0  ;;  %v2030_v1 = vld [vmem:[%s2778_s30 + $0x8] sm:$0xff]  }
 0x119   : > { %v2097_v7 = vadd.f32 %v2096_v5, %v2095_v2  ;;  %v2098_v8 = vpop.f32.mrb[6].mxu1  ;;  %v2059_v9 = vpop.f32.mrb[7].mxu0  ;;  %v2020_v2 = vunpack.c.l.bf16 %v2030_v1  ;;  %v2021_v3 = vunpack.c.h.bf16 %v2030_v1  ;;  %v990_v5 = vld [vmem:[%s2787_s21 + $0x18] sm:$0xff] }
 0x11a   : > { %v844_v10 = vadd.f32 %v2057_v4, %v2716_v50  ;;  %v2060_v11 = vadd.f32 %v2059_v9, %v2058_v6  ;;  %v2099_v12 = vpop.f32.mrb[7].mxu1  ;;  %v989_v4 = vld [vmem:[%s2787_s21 + $0x10] sm:$0xff] }
 0x11b   : > { %v2100_v13 = vadd.f32 %v2099_v12, %v2098_v8  ;;  %v2031_v6 = vld [vmem:[%s2778_s30 + $0x10] sm:$0xff]  }
 0x11c   : > { %v2727_v14 = vadd.f32 %v2097_v7, %v844_v10  ;;  %v847_v15 = vadd.f32 %v2060_v11, %v2716_v50  ;;  %v2214_v7 = vpack.i.bf16 %v2021_v3, %v2020_v2  ;;  %v2024_v8 = vunpack.c.l.bf16 %v2031_v6  ;;  %v991_v10 = vld [vmem:[%s2787_s21 + $0x20] sm:$0xff]  ;;  %v992_v11 = vld [vmem:[%s2787_s21 + $0x28] sm:$0xff] }
 0x11d   : > { %v2025_v9 = vunpack.c.h.bf16 %v2031_v6  ;;  %v2286_v6 = vld [vmem:[%s3210_s5] sm:$0xff]  }
 0x11e   : > { %2291 = vtanh.f32 %v2727_v14  ;;  %v2731_v16 = vadd.f32 %v2100_v13, %v847_v15  ;;  %v2061_v17 = vpop.f32.mrb[8].mxu0  ;;  %v2032_v13 = vld [vmem:[%s2778_s30 + $0x18] sm:$0xff]   ;;  %2133 = vmatprep.subr.bf16.mxu0 %v2286_v6 }
 0x11f   : > { %v2101_v18 = vpop.f32.mrb[8].mxu1  ;;  %v2062_v19 = vpop.f32.mrb[9].mxu0  ;;  %v2219_v12 = vpack.i.bf16 %v2025_v9, %v2024_v8  ;;  %v2028_v15 = vunpack.c.l.bf16 %v2032_v13  ;;  %2134 = vmatpush3.bf16.msra.mxu0 %v2286_v6 }
 0x120   : > { %v2733_v20 = vpop.eup %2287  ;;  %v2063_v21 = vadd.f32 %v2062_v19, %v2061_v17  ;;  %v2102_v22 = vpop.f32.mrb[9].mxu1  ;;  %2293 = vtanh.f32 %v2731_v16  ;;  %v2029_v17 = vunpack.c.h.bf16 %v2032_v13  ;;  %v994_v19 = vld [vmem:[%s2787_s21 + $0x38] sm:$0xff] }
 0x121   : > { %v2064_v23 = vpop.f32.mrb[10].mxu0  ;;  %v2103_v24 = vadd.f32 %v2102_v22, %v2101_v18  ;;  %v2104_v25 = vpop.f32.mrb[10].mxu1  ;;  %1043 = vrot.lane.b32.xlu0 %v2733_v20, %s2475_s25  ;;  %v993_v18 = vld [vmem:[%s2787_s21 + $0x30] sm:$0xff]  ;;  %v1933_v22 = vmul.f32 -1.442695, %v2719_v62  ;;  %s3218_s21 = sshll.u32 %s3027_s20, 5 }
 0x122   : > { %v2065_v26 = vpop.f32.mrb[11].mxu0  ;;  %v852_v27 = vadd.f32 %v2063_v21, %v2716_v50  ;;  %v2105_v29 = vpop.f32.mrb[11].mxu1  ;;  %v2224_v21 = vpack.i.bf16 %v2029_v17, %v2028_v15 }
 0x123   : > { %v2066_v28 = vadd.f32 %v2065_v26, %v2064_v23  ;;  %v2106_v30 = vadd.f32 %v2105_v29, %v2104_v25  ;;  %v2739_v31 = vpop.eup %2289  ;;  %v1934_v23 = vmul.f32 -1.442695, %v2723_v0  ;;  %v1936_v25 = vmul.f32 -1.442695, %v2731_v16 }
 0x124   : > { %v2741_v32 = vadd.f32 %v2103_v24, %v852_v27  ;;  %v1935_v24 = vmul.f32 -1.442695, %v2727_v14 }
 0x125   : > { %v855_v33 = vadd.f32 %v2066_v28, %v2716_v50  ;;  %1045 = vrot.lane.b32.xlu0 %v2739_v31, %s2475_s25 }
 0x126   : > { %2295 = vtanh.f32 %v2741_v32  ;;  %v2067_v35 = vpop.f32.mrb[12].mxu0  ;;  %v1937_v27 = vmul.f32 -1.442695, %v2741_v32 }
 0x127   : > { %v2747_v34 = vadd.f32 %v2106_v30, %v855_v33  ;;  %v2107_v36 = vpop.f32.mrb[12].mxu1  ;;  %v2068_v37 = vpop.f32.mrb[13].mxu0 }
 0x128   : > { %v2749_v38 = vpop.eup %2291  ;;  %v2069_v39 = vadd.f32 %v2068_v37, %v2067_v35  ;;  %v2108_v40 = vpop.f32.mrb[13].mxu1 }
 0x129   : > { %v2070_v41 = vpop.f32.mrb[14].mxu0  ;;  %2297 = vtanh.f32 %v2747_v34  ;;  %v2109_v42 = vadd.f32 %v2108_v40, %v2107_v36  ;;  %v2110_v43 = vpop.f32.mrb[14].mxu1  ;;  %1047 = vrot.lane.b32.xlu1 %v2749_v38, %s2475_s25  ;;  %v1938_v30 = vmul.f32 -1.442695, %v2747_v34 }
 0x12a   : > { %v2071_v44 = vpop.f32.mrb[15].mxu0  ;;  %v860_v45 = vadd.f32 %v2069_v39, %v2716_v50  ;;  %v2111_v47 = vpop.f32.mrb[15].mxu1 }
 0x12b   : > { %v2072_v46 = vadd.f32 %v2071_v44, %v2070_v41  ;;  %v2112_v48 = vadd.f32 %v2111_v47, %v2110_v43  ;;  %v2755_v49 = vpop.eup %2293 }
 0x12c   : > { %v2757_v51 = vadd.f32 %v2109_v42, %v860_v45 }
 0x12d   : > { %v863_v52 = vadd.f32 %v2072_v46, %v2716_v50  ;;  %1049 = vrot.lane.b32.xlu1 %v2755_v49, %s2475_s25  ;;  %v2015_v50 = vld [vmem:[%s2778_s30] sm:$0xff]  }
 0x12e   : > { %2299 = vtanh.f32 %v2757_v51  ;;  %v2016_v57 = vunpack.c.l.bf16 %v2015_v50  ;;  %v2017_v58 = vunpack.c.h.bf16 %v2015_v50  ;;  %v1939_v0 = vmul.f32 -1.442695, %v2757_v51 }
 0x12f   : > { %v2763_v53 = vadd.f32 %v2112_v48, %v863_v52 }
 0x130   : > { %v2765_v54 = vpop.eup %2295  ;;  %v2209_v63 = vpack.i.bf16 %v2017_v58, %v2016_v57 }
 0x131   : > { %2301 = vtanh.f32 %v2763_v53  ;;  %1051 = vrot.lane.b32.xlu0 %v2765_v54, %s2475_s25  ;;  %v1940_v16 = vmul.f32 -1.442695, %v2763_v53 }
 0x132   : > { %2303 = vpow2.f32 %v1933_v22 }
 0x133   : > { %v2771_v55 = vpop.eup %2297  ;;  %2305 = vpow2.f32 %v1934_v23 }
 0x134   : > { %1053 = vrot.lane.b32.xlu1 %v2771_v55, %s2475_s25  ;;  %2307 = vpow2.f32 %v1935_v24 }
 0x135   : > { %2309 = vpow2.f32 %v1936_v25 }
 0x136   : > { %2311 = vpow2.f32 %v1937_v27 }
 0x138   : > { %v2789_v56 = vpop.eup %2299 }
 0x139   : > { %1055 = vrot.lane.b32.xlu0 %v2789_v56, %s2475_s25 }
 0x13b   : > { %v2794_v60 = vpop.eup %2301 }
 0x13c   : > { %1057 = vrot.lane.b32.xlu1 %v2794_v60, %s2475_s25  ;;  %v2304_v26 = vpop.eup %2303  ;;  %s1641_s25 = sand.u32 1, %s2563_s17  }
 0x13d   : > { %1003 = vrot.lane.b32.xlu0 %v987_v59, %s2476_s22  ;;  %v955_v28 = vadd.f32 1.0, %v2304_v26  ;;  %v2306_v29 = vpop.eup %2305 }
 0x13e   : > { %v956_v62 = vadd.f32 1.0, %v2306_v29  ;;  %v2308_v33 = vpop.eup %2307 }
 0x13f   : > { %2313 = vrcp.f32 %v955_v28  ;;  %v957_v14 = vadd.f32 1.0, %v2308_v33  ;;  %v2310_v35 = vpop.eup %2309 }
 0x140   : > { %1005 = vrot.lane.b32.xlu1 %v988_v61, %s2476_s22  ;;  %2315 = vpow2.f32 %v1938_v30  ;;  %v958_v36 = vadd.f32 1.0, %v2310_v35  ;;  %v2312_v32 = vpop.eup %2311 }
 0x141   : > { %2210 = vrot.lane.b32.xlu0 %v2209_v63, %s2477_s12  ;;  %2317 = vrcp.f32 %v956_v62  ;;  %v959_v41 = vadd.f32 1.0, %v2312_v32 }
 0x142   : > { %2319 = vpow2.f32 %v1939_v0 }
 0x143   : > { %2321 = vrcp.f32 %v957_v14 }
 0x144   : > { %1007 = vrot.lane.b32.xlu1 %v989_v4, %s2476_s22  ;;  %2323 = vpow2.f32 %v1940_v16 }
 0x145   : > { %1009 = vrot.lane.b32.xlu0 %v990_v5, %s2476_s22  ;;  %2325 = vrcp.f32 %v958_v36  ;;  %v2285_v5 = vld [vmem:[%s3211_s6] sm:$0xff]  }
 0x146   : > { %2327 = vrcp.f32 %v959_v41  ;;  %2123 = vmatprep.subr.bf16.mxu1 %v2285_v5 }
 0x147   : > { %2124 = vmatpush3.bf16.msra.mxu1 %v2285_v5 }
 0x148   : > { %2215 = vrot.lane.b32.xlu1 %v2214_v7, %s2477_s12 }
 0x149   : > { %1011 = vrot.lane.b32.xlu0 %v991_v10, %s2476_s22  ;;  %v2828_v37 = vpop.eup %2313 }
 0x14a   : > { %v2316_v40 = vpop.eup %2315 }
 0x14b   : > { %v2832_v42 = vpop.eup %2317  ;;  %v960_v44 = vadd.f32 1.0, %v2316_v40 }
 0x14c   : > { %1013 = vrot.lane.b32.xlu1 %v992_v11, %s2476_s22  ;;  %v2320_v46 = vpop.eup %2319 }
 0x14d   : > { %2220 = vrot.lane.b32.xlu0 %v2219_v12, %s2477_s12  ;;  %v2836_v47 = vpop.eup %2321  ;;  %2329 = vrcp.f32 %v960_v44  ;;  %v961_v53 = vadd.f32 1.0, %v2320_v46 }
 0x14e   : > { %v2324_v52 = vpop.eup %2323 }
 0x14f   : > { %v2840_v50 = vpop.eup %2325  ;;  %v962_v58 = vadd.f32 1.0, %v2324_v52  ;;  %2331 = vrcp.f32 %v961_v53 }
 0x150   : > { %1015 = vrot.lane.b32.xlu1 %v993_v18, %s2476_s22  ;;  %v2844_v61 = vpop.eup %2327 }
 0x151   : > { %1017 = vrot.lane.b32.xlu0 %v994_v19, %s2476_s22  ;;  %2333 = vrcp.f32 %v962_v58 }
 0x154   : > { %2225 = vrot.lane.b32.xlu1 %v2224_v21, %s2477_s12 }
 0x157   : > { %v2847_v2 = vpop.eup %2329 }
 0x159   : > { %v2858_v7 = vpop.eup %2331 }
 0x15b   : > { %v2861_v10 = vpop.eup %2333 }
 0x193   : > { %v1044_v34 = vpop.permute.xlu0 %1043 }
 0x194   : > { %v1067_v39 = vmul.f32 %v2828_v37, %v1044_v34 }
 0x196   : > { %1083 = vrot.lane.b32.xlu0 %v1067_v39, %s2476_s22 }
 0x197   : > { %v1046_v43 = vpop.permute.xlu0 %1045 }
 0x198   : > { %v1068_v45 = vmul.f32 %v2832_v42, %v1046_v43 }
 0x19a   : > { %1085 = vrot.lane.b32.xlu1 %v1068_v45, %s2476_s22 }
 0x19b   : > { %v1048_v48 = vpop.permute.xlu1 %1047 }
 0x19c   : > { %v1069_v51 = vmul.f32 %v2836_v47, %v1048_v48 }
 0x19e   : > { %1087 = vrot.lane.b32.xlu0 %v1069_v51, %s2476_s22 }
 0x19f   : > { %v1050_v57 = vpop.permute.xlu1 %1049 }
 0x1a0   : > { %v1070_v59 = vmul.f32 %v2840_v50, %v1050_v57 }
 0x1a2   : > { %1089 = vrot.lane.b32.xlu1 %v1070_v59, %s2476_s22 }
 0x1a3   : > { %v1052_v63 = vpop.permute.xlu0 %1051 }
 0x1a4   : > { %v1071_v1 = vmul.f32 %v2844_v61, %v1052_v63 }
 0x1a6   : > { %v1054_v3 = vpop.permute.xlu1 %1053  ;;  %1091 = vrot.lane.b32.xlu0 %v1071_v1, %s2476_s22 }
 0x1a7   : > { %v1072_v4 = vmul.f32 %v2847_v2, %v1054_v3 }
 0x1a9   : > { %1093 = vrot.lane.b32.xlu1 %v1072_v4, %s2476_s22 }
 0x1ab   : > { %v1056_v8 = vpop.permute.xlu0 %1055 }
 0x1ac   : > { %v1073_v9 = vmul.f32 %v2858_v7, %v1056_v8 }
 0x1ae   : > { %v1058_v11 = vpop.permute.xlu1 %1057  ;;  %1095 = vrot.lane.b32.xlu0 %v1073_v9, %s2476_s22 }
 0x1af   : > { %v1074_v12 = vmul.f32 %v2861_v10, %v1058_v11  ;;  %v1004_v13 = vpop.permute.xlu0 %1003 }
 0x1b0   : > { %v1027_v62 = vmul.f32 %v2828_v37, %v1004_v13 }
 0x1b1   : > { %1097 = vrot.lane.b32.xlu1 %v1074_v12, %s2476_s22 }
 0x1b2   : > { %v1006_v15 = vpop.permute.xlu1 %1005 }
 0x1b3   : > { %v2211_v17 = vpop.permute.xlu0 %2210  ;;  %v1028_v33 = vmul.f32 %v2832_v42, %v1006_v15 }
 0x1b4   : > { %v2213_v27 = vunpack.i.h.bf16 %v2211_v17  ;;  %v2212_v28 = vunpack.i.l.bf16 %v2211_v17 }
 0x1b6   : > { %v1008_v18 = vpop.permute.xlu1 %1007  ;;  %v1163_v0 = vmul.f32 %v2828_v37, %v2212_v28  ;;  %v1164_v14 = vmul.f32 %v2832_v42, %v2213_v27 }
 0x1b7   : > { %v1010_v19 = vpop.permute.xlu0 %1009  ;;  %v1029_v45 = vmul.f32 %v2836_v47, %v1008_v18 }
 0x1b8   : > { %v1030_v46 = vmul.f32 %v2840_v50, %v1010_v19 }
 0x1ba   : > { %v2216_v21 = vpop.permute.xlu1 %2215 }
 0x1bb   : > { %v1012_v22 = vpop.permute.xlu0 %1011  ;;  %v2218_v39 = vunpack.i.h.bf16 %v2216_v21  ;;  %v2217_v40 = vunpack.i.l.bf16 %v2216_v21 }
 0x1bc   : > { %v1031_v6 = vmul.f32 %v2844_v61, %v1012_v22 }
 0x1bd   : > { %v1165_v48 = vmul.f32 %v2836_v47, %v2217_v40  ;;  %v1166_v51 = vmul.f32 %v2840_v50, %v2218_v39 }
 0x1be   : > { %v1014_v23 = vpop.permute.xlu1 %1013 }
 0x1bf   : > { %v2221_v24 = vpop.permute.xlu0 %2220  ;;  %v1032_v8 = vmul.f32 %v2847_v2, %v1014_v23 }
 0x1c0   : > { %v2223_v63 = vunpack.i.h.bf16 %v2221_v24  ;;  %v2222_v1 = vunpack.i.l.bf16 %v2221_v24 }
 0x1c2   : > { %v1016_v25 = vpop.permute.xlu1 %1015  ;;  %v1167_v9 = vmul.f32 %v2844_v61, %v2222_v1  ;;  %v1168_v11 = vmul.f32 %v2847_v2, %v2223_v63 }
 0x1c3   : > { %v1018_v26 = vpop.permute.xlu0 %1017  ;;  %v1033_v27 = vmul.f32 %v2858_v7, %v1016_v25 }
 0x1c4   : > { %v1034_v28 = vmul.f32 %v2861_v10, %v1018_v26 }
 0x1c6   : > { %v2226_v29 = vpop.permute.xlu1 %2225 }
 0x1c7   : > { %v2228_v19 = vunpack.i.h.bf16 %v2226_v29  ;;  %v2227_v21 = vunpack.i.l.bf16 %v2226_v29 }
 0x208   : > { %v1084_v30 = vpop.permute.xlu0 %1083 }
 0x209   : > { %v2870_v16 = vadd.f32 %v1084_v30, %v1027_v62  ;;  %v2872_v36 = vadd.f32 %v1163_v0, %v1084_v30  ;;  %v1169_v30 = vmul.f32 %v2858_v7, %v2227_v21  ;;  %v1170_v62 = vmul.f32 %v2861_v10, %v2228_v19 }
 0x20c   : > { %v1086_v35 = vpop.permute.xlu1 %1085 }
 0x20d   : > { %v2874_v32 = vadd.f32 %v1086_v35, %v1028_v33  ;;  %v2876_v34 = vadd.f32 %v1164_v14, %v1086_v35 }
 0x20f   : > { %v1179_v41 = vpack.c.bf16 %v2874_v32, %v2870_v16  ;;  %v1185_v43 = vpack.c.bf16 %v2876_v34, %v2872_v36 }
 0x210   : > { %v1088_v44 = vpop.permute.xlu0 %1087 }
 0x211   : > { %1195 = vrot.lane.b32.xlu0 %v1185_v43, %s2478_s18  ;;  %1291 = vrot.lane.b32.xlu1 %v1179_v41, %s2479_s11  ;;  %v2888_v53 = vadd.f32 %v1088_v44, %v1029_v45  ;;  %v2890_v57 = vadd.f32 %v1165_v48, %v1088_v44 }
 0x214   : > { %v1090_v52 = vpop.permute.xlu1 %1089 }
 0x215   : > { %v2892_v58 = vadd.f32 %v1090_v52, %v1030_v46  ;;  %v2894_v59 = vadd.f32 %v1166_v51, %v1090_v52 }
 0x217   : > { %v1180_v3 = vpack.c.bf16 %v2892_v58, %v2888_v53  ;;  %v1186_v4 = vpack.c.bf16 %v2894_v59, %v2890_v57 }
 0x218   : > { %v1092_v5 = vpop.permute.xlu0 %1091 }
 0x219   : > { %1197 = vrot.lane.b32.xlu0 %v1186_v4, %s2478_s18  ;;  %1293 = vrot.lane.b32.xlu1 %v1180_v3, %s2479_s11  ;;  %v2906_v13 = vadd.f32 %v1092_v5, %v1031_v6  ;;  %v2908_v15 = vadd.f32 %v1167_v9, %v1092_v5 }
 0x21b   : > { %v1094_v12 = vpop.permute.xlu1 %1093 }
 0x21c   : > { %v2910_v17 = vadd.f32 %v1094_v12, %v1032_v8  ;;  %v2912_v18 = vadd.f32 %v1168_v11, %v1094_v12 }
 0x21e   : > { %v1181_v22 = vpack.c.bf16 %v2910_v17, %v2906_v13  ;;  %v1187_v23 = vpack.c.bf16 %v2912_v18, %v2908_v15 }
 0x220   : > { %1199 = vrot.lane.b32.xlu0 %v1187_v23, %s2478_s18  ;;  %1295 = vrot.lane.b32.xlu1 %v1181_v22, %s2479_s11  ;;  %v1096_v24 = vpop.permute.xlu0 %1095 }
 0x221   : > { %v2924_v33 = vadd.f32 %v1096_v24, %v1033_v27  ;;  %v2926_v0 = vadd.f32 %v1169_v30, %v1096_v24 }
 0x223   : > { %v1098_v29 = vpop.permute.xlu1 %1097 }
 0x224   : > { %v2928_v14 = vadd.f32 %v1098_v29, %v1034_v28  ;;  %v2930_v35 = vadd.f32 %v1170_v62, %v1098_v29 }
 0x226   : > { %v1182_v39 = vpack.c.bf16 %v2928_v14, %v2924_v33  ;;  %v1188_v25 = vpack.c.bf16 %v2930_v35, %v2926_v0 }
 0x228   : > { %1201 = vrot.lane.b32.xlu0 %v1188_v25, %s2478_s18  ;;  %1297 = vrot.lane.b32.xlu1 %v1182_v39, %s2479_s11 }
 0x283   : > { %v1196_v26 = vpop.permute.xlu0 %1195  ;;  %v1292_v40 = vpop.permute.xlu1 %1291 }
 0x284   : > { %2125 = vmatprep.mubr.msk.bf16.mxu1 %vm1209_vm0, %v1196_v26  ;;  %2135 = vmatprep.mubr.msk.bf16.mxu0 %vm1209_vm0, %v1292_v40 }
 0x28b   : > { %v1198_v41 = vpop.permute.xlu0 %1197  ;;  %v1294_v43 = vpop.permute.xlu1 %1293 }
 0x28c   : > { %2126 = vmatmul.mubr.msk.bf16.vlgmr.msra.gmra.mrb[16].mxu1 %vm1209_vm0, %v1198_v41  ;;  %2136 = vmatmul.mubr.msk.bf16.vlgmr.msra.gmra.mrb[16].mxu0 %vm1209_vm0, %v1294_v43 }
 0x292   : > { %v1200_v44 = vpop.permute.xlu0 %1199  ;;  %v1296_v45 = vpop.permute.xlu1 %1295 }
 0x293   : > { %2129 = vmatprep.mubr.msk.bf16.mxu1 %vm1209_vm0, %v1200_v44  ;;  %2139 = vmatprep.mubr.msk.bf16.mxu0 %vm1209_vm0, %v1296_v45 }
 0x29a   : > { %v1202_v46 = vpop.permute.xlu0 %1201  ;;  %v1298_v48 = vpop.permute.xlu1 %1297 }
 0x29b   : > { %2130 = vmatmul.mubr.msk.bf16.gmra.mrb[20].mxu1 %vm1209_vm0, %v1202_v46  ;;  %2140 = vmatmul.mubr.msk.bf16.gmra.mrb[20].mxu0 %vm1209_vm0, %v1298_v48 }
 0x35f   : > { %v2127_v51 = vpop.f32.mrb[16].mxu1  ;;  %v2137_v52 = vpop.f32.mrb[16].mxu0 }
 0x360   : > { %v1360_v63 = vadd.f32 %v2137_v52, %v2127_v51  ;;  %v1256_v1 = vpop.f32.mrb[17].mxu1  ;;  %v1351_v3 = vpop.f32.mrb[17].mxu0  ;;  %v1995_v51 = vpack.c.bf16 %v2872_v36, %v2872_v36  ;;  %v1996_v52 = vpack.c.bf16 %v2876_v34, %v2876_v34  ;;  %v1999_v36 = vpack.c.bf16 %v2908_v15, %v2908_v15 }
 0x361   : > { %v1352_v4 = vadd.f32 %v1351_v3, %v1256_v1  ;;  %v2128_v5 = vpop.f32.mrb[18].mxu1  ;;  %v2138_v6 = vpop.f32.mrb[18].mxu0  ;;  %v1998_v1 = vpack.c.bf16 %v2894_v59, %v2894_v59  ;;  %v2000_v34 = vpack.c.bf16 %v2912_v18, %v2912_v18  ;;  %v2002_v59 = vpack.c.bf16 %v2930_v35, %v2930_v35 }
 0x362   : > { %2335 = vtanh.f32 %v1360_v63  ;;  %v1363_v8 = vadd.f32 %v2138_v6, %v2128_v5  ;;  %v1259_v9 = vpop.f32.mrb[19].mxu1  ;;  %v1354_v11 = vpop.f32.mrb[19].mxu0  ;;  %v1997_v63 = vpack.c.bf16 %v2890_v57, %v2890_v57  ;;  %v2001_v57 = vpack.c.bf16 %v2926_v0, %v2926_v0 }
 0x363   : > { %v1355_v12 = vadd.f32 %v1354_v11, %v1259_v9 }
 0x364   : > { %2337 = vtanh.f32 %v1363_v8 }
 0x365   : > { %2339 = vtanh.f32 %v1352_v4 }
 0x366   : > { %2341 = vtanh.f32 %v1355_v12 }
 0x36c   : > { %v2336_v19 = vpop.eup %2335 }
 0x36d   : > { %1402 = vrot.lane.b32.xlu0 %v2336_v19, %s2478_s18 }
 0x36e   : > { %v2338_v21 = vpop.eup %2337  ;;  %v2131_v22 = vpop.f32.mrb[20].mxu1 }
 0x36f   : > { %v2141_v23 = vpop.f32.mrb[20].mxu0  ;;  %v1272_v27 = vpop.f32.mrb[21].mxu1  ;;  %1404 = vrot.lane.b32.xlu1 %v2338_v21, %s2478_s18 }
 0x370   : > { %v1376_v24 = vadd.f32 %v2141_v23, %v2131_v22  ;;  %v1367_v28 = vpop.f32.mrb[21].mxu0  ;;  %v2340_v30 = vpop.eup %2339 }
 0x371   : > { %v1368_v62 = vadd.f32 %v1367_v28, %v1272_v27  ;;  %v2132_v29 = vpop.f32.mrb[22].mxu1  ;;  %v2142_v39 = vpop.f32.mrb[22].mxu0  ;;  %1398 = vrot.lane.b32.xlu0 %v2340_v30, %s2478_s18 }
 0x372   : > { %2343 = vtanh.f32 %v1376_v24  ;;  %v1379_v25 = vadd.f32 %v2142_v39, %v2132_v29  ;;  %v1275_v26 = vpop.f32.mrb[23].mxu1  ;;  %v1370_v40 = vpop.f32.mrb[23].mxu0 }
 0x373   : > { %v2342_v41 = vpop.eup %2341  ;;  %v1371_v43 = vadd.f32 %v1370_v40, %v1275_v26 }
 0x374   : > { %2345 = vtanh.f32 %v1379_v25  ;;  %1400 = vrot.lane.b32.xlu1 %v2342_v41, %s2478_s18 }
 0x375   : > { %2347 = vtanh.f32 %v1368_v62 }
 0x376   : > { %2349 = vtanh.f32 %v1371_v43 }
 0x37c   : > { %v2344_v44 = vpop.eup %2343 }
 0x37d   : > { %1410 = vrot.lane.b32.xlu0 %v2344_v44, %s2478_s18 }
 0x37e   : > { %v2346_v45 = vpop.eup %2345 }
 0x37f   : > { %1412 = vrot.lane.b32.xlu1 %v2346_v45, %s2478_s18  ;;  %v2348_v46 = vpop.eup %2347 }
 0x380   : > { %v2350_v48 = vpop.eup %2349 }
 0x381   : > { %1406 = vrot.lane.b32.xlu0 %v2348_v46, %s2478_s18 }
 0x383   : > { %1408 = vrot.lane.b32.xlu1 %v2350_v48, %s2478_s18 }
 0x385   : > { %1543 = vrot.lane.b32.xlu0 %v1995_v51, %s2478_s18 }
 0x387   : > { %1545 = vrot.lane.b32.xlu1 %v1996_v52, %s2478_s18 }
 0x389   : > { %1547 = vrot.lane.b32.xlu0 %v1997_v63, %s2478_s18 }
 0x38b   : > { %1549 = vrot.lane.b32.xlu1 %v1998_v1, %s2478_s18 }
 0x38d   : > { %1551 = vrot.lane.b32.xlu0 %v1999_v36, %s2478_s18 }
 0x38f   : > { %1553 = vrot.lane.b32.xlu1 %v2000_v34, %s2478_s18 }
 0x391   : > { %1555 = vrot.lane.b32.xlu0 %v2001_v57, %s2478_s18 }
 0x393   : > { %1557 = vrot.lane.b32.xlu1 %v2002_v59, %s2478_s18  ;;  %s2480_s18 = smov [#allocation4]  }
 0x395   : > { %1495 = vrot.lane.b32.xlu0 %v2870_v16, %s2479_s11  ;;  %v2003_v16 = vpack.c.bf16 %v2733_v20, %v2733_v20  ;;  %v2007_v20 = vpack.c.bf16 %v2765_v54, %v2765_v54 }
 0x397   : > { %1497 = vrot.lane.b32.xlu1 %v2874_v32, %s2479_s11  ;;  %v2004_v32 = vpack.c.bf16 %v2739_v31, %v2739_v31  ;;  %v2008_v31 = vpack.c.bf16 %v2771_v55, %v2771_v55 }
 0x399   : > { %1499 = vrot.lane.b32.xlu0 %v2888_v53, %s2479_s11  ;;  %v2005_v53 = vpack.c.bf16 %v2749_v38, %v2749_v38  ;;  %v2009_v38 = vpack.c.bf16 %v2789_v56, %v2789_v56 }
 0x39b   : > { %1501 = vrot.lane.b32.xlu1 %v2892_v58, %s2479_s11  ;;  %v2006_v58 = vpack.c.bf16 %v2755_v49, %v2755_v49  ;;  %v2010_v49 = vpack.c.bf16 %v2794_v60, %v2794_v60 }
 0x39d   : > { %1503 = vrot.lane.b32.xlu0 %v2906_v13, %s2479_s11 }
 0x39f   : > { %1505 = vrot.lane.b32.xlu1 %v2910_v17, %s2479_s11 }
 0x3a1   : > { %1507 = vrot.lane.b32.xlu0 %v2924_v33, %s2479_s11 }
 0x3a3   : > { %1509 = vrot.lane.b32.xlu1 %v2928_v14, %s2479_s11  ;;  %s2355_s11 = sshll.u32 %s2480_s18, 4  ;;  %s2356_s11 = int_to_ptr.vmem [resolvable:$false] %s2355_s11 }
 0x3a4   : > { %s2357_s28 = scalar_lea.vmem %s2356_s11, 1024 }
 0x3a5   : > { %1599 = vrot.lane.b32.xlu0 %v2003_v16, %s2476_s22 }
 0x3a7   : > { %1601 = vrot.lane.b32.xlu1 %v2004_v32, %s2476_s22 }
 0x3a9   : > { %1603 = vrot.lane.b32.xlu0 %v2005_v53, %s2476_s22 }
 0x3ab   : > { %1605 = vrot.lane.b32.xlu1 %v2006_v58, %s2476_s22 }
 0x3ad   : > { %1607 = vrot.lane.b32.xlu0 %v2007_v20, %s2476_s22 }
 0x3af   : > { %1609 = vrot.lane.b32.xlu1 %v2008_v31, %s2476_s22 }
 0x3b1   : > { %1611 = vrot.lane.b32.xlu0 %v2009_v38, %s2476_s22 }
 0x3b3   : > { %1613 = vrot.lane.b32.xlu1 %v2010_v49, %s2476_s22  ;;  %s405_s22 = scalar_lea.vmem [#allocation4], %s3218_s21 }
 0x3b4   : > { %s1680_s29 = sshll.u32 %s405_s22, 4  ;;  %s3057_s29 = int_to_ptr.vmem [resolvable:$true] %s1680_s29 }
 0x3b5   : > { %s2351_s21 = scalar_lea.vmem %s3057_s29, 512  ;;  %p2358_p0 = scmp.lt.s32.totalorder %s3057_s29, %s2356_s11 }
 0x3b6   : > { %p2352_p11 = scmp.ne.s32.totalorder %s3057_s29, %s2351_s21  ;;  %p2359_p1 = scmp.lt.s32.totalorder %s2357_s28, %s2351_s21 }
 0x3b8   : > { %p2353_p12 = pnand %p2352_p11, %p2582_p5  ;;  %p2360_p2 = por %p2359_p1, %p2358_p0 }
 0x3ba   : > { %p2354_p13 = pneg %p2353_p12 }
 0x3bc   : > { %p2361_p3 = pnand %p2360_p2, %p2354_p13 }
 0x3df   : > { %v1403_v13 = vpop.permute.xlu0 %1402 }
 0x3e0   : > { %v1424_v54 = vmul.f32 %v2836_v47, %v1403_v13 }
 0x3e1   : > { %v1405_v15 = vpop.permute.xlu1 %1404 }
 0x3e2   : > { %v1989_v17 = vpack.c.bf16 %v1424_v54, %v1424_v54  ;;  %v1425_v55 = vmul.f32 %v2840_v50, %v1405_v15 }
 0x3e3   : > { %v1399_v18 = vpop.permute.xlu0 %1398 }
 0x3e4   : > { %v1990_v33 = vpack.c.bf16 %v1425_v55, %v1425_v55  ;;  %v1422_v0 = vmul.f32 %v2828_v37, %v1399_v18  ;;  %1458 = vrot.lane.b32.xlu0 %v1989_v17, %s2477_s12 }
 0x3e6   : > { %v1401_v56 = vpop.permute.xlu1 %1400  ;;  %v1987_v14 = vpack.c.bf16 %v1422_v0, %v1422_v0  ;;  %1460 = vrot.lane.b32.xlu1 %v1990_v33, %s2477_s12 }
 0x3e7   : > { %v1423_v60 = vmul.f32 %v2832_v42, %v1401_v56 }
 0x3e8   : > { %1454 = vrot.lane.b32.xlu0 %v1987_v14, %s2477_s12 }
 0x3e9   : > { %v1988_v35 = vpack.c.bf16 %v1423_v60, %v1423_v60 }
 0x3eb   : > { %1456 = vrot.lane.b32.xlu1 %v1988_v35, %s2477_s12 }
 0x3ef   : > { %v1411_v47 = vpop.permute.xlu0 %1410 }
 0x3f0   : > { %v1428_v42 = vmul.f32 %v2858_v7, %v1411_v47 }
 0x3f1   : > { %v1413_v50 = vpop.permute.xlu1 %1412 }
 0x3f2   : > { %v1429_v9 = vmul.f32 %v2861_v10, %v1413_v50  ;;  %v1993_v12 = vpack.c.bf16 %v1428_v42, %v1428_v42 }
 0x3f3   : > { %v1407_v37 = vpop.permute.xlu0 %1406 }
 0x3f4   : > { %v1426_v3 = vmul.f32 %v2844_v61, %v1407_v37  ;;  %v1994_v7 = vpack.c.bf16 %v1429_v9, %v1429_v9 }
 0x3f5   : > { %v1409_v4 = vpop.permute.xlu1 %1408 }
 0x3f6   : > { %v1991_v5 = vpack.c.bf16 %v1426_v3, %v1426_v3  ;;  %v1427_v6 = vmul.f32 %v2847_v2, %v1409_v4 }
 0x3f7   : > { %v1544_v8 = vpop.permute.xlu0 %1543 }
 0x3f8   : > { %v1992_v11 = vpack.c.bf16 %v1427_v6, %v1427_v6  ;;  %1567 = vst.msk [vmem:[%s405_s22] sm:$0xf] %vm1478_vm1, %v1544_v8  ;;  %1462 = vrot.lane.b32.xlu0 %v1991_v5, %s2477_s12 }
 0x3f9   : > { %v1546_v61 = vpop.permute.xlu1 %1545 }
 0x3fa   : > { %1568 = vst.msk [vmem:[%s405_s22 + $0x4] sm:$0xf] %vm1478_vm1, %v1546_v61  ;;  %1464 = vrot.lane.b32.xlu1 %v1992_v11, %s2477_s12 }
 0x3fb   : > { %v1548_v2 = vpop.permute.xlu0 %1547 }
 0x3fc   : > { %1569 = vst.msk [vmem:[%s405_s22 + $0x8] sm:$0xf] %vm1478_vm1, %v1548_v2  ;;  %1466 = vrot.lane.b32.xlu0 %v1993_v12, %s2477_s12 }
 0x3fd   : > { %v1550_v10 = vpop.permute.xlu1 %1549 }
 0x3fe   : > { %1570 = vst.msk [vmem:[%s405_s22 + $0xc] sm:$0xf] %vm1478_vm1, %v1550_v10  ;;  %1468 = vrot.lane.b32.xlu1 %v1994_v7, %s2477_s12  ;;  %s3060_s12 = scalar_lea.sflag [#allocation5], %s1641_s25 }
 0x3ff   : > { %v1552_v19 = vpop.permute.xlu0 %1551 }
 0x400   : > { %1571 = vst.msk [vmem:[%s405_s22 + $0x10] sm:$0xf] %vm1478_vm1, %v1552_v19 }
 0x401   : > { %v1554_v21 = vpop.permute.xlu1 %1553 }
 0x402   : > { %1572 = vst.msk [vmem:[%s405_s22 + $0x14] sm:$0xf] %vm1478_vm1, %v1554_v21 }
 0x403   : > { %v1556_v22 = vpop.permute.xlu0 %1555 }
 0x404   : > { %1573 = vst.msk [vmem:[%s405_s22 + $0x18] sm:$0xf] %vm1478_vm1, %v1556_v22 }
 0x405   : > { %v1558_v23 = vpop.permute.xlu1 %1557 }
 0x406   : > { %1574 = vst.msk [vmem:[%s405_s22 + $0x1c] sm:$0xf] %vm1478_vm1, %v1558_v23 }
 0x407   : > { %v1496_v24 = vpop.permute.xlu0 %1495 }
 0x408   : > { %2364 = shalt.err (!%p2361_p3)
}
 0x409   : > { %s2365_s22 = scalar_lea.hbm %s3054_s26, 512  ;;  %s2369_s18 = scalar_lea.hbm %s3214_s9, 1024 }
 0x40a   : > { %p2366_p4 = scmp.ne.s32.totalorder %s3054_s26, %s2365_s22  ;;  %p2370_p9 = scmp.lt.u32.totalorder %s3054_s26, %s3214_s9 }
 0x40b   : > { %p2371_p10 = scmp.lt.u32.totalorder %s2369_s18, %s2365_s22  ;;  %p2373_p12 = scmp.lt.u32.totalorder %s2365_s22, %s3054_s26 }
 0x40c   : > { %p2367_p7 = pnand %p2366_p4, %p2582_p5 }
 0x40d   : > { %p2372_p11 = por %p2371_p10, %p2370_p9 }
 0x40e   : > { %p2368_p8 = pneg %p2367_p7 }
 0x40f   : > { %p2374_p13 = por %p2373_p12, %p2372_p11 }
 0x411   : > { %p2375_p0 = pnand %p2374_p13, %p2368_p8 }
 0x413   : > { %2378 = shalt.err (!%p2375_p0)
}
 0x414   : > { %s3220_s21 = smov 64   ;;  %s3221_s28 = smov 4   ;;  %v1498_v27 = vpop.permute.xlu1 %1497  ;;  %v1500_v28 = vpop.permute.xlu0 %1499 }
 0x415   : > { %2152 = dma.vmem_to_hbm [thread:$0]  (%p2582_p5), %s3057_s29, 512, %s3054_s26, %s3060_s12, %s3220_s21, %s3220_s21, %s3221_s28  }
 0x416   : > { %s3229_s0 = sshll.u32 %s3027_s20, 6  ;;  %s2011_s22 = sshll.u32 %s2563_s17, 10 }
 0x417   : > { %s398_s30 = scalar_lea.vmem [#allocation2], %s3229_s0  ;;  %s3099_s18 = scalar_lea.hbm %s3213_s8, %s2011_s22 }
 0x418   : > { %1519 = vst.msk [vmem:[%s398_s30] sm:$0xff] %vm1209_vm0, %v1496_v24  ;;  %1520 = vst.msk [vmem:[%s398_s30 + $0x8] sm:$0xff] %vm1209_vm0, %v1498_v27  ;;  %v1502_v30 = vpop.permute.xlu1 %1501  ;;  %v1504_v62 = vpop.permute.xlu0 %1503  ;;  %s1664_s26 = sshll.u32 %s398_s30, 4  ;;  %s2483_s29 = smov [#allocation2]   ;;  %s3101_s26 = int_to_ptr.vmem [resolvable:$true] %s1664_s26 }
 0x419   : > { %1521 = vst.msk [vmem:[%s398_s30 + $0x10] sm:$0xff] %vm1209_vm0, %v1500_v28  ;;  %1522 = vst.msk [vmem:[%s398_s30 + $0x18] sm:$0xff] %vm1209_vm0, %v1502_v30  ;;  %s2379_s0 = scalar_lea.vmem %s3101_s26, 1024  ;;  %s2383_s22 = sshll.u32 %s2483_s29, 4  ;;  %s2384_s22 = int_to_ptr.vmem [resolvable:$false] %s2383_s22 }
 0x41a   : > { %1523 = vst.msk [vmem:[%s398_s30 + $0x20] sm:$0xff] %vm1209_vm0, %v1504_v62  ;;  %p2380_p1 = scmp.ne.s32.totalorder %s3101_s26, %s2379_s0  ;;  %s2385_s25 = scalar_lea.vmem %s2384_s22, 2048 }
 0x41b   : > { %p2386_p4 = scmp.lt.s32.totalorder %s3101_s26, %s2384_s22  ;;  %p2387_p7 = scmp.lt.s32.totalorder %s2385_s25, %s2379_s0 }
 0x41c   : > { %v1506_v29 = vpop.permute.xlu1 %1505  ;;  %v1508_v39 = vpop.permute.xlu0 %1507  ;;  %p2381_p2 = pnand %p2380_p1, %p2582_p5 }
 0x41d   : > { %1524 = vst.msk [vmem:[%s398_s30 + $0x28] sm:$0xff] %vm1209_vm0, %v1506_v29  ;;  %1525 = vst.msk [vmem:[%s398_s30 + $0x30] sm:$0xff] %vm1209_vm0, %v1508_v39  ;;  %p2388_p8 = por %p2387_p7, %p2386_p4 }
 0x41e   : > { %p2382_p3 = pneg %p2381_p2 }
 0x420   : > { %v1510_v25 = vpop.permute.xlu1 %1509  ;;  %v1600_v26 = vpop.permute.xlu0 %1599  ;;  %p2389_p9 = pnand %p2388_p8, %p2382_p3 }
 0x421   : > { %1526 = vst.msk [vmem:[%s398_s30 + $0x38] sm:$0xff] %vm1209_vm0, %v1510_v25 }
 0x422   : > { %2392 = shalt.err (!%p2389_p9)
}
 0x423   : > { %s2393_s30 = scalar_lea.hbm %s3099_s18, 1024  ;;  %s2397_s29 = scalar_lea.hbm %s3213_s8, 2048 }
 0x424   : > { %p2394_p10 = scmp.ne.s32.totalorder %s3099_s18, %s2393_s30  ;;  %p2398_p13 = scmp.lt.u32.totalorder %s3099_s18, %s3213_s8 }
 0x425   : > { %p2399_p0 = scmp.lt.u32.totalorder %s2397_s29, %s2393_s30  ;;  %p2401_p2 = scmp.lt.u32.totalorder %s2393_s30, %s3099_s18 }
 0x426   : > { %p2395_p11 = pnand %p2394_p10, %p2582_p5 }
 0x427   : > { %p2400_p1 = por %p2399_p0, %p2398_p13 }
 0x428   : > { %p2396_p12 = pneg %p2395_p11 }
 0x429   : > { %p2402_p3 = por %p2401_p2, %p2400_p1 }
 0x42b   : > { %p2403_p4 = pnand %p2402_p3, %p2396_p12 }
 0x42d   : > { %2406 = shalt.err (!%p2403_p4)
}
 0x42e   : > { %s2484_s0 = smov 128   ;;  %s2485_s25 = smov 8   ;;  %v1602_v40 = vpop.permute.xlu1 %1601  ;;  %v1604_v41 = vpop.permute.xlu0 %1603 }
 0x42f   : > { %s3230_s21 = scalar_lea.sflag [#allocation3], %s3027_s20  ;;  %s3231_s28 = sshll.u32 %s3027_s20, 5 }
 0x430   : > { %2151 = dma.vmem_to_hbm [thread:$0]  (%p2582_p5), %s3101_s26, 1024, %s3099_s18, %s3230_s21, %s2484_s0, %s2484_s0, %s2485_s25  }
 0x431   : > { %s412_s1 = scalar_lea.vmem [#allocation6], %s3231_s28  ;;  %s3232_s20 = sshll.u32 %s2563_s17, 9 }
 0x432   : > { %1623 = vst.msk [vmem:[%s412_s1] sm:$0xf] %vm1478_vm1, %v1600_v26  ;;  %1624 = vst.msk [vmem:[%s412_s1 + $0x4] sm:$0xf] %vm1478_vm1, %v1602_v40  ;;  %v1606_v43 = vpop.permute.xlu1 %1605  ;;  %v1608_v44 = vpop.permute.xlu0 %1607  ;;  %s1696_s11 = sshll.u32 %s412_s1, 4  ;;  %s3145_s30 = scalar_lea.hbm %s3215_s10, %s3232_s20  ;;  %s3137_s11 = int_to_ptr.vmem [resolvable:$true] %s1696_s11 }
 0x433   : > { %1625 = vst.msk [vmem:[%s412_s1 + $0x8] sm:$0xf] %vm1478_vm1, %v1604_v41  ;;  %1626 = vst.msk [vmem:[%s412_s1 + $0xc] sm:$0xf] %vm1478_vm1, %v1606_v43  ;;  %s2407_s29 = scalar_lea.vmem %s3137_s11, 512  ;;  %s2486_s22 = smov [#allocation6]  }
 0x434   : > { %1627 = vst.msk [vmem:[%s412_s1 + $0x10] sm:$0xf] %vm1478_vm1, %v1608_v44  ;;  %p2408_p7 = scmp.ne.s32.totalorder %s3137_s11, %s2407_s29  ;;  %s2411_s0 = sshll.u32 %s2486_s22, 4  ;;  %s2412_s0 = int_to_ptr.vmem [resolvable:$false] %s2411_s0 }
 0x435   : > { %s2413_s25 = scalar_lea.vmem %s2412_s0, 1024  ;;  %p2414_p10 = scmp.lt.s32.totalorder %s3137_s11, %s2412_s0 }
 0x436   : > { %v1610_v45 = vpop.permute.xlu1 %1609  ;;  %v1612_v46 = vpop.permute.xlu0 %1611  ;;  %p2409_p8 = pnand %p2408_p7, %p2582_p5  ;;  %p2415_p11 = scmp.lt.s32.totalorder %s2413_s25, %s2407_s29 }
 0x437   : > { %1628 = vst.msk [vmem:[%s412_s1 + $0x14] sm:$0xf] %vm1478_vm1, %v1610_v45  ;;  %1629 = vst.msk [vmem:[%s412_s1 + $0x18] sm:$0xf] %vm1478_vm1, %v1612_v46 }
 0x438   : > { %p2410_p9 = pneg %p2409_p8  ;;  %p2416_p12 = por %p2415_p11, %p2414_p10 }
 0x43a   : > { %v1614_v48 = vpop.permute.xlu1 %1613  ;;  %p2417_p13 = pnand %p2416_p12, %p2410_p9 }
 0x43b   : > { %1630 = vst.msk [vmem:[%s412_s1 + $0x1c] sm:$0xf] %vm1478_vm1, %v1614_v48 }
 0x43c   : > { %2420 = shalt.err (!%p2417_p13)
}
 0x43d   : > { %s2421_s1 = scalar_lea.hbm %s3145_s30, 512  ;;  %s2425_s28 = scalar_lea.hbm %s3215_s10, 1024 }
 0x43e   : > { %p2422_p0 = scmp.ne.s32.totalorder %s3145_s30, %s2421_s1  ;;  %p2426_p3 = scmp.lt.u32.totalorder %s3145_s30, %s3215_s10 }
 0x43f   : > { %p2427_p4 = scmp.lt.u32.totalorder %s2425_s28, %s2421_s1  ;;  %p2429_p8 = scmp.lt.u32.totalorder %s2421_s1, %s3145_s30 }
 0x440   : > { %p2423_p1 = pnand %p2422_p0, %p2582_p5 }
 0x441   : > { %p2428_p7 = por %p2427_p4, %p2426_p3 }
 0x442   : > { %p2424_p2 = pneg %p2423_p1 }
 0x443   : > { %p2430_p9 = por %p2429_p8, %p2428_p7 }
 0x445   : > { %p2431_p10 = pnand %p2430_p9, %p2424_p2 }
 0x447   : > { %2434 = shalt.err (!%p2431_p10)
}
 0x448   : > { %s3233_s18 = smov 4   ;;  %s3234_s29 = smov 64  }
 0x449   : > { %2153 = dma.vmem_to_hbm [thread:$0]  (%p2582_p5), %s3137_s11, 512, %s3145_s30, %s3060_s12, %s3234_s29, %s3234_s29, %s3233_s18  }
 0x44a   : > { %s3235_s22 = sshll.u32 %s3243_s27, 2 }
 0x44b   : > { %s436_s17 = scalar_lea.vmem %s3212_s7, %s3235_s22 }
 0x456   : > { %v1459_v51 = vpop.permute.xlu0 %1458 }
 0x457   : > { %1481 = vst.msk [vmem:[%s436_s17 + $0x8] sm:$0xf] %vm1478_vm1, %v1459_v51 }
 0x458   : > { %v1461_v52 = vpop.permute.xlu1 %1460 }
 0x459   : > { %1482 = vst.msk [vmem:[%s436_s17 + $0xc] sm:$0xf] %vm1478_vm1, %v1461_v52 }
 0x45a   : > { %v1455_v63 = vpop.permute.xlu0 %1454 }
 0x45b   : > { %1479 = vst.msk [vmem:[%s436_s17] sm:$0xf] %vm1478_vm1, %v1455_v63 }
 0x45d   : > { %v1457_v1 = vpop.permute.xlu1 %1456 }
 0x45e   : > { %1480 = vst.msk [vmem:[%s436_s17 + $0x4] sm:$0xf] %vm1478_vm1, %v1457_v1 }
 0x46a   : > { %v1463_v36 = vpop.permute.xlu0 %1462 }
 0x46b   : > { %1483 = vst.msk [vmem:[%s436_s17 + $0x10] sm:$0xf] %vm1478_vm1, %v1463_v36 }
 0x46c   : > { %v1465_v34 = vpop.permute.xlu1 %1464 }
 0x46d   : > { %1484 = vst.msk [vmem:[%s436_s17 + $0x14] sm:$0xf] %vm1478_vm1, %v1465_v34 }
 0x46e   : > { %v1467_v57 = vpop.permute.xlu0 %1466 }
 0x46f   : > { %1485 = vst.msk [vmem:[%s436_s17 + $0x18] sm:$0xf] %vm1478_vm1, %v1467_v57 }
 0x470   : > { %v1469_v59 = vpop.permute.xlu1 %1468 }
 0x471   : > { %1486 = vst.msk [vmem:[%s436_s17 + $0x1c] sm:$0xf] %vm1478_vm1, %v1469_v59 }
 0x472 PF: > { %p2167_p5 = scmp.ge.s32.totalorder %s2473_s16, 2  ;;  %s1719_s23 = sand.u32 1, %s2461_s13  }
 0x473   : > { %s1720_s27 = scalar_lea.sflag [#allocation3], %s1719_s23 }
 0x474   : > { %p2158_p11 = pnand %p2167_p5, %p2586_p6 }
 0x476   : > { %2452 = dma.done.wait (!%p2158_p11), %s1720_s27, 1024  }
 0x477   : > { %2454 = vsyncadd (!%p2158_p11), %s1720_s27, 4294966272  ;;  %s3236_s12 = sadd.s32 4294967294, %s2473_s16  }
 0x478   : > { %s1728_s11 = sand.u32 1, %s3236_s12  }
 0x479   : > { %s1729_s30 = scalar_lea.sflag [#allocation5], %s1728_s11 }
 0x47a   : > { %2456 = dma.done.wait (!%p2158_p11), %s1729_s30, 1024  }
 0x47b   : > { %2458 = vsyncadd (!%p2158_p11), %s1729_s30, 4294966272  ;;  %s3237_s1 = sld [smem:[#allocation9_spill]]  ;;  %p24_p12 = scmp.ge.s32.totalorder %s2567_s19, 4  }
 0x47c   : > { %s3238_s13 = smov %s2465_s14  ;;  %s3239_s14 = smov %s2469_s15 }
 0x47d   : > { %s3241_s16 = smov %s2567_s19  ;;  %26 = sbr.rel (!%p24_p12) target bundleno = 8 (0x8), region = 133 }
 0x481   : > { %s3240_s15 = smov %s3237_s1 }
 0x484   :  { %1743 = vsyncpa [#allocation3], 1 }
 0x485   :  { %1745 = vsyncpa [#allocation3 + $0x1], 1 }
 0x486   :  { %1746 = vsyncpa [#allocation5], 1 }
 0x487   :  { %1748 = vsyncpa [#allocation5 + $0x1], 1 }

// kernel: msmm_forward.45
= control target key start
LH: loop header
LB: loop body
LE: loop exit
PB: predicated region body
PF: predicated region fallthrough
CT: control target
= control target key end

     0   :  { %s6836_s0 = inlined_call_operand.vmem [shape: bf16[512,256], index: 0, kind: input, shape index: {}]   ;;  %s6837_s1 = inlined_call_operand.vmem [shape: bf16[256,64], index: 1, kind: input, shape index: {}]   ;;  %s6838_s2 = inlined_call_operand.vmem [shape: f32[1,64], index: 2, kind: input, shape index: {}]   ;;  %s6839_s3 = inlined_call_operand.vmem [shape: f32[512,8], index: 3, kind: input, shape index: {}]   ;;  %s6840_s4 = inlined_call_operand.vmem [shape: bf16[512,8], index: 4, kind: input, shape index: {}]   ;;  %s6841_s5 = inlined_call_operand.vmem [shape: bf16[8,8], index: 5, kind: input, shape index: {}]   ;;  %s6842_s6 = inlined_call_operand.vmem [shape: bf16[8,8], index: 6, kind: input, shape index: {}]   ;;  %s6843_s7 = inlined_call_operand.vmem [shape: bf16[512,8], index: 7, kind: output, shape index: {0}]   ;;  %s6844_s8 = inlined_call_operand.hbm [shape: f32[512,8], index: 8, kind: output, shape index: {1}]   ;;  %s6845_s9 = inlined_call_operand.vmem [shape: bf16[512,8], index: 9, kind: output, shape index: {2}]   ;;  %s6846_s10 = inlined_call_operand.vmem [shape: bf16[512,8], index: 10, kind: output, shape index: {3}]  }
   0x1   :  { %6940 = sst [smem:[#allocation105_spill]] %s6836_s0 }
   0x2   :  { %16 = vsyncpa [#allocation3], 0 }
   0x3   :  { %18 = vsyncpa [#allocation3 + $0x1], 0  ;;  %s4914_s13 = smov 0   ;;  %s4916_s14 = smov 0  }
   0x4   :  { %s4918_s15 = smov 0   ;;  %s4920_s16 = smov 0  }
   0x5 LB: > { %s4935_s17 = sadd.s32 4294967295, %s4847_s16   ;;  %s3680_s18 = sadd.s32 4294967294, %s4847_s16   ;;  %s4847_s16 = sphi %s4920_s16, %s7151_s16   ;;  %s4843_s15 = sphi %s4918_s15, %s7150_s15   ;;  %s4839_s14 = sphi %s4916_s14, %s7149_s14   ;;  %s4835_s13 = sphi %s4914_s13, %s7148_s13  }
   0x6   : > { %s4939_s19 = sadd.s32 1, %s4847_s16   ;;  %s219_s20 = sadd.s32 1, %s4843_s15 }
   0x7   : > { %s216_s21 = ssub.s32 %s4847_s16, %s4939_s19  ;;  %p229_p0 = scmp.ne.s32.totalorder %s4843_s15, %s4839_s14 }
   0x8   : > { %p217_p1 = scmp.eq.s32.totalorder %s216_s21, 0  ;;  %p230_p2 = scmp.eq.s32.totalorder %s4935_s17, 1 }
   0x9   : > { %p235_p3 = scmp.ne.s32.totalorder %s4839_s14, %s4835_s13  ;;  %p236_p4 = scmp.eq.s32.totalorder %s3680_s18, 1 }
   0xa   : > { %s4950_s22 = scalar_select %p217_p1, %s4843_s15, %s219_s20  }
   0xb   : > { %p4952_p5 = por %p230_p2, %p229_p0  ;;  %p4956_p6 = por %p236_p4, %p235_p3 }
   0xc   : > { %p3683_p7 = scmp.ge.s32.totalorder %s4847_s16, 1  ;;  %p346_p8 = scmp.lt.s32.totalorder %s4847_s16, 3 }
   0xe   : > { %p347_p9 = pnand %p3683_p7, %p346_p8 }
  0x10   : > { %350 = sbr.rel (%p347_p9) target bundleno = 1356 (0x54c), region = 48 }
  0x17   : > { %v4465_v0 = vld [vmem:[%s6837_s1 + $0x40] sm:$0xff]   ;;  %s3685_s27 = sshll.u32 %s4935_s17, 5  ;;  %v4467_v2 = vld [vmem:[%s6837_s1 + $0x48] sm:$0xff]   ;;  %v4469_v4 = vld [vmem:[%s6837_s1 + $0x50] sm:$0xff]   ;;  %s6943_s0 = sld [smem:[#allocation105_spill]]  ;;  %vm2060_vm0 = vcmask 1043456  }
  0x18   : > { %v4466_v1 = vld [vmem:[%s6837_s1] sm:$0xff]   ;;  %4089 = vmatprep.subr.bf16.mxu0 %v4465_v0  ;;  %v4468_v3 = vld [vmem:[%s6837_s1 + $0x8] sm:$0xff]   ;;  %p411_p10 = scmp.lt.s32.totalorder %s3685_s27, 63  ;;  %v4470_v5 = vld [vmem:[%s6837_s1 + $0x10] sm:$0xff]   ;;  %s4849_s29 = smov 40   ;;  %vm2011_vm1 = vcmask 64512  }
  0x19   : > { %4090 = vmatpush3.bf16.msra.mxu0 %v4466_v1  ;;  %v4471_v6 = vld [vmem:[%s6837_s1 + $0x58] sm:$0xff]   ;;  %v4473_v8 = vld [vmem:[%s6837_s1 + $0x60] sm:$0xff]   ;;  %v4475_v10 = vld [vmem:[%s6837_s1 + $0x68] sm:$0xff]   ;;  %s393_s21 = sand.u32 1, %s4839_s14   ;;  %vm2869_vm2 = vcmask 60416   ;;  %s6937_s11 = smov 104  }
  0x1a   : > { %4091 = vmatprep.subr.bf16.mxu0 %v4467_v2  ;;  %s7153_s27 = smov (!%p411_p10, %s3685_s27), 63  ;;  %v4472_v7 = vld [vmem:[%s6837_s1 + $0x18] sm:$0xff]   ;;  %v4474_v9 = vld [vmem:[%s6837_s1 + $0x20] sm:$0xff]   ;;  %v4476_v12 = vld [vmem:[%s6837_s1 + $0x28] sm:$0xff]   ;;  %s3684_s25 = sshll.u32 %s393_s21, 8 }
  0x1b   : > { %s6847_s12 = sshll.u32 %s7153_s27, 3  ;;  %v4477_v13 = vld [vmem:[%s6837_s1 + $0x70] sm:$0xff]   ;;  %v4479_v15 = vld [vmem:[%s6837_s1 + $0x78] sm:$0xff]   ;;  %s6944_s30 = sshll.u32 %s7153_s27, 3 }
  0x1c   : > { %v4478_v14 = vld [vmem:[%s6837_s1 + $0x30] sm:$0xff]   ;;  %v4480_v16 = vld [vmem:[%s6837_s1 + $0x38] sm:$0xff]   ;;  %s5076_s20 = scalar_lea.vmem %s6839_s3, %s6944_s30  ;;  %s4852_s30 = smov 88  }
  0x1d   : > { %4092 = vmatpush3.bf16.msra.mxu0 %v4468_v3  ;;  %s4998_s26 = scalar_lea.vmem %s6943_s0, %s6847_s12  ;;  %s5023_s12 = sshll.u32 %s7153_s27, 2 }
  0x1e   : > { %4093 = vmatprep.subr.bf16.mxu0 %v4469_v4  ;;  %v4483_v11 = vld [vmem:[%s4998_s26 + $0x4] ss:$8 sps:$4 sm:$0xff]   ;;  %v4481_v17 = vld [vmem:[%s4998_s26] ss:$8 sps:$4 sm:$0xff]   ;;  %s5030_s28 = scalar_lea.vmem %s6840_s4, %s5023_s12  ;;  %v4484_v18 = vld [vmem:[%s4998_s26 + $0x14] ss:$8 sps:$4 sm:$0xff]   ;;  %s6443_s18 = scalar_lea.vmem %s6845_s9, %s5023_s12 }
  0x1f   : > { %808 = vmatprep.mubr.bf16.mxu0 %v4483_v11  ;;  %v4011_v19 = vld [vmem:[%s5030_s28] sm:$0xff]   ;;  %v4074_v20 = vld [vmem:[%s5030_s28 + $0x8] sm:$0xff]   ;;  %v4075_v25 = vld [vmem:[%s5030_s28 + $0x10] sm:$0xff]   ;;  %s6939_s27 = smov 8  }
  0x20   : > { %v4012_v21 = vunpack.c.l.bf16 %v4011_v19  ;;  %v4013_v22 = vunpack.c.h.bf16 %v4011_v19  ;;  %v4016_v23 = vunpack.c.l.bf16 %v4074_v20  ;;  %v4017_v24 = vunpack.c.h.bf16 %v4074_v20  ;;  %v4076_v26 = vld [vmem:[%s5030_s28 + $0x18] sm:$0xff]   ;;  %v4077_v31 = vld [vmem:[%s5030_s28 + $0x20] sm:$0xff]   ;;  %v4078_v34 = vld [vmem:[%s5030_s28 + $0x28] sm:$0xff]  }
  0x21   : > { %4094 = vmatpush3.bf16.msra.mxu0 %v4470_v5  ;;  %v4020_v27 = vunpack.c.l.bf16 %v4075_v25  ;;  %v4021_v28 = vunpack.c.h.bf16 %v4075_v25  ;;  %v4024_v29 = vunpack.c.l.bf16 %v4076_v26  ;;  %v4025_v30 = vunpack.c.h.bf16 %v4076_v26  ;;  %v4486_v35 = vld [vmem:[%s4998_s26 + $0x10] ss:$8 sps:$4 sm:$0xff]   ;;  %v4487_v39 = vld [vmem:[%s4998_s26 + $0x24] ss:$8 sps:$4 sm:$0xff]   ;;  %v4489_v53 = vld [vmem:[%s4998_s26 + $0x20] ss:$8 sps:$4 sm:$0xff]  }
  0x22   : > { %4095 = vmatprep.subr.bf16.mxu0 %v4471_v6  ;;  %v4385_v32 = vpack.i.bf16 %v4013_v22, %v4012_v21  ;;  %v4390_v33 = vpack.i.bf16 %v4017_v24, %v4016_v23  ;;  %v4028_v37 = vunpack.c.l.bf16 %v4077_v31  ;;  %v4029_v38 = vunpack.c.h.bf16 %v4077_v31  ;;  %v4079_v43 = vld [vmem:[%s5030_s28 + $0x30] sm:$0xff]   ;;  %v4080_v44 = vld [vmem:[%s5030_s28 + $0x38] sm:$0xff]   ;;  %v4081_v51 = vld [vmem:[%s5030_s28 + $0x40] sm:$0xff]  }
  0x23   : > { %v4395_v36 = vpack.i.bf16 %v4021_v28, %v4020_v27  ;;  %v4400_v40 = vpack.i.bf16 %v4025_v30, %v4024_v29  ;;  %v4032_v41 = vunpack.c.l.bf16 %v4078_v34  ;;  %v4033_v42 = vunpack.c.h.bf16 %v4078_v34  ;;  %v4082_v52 = vld [vmem:[%s5030_s28 + $0x48] sm:$0xff]   ;;  %v4490_v57 = vld [vmem:[%s4998_s26 + $0x34] ss:$8 sps:$4 sm:$0xff]   ;;  %v4085_v5 = vld [vmem:[%s5030_s28 + $0x60] sm:$0xff]  }
  0x24   : > { %4386 = vrot.lane.b32.xlu0 %v4385_v32, %s4849_s29  ;;  %4391 = vrot.lane.b32.xlu1 %v4390_v33, %s4849_s29  ;;  %v4405_v45 = vpack.i.bf16 %v4029_v38, %v4028_v37  ;;  %v4036_v46 = vunpack.c.l.bf16 %v4079_v43  ;;  %v4037_v47 = vunpack.c.h.bf16 %v4079_v43  ;;  %v4040_v49 = vunpack.c.l.bf16 %v4080_v44  ;;  %v4083_v61 = vld [vmem:[%s5030_s28 + $0x50] sm:$0xff]   ;;  %v4084_v62 = vld [vmem:[%s5030_s28 + $0x58] sm:$0xff]  }
  0x25   : > { %4096 = vmatpush3.bf16.msra.mxu0 %v4472_v7  ;;  %v4410_v48 = vpack.i.bf16 %v4033_v42, %v4032_v41  ;;  %v4041_v50 = vunpack.c.h.bf16 %v4080_v44  ;;  %v4044_v55 = vunpack.c.l.bf16 %v4081_v51  ;;  %v4045_v56 = vunpack.c.h.bf16 %v4081_v51  ;;  %v4086_v6 = vld [vmem:[%s5030_s28 + $0x68] sm:$0xff]   ;;  %v4492_v7 = vld [vmem:[%s4998_s26 + $0x30] ss:$8 sps:$4 sm:$0xff]   ;;  %v4496_v25 = vld [vmem:[%s4998_s26 + $0x54] ss:$8 sps:$4 sm:$0xff]  }
  0x26   : > { %4097 = vmatprep.subr.bf16.mxu0 %v4473_v8  ;;  %v4415_v54 = vpack.i.bf16 %v4037_v47, %v4036_v46  ;;  %v4048_v59 = vunpack.c.l.bf16 %v4082_v52  ;;  %v4049_v60 = vunpack.c.h.bf16 %v4082_v52  ;;  %v4052_v0 = vunpack.c.l.bf16 %v4083_v61  ;;  %v4493_v11 = vld [vmem:[%s4998_s26 + $0x44] ss:$8 sps:$4 sm:$0xff]   ;;  %v4495_v23 = vld [vmem:[%s4998_s26 + $0x40] ss:$8 sps:$4 sm:$0xff]   ;;  %v4498_v29 = vld [vmem:[%s4998_s26 + $0x50] ss:$8 sps:$4 sm:$0xff]  }
  0x27   : > { %v4420_v58 = vpack.i.bf16 %v4041_v50, %v4040_v49  ;;  %v4425_v63 = vpack.i.bf16 %v4045_v56, %v4044_v55  ;;  %v4053_v1 = vunpack.c.h.bf16 %v4083_v61  ;;  %v4056_v3 = vunpack.c.l.bf16 %v4084_v62  ;;  %v1161_v27 = vld [vmem:[%s5076_s20] sm:$0xff]  ;;  %v1162_v28 = vld [vmem:[%s5076_s20 + $0x8] sm:$0xff]  ;;  %v1164_v31 = vld [vmem:[%s5076_s20 + $0x18] sm:$0xff] }
  0x28   : > { %4396 = vrot.lane.b32.xlu0 %v4395_v36, %s4849_s29  ;;  %4401 = vrot.lane.b32.xlu1 %v4400_v40, %s4849_s29  ;;  %v4430_v2 = vpack.i.bf16 %v4049_v60, %v4048_v59  ;;  %v4057_v4 = vunpack.c.h.bf16 %v4084_v62  ;;  %v4499_v30 = vld [vmem:[%s4998_s26 + $0x64] ss:$8 sps:$4 sm:$0xff]   ;;  %v1163_v32 = vld [vmem:[%s5076_s20 + $0x10] sm:$0xff] }
  0x29   : > { %4098 = vmatpush3.bf16.msra.mxu0 %v4474_v9  ;;  %v4435_v8 = vpack.i.bf16 %v4053_v1, %v4052_v0  ;;  %v4060_v9 = vunpack.c.l.bf16 %v4085_v5  ;;  %v1165_v33 = vld [vmem:[%s5076_s20 + $0x20] sm:$0xff]  ;;  %v1166_v34 = vld [vmem:[%s5076_s20 + $0x28] sm:$0xff]  ;;  %v4502_v36 = vld [vmem:[%s4998_s26 + $0x74] ss:$8 sps:$4 sm:$0xff]  }
  0x2a   : > { %4099 = vmatprep.subr.bf16.mxu0 %v4475_v10  ;;  %v4061_v10 = vunpack.c.h.bf16 %v4085_v5  ;;  %v1168_v37 = vld [vmem:[%s5076_s20 + $0x38] sm:$0xff]  ;;  %v1167_v38 = vld [vmem:[%s5076_s20 + $0x30] sm:$0xff]  ;;  %v1170_v40 = vld [vmem:[%s5076_s20 + $0x48] sm:$0xff] }
  0x2b   : > { %v4504_v41 = vld [vmem:[%s4998_s26 + $0x70] ss:$8 sps:$4 sm:$0xff]   ;;  %v4505_v42 = vld [vmem:[%s4998_s26 + $0x84] ss:$8 sps:$4 sm:$0xff]   ;;  %v4507_v47 = vld [vmem:[%s4998_s26 + $0x80] ss:$8 sps:$4 sm:$0xff]  }
  0x2c   : > { %4406 = vrot.lane.b32.xlu0 %v4405_v45, %s4849_s29  ;;  %4411 = vrot.lane.b32.xlu1 %v4410_v48, %s4849_s29  ;;  %v1172_v43 = vld [vmem:[%s5076_s20 + $0x58] sm:$0xff]  ;;  %v1171_v44 = vld [vmem:[%s5076_s20 + $0x50] sm:$0xff] }
  0x2d   : > { %4100 = vmatpush3.bf16.msra.mxu0 %v4476_v12  ;;  %v4440_v12 = vpack.i.bf16 %v4057_v4, %v4056_v3  ;;  %v1173_v45 = vld [vmem:[%s5076_s20 + $0x60] sm:$0xff]  ;;  %v1174_v46 = vld [vmem:[%s5076_s20 + $0x68] sm:$0xff]  ;;  %v4508_v48 = vld [vmem:[%s4998_s26 + $0x94] ss:$8 sps:$4 sm:$0xff]  }
  0x2e   : > { %4101 = vmatprep.subr.bf16.mxu0 %v4477_v13  ;;  %v4064_v13 = vunpack.c.l.bf16 %v4086_v6  ;;  %v1176_v49 = vld [vmem:[%s5076_s20 + $0x78] sm:$0xff]  ;;  %v1175_v50 = vld [vmem:[%s5076_s20 + $0x70] sm:$0xff]  ;;  %v4511_v52 = vld [vmem:[%s4998_s26 + $0xa4] ss:$8 sps:$4 sm:$0xff]  }
  0x2f   : > { %v4510_v51 = vld [vmem:[%s4998_s26 + $0x90] ss:$8 sps:$4 sm:$0xff]   ;;  %v4517_v56 = vld [vmem:[%s4998_s26 + $0xc4] ss:$8 sps:$4 sm:$0xff]   ;;  %v4525_v61 = vld [vmem:[%s4998_s26 + $0xe0] ss:$8 sps:$4 sm:$0xff]  }
  0x30   : > { %4416 = vrot.lane.b32.xlu0 %v4415_v54, %s4849_s29  ;;  %4421 = vrot.lane.b32.xlu1 %v4420_v58, %s4849_s29  ;;  %v4514_v54 = vld [vmem:[%s4998_s26 + $0xb4] ss:$8 sps:$4 sm:$0xff]   ;;  %v4516_v55 = vld [vmem:[%s4998_s26 + $0xb0] ss:$8 sps:$4 sm:$0xff]  }
  0x31   : > { %4102 = vmatpush3.bf16.msra.mxu0 %v4478_v14  ;;  %v4065_v14 = vunpack.c.h.bf16 %v4086_v6  ;;  %v4520_v58 = vld [vmem:[%s4998_s26 + $0xd4] ss:$8 sps:$4 sm:$0xff]   ;;  %v4522_v59 = vld [vmem:[%s4998_s26 + $0xd0] ss:$8 sps:$4 sm:$0xff]   ;;  %v4523_v60 = vld [vmem:[%s4998_s26 + $0xe4] ss:$8 sps:$4 sm:$0xff]  }
  0x32   : > { %4103 = vmatprep.subr.bf16.mxu0 %v4479_v15  ;;  %v4087_v15 = vld [vmem:[%s5030_s28 + $0x70] sm:$0xff]   ;;  %v5136_v1 = vld [vmem:[%s6838_s2] ss:$0 sm:$0xff] }
  0x33   : > { %v4069_v19 = vunpack.c.h.bf16 %v4087_v15  ;;  %v4450_v20 = vpack.i.bf16 %v4065_v14, %v4064_v13  ;;  %v4526_v62 = vld [vmem:[%s4998_s26 + $0xf4] ss:$8 sps:$4 sm:$0xff]  }
  0x34   : > { %4426 = vrot.lane.b32.xlu0 %v4425_v63, %s4849_s29  ;;  %4431 = vrot.lane.b32.xlu1 %v4430_v2, %s4849_s29  ;;  %v4528_v63 = vld [vmem:[%s4998_s26 + $0xf0] ss:$8 sps:$4 sm:$0xff]  }
  0x35   : > { %4104 = vmatpush3.bf16.msra.mxu0 %v4480_v16  ;;  %v4088_v16 = vld [vmem:[%s5030_s28 + $0x78] sm:$0xff]   ;;  %s6935_s28 = smov 72  }
  0x36   : > { %v4072_v21 = vunpack.c.l.bf16 %v4088_v16  ;;  %v4073_v22 = vunpack.c.h.bf16 %v4088_v16 }
  0x38   : > { %809 = vmatmul.mubr.bf16.vlgmr.msra.gmra.mrb[0].mxu0 %v4481_v17  ;;  %4436 = vrot.lane.b32.xlu0 %v4435_v8, %s4849_s29  ;;  %v4445_v17 = vpack.i.bf16 %v4061_v10, %v4060_v9  ;;  %v4460_v26 = vpack.i.bf16 %v4073_v22, %v4072_v21 }
  0x39   : > { %816 = vmatprep.mubr.bf16.mxu0 %v4484_v18  ;;  %v4068_v18 = vunpack.c.l.bf16 %v4087_v15  ;;  %4441 = vrot.lane.b32.xlu1 %v4440_v12, %s4849_s29 }
  0x3b   : > { %v4455_v24 = vpack.i.bf16 %v4069_v19, %v4068_v18 }
  0x3c   : > { %4446 = vrot.lane.b32.xlu0 %v4445_v17, %s4849_s29 }
  0x3d   : > { %4451 = vrot.lane.b32.xlu1 %v4450_v20, %s4849_s29 }
  0x40   : > { %817 = vmatmul.mubr.bf16.gmra.mrb[4].mxu0 %v4486_v35  ;;  %4456 = vrot.lane.b32.xlu0 %v4455_v24, %s4849_s29  ;;  %v4501_v35 = vld [vmem:[%s4998_s26 + $0x60] ss:$8 sps:$4 sm:$0xff]  }
  0x41   : > { %824 = vmatprep.mubr.bf16.mxu0 %v4487_v39  ;;  %4461 = vrot.lane.b32.xlu1 %v4460_v26, %s4849_s29  ;;  %v1169_v39 = vld [vmem:[%s5076_s20 + $0x40] sm:$0xff]  ;;  %s4855_s29 = smov 24  }
  0x44   : > { %1225 = vrot.lane.b32.xlu0 %v1161_v27, %s6939_s27 }
  0x45   : > { %1227 = vrot.lane.b32.xlu1 %v1162_v28, %s6939_s27 }
  0x48   : > { %825 = vmatmul.mubr.bf16.gmra.mrb[8].mxu0 %v4489_v53  ;;  %1231 = vrot.lane.b32.xlu0 %v1164_v31, %s6939_s27  ;;  %v4513_v53 = vld [vmem:[%s4998_s26 + $0xa0] ss:$8 sps:$4 sm:$0xff]  }
  0x49   : > { %832 = vmatprep.mubr.bf16.mxu0 %v4490_v57  ;;  %1229 = vrot.lane.b32.xlu1 %v1163_v32, %s6939_s27  ;;  %v4519_v57 = vld [vmem:[%s4998_s26 + $0xc0] ss:$8 sps:$4 sm:$0xff]   ;;  %s4851_s26 = smov 112  }
  0x4c   : > { %1233 = vrot.lane.b32.xlu0 %v1165_v33, %s6939_s27 }
  0x4d   : > { %1235 = vrot.lane.b32.xlu1 %v1166_v34, %s6939_s27 }
  0x50   : > { %833 = vmatmul.mubr.bf16.gmra.mrb[12].mxu0 %v4492_v7  ;;  %1239 = vrot.lane.b32.xlu0 %v1168_v37, %s6939_s27 }
  0x51   : > { %840 = vmatprep.mubr.bf16.mxu0 %v4493_v11  ;;  %1237 = vrot.lane.b32.xlu1 %v1167_v38, %s6939_s27 }
  0x54   : > { %1241 = vrot.lane.b32.xlu0 %v1169_v39, %s6939_s27 }
  0x55   : > { %1243 = vrot.lane.b32.xlu1 %v1170_v40, %s6939_s27 }
  0x58   : > { %841 = vmatmul.mubr.bf16.gmra.mrb[16].mxu0 %v4495_v23  ;;  %1247 = vrot.lane.b32.xlu0 %v1172_v43, %s6939_s27 }
  0x59   : > { %848 = vmatprep.mubr.bf16.mxu0 %v4496_v25  ;;  %1245 = vrot.lane.b32.xlu1 %v1171_v44, %s6939_s27 }
  0x5c   : > { %1249 = vrot.lane.b32.xlu0 %v1173_v45, %s6939_s27 }
  0x5d   : > { %1251 = vrot.lane.b32.xlu1 %v1174_v46, %s6939_s27 }
  0x60   : > { %849 = vmatmul.mubr.bf16.gmra.mrb[20].mxu0 %v4498_v29  ;;  %1255 = vrot.lane.b32.xlu0 %v1176_v49, %s6939_s27 }
  0x61   : > { %856 = vmatprep.mubr.bf16.mxu0 %v4499_v30  ;;  %1253 = vrot.lane.b32.xlu1 %v1175_v50, %s6939_s27 }
  0x68   : > { %857 = vmatmul.mubr.bf16.gmra.mrb[24].mxu0 %v4501_v35 }
  0x69   : > { %864 = vmatprep.mubr.bf16.mxu0 %v4502_v36 }
  0x70   : > { %865 = vmatmul.mubr.bf16.gmra.mrb[28].mxu0 %v4504_v41 }
  0x71   : > { %872 = vmatprep.mubr.bf16.mxu0 %v4505_v42 }
  0x78   : > { %873 = vmatmul.mubr.bf16.gmra.mrb[32].mxu0 %v4507_v47 }
  0x79   : > { %880 = vmatprep.mubr.bf16.mxu0 %v4508_v48 }
  0x80   : > { %881 = vmatmul.mubr.bf16.gmra.mrb[36].mxu0 %v4510_v51 }
  0x81   : > { %888 = vmatprep.mubr.bf16.mxu0 %v4511_v52 }
  0x88   : > { %889 = vmatmul.mubr.bf16.gmra.mrb[40].mxu0 %v4513_v53 }
  0x89   : > { %896 = vmatprep.mubr.bf16.mxu0 %v4514_v54 }
  0x90   : > { %897 = vmatmul.mubr.bf16.gmra.mrb[44].mxu0 %v4516_v55 }
  0x91   : > { %904 = vmatprep.mubr.bf16.mxu0 %v4517_v56 }
  0x98   : > { %905 = vmatmul.mubr.bf16.gmra.mrb[48].mxu0 %v4519_v57 }
  0x99   : > { %912 = vmatprep.mubr.bf16.mxu0 %v4520_v58 }
  0xa0   : > { %913 = vmatmul.mubr.bf16.gmra.mrb[52].mxu0 %v4522_v59 }
  0xa1   : > { %920 = vmatprep.mubr.bf16.mxu0 %v4523_v60 }
  0xa8   : > { %921 = vmatmul.mubr.bf16.gmra.mrb[56].mxu0 %v4525_v61 }
  0xa9   : > { %928 = vmatprep.mubr.bf16.mxu0 %v4526_v62 }
  0xb0   : > { %929 = vmatmul.mubr.bf16.gmra.mrb[60].mxu0 %v4528_v63  ;;  %v5224_v63 = vpop.permute.xlu0 %4386 }
 0x10b   : > { %v4105_v0 = vpop.f32.mrb[0].mxu0 }
 0x10c   : > { %v4106_v2 = vpop.f32.mrb[1].mxu0 }
 0x10d   : > { %v4107_v3 = vadd.f32 %v4106_v2, %v4105_v0  ;;  %v4108_v4 = vpop.f32.mrb[2].mxu0 }
 0x10e   : > { %v4109_v5 = vpop.f32.mrb[3].mxu0 }
 0x10f   : > { %v5139_v6 = vadd.f32 %v4107_v3, %v5136_v1  ;;  %v4110_v7 = vadd.f32 %v4109_v5, %v4108_v4 }
 0x111   : > { %4529 = vtanh.f32 %v5139_v6  ;;  %v5143_v8 = vadd.f32 %v4110_v7, %v5136_v1 }
 0x113   : > { %v4111_v9 = vpop.f32.mrb[4].mxu0  ;;  %4531 = vtanh.f32 %v5143_v8 }
 0x114   : > { %v4112_v10 = vpop.f32.mrb[5].mxu0 }
 0x115   : > { %v4113_v11 = vadd.f32 %v4112_v10, %v4111_v9  ;;  %v4114_v12 = vpop.f32.mrb[6].mxu0  ;;  %v5237_v9 = vpop.permute.xlu0 %4396 }
 0x116   : > { %v4115_v13 = vpop.f32.mrb[7].mxu0 }
 0x117   : > { %v5147_v14 = vadd.f32 %v4113_v11, %v5136_v1  ;;  %v4116_v15 = vadd.f32 %v4115_v13, %v4114_v12  ;;  %v5242_v11 = vpop.permute.xlu1 %4391 }
 0x119   : > { %4533 = vtanh.f32 %v5147_v14  ;;  %v5151_v16 = vadd.f32 %v4116_v15, %v5136_v1 }
 0x11b   : > { %v5153_v17 = vpop.eup %4529  ;;  %v4117_v18 = vpop.f32.mrb[8].mxu0  ;;  %4535 = vtanh.f32 %v5151_v16 }
 0x11c   : > { %6945 = vst [vmem:[#allocation5_spill] sm:$0xff] %v5153_v17  ;;  %v4118_v19 = vpop.f32.mrb[9].mxu0  ;;  %1385 = vrot.lane.b32.xlu0 %v5153_v17, %s4851_s26 }
 0x11d   : > { %v4119_v20 = vadd.f32 %v4118_v19, %v4117_v18  ;;  %v4120_v21 = vpop.f32.mrb[10].mxu0  ;;  %v5158_v23 = vpop.eup %4531 }
 0x11e   : > { %v4121_v22 = vpop.f32.mrb[11].mxu0  ;;  %6946 = vst [vmem:[#allocation6_spill] sm:$0xff] %v5158_v23 }
 0x11f   : > { %v5161_v24 = vadd.f32 %v4119_v20, %v5136_v1  ;;  %v4122_v25 = vadd.f32 %v4121_v22, %v4120_v21  ;;  %v5255_v22 = vpop.permute.xlu0 %4406 }
 0x120   : > { %1387 = vrot.lane.b32.xlu0 %v5158_v23, %s4851_s26 }
 0x121   : > { %4537 = vtanh.f32 %v5161_v24  ;;  %v5167_v26 = vadd.f32 %v4122_v25, %v5136_v1 }
 0x123   : > { %v5169_v27 = vpop.eup %4533  ;;  %v4123_v28 = vpop.f32.mrb[12].mxu0  ;;  %4539 = vtanh.f32 %v5167_v26 }
 0x124   : > { %6947 = vst [vmem:[#allocation7_spill] sm:$0xff] %v5169_v27  ;;  %v4124_v29 = vpop.f32.mrb[13].mxu0  ;;  %1389 = vrot.lane.b32.xlu1 %v5169_v27, %s4851_s26 }
 0x125   : > { %v4125_v30 = vadd.f32 %v4124_v29, %v4123_v28  ;;  %v4126_v31 = vpop.f32.mrb[14].mxu0  ;;  %v5174_v33 = vpop.eup %4535 }
 0x126   : > { %v4127_v32 = vpop.f32.mrb[15].mxu0  ;;  %6948 = vst [vmem:[#allocation8_spill] sm:$0xff] %v5174_v33  ;;  %v5259_v28 = vpop.permute.xlu1 %4401 }
 0x127   : > { %v5177_v34 = vadd.f32 %v4125_v30, %v5136_v1  ;;  %v4128_v35 = vadd.f32 %v4127_v32, %v4126_v31 }
 0x128   : > { %1391 = vrot.lane.b32.xlu1 %v5174_v33, %s4851_s26 }
 0x129   : > { %4541 = vtanh.f32 %v5177_v34  ;;  %v5183_v36 = vadd.f32 %v4128_v35, %v5136_v1 }
 0x12b   : > { %v5185_v37 = vpop.eup %4537  ;;  %v4129_v38 = vpop.f32.mrb[16].mxu0  ;;  %4543 = vtanh.f32 %v5183_v36 }
 0x12c   : > { %6949 = vst [vmem:[#allocation9_spill] sm:$0xff] %v5185_v37  ;;  %v4130_v39 = vpop.f32.mrb[17].mxu0  ;;  %1393 = vrot.lane.b32.xlu0 %v5185_v37, %s4851_s26 }
 0x12d   : > { %v4131_v40 = vadd.f32 %v4130_v39, %v4129_v38  ;;  %v4132_v41 = vpop.f32.mrb[18].mxu0  ;;  %v5190_v42 = vpop.eup %4539 }
 0x12e   : > { %6950 = vst [vmem:[#allocation10_spill] sm:$0xff] %v5190_v42  ;;  %v4133_v43 = vpop.f32.mrb[19].mxu0  ;;  %1395 = vrot.lane.b32.xlu1 %v5190_v42, %s4851_s26 }
 0x12f   : > { %v5193_v44 = vadd.f32 %v4131_v40, %v5136_v1  ;;  %v4134_v45 = vadd.f32 %v4133_v43, %v4132_v41  ;;  %v5271_v41 = vpop.permute.xlu0 %4416  ;;  %v5273_v43 = vpop.permute.xlu1 %4411 }
 0x131   : > { %4545 = vtanh.f32 %v5193_v44  ;;  %v5199_v46 = vadd.f32 %v4134_v45, %v5136_v1 }
 0x133   : > { %v5201_v47 = vpop.eup %4541  ;;  %v4135_v48 = vpop.f32.mrb[20].mxu0  ;;  %4547 = vtanh.f32 %v5199_v46 }
 0x134   : > { %6951 = vst [vmem:[#allocation11_spill] sm:$0xff] %v5201_v47  ;;  %v4136_v49 = vpop.f32.mrb[21].mxu0  ;;  %1397 = vrot.lane.b32.xlu0 %v5201_v47, %s4851_s26 }
 0x135   : > { %v4137_v50 = vadd.f32 %v4136_v49, %v4135_v48  ;;  %v4138_v51 = vpop.f32.mrb[22].mxu0  ;;  %v5206_v52 = vpop.eup %4543 }
 0x136   : > { %6952 = vst [vmem:[#allocation12_spill] sm:$0xff] %v5206_v52  ;;  %v4139_v53 = vpop.f32.mrb[23].mxu0  ;;  %1399 = vrot.lane.b32.xlu1 %v5206_v52, %s4851_s26 }
 0x137   : > { %v5209_v54 = vadd.f32 %v4137_v50, %v5136_v1  ;;  %v4140_v55 = vadd.f32 %v4139_v53, %v4138_v51 }
 0x139   : > { %4549 = vtanh.f32 %v5209_v54  ;;  %v5215_v56 = vadd.f32 %v4140_v55, %v5136_v1 }
 0x13b   : > { %v5217_v57 = vpop.eup %4545  ;;  %v4141_v58 = vpop.f32.mrb[24].mxu0  ;;  %4551 = vtanh.f32 %v5215_v56 }
 0x13c   : > { %6953 = vst [vmem:[#allocation13_spill] sm:$0xff] %v5217_v57  ;;  %v4142_v59 = vpop.f32.mrb[25].mxu0  ;;  %1401 = vrot.lane.b32.xlu0 %v5217_v57, %s4851_s26 }
 0x13d   : > { %v4143_v60 = vadd.f32 %v4142_v59, %v4141_v58  ;;  %v4144_v61 = vpop.f32.mrb[26].mxu0  ;;  %v5222_v62 = vpop.eup %4547 }
 0x13e   : > { %6954 = vst [vmem:[#allocation14_spill] sm:$0xff] %v5222_v62  ;;  %v4145_v0 = vpop.f32.mrb[27].mxu0  ;;  %1403 = vrot.lane.b32.xlu1 %v5222_v62, %s4851_s26  ;;  %v5286_v58 = vpop.permute.xlu0 %4426 }
 0x13f   : > { %v5227_v2 = vadd.f32 %v4143_v60, %v5136_v1  ;;  %v4146_v3 = vadd.f32 %v4145_v0, %v4144_v61  ;;  %v5288_v60 = vpop.permute.xlu1 %4421 }
 0x141   : > { %4553 = vtanh.f32 %v5227_v2  ;;  %v5233_v4 = vadd.f32 %v4146_v3, %v5136_v1 }
 0x143   : > { %v5235_v5 = vpop.eup %4549  ;;  %v4147_v7 = vpop.f32.mrb[28].mxu0  ;;  %4555 = vtanh.f32 %v5233_v4 }
 0x144   : > { %6955 = vst [vmem:[#allocation15_spill] sm:$0xff] %v5235_v5  ;;  %v4148_v10 = vpop.f32.mrb[29].mxu0  ;;  %1405 = vrot.lane.b32.xlu0 %v5235_v5, %s4851_s26 }
 0x145   : > { %v4149_v12 = vadd.f32 %v4148_v10, %v4147_v7  ;;  %v4150_v13 = vpop.f32.mrb[30].mxu0  ;;  %v5244_v15 = vpop.eup %4551 }
 0x146   : > { %6956 = vst [vmem:[#allocation16_spill] sm:$0xff] %v5244_v15  ;;  %v4151_v18 = vpop.f32.mrb[31].mxu0  ;;  %1407 = vrot.lane.b32.xlu1 %v5244_v15, %s4851_s26 }
 0x147   : > { %v5247_v19 = vadd.f32 %v4149_v12, %v5136_v1  ;;  %v4152_v20 = vadd.f32 %v4151_v18, %v4150_v13  ;;  %v5301_v12 = vpop.permute.xlu0 %4436  ;;  %v5306_v18 = vpop.permute.xlu1 %4431 }
 0x149   : > { %4557 = vtanh.f32 %v5247_v19  ;;  %v5253_v21 = vadd.f32 %v4152_v20, %v5136_v1 }
 0x14b   : > { %v5257_v25 = vpop.eup %4553  ;;  %v4153_v29 = vpop.f32.mrb[32].mxu0  ;;  %4559 = vtanh.f32 %v5253_v21 }
 0x14c   : > { %6957 = vst [vmem:[#allocation17_spill] sm:$0xff] %v5257_v25  ;;  %v4154_v30 = vpop.f32.mrb[33].mxu0  ;;  %1409 = vrot.lane.b32.xlu0 %v5257_v25, %s4851_s26 }
 0x14d   : > { %v4155_v31 = vadd.f32 %v4154_v30, %v4153_v29  ;;  %v4156_v32 = vpop.f32.mrb[34].mxu0  ;;  %v5264_v35 = vpop.eup %4555 }
 0x14e   : > { %6958 = vst [vmem:[#allocation18_spill] sm:$0xff] %v5264_v35  ;;  %v4157_v38 = vpop.f32.mrb[35].mxu0  ;;  %1411 = vrot.lane.b32.xlu1 %v5264_v35, %s4851_s26 }
 0x14f   : > { %v5267_v39 = vadd.f32 %v4155_v31, %v5136_v1  ;;  %v4158_v40 = vadd.f32 %v4157_v38, %v4156_v32 }
 0x151   : > { %4561 = vtanh.f32 %v5267_v39  ;;  %v5277_v45 = vadd.f32 %v4158_v40, %v5136_v1 }
 0x153   : > { %v5279_v48 = vpop.eup %4557  ;;  %v4159_v49 = vpop.f32.mrb[36].mxu0  ;;  %4563 = vtanh.f32 %v5277_v45 }
 0x154   : > { %6959 = vst [vmem:[#allocation19_spill] sm:$0xff] %v5279_v48  ;;  %v4160_v50 = vpop.f32.mrb[37].mxu0  ;;  %1413 = vrot.lane.b32.xlu0 %v5279_v48, %s4851_s26 }
 0x155   : > { %v4161_v51 = vadd.f32 %v4160_v50, %v4159_v49  ;;  %v4162_v53 = vpop.f32.mrb[38].mxu0  ;;  %v5284_v55 = vpop.eup %4559 }
 0x156   : > { %6960 = vst [vmem:[#allocation20_spill] sm:$0xff] %v5284_v55  ;;  %v4163_v59 = vpop.f32.mrb[39].mxu0  ;;  %1415 = vrot.lane.b32.xlu1 %v5284_v55, %s4851_s26  ;;  %v5319_v49 = vpop.permute.xlu0 %4446 }
 0x157   : > { %v5291_v61 = vadd.f32 %v4161_v51, %v5136_v1  ;;  %v4164_v0 = vadd.f32 %v4163_v59, %v4162_v53  ;;  %v5323_v51 = vpop.permute.xlu1 %4441 }
 0x159   : > { %4565 = vtanh.f32 %v5291_v61  ;;  %v5297_v3 = vadd.f32 %v4164_v0, %v5136_v1 }
 0x15b   : > { %v5299_v7 = vpop.eup %4561  ;;  %v4165_v10 = vpop.f32.mrb[40].mxu0  ;;  %4567 = vtanh.f32 %v5297_v3 }
 0x15c   : > { %6961 = vst [vmem:[#allocation21_spill] sm:$0xff] %v5299_v7  ;;  %v4166_v13 = vpop.f32.mrb[41].mxu0  ;;  %1417 = vrot.lane.b32.xlu0 %v5299_v7, %s4851_s26 }
 0x15d   : > { %v4167_v20 = vadd.f32 %v4166_v13, %v4165_v10  ;;  %v4168_v29 = vpop.f32.mrb[42].mxu0  ;;  %v5308_v30 = vpop.eup %4563 }
 0x15e   : > { %6962 = vst [vmem:[#allocation22_spill] sm:$0xff] %v5308_v30  ;;  %v4169_v31 = vpop.f32.mrb[43].mxu0  ;;  %1419 = vrot.lane.b32.xlu1 %v5308_v30, %s4851_s26  ;;  %v5337_v30 = vpop.permute.xlu1 %4451 }
 0x15f   : > { %v5311_v32 = vadd.f32 %v4167_v20, %v5136_v1  ;;  %v4170_v38 = vadd.f32 %v4169_v31, %v4168_v29 }
 0x161   : > { %4569 = vtanh.f32 %v5311_v32  ;;  %v5317_v40 = vadd.f32 %v4170_v38, %v5136_v1  ;;  %v5335_v38 = vpop.permute.xlu0 %4456 }
 0x163   : > { %v5321_v50 = vpop.eup %4565  ;;  %v4171_v53 = vpop.f32.mrb[44].mxu0  ;;  %4571 = vtanh.f32 %v5317_v40 }
 0x164   : > { %6963 = vst [vmem:[#allocation23_spill] sm:$0xff] %v5321_v50  ;;  %v4172_v59 = vpop.f32.mrb[45].mxu0  ;;  %1421 = vrot.lane.b32.xlu0 %v5321_v50, %s4851_s26  ;;  %v3747_v50 = vmul.f32 -1.442695, %v5139_v6 }
 0x165   : > { %v4173_v0 = vadd.f32 %v4172_v59, %v4171_v53  ;;  %v4174_v10 = vpop.f32.mrb[46].mxu0  ;;  %v5328_v13 = vpop.eup %4567 }
 0x166   : > { %6964 = vst [vmem:[#allocation24_spill] sm:$0xff] %v5328_v13  ;;  %v4175_v20 = vpop.f32.mrb[47].mxu0  ;;  %1423 = vrot.lane.b32.xlu1 %v5328_v13, %s4851_s26  ;;  %v5351_v35 = vpop.permute.xlu0 %1225 }
 0x167   : > { %v5331_v29 = vadd.f32 %v4173_v0, %v5136_v1  ;;  %v4176_v31 = vadd.f32 %v4175_v20, %v4174_v10 }
 0x169   : > { %4573 = vtanh.f32 %v5331_v29  ;;  %v5341_v55 = vadd.f32 %v4176_v31, %v5136_v1  ;;  %v5353_v31 = vpop.permute.xlu1 %4461 }
 0x16b   : > { %v5343_v53 = vpop.eup %4569  ;;  %v4177_v59 = vpop.f32.mrb[48].mxu0  ;;  %4575 = vtanh.f32 %v5341_v55 }
 0x16c   : > { %6965 = vst [vmem:[#allocation25_spill] sm:$0xff] %v5343_v53  ;;  %v4178_v0 = vpop.f32.mrb[49].mxu0  ;;  %1425 = vrot.lane.b32.xlu0 %v5343_v53, %s4851_s26  ;;  %4577 = vpow2.f32 %v3747_v50  ;;  %v3748_v53 = vmul.f32 -1.442695, %v5143_v8 }
 0x16d   : > { %v4179_v10 = vadd.f32 %v4178_v0, %v4177_v59  ;;  %v4180_v20 = vpop.f32.mrb[50].mxu0  ;;  %v5349_v13 = vpop.eup %4571 }
 0x16e   : > { %6966 = vst [vmem:[#allocation26_spill] sm:$0xff] %v5349_v13  ;;  %v4181_v7 = vpop.f32.mrb[51].mxu0  ;;  %1427 = vrot.lane.b32.xlu1 %v5349_v13, %s4851_s26  ;;  %v5364_v59 = vpop.permute.xlu0 %1231 }
 0x16f   : > { %v5356_v15 = vadd.f32 %v4179_v10, %v5136_v1  ;;  %v4182_v48 = vadd.f32 %v4181_v7, %v4180_v20  ;;  %6967 = vst [vmem:[#allocation27_spill] sm:$0xff] %v5364_v59  ;;  %v3749_v10 = vmul.f32 -1.442695, %v5147_v14  ;;  %v5373_v50 = vpop.permute.xlu1 %1227  ;;  %v1177_v59 = vld [vmem:[%s5076_s20 + $0x80] sm:$0xff] }
 0x171   : > { %4579 = vtanh.f32 %v5356_v15  ;;  %v5362_v6 = vadd.f32 %v4182_v48, %v5136_v1 }
 0x172   : > { %v5377_v25 = vpop.permute.xlu0 %1233 }
 0x173   : > { %v5366_v0 = vpop.eup %4573  ;;  %v4183_v62 = vpop.f32.mrb[52].mxu0  ;;  %4581 = vtanh.f32 %v5362_v6  ;;  %6970 = vst [vmem:[#allocation30_spill] sm:$0xff] %v5377_v25  ;;  %v1178_v25 = vld [vmem:[%s5076_s20 + $0x88] sm:$0xff] }
 0x174   : > { %6968 = vst [vmem:[#allocation28_spill] sm:$0xff] %v5366_v0  ;;  %v4184_v7 = vpop.f32.mrb[53].mxu0  ;;  %1429 = vrot.lane.b32.xlu0 %v5366_v0, %s4851_s26  ;;  %4583 = vpow2.f32 %v3748_v53  ;;  %v5384_v5 = vpop.permute.xlu1 %1229  ;;  %v3750_v53 = vmul.f32 -1.442695, %v5151_v16  ;;  %v3751_v16 = vmul.f32 -1.442695, %v5161_v24 }
 0x175   : > { %v4185_v20 = vadd.f32 %v4184_v7, %v4183_v62  ;;  %v4186_v48 = vpop.f32.mrb[54].mxu0  ;;  %v5375_v13 = vpop.eup %4575  ;;  %4585 = vpow2.f32 %v3749_v10  ;;  %6971 = vst [vmem:[#allocation31_spill] sm:$0xff] %v5384_v5 }
 0x176   : > { %6969 = vst [vmem:[#allocation29_spill] sm:$0xff] %v5375_v13  ;;  %v4187_v52 = vpop.f32.mrb[55].mxu0  ;;  %1431 = vrot.lane.b32.xlu1 %v5375_v13, %s4851_s26  ;;  %v4578_v7 = vpop.eup %4577 }
 0x177   : > { %v5380_v8 = vadd.f32 %v4185_v20, %v5136_v1  ;;  %v4188_v14 = vadd.f32 %v4187_v52, %v4186_v48  ;;  %v5390_v0 = vpop.permute.xlu0 %1239  ;;  %v1033_v57 = vadd.f32 1.0, %v4578_v7 }
 0x178   : > { %6972 = vst [vmem:[#allocation32_spill] sm:$0xff] %v5390_v0  ;;  %v5398_v10 = vpop.permute.xlu1 %1235 }
 0x179   : > { %4587 = vtanh.f32 %v5380_v8  ;;  %v5388_v62 = vadd.f32 %v4188_v14, %v5136_v1 }
 0x17b   : > { %v5392_v42 = vpop.eup %4579  ;;  %v4189_v20 = vpop.f32.mrb[56].mxu0  ;;  %4589 = vtanh.f32 %v5388_v62 }
 0x17c   : > { %6973 = vst [vmem:[#allocation33_spill] sm:$0xff] %v5392_v42  ;;  %v4190_v52 = vpop.f32.mrb[57].mxu0  ;;  %1433 = vrot.lane.b32.xlu0 %v5392_v42, %s4851_s26  ;;  %v5402_v33 = vpop.permute.xlu0 %1241  ;;  %4591 = vpow2.f32 %v3750_v53  ;;  %v3752_v53 = vmul.f32 -1.442695, %v5167_v26 }
 0x17d   : > { %v4191_v48 = vadd.f32 %v4190_v52, %v4189_v20  ;;  %v4192_v13 = vpop.f32.mrb[58].mxu0  ;;  %v5400_v14 = vpop.eup %4581  ;;  %6975 = vst [vmem:[#allocation35_spill] sm:$0xff] %v5402_v33 }
 0x17e   : > { %6974 = vst [vmem:[#allocation34_spill] sm:$0xff] %v5400_v14  ;;  %v4193_v47 = vpop.f32.mrb[59].mxu0  ;;  %1435 = vrot.lane.b32.xlu1 %v5400_v14, %s4851_s26  ;;  %v4584_v42 = vpop.eup %4583 }
 0x17f   : > { %v5406_v23 = vadd.f32 %v4191_v48, %v5136_v1  ;;  %v4194_v37 = vadd.f32 %v4193_v47, %v4192_v13  ;;  %v5410_v27 = vpop.permute.xlu1 %1237  ;;  %v4586_v20 = vpop.eup %4585  ;;  %v1034_v13 = vadd.f32 1.0, %v4584_v42 }
 0x180   : > { %6976 = vst [vmem:[#allocation36_spill] sm:$0xff] %v5410_v27  ;;  %v5417_v24 = vpop.permute.xlu0 %1247  ;;  %v1035_v26 = vadd.f32 1.0, %v4586_v20  ;;  %v3754_v20 = vmul.f32 -1.442695, %v5183_v36 }
 0x181   : > { %4593 = vtanh.f32 %v5406_v23  ;;  %v5414_v7 = vadd.f32 %v4194_v37, %v5136_v1  ;;  %6977 = vst [vmem:[#allocation37_spill] sm:$0xff] %v5417_v24 }
 0x182   : > { %4595 = vrcp.f32 %v1033_v57 }
 0x183   : > { %v5419_v52 = vpop.eup %4587  ;;  %4597 = vpow2.f32 %v3751_v16  ;;  %v4195_v47 = vpop.f32.mrb[60].mxu0  ;;  %v3753_v16 = vmul.f32 -1.442695, %v5177_v34 }
 0x184   : > { %6978 = vst [vmem:[#allocation38_spill] sm:$0xff] %v5419_v52  ;;  %4599 = vtanh.f32 %v5414_v7  ;;  %1437 = vrot.lane.b32.xlu0 %v5419_v52, %s4851_s26  ;;  %v4196_v48 = vpop.f32.mrb[61].mxu0  ;;  %v5424_v14 = vpop.permute.xlu1 %1243 }
 0x185   : > { %6979 = vst [vmem:[#allocation39_spill] sm:$0xff] %v5424_v14  ;;  %v4197_v37 = vadd.f32 %v4196_v48, %v4195_v47  ;;  %v4198_v17 = vpop.f32.mrb[62].mxu0  ;;  %v5426_v57 = vpop.eup %4589  ;;  %4601 = vpow2.f32 %v3752_v53 }
 0x186   : > { %6980 = vst [vmem:[#allocation40_spill] sm:$0xff] %v5426_v57  ;;  %v5428_v24 = vpop.permute.xlu0 %1249  ;;  %v4199_v27 = vpop.f32.mrb[63].mxu0  ;;  %1439 = vrot.lane.b32.xlu1 %v5426_v57, %s4851_s26  ;;  %4603 = vrcp.f32 %v1034_v13  ;;  %v3755_v13 = vmul.f32 -1.442695, %v5193_v44 }
 0x187   : > { %6981 = vst [vmem:[#allocation41_spill] sm:$0xff] %v5428_v24  ;;  %v5432_v42 = vadd.f32 %v4197_v37, %v5136_v1  ;;  %v4200_v52 = vadd.f32 %v4199_v27, %v4198_v17  ;;  %v4592_v0 = vpop.eup %4591 }
 0x188   : > { %v5441_v53 = vpop.permute.xlu1 %1245  ;;  %v1036_v17 = vadd.f32 1.0, %v4592_v0 }
 0x189   : > { %4605 = vtanh.f32 %v5432_v42  ;;  %v5438_v47 = vadd.f32 %v4200_v52, %v5136_v1  ;;  %6982 = vst [vmem:[#allocation42_spill] sm:$0xff] %v5441_v53 }
 0x18a   : > { %4607 = vrcp.f32 %v1035_v26  ;;  %v5443_v34 = vpop.permute.xlu0 %1255 }
 0x18b   : > { %6983 = vst [vmem:[#allocation43_spill] sm:$0xff] %v5443_v34  ;;  %v5445_v48 = vpop.eup %4593  ;;  %4609 = vpow2.f32 %v3753_v16 }
 0x18c   : > { %6984 = vst [vmem:[#allocation44_spill] sm:$0xff] %v5445_v48  ;;  %v5447_v37 = vpop.eup %4595  ;;  %4611 = vtanh.f32 %v5438_v47  ;;  %1441 = vrot.lane.b32.xlu0 %v5445_v48, %s4851_s26  ;;  %v5454_v36 = vpop.permute.xlu1 %1251  ;;  %v3756_v48 = vmul.f32 -1.442695, %v5199_v46 }
 0x18d   : > { %6985 = vst [vmem:[#allocation45_spill] sm:$0xff] %v5447_v37  ;;  %v4598_v1 = vpop.eup %4597  ;;  %4613 = vpow2.f32 %v3754_v20  ;;  %6987 = vst [vmem:[#allocation47_spill] sm:$0xff] %v5454_v36 }
 0x18e   : > { %v5452_v27 = vpop.eup %4599  ;;  %v1386_v52 = vpop.permute.xlu0 %1385  ;;  %4615 = vrcp.f32 %v1036_v17  ;;  %v1037_v16 = vadd.f32 1.0, %v4598_v1 }
 0x18f   : > { %6986 = vst [vmem:[#allocation46_spill] sm:$0xff] %v5452_v27  ;;  %1443 = vrot.lane.b32.xlu1 %v5452_v27, %s4851_s26  ;;  %v1481_v26 = vmul.f32 %v5447_v37, %v1386_v52  ;;  %v4602_v0 = vpop.eup %4601  ;;  %4617 = vpow2.f32 %v3755_v13  ;;  %v3757_v52 = vmul.f32 -1.442695, %v5209_v54 }
 0x190   : > { %v5461_v57 = vpop.eup %4603  ;;  %v5464_v20 = vpop.permute.xlu1 %1253  ;;  %v1038_v44 = vadd.f32 1.0, %v4602_v0  ;;  %4619 = vrcp.f32 %v1037_v16  ;;  %v3758_v0 = vmul.f32 -1.442695, %v5215_v56 }
 0x191   : > { %1545 = vrot.lane.b32.xlu0 %v1481_v26, %s6939_s27  ;;  %6988 = vst [vmem:[#allocation48_spill] sm:$0xff] %v5461_v57  ;;  %6989 = vst [vmem:[#allocation49_spill] sm:$0xff] %v5464_v20  ;;  %4621 = vpow2.f32 %v3756_v48 }
 0x192   : > { %v1388_v34 = vpop.permute.xlu0 %1387  ;;  %4623 = vrcp.f32 %v1038_v44 }
 0x193   : > { %v5466_v53 = vpop.eup %4605  ;;  %v1482_v27 = vmul.f32 %v5461_v57, %v1388_v34  ;;  %4625 = vpow2.f32 %v3757_v52 }
 0x194   : > { %6990 = vst [vmem:[#allocation50_spill] sm:$0xff] %v5466_v53  ;;  %v5469_v24 = vpop.eup %4607 }
 0x195   : > { %v4610_v17 = vpop.eup %4609  ;;  %1547 = vrot.lane.b32.xlu1 %v1482_v27, %s6939_s27  ;;  %1445 = vrot.lane.b32.xlu0 %v5466_v53, %s4851_s26 }
 0x196   : > { %v5474_v1 = vpop.eup %4611  ;;  %v1390_v46 = vpop.permute.xlu1 %1389  ;;  %v1039_v34 = vadd.f32 1.0, %v4610_v17 }
 0x197   : > { %6991 = vst [vmem:[#allocation51_spill] sm:$0xff] %v5474_v1  ;;  %v1483_v13 = vmul.f32 %v5469_v24, %v1390_v46  ;;  %v4614_v26 = vpop.eup %4613  ;;  %v3759_v46 = vmul.f32 -1.442695, %v5227_v2 }
 0x198   : > { %v5481_v27 = vpop.eup %4615  ;;  %v1040_v53 = vadd.f32 1.0, %v4614_v26  ;;  %4627 = vrcp.f32 %v1039_v34  ;;  %v3760_v26 = vmul.f32 -1.442695, %v5233_v4 }
 0x199   : > { %1447 = vrot.lane.b32.xlu1 %v5474_v1, %s4851_s26  ;;  %1549 = vrot.lane.b32.xlu0 %v1483_v13, %s6939_s27  ;;  %v4618_v54 = vpop.eup %4617  ;;  %4629 = vpow2.f32 %v3758_v0  ;;  %s6288_s26 = scalar_lea.vmem [#allocation2], %s3684_s25  ;;  %s6537_s25 = scalar_lea.vmem %s6846_s10, %s5023_s12 }
 0x19a   : > { %v1392_v16 = vpop.permute.xlu1 %1391  ;;  %v5486_v44 = vpop.eup %4619  ;;  %4631 = vrcp.f32 %v1040_v53  ;;  %v1041_v56 = vadd.f32 1.0, %v4618_v54 }
 0x19b   : > { %v1484_v48 = vmul.f32 %v5481_v27, %v1392_v16  ;;  %6992 = vst [vmem:[#allocation52_spill] sm:$0xff] %v5486_v44  ;;  %v4622_v1 = vpop.eup %4621  ;;  %4633 = vpow2.f32 %v3759_v46 }
 0x19c   : > { %v5490_v20 = vpop.eup %4623  ;;  %v1042_v16 = vadd.f32 1.0, %v4622_v1  ;;  %4635 = vrcp.f32 %v1041_v56  ;;  %v3762_v1 = vmul.f32 -1.442695, %v5253_v21 }
 0x19d   : > { %1551 = vrot.lane.b32.xlu1 %v1484_v48, %s6939_s27  ;;  %6993 = vst [vmem:[#allocation53_spill] sm:$0xff] %v5490_v20  ;;  %v4626_v53 = vpop.eup %4625  ;;  %4637 = vpow2.f32 %v3760_v26  ;;  %v3761_v48 = vmul.f32 -1.442695, %v5247_v19 }
 0x19e   : > { %v1394_v17 = vpop.permute.xlu0 %1393  ;;  %4639 = vrcp.f32 %v1042_v16  ;;  %v3763_v16 = vmul.f32 -1.442695, %v5267_v39 }
 0x19f   : > { %v1485_v13 = vmul.f32 %v5486_v44, %v1394_v17  ;;  %4641 = vpow2.f32 %v3761_v48  ;;  %v3764_v48 = vmul.f32 -1.442695, %v5277_v45 }
 0x1a0   : > { %v1396_v52 = vpop.permute.xlu1 %1395 }
 0x1a1   : > { %1553 = vrot.lane.b32.xlu0 %v1485_v13, %s6939_s27  ;;  %v1486_v34 = vmul.f32 %v5490_v20, %v1396_v52  ;;  %v1043_v13 = vadd.f32 1.0, %v4626_v53 }
 0x1a2   : > { %v5496_v2 = vpop.eup %4627 }
 0x1a3   : > { %1555 = vrot.lane.b32.xlu1 %v1486_v34, %s6939_s27  ;;  %6994 = vst [vmem:[#allocation54_spill] sm:$0xff] %v5496_v2  ;;  %v4630_v17 = vpop.eup %4629  ;;  %4643 = vrcp.f32 %v1043_v13 }
 0x1a4   : > { %v5500_v4 = vpop.eup %4631  ;;  %v1044_v56 = vadd.f32 1.0, %v4630_v17  ;;  %4645 = vpow2.f32 %v3762_v1 }
 0x1a5   : > { %6995 = vst [vmem:[#allocation55_spill] sm:$0xff] %v5500_v4  ;;  %v4634_v26 = vpop.eup %4633 }
 0x1a6   : > { %v1398_v0 = vpop.permute.xlu0 %1397  ;;  %v5506_v19 = vpop.eup %4635  ;;  %4647 = vrcp.f32 %v1044_v56  ;;  %v3765_v56 = vmul.f32 -1.442695, %v5291_v61 }
 0x1a7   : > { %v1487_v54 = vmul.f32 %v5496_v2, %v1398_v0  ;;  %6996 = vst [vmem:[#allocation56_spill] sm:$0xff] %v5506_v19  ;;  %v4638_v0 = vpop.eup %4637  ;;  %4649 = vpow2.f32 %v3763_v16  ;;  %v3766_v16 = vmul.f32 -1.442695, %v5297_v3 }
 0x1a8   : > { %v1400_v52 = vpop.permute.xlu1 %1399  ;;  %v5510_v21 = vpop.eup %4639  ;;  %v1046_v13 = vadd.f32 1.0, %v4638_v0 }
 0x1a9   : > { %1557 = vrot.lane.b32.xlu0 %v1487_v54, %s6939_s27  ;;  %v1488_v46 = vmul.f32 %v5500_v4, %v1400_v52  ;;  %v1045_v54 = vadd.f32 1.0, %v4634_v26  ;;  %6997 = vst [vmem:[#allocation57_spill] sm:$0xff] %v5510_v21  ;;  %v4642_v1 = vpop.eup %4641 }
 0x1ab   : > { %1559 = vrot.lane.b32.xlu1 %v1488_v46, %s6939_s27  ;;  %4651 = vrcp.f32 %v1045_v54 }
 0x1ac   : > { %4653 = vpow2.f32 %v3764_v48 }
 0x1ad   : > { %v5516_v39 = vpop.eup %4643  ;;  %4655 = vrcp.f32 %v1046_v13  ;;  %v3767_v13 = vmul.f32 -1.442695, %v5311_v32 }
 0x1ae   : > { %v1402_v34 = vpop.permute.xlu0 %1401  ;;  %4657 = vpow2.f32 %v3765_v56  ;;  %v3768_v56 = vmul.f32 -1.442695, %v5317_v40 }
 0x1af   : > { %v1489_v53 = vmul.f32 %v5506_v19, %v1402_v34  ;;  %v4646_v34 = vpop.eup %4645 }
 0x1b0   : > { %v1404_v52 = vpop.permute.xlu1 %1403  ;;  %v5520_v45 = vpop.eup %4647  ;;  %v1048_v54 = vadd.f32 1.0, %v4646_v34 }
 0x1b1   : > { %1561 = vrot.lane.b32.xlu0 %v1489_v53, %s6939_s27  ;;  %v1490_v17 = vmul.f32 %v5510_v21, %v1404_v52  ;;  %v1047_v53 = vadd.f32 1.0, %v4642_v1  ;;  %v4650_v48 = vpop.eup %4649 }
 0x1b3   : > { %1563 = vrot.lane.b32.xlu1 %v1490_v17, %s6939_s27  ;;  %4659 = vrcp.f32 %v1047_v53 }
 0x1b4   : > { %4661 = vpow2.f32 %v3766_v16 }
 0x1b5   : > { %v5526_v61 = vpop.eup %4651  ;;  %4663 = vrcp.f32 %v1048_v54  ;;  %v3769_v54 = vmul.f32 -1.442695, %v5331_v29 }
 0x1b6   : > { %v1406_v46 = vpop.permute.xlu0 %1405  ;;  %4665 = vpow2.f32 %v3767_v13  ;;  %v3770_v13 = vmul.f32 -1.442695, %v5341_v55 }
 0x1b7   : > { %v1491_v26 = vmul.f32 %v5516_v39, %v1406_v46  ;;  %v4654_v46 = vpop.eup %4653 }
 0x1b8   : > { %v1408_v52 = vpop.permute.xlu1 %1407  ;;  %v5530_v3 = vpop.eup %4655  ;;  %v1050_v53 = vadd.f32 1.0, %v4654_v46 }
 0x1b9   : > { %1565 = vrot.lane.b32.xlu0 %v1491_v26, %s6939_s27  ;;  %v1492_v0 = vmul.f32 %v5520_v45, %v1408_v52  ;;  %v1049_v26 = vadd.f32 1.0, %v4650_v48  ;;  %6998 = vst [vmem:[#allocation58_spill] sm:$0xff] %v5530_v3  ;;  %v4658_v16 = vpop.eup %4657 }
 0x1bb   : > { %1567 = vrot.lane.b32.xlu1 %v1492_v0, %s6939_s27  ;;  %4667 = vrcp.f32 %v1049_v26 }
 0x1bc   : > { %4669 = vpow2.f32 %v3768_v56 }
 0x1bd   : > { %v5536_v32 = vpop.eup %4659  ;;  %4671 = vrcp.f32 %v1050_v53  ;;  %v3771_v53 = vmul.f32 -1.442695, %v5356_v15 }
 0x1be   : > { %v1410_v17 = vpop.permute.xlu0 %1409  ;;  %4673 = vpow2.f32 %v3769_v54  ;;  %v3772_v54 = vmul.f32 -1.442695, %v5362_v6 }
 0x1bf   : > { %v1493_v1 = vmul.f32 %v5526_v61, %v1410_v17  ;;  %v4662_v17 = vpop.eup %4661 }
 0x1c0   : > { %v1412_v52 = vpop.permute.xlu1 %1411  ;;  %v5540_v40 = vpop.eup %4663  ;;  %v1052_v26 = vadd.f32 1.0, %v4662_v17 }
 0x1c1   : > { %1569 = vrot.lane.b32.xlu0 %v1493_v1, %s6939_s27  ;;  %v1494_v34 = vmul.f32 %v5530_v3, %v1412_v52  ;;  %v1051_v1 = vadd.f32 1.0, %v4658_v16  ;;  %v4666_v56 = vpop.eup %4665 }
 0x1c3   : > { %1571 = vrot.lane.b32.xlu1 %v1494_v34, %s6939_s27  ;;  %4675 = vrcp.f32 %v1051_v1 }
 0x1c4   : > { %4677 = vpow2.f32 %v3770_v13 }
 0x1c5   : > { %v5546_v29 = vpop.eup %4667  ;;  %4679 = vrcp.f32 %v1052_v26 }
 0x1c6   : > { %v1414_v0 = vpop.permute.xlu0 %1413  ;;  %4681 = vpow2.f32 %v3771_v53  ;;  %v3774_v53 = vmul.f32 -1.442695, %v5388_v62 }
 0x1c7   : > { %v1495_v48 = vmul.f32 %v5536_v32, %v1414_v0  ;;  %v4670_v0 = vpop.eup %4669 }
 0x1c8   : > { %v1416_v52 = vpop.permute.xlu1 %1415  ;;  %v5550_v55 = vpop.eup %4671  ;;  %v1054_v1 = vadd.f32 1.0, %v4670_v0 }
 0x1c9   : > { %1573 = vrot.lane.b32.xlu0 %v1495_v48, %s6939_s27  ;;  %v1496_v46 = vmul.f32 %v5540_v40, %v1416_v52  ;;  %v1053_v48 = vadd.f32 1.0, %v4666_v56  ;;  %v4674_v13 = vpop.eup %4673 }
 0x1cb   : > { %1575 = vrot.lane.b32.xlu1 %v1496_v46, %s6939_s27  ;;  %4683 = vrcp.f32 %v1053_v48  ;;  %v3773_v46 = vmul.f32 -1.442695, %v5380_v8 }
 0x1cc   : > { %4685 = vpow2.f32 %v3772_v54 }
 0x1cd   : > { %v5556_v15 = vpop.eup %4675  ;;  %4687 = vrcp.f32 %v1054_v1  ;;  %v3775_v1 = vmul.f32 -1.442695, %v5406_v23 }
 0x1ce   : > { %v1418_v34 = vpop.permute.xlu0 %1417  ;;  %4689 = vpow2.f32 %v3773_v46 }
 0x1cf   : > { %v1497_v16 = vmul.f32 %v5546_v29, %v1418_v34  ;;  %v4678_v34 = vpop.eup %4677 }
 0x1d0   : > { %v1420_v52 = vpop.permute.xlu1 %1419  ;;  %v5560_v6 = vpop.eup %4679  ;;  %v1056_v48 = vadd.f32 1.0, %v4678_v34  ;;  %v3776_v34 = vmul.f32 -1.442695, %v5414_v7 }
 0x1d1   : > { %1577 = vrot.lane.b32.xlu0 %v1497_v16, %s6939_s27  ;;  %v1498_v17 = vmul.f32 %v5550_v55, %v1420_v52  ;;  %v1055_v16 = vadd.f32 1.0, %v4674_v13  ;;  %v4682_v8 = vpop.eup %4681 }
 0x1d2   : > { %v1057_v46 = vadd.f32 1.0, %v4682_v8 }
 0x1d3   : > { %1579 = vrot.lane.b32.xlu1 %v1498_v17, %s6939_s27  ;;  %4691 = vrcp.f32 %v1055_v16 }
 0x1d4   : > { %4693 = vpow2.f32 %v3774_v53 }
 0x1d5   : > { %v5566_v54 = vpop.eup %4683  ;;  %4695 = vrcp.f32 %v1056_v48 }
 0x1d6   : > { %v1422_v26 = vpop.permute.xlu0 %1421  ;;  %4697 = vpow2.f32 %v3775_v1 }
 0x1d7   : > { %v1499_v56 = vmul.f32 %v5556_v15, %v1422_v26  ;;  %v4686_v26 = vpop.eup %4685  ;;  %4699 = vrcp.f32 %v1057_v46  ;;  %v3778_v46 = vmul.f32 -1.442695, %v5438_v47 }
 0x1d8   : > { %v1424_v52 = vpop.permute.xlu1 %1423  ;;  %4701 = vpow2.f32 %v3776_v34 }
 0x1d9   : > { %1581 = vrot.lane.b32.xlu0 %v1499_v56, %s6939_s27  ;;  %v1500_v0 = vmul.f32 %v5560_v6, %v1424_v52  ;;  %v5570_v56 = vpop.eup %4687  ;;  %v1058_v52 = vadd.f32 1.0, %v4686_v26 }
 0x1da   : > { %6999 = vst [vmem:[#allocation59_spill] sm:$0xff] %v5570_v56  ;;  %v4690_v53 = vpop.eup %4689 }
 0x1db   : > { %1583 = vrot.lane.b32.xlu1 %v1500_v0, %s6939_s27  ;;  %4703 = vrcp.f32 %v1058_v52  ;;  %v1059_v48 = vadd.f32 1.0, %v4690_v53 }
 0x1dd   : > { %v5576_v23 = vpop.eup %4691  ;;  %4705 = vrcp.f32 %v1059_v48 }
 0x1de   : > { %v1426_v17 = vpop.permute.xlu0 %1425 }
 0x1df   : > { %v1501_v13 = vmul.f32 %v5566_v54, %v1426_v17  ;;  %v4694_v17 = vpop.eup %4693 }
 0x1e0   : > { %v1428_v62 = vpop.permute.xlu1 %1427  ;;  %v5580_v7 = vpop.eup %4695  ;;  %v1060_v26 = vadd.f32 1.0, %v4694_v17 }
 0x1e1   : > { %1585 = vrot.lane.b32.xlu0 %v1501_v13, %s6939_s27  ;;  %v1502_v16 = vmul.f32 %v5570_v56, %v1428_v62  ;;  %v3777_v13 = vmul.f32 -1.442695, %v5432_v42  ;;  %v4698_v34 = vpop.eup %4697 }
 0x1e3   : > { %1587 = vrot.lane.b32.xlu1 %v1502_v16, %s6939_s27  ;;  %4707 = vpow2.f32 %v3777_v13  ;;  %v5586_v16 = vpop.eup %4699 }
 0x1e4   : > { %7000 = vst [vmem:[#allocation60_spill] sm:$0xff] %v5586_v16  ;;  %4709 = vrcp.f32 %v1060_v26  ;;  %v4702_v53 = vpop.eup %4701 }
 0x1e5   : > { %4711 = vpow2.f32 %v3778_v46  ;;  %v1062_v47 = vadd.f32 1.0, %v4702_v53 }
 0x1e6   : > { %v1430_v0 = vpop.permute.xlu0 %1429 }
 0x1e7   : > { %v1503_v8 = vmul.f32 %v5576_v23, %v1430_v0  ;;  %v1061_v0 = vadd.f32 1.0, %v4698_v34 }
 0x1e8   : > { %v1432_v62 = vpop.permute.xlu1 %1431 }
 0x1e9   : > { %1589 = vrot.lane.b32.xlu0 %v1503_v8, %s6939_s27  ;;  %v1504_v1 = vmul.f32 %v5580_v7, %v1432_v62  ;;  %v5589_v8 = vpop.eup %4703  ;;  %4713 = vrcp.f32 %v1061_v0 }
 0x1ea   : > { %7001 = vst [vmem:[#allocation61_spill] sm:$0xff] %v5589_v8  ;;  %v5594_v17 = vpop.eup %4705  ;;  %4715 = vrcp.f32 %v1062_v47 }
 0x1eb   : > { %1591 = vrot.lane.b32.xlu1 %v1504_v1, %s6939_s27 }
 0x1ed   : > { %v4708_v13 = vpop.eup %4707 }
 0x1ee   : > { %v1434_v52 = vpop.permute.xlu0 %1433  ;;  %v5597_v34 = vpop.eup %4709  ;;  %v1063_v46 = vadd.f32 1.0, %v4708_v13  ;;  %v4389_v13 = vunpack.i.h.bf16 %v5224_v63 }
 0x1ef   : > { %v1505_v42 = vmul.f32 %v5586_v16, %v1434_v52 }
 0x1f0   : > { %v1436_v62 = vpop.permute.xlu1 %1435  ;;  %4717 = vrcp.f32 %v1063_v46  ;;  %v4388_v46 = vunpack.i.l.bf16 %v5224_v63 }
 0x1f1   : > { %1593 = vrot.lane.b32.xlu0 %v1505_v42, %s6939_s27  ;;  %v1506_v48 = vmul.f32 %v5589_v8, %v1436_v62  ;;  %v4712_v42 = vpop.eup %4711 }
 0x1f2   : > { %v1064_v53 = vadd.f32 1.0, %v4712_v42  ;;  %v1962_v42 = vld [vmem:[%s6842_s6] sm:$0xf]  ;;  %v1865_v63 = vmul.f32 %v5447_v37, %v4388_v46 }
 0x1f3   : > { %1595 = vrot.lane.b32.xlu1 %v1506_v48, %s6939_s27  ;;  %v5602_v0 = vpop.eup %4713  ;;  %4335 = vmatprep.subr.msk.bf16.mxu1 %vm2060_vm0, %v1962_v42 }
 0x1f4   : > { %v5605_v36 = vpop.eup %4715  ;;  %4719 = vrcp.f32 %v1064_v53  ;;  %v2062_v53 = vsel %vm2060_vm0, %v1962_v42, 0 }
 0x1f5   : > { %4236 = vmatpush3.bf16.msra.mxu1 %v2062_v53  ;;  %v4393_v53 = vunpack.i.l.bf16 %v5242_v11 }
 0x1f6   : > { %v1438_v1 = vpop.permute.xlu0 %1437 }
 0x1f7   : > { %v1507_v26 = vmul.f32 %v5594_v17, %v1438_v1 }
 0x1f8   : > { %v1440_v52 = vpop.permute.xlu1 %1439 }
 0x1f9   : > { %1597 = vrot.lane.b32.xlu0 %v1507_v26, %s6939_s27  ;;  %v1508_v62 = vmul.f32 %v5597_v34, %v1440_v52 }
 0x1fb   : > { %1599 = vrot.lane.b32.xlu1 %v1508_v62, %s6939_s27  ;;  %v1866_v62 = vmul.f32 %v5461_v57, %v4389_v13  ;;  %v4394_v13 = vunpack.i.h.bf16 %v5242_v11  ;;  %v1867_v11 = vmul.f32 %v5469_v24, %v4393_v53 }
 0x1fe   : > { %v1442_v48 = vpop.permute.xlu0 %1441 }
 0x1ff   : > { %v1509_v47 = vmul.f32 %v5602_v0, %v1442_v48  ;;  %v5620_v48 = vpop.eup %4717 }
 0x200   : > { %v5634_v42 = vpop.eup %4719 }
 0x201   : > { %v1444_v1 = vpop.permute.xlu1 %1443  ;;  %1601 = vrot.lane.b32.xlu0 %v1509_v47, %s6939_s27 }
 0x202   : > { %v1510_v26 = vmul.f32 %v5605_v36, %v1444_v1 }
 0x203   : > { %v5610_v52 = vpop.permute.xlu0 %1545 }
 0x204   : > { %1603 = vrot.lane.b32.xlu1 %v1510_v26, %s6939_s27  ;;  %v5631_v5 = vadd.f32 %v1865_v63, %v5610_v52 }
 0x206   : > { %7003 = vst [vmem:[#allocation63_spill] sm:$0xff] %v5631_v5 }
 0x207   : > { %v5622_v47 = vpop.permute.xlu1 %1547  ;;  %v1446_v1 = vpop.permute.xlu0 %1445 }
 0x208   : > { %v5626_v26 = vadd.f32 %v1866_v62, %v5622_v47  ;;  %v1511_v33 = vmul.f32 %v5620_v48, %v1446_v1  ;;  %v1868_v1 = vmul.f32 %v5481_v27, %v4394_v13 }
 0x20a   : > { %7002 = vst [vmem:[#allocation62_spill] sm:$0xff] %v5626_v26  ;;  %1605 = vrot.lane.b32.xlu0 %v1511_v33, %s6939_s27  ;;  %v1946_v62 = vpack.c.bf16 %v5626_v26, %v5631_v5  ;;  %v4399_v26 = vunpack.i.h.bf16 %v5237_v9 }
 0x20b   : > { %v1448_v14 = vpop.permute.xlu1 %1447  ;;  %v5643_v63 = vpop.permute.xlu0 %1549 }
 0x20c   : > { %v1512_v46 = vmul.f32 %v5634_v42, %v1448_v14  ;;  %7004 = vst [vmem:[#allocation64_spill] sm:$0xff] %v5643_v63 }
 0x20e   : > { %1607 = vrot.lane.b32.xlu1 %v1512_v46, %s6939_s27  ;;  %1979 = vrot.lane.b32.xlu0 %v1946_v62, %s4852_s30  ;;  %v4398_v46 = vunpack.i.l.bf16 %v5237_v9  ;;  %v5656_v62 = vadd.f32 %v1867_v11, %v5643_v63  ;;  %v4404_v11 = vunpack.i.h.bf16 %v5259_v28 }
 0x20f   : > { %v5645_v33 = vpop.permute.xlu1 %1551 }
 0x210   : > { %7005 = vst [vmem:[#allocation65_spill] sm:$0xff] %v5645_v33  ;;  %v5651_v14 = vadd.f32 %v1868_v1, %v5645_v33  ;;  %7007 = vst [vmem:[#allocation67_spill] sm:$0xff] %v5656_v62  ;;  %v1869_v53 = vmul.f32 %v5486_v44, %v4398_v46  ;;  %v1870_v1 = vmul.f32 %v5490_v20, %v4399_v26 }
 0x212   : > { %7006 = vst [vmem:[#allocation66_spill] sm:$0xff] %v5651_v14  ;;  %1259 = vrot.lane.b32.xlu1 %v1178_v25, %s6939_s27  ;;  %1257 = vrot.lane.b32.xlu0 %v1177_v59, %s6939_s27  ;;  %v1947_v13 = vpack.c.bf16 %v5651_v14, %v5656_v62  ;;  %v1179_v59 = vld [vmem:[%s5076_s20 + $0x90] sm:$0xff]  ;;  %v4403_v14 = vunpack.i.l.bf16 %v5259_v28 }
 0x213   : > { %v5662_v5 = vpop.permute.xlu0 %1553 }
 0x214   : > { %v5670_v9 = vadd.f32 %v1869_v53, %v5662_v5  ;;  %v1871_v53 = vmul.f32 %v5496_v2, %v4403_v14 }
 0x215   : > { %v5666_v33 = vpop.permute.xlu1 %1555 }
 0x216   : > { %1981 = vrot.lane.b32.xlu1 %v1947_v13, %s4852_s30  ;;  %7008 = vst [vmem:[#allocation68_spill] sm:$0xff] %v5670_v9  ;;  %v5673_v25 = vadd.f32 %v1870_v1, %v5666_v33  ;;  %v1180_v13 = vld [vmem:[%s5076_s20 + $0x98] sm:$0xff]  ;;  %v1872_v1 = vmul.f32 %v5500_v4, %v4404_v11 }
 0x218   : > { %7009 = vst [vmem:[#allocation69_spill] sm:$0xff] %v5673_v25  ;;  %v1948_v46 = vpack.c.bf16 %v5673_v25, %v5670_v9  ;;  %v1182_v25 = vld [vmem:[%s5076_s20 + $0xa8] sm:$0xff] }
 0x21a   : > { %1261 = vrot.lane.b32.xlu1 %v1179_v59, %s6939_s27  ;;  %1983 = vrot.lane.b32.xlu0 %v1948_v46, %s4852_s30  ;;  %v4409_v59 = vunpack.i.h.bf16 %v5255_v22  ;;  %v4408_v46 = vunpack.i.l.bf16 %v5255_v22 }
 0x21b   : > { %v5682_v26 = vpop.permute.xlu0 %1557 }
 0x21c   : > { %7010 = vst [vmem:[#allocation70_spill] sm:$0xff] %v5682_v26  ;;  %v5690_v63 = vadd.f32 %v1871_v53, %v5682_v26  ;;  %v1873_v53 = vmul.f32 %v5506_v19, %v4408_v46 }
 0x21d   : > { %v5687_v62 = vpop.permute.xlu1 %1559 }
 0x21e   : > { %7011 = vst [vmem:[#allocation71_spill] sm:$0xff] %v5690_v63  ;;  %v5693_v28 = vadd.f32 %v1872_v1, %v5687_v62  ;;  %1263 = vrot.lane.b32.xlu0 %v1180_v13, %s6939_s27  ;;  %v1874_v1 = vmul.f32 %v5510_v21, %v4409_v59 }
 0x220   : > { %7012 = vst [vmem:[#allocation72_spill] sm:$0xff] %v5693_v28  ;;  %v1949_v14 = vpack.c.bf16 %v5693_v28, %v5690_v63  ;;  %v4414_v28 = vunpack.i.h.bf16 %v5273_v43  ;;  %v1181_v63 = vld [vmem:[%s5076_s20 + $0xa0] sm:$0xff] }
 0x222   : > { %1985 = vrot.lane.b32.xlu1 %v1949_v14, %s4852_s30  ;;  %v4413_v14 = vunpack.i.l.bf16 %v5273_v43 }
 0x223   : > { %v5701_v11 = vpop.permute.xlu0 %1561 }
 0x224   : > { %v5709_v13 = vadd.f32 %v1873_v53, %v5701_v11  ;;  %v1875_v53 = vmul.f32 %v5516_v39, %v4413_v14 }
 0x225   : > { %v5706_v9 = vpop.permute.xlu1 %1563 }
 0x226   : > { %7013 = vst [vmem:[#allocation73_spill] sm:$0xff] %v5709_v13  ;;  %v5712_v22 = vadd.f32 %v1874_v1, %v5706_v9  ;;  %1267 = vrot.lane.b32.xlu1 %v1182_v25, %s6939_s27  ;;  %v1876_v1 = vmul.f32 %v5520_v45, %v4414_v28 }
 0x228   : > { %7014 = vst [vmem:[#allocation74_spill] sm:$0xff] %v5712_v22  ;;  %v1950_v46 = vpack.c.bf16 %v5712_v22, %v5709_v13  ;;  %v4419_v22 = vunpack.i.h.bf16 %v5271_v41  ;;  %v1183_v13 = vld [vmem:[%s5076_s20 + $0xb0] sm:$0xff] }
 0x22a   : > { %1987 = vrot.lane.b32.xlu0 %v1950_v46, %s4852_s30  ;;  %v4418_v46 = vunpack.i.l.bf16 %v5271_v41 }
 0x22b   : > { %v5720_v59 = vpop.permute.xlu0 %1565 }
 0x22c   : > { %7015 = vst [vmem:[#allocation75_spill] sm:$0xff] %v5720_v59  ;;  %v5728_v25 = vadd.f32 %v1875_v53, %v5720_v59  ;;  %v1877_v53 = vmul.f32 %v5526_v61, %v4418_v46 }
 0x22d   : > { %v5725_v26 = vpop.permute.xlu1 %1567 }
 0x22e   : > { %7016 = vst [vmem:[#allocation76_spill] sm:$0xff] %v5728_v25  ;;  %v5731_v43 = vadd.f32 %v1876_v1, %v5725_v26  ;;  %1265 = vrot.lane.b32.xlu0 %v1181_v63, %s6939_s27  ;;  %v1878_v1 = vmul.f32 %v5530_v3, %v4419_v22 }
 0x230   : > { %7017 = vst [vmem:[#allocation77_spill] sm:$0xff] %v5731_v43  ;;  %v1951_v14 = vpack.c.bf16 %v5731_v43, %v5728_v25  ;;  %v4424_v43 = vunpack.i.h.bf16 %v5288_v60  ;;  %v1184_v25 = vld [vmem:[%s5076_s20 + $0xb8] sm:$0xff] }
 0x232   : > { %1989 = vrot.lane.b32.xlu1 %v1951_v14, %s4852_s30  ;;  %v4423_v14 = vunpack.i.l.bf16 %v5288_v60 }
 0x233   : > { %v5739_v28 = vpop.permute.xlu0 %1569 }
 0x234   : > { %7018 = vst [vmem:[#allocation78_spill] sm:$0xff] %v5739_v28  ;;  %v5747_v63 = vadd.f32 %v1877_v53, %v5739_v28  ;;  %v1879_v53 = vmul.f32 %v5536_v32, %v4423_v14 }
 0x235   : > { %v5744_v59 = vpop.permute.xlu1 %1571 }
 0x236   : > { %7019 = vst [vmem:[#allocation79_spill] sm:$0xff] %v5747_v63  ;;  %v5750_v41 = vadd.f32 %v1878_v1, %v5744_v59  ;;  %1269 = vrot.lane.b32.xlu1 %v1183_v13, %s6939_s27  ;;  %v1880_v1 = vmul.f32 %v5540_v40, %v4424_v43 }
 0x238   : > { %7020 = vst [vmem:[#allocation80_spill] sm:$0xff] %v5750_v41  ;;  %v1952_v46 = vpack.c.bf16 %v5750_v41, %v5747_v63  ;;  %v4429_v41 = vunpack.i.h.bf16 %v5286_v58  ;;  %v1186_v63 = vld [vmem:[%s5076_s20 + $0xc8] sm:$0xff] }
 0x23a   : > { %1991 = vrot.lane.b32.xlu0 %v1952_v46, %s4852_s30  ;;  %v4428_v46 = vunpack.i.l.bf16 %v5286_v58 }
 0x23b   : > { %v5758_v22 = vpop.permute.xlu0 %1573 }
 0x23c   : > { %7021 = vst [vmem:[#allocation81_spill] sm:$0xff] %v5758_v22  ;;  %v5766_v13 = vadd.f32 %v1879_v53, %v5758_v22  ;;  %v1881_v53 = vmul.f32 %v5546_v29, %v4428_v46 }
 0x23d   : > { %v5763_v28 = vpop.permute.xlu1 %1575 }
 0x23e   : > { %7022 = vst [vmem:[#allocation82_spill] sm:$0xff] %v5763_v28  ;;  %7023 = vst [vmem:[#allocation83_spill] sm:$0xff] %v5766_v13  ;;  %v5769_v60 = vadd.f32 %v1880_v1, %v5763_v28  ;;  %1271 = vrot.lane.b32.xlu0 %v1184_v25, %s6939_s27  ;;  %v1882_v1 = vmul.f32 %v5550_v55, %v4429_v41 }
 0x240   : > { %7024 = vst [vmem:[#allocation84_spill] sm:$0xff] %v5769_v60  ;;  %v1953_v14 = vpack.c.bf16 %v5769_v60, %v5766_v13  ;;  %v4434_v60 = vunpack.i.h.bf16 %v5306_v18  ;;  %v1185_v13 = vld [vmem:[%s5076_s20 + $0xc0] sm:$0xff] }
 0x242   : > { %1993 = vrot.lane.b32.xlu1 %v1953_v14, %s4852_s30  ;;  %v4433_v14 = vunpack.i.l.bf16 %v5306_v18 }
 0x243   : > { %v5777_v43 = vpop.permute.xlu0 %1577 }
 0x244   : > { %v5785_v25 = vadd.f32 %v1881_v53, %v5777_v43  ;;  %v1883_v53 = vmul.f32 %v5556_v15, %v4433_v14 }
 0x245   : > { %v5782_v22 = vpop.permute.xlu1 %1579 }
 0x246   : > { %7025 = vst [vmem:[#allocation85_spill] sm:$0xff] %v5785_v25  ;;  %v5788_v58 = vadd.f32 %v1882_v1, %v5782_v22  ;;  %1275 = vrot.lane.b32.xlu1 %v1186_v63, %s6939_s27  ;;  %v1884_v1 = vmul.f32 %v5560_v6, %v4434_v60 }
 0x248   : > { %7026 = vst [vmem:[#allocation86_spill] sm:$0xff] %v5788_v58  ;;  %v1954_v46 = vpack.c.bf16 %v5788_v58, %v5785_v25  ;;  %v4439_v58 = vunpack.i.h.bf16 %v5301_v12  ;;  %v1187_v25 = vld [vmem:[%s5076_s20 + $0xd0] sm:$0xff] }
 0x24a   : > { %1995 = vrot.lane.b32.xlu0 %v1954_v46, %s4852_s30  ;;  %v4438_v46 = vunpack.i.l.bf16 %v5301_v12 }
 0x24b   : > { %v5796_v41 = vpop.permute.xlu0 %1581 }
 0x24c   : > { %7027 = vst [vmem:[#allocation87_spill] sm:$0xff] %v5796_v41  ;;  %v5804_v63 = vadd.f32 %v1883_v53, %v5796_v41  ;;  %v1885_v53 = vmul.f32 %v5566_v54, %v4438_v46 }
 0x24d   : > { %v5801_v28 = vpop.permute.xlu1 %1583 }
 0x24e   : > { %7028 = vst [vmem:[#allocation88_spill] sm:$0xff] %v5804_v63  ;;  %v5807_v18 = vadd.f32 %v1884_v1, %v5801_v28  ;;  %1273 = vrot.lane.b32.xlu0 %v1185_v13, %s6939_s27  ;;  %v1886_v1 = vmul.f32 %v5570_v56, %v4439_v58 }
 0x250   : > { %7029 = vst [vmem:[#allocation89_spill] sm:$0xff] %v5807_v18  ;;  %v1955_v14 = vpack.c.bf16 %v5807_v18, %v5804_v63  ;;  %v4444_v18 = vunpack.i.h.bf16 %v5323_v51  ;;  %v1188_v63 = vld [vmem:[%s5076_s20 + $0xd8] sm:$0xff] }
 0x252   : > { %1997 = vrot.lane.b32.xlu1 %v1955_v14, %s4852_s30  ;;  %v4443_v14 = vunpack.i.l.bf16 %v5323_v51 }
 0x253   : > { %v5815_v60 = vpop.permute.xlu0 %1585 }
 0x254   : > { %7030 = vst [vmem:[#allocation90_spill] sm:$0xff] %v5815_v60  ;;  %v5823_v13 = vadd.f32 %v1885_v53, %v5815_v60  ;;  %v1887_v53 = vmul.f32 %v5576_v23, %v4443_v14 }
 0x255   : > { %v5820_v41 = vpop.permute.xlu1 %1587 }
 0x256   : > { %7031 = vst [vmem:[#allocation91_spill] sm:$0xff] %v5823_v13  ;;  %v5826_v12 = vadd.f32 %v1886_v1, %v5820_v41  ;;  %1277 = vrot.lane.b32.xlu1 %v1187_v25, %s6939_s27  ;;  %v1888_v1 = vmul.f32 %v5580_v7, %v4444_v18 }
 0x258   : > { %7032 = vst [vmem:[#allocation92_spill] sm:$0xff] %v5826_v12  ;;  %v1956_v46 = vpack.c.bf16 %v5826_v12, %v5823_v13  ;;  %v4449_v12 = vunpack.i.h.bf16 %v5319_v49  ;;  %v1190_v13 = vld [vmem:[%s5076_s20 + $0xe8] sm:$0xff] }
 0x25a   : > { %1999 = vrot.lane.b32.xlu0 %v1956_v46, %s4852_s30  ;;  %v4448_v46 = vunpack.i.l.bf16 %v5319_v49 }
 0x25b   : > { %v5834_v58 = vpop.permute.xlu0 %1589 }
 0x25c   : > { %v5842_v25 = vadd.f32 %v1887_v53, %v5834_v58  ;;  %v1889_v53 = vmul.f32 %v5586_v16, %v4448_v46 }
 0x25d   : > { %v5839_v60 = vpop.permute.xlu1 %1591 }
 0x25e   : > { %7033 = vst [vmem:[#allocation93_spill] sm:$0xff] %v5839_v60  ;;  %7034 = vst [vmem:[#allocation94_spill] sm:$0xff] %v5842_v25  ;;  %v5845_v51 = vadd.f32 %v1888_v1, %v5839_v60  ;;  %1279 = vrot.lane.b32.xlu0 %v1188_v63, %s6939_s27  ;;  %v1890_v1 = vmul.f32 %v5589_v8, %v4449_v12 }
 0x260   : > { %7035 = vst [vmem:[#allocation95_spill] sm:$0xff] %v5845_v51  ;;  %v1957_v14 = vpack.c.bf16 %v5845_v51, %v5842_v25  ;;  %v4454_v51 = vunpack.i.h.bf16 %v5337_v30  ;;  %v1189_v25 = vld [vmem:[%s5076_s20 + $0xe0] sm:$0xff] }
 0x262   : > { %2001 = vrot.lane.b32.xlu1 %v1957_v14, %s4852_s30  ;;  %v4453_v14 = vunpack.i.l.bf16 %v5337_v30 }
 0x263   : > { %v5853_v18 = vpop.permute.xlu0 %1593 }
 0x264   : > { %7036 = vst [vmem:[#allocation96_spill] sm:$0xff] %v5853_v18  ;;  %v5861_v63 = vadd.f32 %v1889_v53, %v5853_v18  ;;  %v1891_v53 = vmul.f32 %v5594_v17, %v4453_v14  ;;  %v1191_v14 = vld [vmem:[%s5076_s20 + $0xf0] sm:$0xff] }
 0x265   : > { %v5858_v60 = vpop.permute.xlu1 %1595 }
 0x266   : > { %7037 = vst [vmem:[#allocation97_spill] sm:$0xff] %v5861_v63  ;;  %v5864_v49 = vadd.f32 %v1890_v1, %v5858_v60  ;;  %1283 = vrot.lane.b32.xlu1 %v1190_v13, %s6939_s27  ;;  %v1892_v1 = vmul.f32 %v5597_v34, %v4454_v51 }
 0x268   : > { %7038 = vst [vmem:[#allocation98_spill] sm:$0xff] %v5864_v49  ;;  %v1958_v46 = vpack.c.bf16 %v5864_v49, %v5861_v63  ;;  %v4459_v49 = vunpack.i.h.bf16 %v5335_v38 }
 0x26a   : > { %2003 = vrot.lane.b32.xlu0 %v1958_v46, %s4852_s30  ;;  %v4458_v46 = vunpack.i.l.bf16 %v5335_v38 }
 0x26b   : > { %v5872_v12 = vpop.permute.xlu0 %1597 }
 0x26c   : > { %v5880_v13 = vadd.f32 %v1891_v53, %v5872_v12  ;;  %v1893_v53 = vmul.f32 %v5602_v0, %v4458_v46  ;;  %v4463_v46 = vunpack.i.l.bf16 %v5353_v31 }
 0x26d   : > { %v5877_v18 = vpop.permute.xlu1 %1599 }
 0x26e   : > { %7039 = vst [vmem:[#allocation99_spill] sm:$0xff] %v5877_v18  ;;  %7040 = vst [vmem:[#allocation100_spill] sm:$0xff] %v5880_v13  ;;  %v5883_v30 = vadd.f32 %v1892_v1, %v5877_v18  ;;  %1281 = vrot.lane.b32.xlu0 %v1189_v25, %s6939_s27  ;;  %v1894_v1 = vmul.f32 %v5605_v36, %v4459_v49  ;;  %v1945_v25 = vld [vmem:[%s6841_s5] sm:$0xf]  ;;  %v4464_v49 = vunpack.i.h.bf16 %v5353_v31 }
 0x26f   : > { %4336 = vmatprep.subr.msk.bf16.mxu1 %vm2060_vm0, %v1945_v25 }
 0x270   : > { %7041 = vst [vmem:[#allocation101_spill] sm:$0xff] %v5883_v30  ;;  %v1959_v63 = vpack.c.bf16 %v5883_v30, %v5880_v13  ;;  %v1322_v13 = vmul.f32 %v5461_v57, %v5373_v50  ;;  %v1895_v50 = vmul.f32 %v5620_v48, %v4463_v46  ;;  %v7045_v57 = vld [vmem:[#allocation27_spill] sm:$0xff] }
 0x272   : > { %2005 = vrot.lane.b32.xlu1 %v1959_v63, %s4852_s30 }
 0x273   : > { %v5891_v51 = vpop.permute.xlu0 %1601 }
 0x274   : > { %7042 = vst [vmem:[#allocation102_spill] sm:$0xff] %v5891_v51  ;;  %v5902_v38 = vadd.f32 %v1893_v53, %v5891_v51  ;;  %v5922_v51 = vadd.f32 %v5622_v47, %v1322_v13 }
 0x276   : > { %v5896_v18 = vpop.permute.xlu1 %1603  ;;  %7043 = vst [vmem:[#allocation103_spill] sm:$0xff] %v5902_v38  ;;  %1285 = vrot.lane.b32.xlu1 %v1191_v14, %s6939_s27  ;;  %v1321_v14 = vmul.f32 %v5447_v37, %v5351_v35  ;;  %v7046_v35 = vld [vmem:[#allocation30_spill] sm:$0xff] }
 0x277   : > { %v5905_v30 = vadd.f32 %v1894_v1, %v5896_v18  ;;  %v1192_v1 = vld [vmem:[%s5076_s20 + $0xf8] sm:$0xff]  ;;  %v1325_v47 = vmul.f32 %v5486_v44, %v7046_v35  ;;  %s4853_s20 = smov 120  }
 0x278   : > { %v5927_v31 = vadd.f32 %v5610_v52, %v1321_v14  ;;  %v7048_v14 = vld [vmem:[#allocation31_spill] sm:$0xff] }
 0x279   : > { %7044 = vst [vmem:[#allocation104_spill] sm:$0xff] %v5905_v30  ;;  %v1960_v63 = vpack.c.bf16 %v5905_v30, %v5902_v38  ;;  %v1326_v30 = vmul.f32 %v5490_v20, %v5398_v10  ;;  %v1324_v38 = vmul.f32 %v5481_v27, %v7045_v57  ;;  %v7047_v57 = vld [vmem:[#allocation39_spill] sm:$0xff]  ;;  %v1323_v35 = vmul.f32 %v5469_v24, %v7048_v14  ;;  %v7049_v20 = vld [vmem:[#allocation65_spill] sm:$0xff]  ;;  %v7051_v14 = vld [vmem:[#allocation32_spill] sm:$0xff] }
 0x27a   : > { %v1929_v10 = vpack.c.bf16 %v5922_v51, %v5927_v31 }
 0x27b   : > { %2007 = vrot.lane.b32.xlu0 %v1960_v63, %s4852_s30  ;;  %v1896_v63 = vmul.f32 %v5634_v42, %v4464_v49  ;;  %v5941_v52 = vadd.f32 %v5666_v33, %v1326_v30  ;;  %v5955_v44 = vadd.f32 %v7049_v20, %v1324_v38  ;;  %v5958_v33 = vadd.f32 %v5662_v5, %v1325_v47  ;;  %v7052_v38 = vld [vmem:[#allocation64_spill] sm:$0xff] }
 0x27c   : > { %v5916_v53 = vpop.permute.xlu0 %1605  ;;  %v1328_v20 = vmul.f32 %v5500_v4, %v7051_v14  ;;  %v7053_v47 = vld [vmem:[#allocation36_spill] sm:$0xff]  ;;  %v7056_v4 = vld [vmem:[#allocation41_spill] sm:$0xff] }
 0x27d   : > { %v5944_v46 = vadd.f32 %v1895_v50, %v5916_v53  ;;  %v7050_v50 = vld [vmem:[#allocation35_spill] sm:$0xff]  ;;  %v1931_v5 = vpack.c.bf16 %v5941_v52, %v5958_v33 }
 0x27f   : > { %1287 = vrot.lane.b32.xlu0 %v1192_v1, %s6939_s27  ;;  %v1330_v1 = vmul.f32 %v5510_v21, %v7047_v57  ;;  %v5971_v21 = vadd.f32 %v7052_v38, %v1323_v35  ;;  %v5986_v35 = vadd.f32 %v5687_v62, %v1328_v20  ;;  %v7055_v38 = vld [vmem:[#allocation37_spill] sm:$0xff] }
 0x280   : > { %v5936_v13 = vpop.permute.xlu1 %1607  ;;  %v1980_v37 = vpop.permute.xlu0 %1979 }
 0x281   : > { %v5947_v49 = vadd.f32 %v1896_v63, %v5936_v13  ;;  %4237 = vmatprep.mubr.msk.bf16.mxu1 %vm2011_vm1, %v1980_v37  ;;  %v1329_v37 = vmul.f32 %v5506_v19, %v7050_v50  ;;  %v5966_v63 = vadd.f32 %v5706_v9, %v1330_v1  ;;  %v7054_v1 = vld [vmem:[#allocation47_spill] sm:$0xff]  ;;  %v1930_v14 = vpack.c.bf16 %v5955_v44, %v5971_v21 }
 0x282   : > { %v1334_v19 = vmul.f32 %v5530_v3, %v7054_v1 }
 0x283   : > { %v1961_v30 = vpack.c.bf16 %v5947_v49, %v5944_v46  ;;  %2241 = vrot.lane.b32.xlu0 %v1929_v10, %s4853_s20  ;;  %v1327_v10 = vmul.f32 %v5496_v2, %v7053_v47  ;;  %v5979_v50 = vadd.f32 %v5701_v11, %v1329_v37  ;;  %v1332_v47 = vmul.f32 %v5520_v45, %v7055_v38  ;;  %v7057_v37 = vld [vmem:[#allocation70_spill] sm:$0xff] }
 0x284   : > { %v1260_v57 = vpop.permute.xlu1 %1259  ;;  %v1258_v9 = vpop.permute.xlu0 %1257  ;;  %v1333_v11 = vmul.f32 %v5526_v61, %v7056_v4  ;;  %v6000_v62 = vadd.f32 %v5744_v59, %v1334_v19  ;;  %v7058_v4 = vld [vmem:[#allocation42_spill] sm:$0xff] }
 0x285   : > { %2009 = vrot.lane.b32.xlu1 %v1961_v30, %s4852_s30  ;;  %v2322_v30 = vsel %vm2060_vm0, %v1945_v25, 0  ;;  %v5995_v2 = vadd.f32 %v7057_v37, %v1327_v10  ;;  %v1933_v1 = vpack.c.bf16 %v5966_v63, %v5979_v50  ;;  %v1338_v20 = vmul.f32 %v5550_v55, %v1260_v57  ;;  %v7059_v19 = vld [vmem:[#allocation78_spill] sm:$0xff]  ;;  %v7060_v57 = vld [vmem:[#allocation43_spill] sm:$0xff] }
 0x286   : > { %v1337_v25 = vmul.f32 %v5546_v29, %v1258_v9  ;;  %v6011_v38 = vadd.f32 %v5725_v26, %v1332_v47  ;;  %v6014_v59 = vadd.f32 %v7059_v19, %v1333_v11  ;;  %v1336_v9 = vmul.f32 %v5540_v40, %v7060_v57  ;;  %v7063_v19 = vld [vmem:[#allocation82_spill] sm:$0xff] }
 0x287   : > { %2245 = vrot.lane.b32.xlu0 %v1931_v5, %s4853_s20  ;;  %v1331_v5 = vmul.f32 %v5516_v39, %v7058_v4  ;;  %v1932_v10 = vpack.c.bf16 %v5986_v35, %v5995_v2  ;;  %v6025_v37 = vadd.f32 %v5782_v22, %v1338_v20  ;;  %v7064_v22 = vld [vmem:[#allocation81_spill] sm:$0xff] }
 0x288   : > { %v1982_v3 = vpop.permute.xlu1 %1981  ;;  %v6028_v26 = vadd.f32 %v5777_v43, %v1337_v25  ;;  %v6037_v57 = vadd.f32 %v7063_v19, %v1336_v9 }
 0x289   : > { %2243 = vrot.lane.b32.xlu1 %v1930_v14, %s4853_s20  ;;  %4238 = vmatmul.mubr.msk.bf16.vlgmr.msra.gmra.mrb[0].mxu1 %vm2011_vm1, %v1982_v3  ;;  %v7061_v14 = vld [vmem:[#allocation75_spill] sm:$0xff] }
 0x28a   : > { %4270 = vmatpush3.bf16.msra.mxu1 %v2322_v30  ;;  %v6020_v3 = vadd.f32 %v7061_v14, %v1331_v5  ;;  %v1935_v30 = vpack.c.bf16 %v6000_v62, %v6014_v59  ;;  %v1937_v20 = vpack.c.bf16 %v6025_v37, %v6028_v26 }
 0x28b   : > { %2249 = vrot.lane.b32.xlu0 %v1933_v1, %s4853_s20  ;;  %v7062_v1 = vld [vmem:[#allocation49_spill] sm:$0xff] }
 0x28c   : > { %v1984_v47 = vpop.permute.xlu0 %1983  ;;  %v1262_v11 = vpop.permute.xlu1 %1261  ;;  %v1335_v4 = vmul.f32 %v5536_v32, %v7062_v1  ;;  %v1934_v5 = vpack.c.bf16 %v6011_v38, %v6020_v3 }
 0x28d   : > { %2247 = vrot.lane.b32.xlu1 %v1932_v10, %s4853_s20  ;;  %4241 = vmatprep.mubr.msk.bf16.mxu1 %vm2011_vm1, %v1984_v47  ;;  %v1339_v25 = vmul.f32 %v5556_v15, %v1262_v11 }
 0x28e   : > { %v6041_v43 = vadd.f32 %v7064_v22, %v1335_v4 }
 0x28f   : > { %2253 = vrot.lane.b32.xlu0 %v1935_v30, %s4853_s20  ;;  %v7065_v30 = vld [vmem:[#allocation87_spill] sm:$0xff] }
 0x290   : > { %v1264_v10 = vpop.permute.xlu0 %1263  ;;  %v1936_v47 = vpack.c.bf16 %v6037_v57, %v6041_v43  ;;  %v6055_v1 = vadd.f32 %v7065_v30, %v1339_v25 }
 0x291   : > { %2251 = vrot.lane.b32.xlu1 %v1934_v5, %s4853_s20  ;;  %v1340_v14 = vmul.f32 %v5560_v6, %v1264_v10  ;;  %v7066_v10 = vld [vmem:[#allocation90_spill] sm:$0xff] }
 0x293   : > { %2257 = vrot.lane.b32.xlu0 %v1937_v20, %s4853_s20  ;;  %v6052_v9 = vadd.f32 %v5801_v28, %v1340_v14 }
 0x294   : > { %v1986_v4 = vpop.permute.xlu1 %1985 }
 0x295   : > { %2255 = vrot.lane.b32.xlu1 %v1936_v47, %s4853_s20  ;;  %4242 = vmatmul.mubr.msk.bf16.gmra.mrb[4].mxu1 %vm2011_vm1, %v1986_v4  ;;  %v1938_v11 = vpack.c.bf16 %v6052_v9, %v6055_v1 }
 0x298   : > { %v1268_v5 = vpop.permute.xlu1 %1267 }
 0x299   : > { %2259 = vrot.lane.b32.xlu1 %v1938_v11, %s4853_s20  ;;  %v1342_v28 = vmul.f32 %v5570_v56, %v1268_v5 }
 0x29b   : > { %v6066_v25 = vadd.f32 %v5820_v41, %v1342_v28 }
 0x29c   : > { %v1988_v19 = vpop.permute.xlu0 %1987 }
 0x29d   : > { %4245 = vmatprep.mubr.msk.bf16.mxu1 %vm2011_vm1, %v1988_v19 }
 0x2a0   : > { %v1266_v22 = vpop.permute.xlu0 %1265 }
 0x2a1   : > { %v1341_v20 = vmul.f32 %v5566_v54, %v1266_v22  ;;  %v7067_v22 = vld [vmem:[#allocation93_spill] sm:$0xff] }
 0x2a3   : > { %v6069_v14 = vadd.f32 %v7066_v10, %v1341_v20 }
 0x2a4   : > { %v1990_v47 = vpop.permute.xlu1 %1989 }
 0x2a5   : > { %v1939_v30 = vpack.c.bf16 %v6066_v25, %v6069_v14  ;;  %4246 = vmatmul.mubr.msk.bf16.gmra.mrb[8].mxu1 %vm2011_vm1, %v1990_v47 }
 0x2a7   : > { %2261 = vrot.lane.b32.xlu0 %v1939_v30, %s4853_s20 }
 0x2a8   : > { %v1270_v4 = vpop.permute.xlu1 %1269 }
 0x2a9   : > { %v1343_v5 = vmul.f32 %v5576_v23, %v1270_v4 }
 0x2ab   : > { %v6079_v28 = vadd.f32 %v5834_v58, %v1343_v5 }
 0x2ac   : > { %v1992_v11 = vpop.permute.xlu0 %1991 }
 0x2ad   : > { %4249 = vmatprep.mubr.msk.bf16.mxu1 %vm2011_vm1, %v1992_v11 }
 0x2b0   : > { %v1272_v19 = vpop.permute.xlu0 %1271 }
 0x2b1   : > { %v1344_v41 = vmul.f32 %v5580_v7, %v1272_v19 }
 0x2b3   : > { %v6082_v20 = vadd.f32 %v7067_v22, %v1344_v41  ;;  %v7068_v41 = vld [vmem:[#allocation96_spill] sm:$0xff] }
 0x2b4   : > { %v1994_v10 = vpop.permute.xlu1 %1993 }
 0x2b5   : > { %v1940_v47 = vpack.c.bf16 %v6082_v20, %v6079_v28  ;;  %4250 = vmatmul.mubr.msk.bf16.gmra.mrb[12].mxu1 %vm2011_vm1, %v1994_v10 }
 0x2b7   : > { %2263 = vrot.lane.b32.xlu1 %v1940_v47, %s4853_s20 }
 0x2b8   : > { %v1276_v30 = vpop.permute.xlu1 %1275 }
 0x2b9   : > { %v1346_v4 = vmul.f32 %v5589_v8, %v1276_v30 }
 0x2bb   : > { %v6092_v5 = vadd.f32 %v5858_v60, %v1346_v4 }
 0x2bc   : > { %v1996_v11 = vpop.permute.xlu0 %1995 }
 0x2bd   : > { %4253 = vmatprep.mubr.msk.bf16.mxu1 %vm2011_vm1, %v1996_v11 }
 0x2c0   : > { %v1274_v19 = vpop.permute.xlu0 %1273 }
 0x2c1   : > { %v1345_v58 = vmul.f32 %v5586_v16, %v1274_v19 }
 0x2c3   : > { %v6095_v22 = vadd.f32 %v7068_v41, %v1345_v58  ;;  %v7069_v58 = vld [vmem:[#allocation99_spill] sm:$0xff] }
 0x2c4   : > { %v1998_v56 = vpop.permute.xlu1 %1997 }
 0x2c5   : > { %v1941_v10 = vpack.c.bf16 %v6092_v5, %v6095_v22  ;;  %4254 = vmatmul.mubr.msk.bf16.gmra.mrb[16].mxu1 %vm2011_vm1, %v1998_v56 }
 0x2c7   : > { %2265 = vrot.lane.b32.xlu0 %v1941_v10, %s4853_s20 }
 0x2c8   : > { %v1278_v47 = vpop.permute.xlu1 %1277 }
 0x2c9   : > { %v1347_v30 = vmul.f32 %v5594_v17, %v1278_v47 }
 0x2cb   : > { %v6105_v4 = vadd.f32 %v5872_v12, %v1347_v30 }
 0x2cc   : > { %v2000_v11 = vpop.permute.xlu0 %1999 }
 0x2cd   : > { %4257 = vmatprep.mubr.msk.bf16.mxu1 %vm2011_vm1, %v2000_v11 }
 0x2d0   : > { %v1280_v19 = vpop.permute.xlu0 %1279 }
 0x2d1   : > { %v1348_v60 = vmul.f32 %v5597_v34, %v1280_v19 }
 0x2d3   : > { %v6108_v41 = vadd.f32 %v7069_v58, %v1348_v60  ;;  %v7070_v60 = vld [vmem:[#allocation102_spill] sm:$0xff] }
 0x2d4   : > { %v2002_v8 = vpop.permute.xlu1 %2001 }
 0x2d5   : > { %v1942_v56 = vpack.c.bf16 %v6108_v41, %v6105_v4  ;;  %4258 = vmatmul.mubr.msk.bf16.gmra.mrb[20].mxu1 %vm2011_vm1, %v2002_v8 }
 0x2d7   : > { %2267 = vrot.lane.b32.xlu1 %v1942_v56, %s4853_s20 }
 0x2d8   : > { %v1284_v10 = vpop.permute.xlu1 %1283 }
 0x2d9   : > { %v1350_v47 = vmul.f32 %v5605_v36, %v1284_v10 }
 0x2db   : > { %v6118_v30 = vadd.f32 %v5896_v18, %v1350_v47 }
 0x2dc   : > { %v2004_v11 = vpop.permute.xlu0 %2003 }
 0x2dd   : > { %4261 = vmatprep.mubr.msk.bf16.mxu1 %vm2011_vm1, %v2004_v11 }
 0x2e0   : > { %v1282_v19 = vpop.permute.xlu0 %1281 }
 0x2e1   : > { %v1349_v12 = vmul.f32 %v5602_v0, %v1282_v19 }
 0x2e3   : > { %v6121_v58 = vadd.f32 %v7070_v60, %v1349_v12 }
 0x2e4   : > { %v2006_v16 = vpop.permute.xlu1 %2005 }
 0x2e5   : > { %v1943_v8 = vpack.c.bf16 %v6118_v30, %v6121_v58  ;;  %4262 = vmatmul.mubr.msk.bf16.gmra.mrb[24].mxu1 %vm2011_vm1, %v2006_v16 }
 0x2e7   : > { %2269 = vrot.lane.b32.xlu0 %v1943_v8, %s4853_s20 }
 0x2e8   : > { %v1286_v56 = vpop.permute.xlu1 %1285 }
 0x2e9   : > { %v1351_v18 = vmul.f32 %v5620_v48, %v1286_v56  ;;  %v7081_v56 = vld [vmem:[#allocation72_spill] sm:$0xff] }
 0x2eb   : > { %2934 = vrot.lane.b32.xlu0 %v5927_v31, %s4853_s20  ;;  %v1671_v19 = vadd.f32 %v5916_v53, %v1351_v18  ;;  %v7082_v18 = vld [vmem:[#allocation83_spill] sm:$0xff] }
 0x2ed   : > { %v2008_v10 = vpop.permute.xlu0 %2007 }
 0x2ee   : > { %4265 = vmatprep.mubr.msk.bf16.mxu1 %vm2011_vm1, %v2008_v10  ;;  %v3952_v10 = vpack.c.bf16 %v7081_v56, %v7081_v56 }
 0x2ef   : > { %2938 = vrot.lane.b32.xlu0 %v5971_v21, %s4853_s20 }
 0x2f1   : > { %v1288_v11 = vpop.permute.xlu0 %1287 }
 0x2f2   : > { %v1352_v47 = vmul.f32 %v5634_v42, %v1288_v11  ;;  %v3959_v11 = vpack.c.bf16 %v7082_v18, %v7082_v18  ;;  %v7099_v18 = vld [vmem:[#allocation5_spill] sm:$0xff] }
 0x2f3   : > { %2942 = vrot.lane.b32.xlu0 %v5958_v33, %s4853_s20 }
 0x2f4   : > { %v6136_v16 = vadd.f32 %v5936_v13, %v1352_v47  ;;  %v7083_v47 = vld [vmem:[#allocation74_spill] sm:$0xff] }
 0x2f5   : > { %v2242_v21 = vpop.permute.xlu0 %2241 }
 0x2f6   : > { %v1944_v31 = vpack.c.bf16 %v6136_v16, %v1671_v19 }
 0x2f7   : > { %v2010_v12 = vpop.permute.xlu1 %2009  ;;  %2946 = vrot.lane.b32.xlu0 %v5995_v2, %s4853_s20 }
 0x2f8   : > { %2271 = vrot.lane.b32.xlu1 %v1944_v31, %s4853_s20  ;;  %4266 = vmatmul.mubr.msk.bf16.gmra.mrb[28].mxu1 %vm2011_vm1, %v2010_v12 }
 0x2f9   : > { %4271 = vmatprep.mubr.msk.bf16.mxu1 %vm2011_vm1, %v2242_v21  ;;  %v2246_v13 = vpop.permute.xlu0 %2245  ;;  %v7085_v21 = vld [vmem:[#allocation77_spill] sm:$0xff] }
 0x2fb   : > { %2950 = vrot.lane.b32.xlu0 %v5979_v50, %s4853_s20  ;;  %v2244_v53 = vpop.permute.xlu1 %2243 }
 0x2fc   : > { %2936 = vrot.lane.b32.xlu1 %v5922_v51, %s4853_s20 }
 0x2ff   : > { %2954 = vrot.lane.b32.xlu0 %v6020_v3, %s4853_s20  ;;  %v2248_v2 = vpop.permute.xlu1 %2247  ;;  %v7072_v3 = vld [vmem:[#allocation67_spill] sm:$0xff] }
 0x300   : > { %2940 = vrot.lane.b32.xlu1 %v5955_v44, %s4853_s20  ;;  %4272 = vmatmul.mubr.msk.bf16.vlgmr.msra.gmra.mrb[0].mxu1 %vm2011_vm1, %v2244_v53  ;;  %v2250_v44 = vpop.permute.xlu0 %2249  ;;  %v3956_v53 = vpack.c.bf16 %v7085_v21, %v7085_v21  ;;  %v7102_v21 = vld [vmem:[#allocation104_spill] sm:$0xff] }
 0x301   : > { %4275 = vmatprep.mubr.msk.bf16.mxu1 %vm2011_vm1, %v2246_v13  ;;  %v7086_v13 = vld [vmem:[#allocation88_spill] sm:$0xff] }
 0x303   : > { %2958 = vrot.lane.b32.xlu0 %v6014_v59, %s4853_s20  ;;  %v2252_v51 = vpop.permute.xlu1 %2251 }
 0x304   : > { %2944 = vrot.lane.b32.xlu1 %v5941_v52, %s4853_s20  ;;  %v2254_v52 = vpop.permute.xlu0 %2253 }
 0x307   : > { %2962 = vrot.lane.b32.xlu0 %v6041_v43, %s4853_s20  ;;  %v2256_v33 = vpop.permute.xlu1 %2255  ;;  %v7074_v43 = vld [vmem:[#allocation71_spill] sm:$0xff] }
 0x308   : > { %2948 = vrot.lane.b32.xlu1 %v5986_v35, %s4853_s20  ;;  %4276 = vmatmul.mubr.msk.bf16.gmra.mrb[4].mxu1 %vm2011_vm1, %v2248_v2  ;;  %v3963_v2 = vpack.c.bf16 %v7086_v13, %v7086_v13 }
 0x309   : > { %4279 = vmatprep.mubr.msk.bf16.mxu1 %vm2011_vm1, %v2250_v44  ;;  %v7087_v44 = vld [vmem:[#allocation80_spill] sm:$0xff] }
 0x30b   : > { %2966 = vrot.lane.b32.xlu0 %v6028_v26, %s4853_s20  ;;  %v2260_v50 = vpop.permute.xlu1 %2259  ;;  %v7073_v26 = vld [vmem:[#allocation68_spill] sm:$0xff] }
 0x30c   : > { %2952 = vrot.lane.b32.xlu1 %v5966_v63, %s4853_s20  ;;  %v2258_v63 = vpop.permute.xlu0 %2257 }
 0x30f   : > { %2970 = vrot.lane.b32.xlu0 %v6055_v1, %s4853_s20  ;;  %v7075_v1 = vld [vmem:[#allocation62_spill] sm:$0xff] }
 0x310   : > { %2956 = vrot.lane.b32.xlu1 %v6011_v38, %s4853_s20  ;;  %4280 = vmatmul.mubr.msk.bf16.gmra.mrb[8].mxu1 %vm2011_vm1, %v2252_v51  ;;  %v3958_v51 = vpack.c.bf16 %v7087_v44, %v7087_v44  ;;  %v7103_v44 = vld [vmem:[#allocation9_spill] sm:$0xff] }
 0x311   : > { %4283 = vmatprep.mubr.msk.bf16.mxu1 %vm2011_vm1, %v2254_v52  ;;  %v7088_v52 = vld [vmem:[#allocation91_spill] sm:$0xff] }
 0x313   : > { %2974 = vrot.lane.b32.xlu0 %v6069_v14, %s4853_s20  ;;  %v7076_v14 = vld [vmem:[#allocation73_spill] sm:$0xff] }
 0x314   : > { %2960 = vrot.lane.b32.xlu1 %v6000_v62, %s4853_s20  ;;  %v7071_v62 = vld [vmem:[#allocation63_spill] sm:$0xff] }
 0x315   : > { %v3945_v38 = vpack.c.bf16 %v7071_v62, %v7071_v62 }
 0x317   : > { %2978 = vrot.lane.b32.xlu0 %v6079_v28, %s4853_s20  ;;  %v3953_v28 = vpack.c.bf16 %v7076_v14, %v7076_v14  ;;  %v7095_v14 = vld [vmem:[#allocation92_spill] sm:$0xff] }
 0x318   : > { %2964 = vrot.lane.b32.xlu1 %v6037_v57, %s4853_s20  ;;  %4284 = vmatmul.mubr.msk.bf16.gmra.mrb[12].mxu1 %vm2011_vm1, %v2256_v33  ;;  %v3949_v57 = vpack.c.bf16 %v7073_v26, %v7073_v26  ;;  %v3965_v33 = vpack.c.bf16 %v7088_v52, %v7088_v52 }
 0x319   : > { %4287 = vmatprep.mubr.msk.bf16.mxu1 %vm2011_vm1, %v2258_v63  ;;  %v2262_v35 = vpop.permute.xlu0 %2261  ;;  %v7089_v63 = vld [vmem:[#allocation84_spill] sm:$0xff] }
 0x31b   : > { %2982 = vrot.lane.b32.xlu0 %v6095_v22, %s4853_s20 }
 0x31c   : > { %2968 = vrot.lane.b32.xlu1 %v6025_v37, %s4853_s20  ;;  %v3947_v37 = vpack.c.bf16 %v7072_v3, %v7072_v3  ;;  %v7092_v3 = vld [vmem:[#allocation97_spill] sm:$0xff] }
 0x31f   : > { %2986 = vrot.lane.b32.xlu0 %v6105_v4, %s4853_s20  ;;  %v7078_v4 = vld [vmem:[#allocation76_spill] sm:$0xff] }
 0x320   : > { %2972 = vrot.lane.b32.xlu1 %v6052_v9, %s4853_s20  ;;  %4288 = vmatmul.mubr.msk.bf16.gmra.mrb[16].mxu1 %vm2011_vm1, %v2260_v50  ;;  %v3951_v9 = vpack.c.bf16 %v7074_v43, %v7074_v43  ;;  %v3960_v50 = vpack.c.bf16 %v7089_v63, %v7089_v63  ;;  %v7104_v63 = vld [vmem:[#allocation6_spill] sm:$0xff] }
 0x321   : > { %4291 = vmatprep.mubr.msk.bf16.mxu1 %vm2011_vm1, %v2262_v35  ;;  %v7090_v35 = vld [vmem:[#allocation94_spill] sm:$0xff] }
 0x322   : > { %v3967_v62 = vpack.c.bf16 %v7090_v35, %v7090_v35  ;;  %v7105_v35 = vld [vmem:[#allocation11_spill] sm:$0xff] }
 0x323   : > { %2990 = vrot.lane.b32.xlu0 %v6121_v58, %s4853_s20  ;;  %v7080_v58 = vld [vmem:[#allocation79_spill] sm:$0xff] }
 0x324   : > { %2976 = vrot.lane.b32.xlu1 %v6066_v25, %s4853_s20  ;;  %v3946_v25 = vpack.c.bf16 %v7075_v1, %v7075_v1  ;;  %v3957_v8 = vpack.c.bf16 %v7080_v58, %v7080_v58  ;;  %v7098_v58 = vld [vmem:[#allocation98_spill] sm:$0xff] }
 0x327   : > { %2994 = vrot.lane.b32.xlu0 %v1671_v19, %s4853_s20  ;;  %v3954_v19 = vpack.c.bf16 %v7083_v47, %v7083_v47 }
 0x328   : > { %2980 = vrot.lane.b32.xlu1 %v6082_v20, %s4853_s20 }
 0x329   : > { %v2264_v59 = vpop.permute.xlu1 %2263 }
 0x32a   : > { %4292 = vmatmul.mubr.msk.bf16.gmra.mrb[20].mxu1 %vm2011_vm1, %v2264_v59 }
 0x32b   : > { %3126 = vrot.lane.b32.xlu0 %v3945_v38, %s4852_s30  ;;  %v7091_v38 = vld [vmem:[#allocation86_spill] sm:$0xff] }
 0x32c   : > { %2984 = vrot.lane.b32.xlu1 %v6092_v5, %s4853_s20  ;;  %v7077_v5 = vld [vmem:[#allocation66_spill] sm:$0xff]  ;;  %v3962_v59 = vpack.c.bf16 %v7091_v38, %v7091_v38 }
 0x32d   : > { %v3948_v22 = vpack.c.bf16 %v7077_v5, %v7077_v5 }
 0x32f   : > { %3130 = vrot.lane.b32.xlu0 %v3947_v37, %s4852_s30  ;;  %v3969_v37 = vpack.c.bf16 %v7092_v3, %v7092_v3  ;;  %v7106_v3 = vld [vmem:[#allocation8_spill] sm:$0xff] }
 0x330   : > { %2988 = vrot.lane.b32.xlu1 %v6108_v41, %s4853_s20  ;;  %v3955_v41 = vpack.c.bf16 %v7078_v4, %v7078_v4  ;;  %v7097_v4 = vld [vmem:[#allocation95_spill] sm:$0xff] }
 0x333   : > { %3134 = vrot.lane.b32.xlu0 %v3949_v57, %s4852_s30  ;;  %v7093_v57 = vld [vmem:[#allocation89_spill] sm:$0xff] }
 0x334   : > { %2992 = vrot.lane.b32.xlu1 %v6118_v30, %s4853_s20  ;;  %v7079_v30 = vld [vmem:[#allocation69_spill] sm:$0xff]  ;;  %v3964_v43 = vpack.c.bf16 %v7093_v57, %v7093_v57 }
 0x335   : > { %v3950_v60 = vpack.c.bf16 %v7079_v30, %v7079_v30  ;;  %v3975_v30 = vpack.c.bf16 %v5944_v46, %v5944_v46  ;;  %v7100_v46 = vld [vmem:[#allocation101_spill] sm:$0xff] }
 0x336   : > { %v3972_v47 = vpack.c.bf16 %v7100_v46, %v7100_v46 }
 0x337   : > { %3138 = vrot.lane.b32.xlu0 %v3951_v9, %s4852_s30  ;;  %v7094_v9 = vld [vmem:[#allocation100_spill] sm:$0xff] }
 0x338   : > { %2996 = vrot.lane.b32.xlu1 %v6136_v16, %s4853_s20  ;;  %v7084_v16 = vld [vmem:[#allocation85_spill] sm:$0xff]  ;;  %v3971_v1 = vpack.c.bf16 %v7094_v9, %v7094_v9 }
 0x339   : > { %v2266_v20 = vpop.permute.xlu0 %2265  ;;  %v3961_v31 = vpack.c.bf16 %v7084_v16, %v7084_v16 }
 0x33a   : > { %4295 = vmatprep.mubr.msk.bf16.mxu1 %vm2011_vm1, %v2266_v20  ;;  %v7096_v20 = vld [vmem:[#allocation103_spill] sm:$0xff] }
 0x33b   : > { %3142 = vrot.lane.b32.xlu0 %v3953_v28, %s4852_s30  ;;  %v3966_v28 = vpack.c.bf16 %v7095_v14, %v7095_v14  ;;  %v3973_v5 = vpack.c.bf16 %v7096_v20, %v7096_v20  ;;  %v7109_v14 = vld [vmem:[#allocation15_spill] sm:$0xff] }
 0x33c   : > { %3128 = vrot.lane.b32.xlu1 %v3946_v25, %s4852_s30 }
 0x33f   : > { %3146 = vrot.lane.b32.xlu0 %v3955_v41, %s4852_s30  ;;  %v3968_v41 = vpack.c.bf16 %v7097_v4, %v7097_v4 }
 0x340   : > { %3132 = vrot.lane.b32.xlu1 %v3948_v22, %s4852_s30 }
 0x343   : > { %3150 = vrot.lane.b32.xlu0 %v3957_v8, %s4852_s30  ;;  %v3970_v8 = vpack.c.bf16 %v7098_v58, %v7098_v58 }
 0x344   : > { %3136 = vrot.lane.b32.xlu1 %v3950_v60, %s4852_s30 }
 0x347   : > { %3154 = vrot.lane.b32.xlu0 %v3959_v11, %s4852_s30  ;;  %v3977_v11 = vpack.c.bf16 %v7099_v18, %v7099_v18 }
 0x348   : > { %3140 = vrot.lane.b32.xlu1 %v3952_v10, %s4852_s30 }
 0x349   : > { %v2268_v12 = vpop.permute.xlu1 %2267 }
 0x34a   : > { %4296 = vmatmul.mubr.msk.bf16.gmra.mrb[24].mxu1 %vm2011_vm1, %v2268_v12 }
 0x34b   : > { %3158 = vrot.lane.b32.xlu0 %v3961_v31, %s4852_s30  ;;  %v7101_v31 = vld [vmem:[#allocation7_spill] sm:$0xff] }
 0x34c   : > { %3144 = vrot.lane.b32.xlu1 %v3954_v19, %s4852_s30  ;;  %v3979_v12 = vpack.c.bf16 %v7101_v31, %v7101_v31 }
 0x34f   : > { %3162 = vrot.lane.b32.xlu0 %v3963_v2, %s4852_s30 }
 0x350   : > { %3148 = vrot.lane.b32.xlu1 %v3956_v53, %s4852_s30  ;;  %v3974_v53 = vpack.c.bf16 %v7102_v21, %v7102_v21 }
 0x353   : > { %3166 = vrot.lane.b32.xlu0 %v3965_v33, %s4852_s30 }
 0x354   : > { %3152 = vrot.lane.b32.xlu1 %v3958_v51, %s4852_s30  ;;  %v3981_v51 = vpack.c.bf16 %v7103_v44, %v7103_v44 }
 0x357   : > { %3170 = vrot.lane.b32.xlu0 %v3967_v62, %s4852_s30  ;;  %v3983_v62 = vpack.c.bf16 %v7105_v35, %v7105_v35 }
 0x358   : > { %3156 = vrot.lane.b32.xlu1 %v3960_v50, %s4852_s30  ;;  %v3978_v50 = vpack.c.bf16 %v7104_v63, %v7104_v63 }
 0x359   : > { %v2270_v26 = vpop.permute.xlu0 %2269 }
 0x35a   : > { %4299 = vmatprep.mubr.msk.bf16.mxu1 %vm2011_vm1, %v2270_v26  ;;  %v7107_v26 = vld [vmem:[#allocation13_spill] sm:$0xff] }
 0x35b   : > { %3174 = vrot.lane.b32.xlu0 %v3969_v37, %s4852_s30  ;;  %v3980_v37 = vpack.c.bf16 %v7106_v3, %v7106_v3  ;;  %v3985_v57 = vpack.c.bf16 %v7107_v26, %v7107_v26 }
 0x35c   : > { %3160 = vrot.lane.b32.xlu1 %v3962_v59, %s4852_s30 }
 0x35d   : > { %v2935_v25 = vpop.permute.xlu0 %2934 }
 0x35e   : > { %3030 = vst.msk [vmem:[%s6288_s26] sm:$0xff] %vm2011_vm1, %v2935_v25 }
 0x35f   : > { %3178 = vrot.lane.b32.xlu0 %v3971_v1, %s4852_s30  ;;  %v7108_v1 = vld [vmem:[#allocation10_spill] sm:$0xff] }
 0x360   : > { %3164 = vrot.lane.b32.xlu1 %v3964_v43, %s4852_s30  ;;  %v3982_v25 = vpack.c.bf16 %v7108_v1, %v7108_v1 }
 0x361   : > { %v2939_v22 = vpop.permute.xlu0 %2938 }
 0x362   : > { %3032 = vst.msk [vmem:[%s6288_s26 + $0x10] sm:$0xff] %vm2011_vm1, %v2939_v22  ;;  %v7110_v22 = vld [vmem:[#allocation12_spill] sm:$0xff] }
 0x363   : > { %3182 = vrot.lane.b32.xlu0 %v3973_v5, %s4852_s30  ;;  %v3984_v4 = vpack.c.bf16 %v7110_v22, %v7110_v22 }
 0x364   : > { %3168 = vrot.lane.b32.xlu1 %v3966_v28, %s4852_s30  ;;  %v3987_v28 = vpack.c.bf16 %v7109_v14, %v7109_v14 }
 0x365   : > { %v2943_v60 = vpop.permute.xlu0 %2942 }
 0x366   : > { %3034 = vst.msk [vmem:[%s6288_s26 + $0x20] sm:$0xff] %vm2011_vm1, %v2943_v60 }
 0x367   : > { %3186 = vrot.lane.b32.xlu0 %v3975_v30, %s4852_s30 }
 0x368   : > { %3172 = vrot.lane.b32.xlu1 %v3968_v41, %s4852_s30  ;;  %v7111_v41 = vld [vmem:[#allocation17_spill] sm:$0xff] }
 0x369   : > { %v2947_v10 = vpop.permute.xlu0 %2946  ;;  %v3989_v30 = vpack.c.bf16 %v7111_v41, %v7111_v41 }
 0x36a   : > { %v2272_v56 = vpop.permute.xlu1 %2271  ;;  %3036 = vst.msk [vmem:[%s6288_s26 + $0x30] sm:$0xff] %vm2011_vm1, %v2947_v10  ;;  %v7113_v10 = vld [vmem:[#allocation19_spill] sm:$0xff] }
 0x36b   : > { %4300 = vmatmul.mubr.msk.bf16.gmra.mrb[28].mxu1 %vm2011_vm1, %v2272_v56  ;;  %3350 = vrot.lane.b32.xlu0 %v3977_v11, %s6935_s28  ;;  %v3991_v18 = vpack.c.bf16 %v7113_v10, %v7113_v10 }
 0x36c   : > { %3176 = vrot.lane.b32.xlu1 %v3970_v8, %s4852_s30  ;;  %v7112_v8 = vld [vmem:[#allocation14_spill] sm:$0xff] }
 0x36d   : > { %v2951_v16 = vpop.permute.xlu0 %2950  ;;  %v3986_v56 = vpack.c.bf16 %v7112_v8, %v7112_v8 }
 0x36e   : > { %v2937_v19 = vpop.permute.xlu1 %2936  ;;  %3038 = vst.msk [vmem:[%s6288_s26 + $0x40] sm:$0xff] %vm2011_vm1, %v2951_v16  ;;  %v7115_v16 = vld [vmem:[#allocation21_spill] sm:$0xff] }
 0x36f   : > { %3031 = vst.msk [vmem:[%s6288_s26 + $0x8] sm:$0xff] %vm2011_vm1, %v2937_v19  ;;  %3354 = vrot.lane.b32.xlu0 %v3979_v12, %s6935_s28  ;;  %v3993_v31 = vpack.c.bf16 %v7115_v16, %v7115_v16 }
 0x370   : > { %3180 = vrot.lane.b32.xlu1 %v3972_v47, %s4852_s30  ;;  %v7114_v47 = vld [vmem:[#allocation16_spill] sm:$0xff] }
 0x371   : > { %v2955_v2 = vpop.permute.xlu0 %2954  ;;  %v3988_v19 = vpack.c.bf16 %v7114_v47, %v7114_v47 }
 0x372   : > { %v2941_v13 = vpop.permute.xlu1 %2940  ;;  %3040 = vst.msk [vmem:[%s6288_s26 + $0x50] sm:$0xff] %vm2011_vm1, %v2955_v2  ;;  %v7117_v2 = vld [vmem:[#allocation23_spill] sm:$0xff] }
 0x373   : > { %3033 = vst.msk [vmem:[%s6288_s26 + $0x18] sm:$0xff] %vm2011_vm1, %v2941_v13  ;;  %3358 = vrot.lane.b32.xlu0 %v3981_v51, %s6935_s28  ;;  %v3995_v44 = vpack.c.bf16 %v7117_v2, %v7117_v2 }
 0x374   : > { %3184 = vrot.lane.b32.xlu1 %v3974_v53, %s4852_s30  ;;  %v7116_v53 = vld [vmem:[#allocation18_spill] sm:$0xff] }
 0x375   : > { %v2959_v33 = vpop.permute.xlu0 %2958  ;;  %v3990_v13 = vpack.c.bf16 %v7116_v53, %v7116_v53 }
 0x376   : > { %v2945_v52 = vpop.permute.xlu1 %2944  ;;  %3042 = vst.msk [vmem:[%s6288_s26 + $0x60] sm:$0xff] %vm2011_vm1, %v2959_v33  ;;  %v7118_v33 = vld [vmem:[#allocation20_spill] sm:$0xff] }
 0x377   : > { %3035 = vst.msk [vmem:[%s6288_s26 + $0x28] sm:$0xff] %vm2011_vm1, %v2945_v52  ;;  %3362 = vrot.lane.b32.xlu0 %v3983_v62, %s6935_s28  ;;  %v3992_v63 = vpack.c.bf16 %v7118_v33, %v7118_v33 }
 0x378   : > { %3352 = vrot.lane.b32.xlu1 %v3978_v50, %s6935_s28  ;;  %v7119_v50 = vld [vmem:[#allocation25_spill] sm:$0xff] }
 0x379   : > { %v2963_v59 = vpop.permute.xlu0 %2962  ;;  %v3997_v35 = vpack.c.bf16 %v7119_v50, %v7119_v50 }
 0x37a   : > { %v2949_v38 = vpop.permute.xlu1 %2948  ;;  %3044 = vst.msk [vmem:[%s6288_s26 + $0x70] sm:$0xff] %vm2011_vm1, %v2963_v59  ;;  %v7120_v59 = vld [vmem:[#allocation22_spill] sm:$0xff] }
 0x37b   : > { %3037 = vst.msk [vmem:[%s6288_s26 + $0x38] sm:$0xff] %vm2011_vm1, %v2949_v38  ;;  %3366 = vrot.lane.b32.xlu0 %v3985_v57, %s6935_s28  ;;  %v3994_v3 = vpack.c.bf16 %v7120_v59, %v7120_v59 }
 0x37c   : > { %3356 = vrot.lane.b32.xlu1 %v3980_v37, %s6935_s28  ;;  %v7121_v37 = vld [vmem:[#allocation28_spill] sm:$0xff] }
 0x37d   : > { %v2967_v9 = vpop.permute.xlu0 %2966  ;;  %v3999_v26 = vpack.c.bf16 %v7121_v37, %v7121_v37 }
 0x37e   : > { %v2953_v43 = vpop.permute.xlu1 %2952  ;;  %3046 = vst.msk [vmem:[%s6288_s26 + $0x80] sm:$0xff] %vm2011_vm1, %v2967_v9  ;;  %v7122_v9 = vld [vmem:[#allocation24_spill] sm:$0xff] }
 0x37f   : > { %3039 = vst.msk [vmem:[%s6288_s26 + $0x48] sm:$0xff] %vm2011_vm1, %v2953_v43  ;;  %3370 = vrot.lane.b32.xlu0 %v3987_v28, %s6935_s28  ;;  %v3996_v1 = vpack.c.bf16 %v7122_v9, %v7122_v9 }
 0x380   : > { %3360 = vrot.lane.b32.xlu1 %v3982_v25, %s6935_s28  ;;  %v7123_v25 = vld [vmem:[#allocation33_spill] sm:$0xff] }
 0x381   : > { %v2971_v5 = vpop.permute.xlu0 %2970  ;;  %v4001_v14 = vpack.c.bf16 %v7123_v25, %v7123_v25 }
 0x382   : > { %v2957_v20 = vpop.permute.xlu1 %2956  ;;  %3048 = vst.msk [vmem:[%s6288_s26 + $0x90] sm:$0xff] %vm2011_vm1, %v2971_v5  ;;  %v7124_v5 = vld [vmem:[#allocation26_spill] sm:$0xff] }
 0x383   : > { %3041 = vst.msk [vmem:[%s6288_s26 + $0x58] sm:$0xff] %vm2011_vm1, %v2957_v20  ;;  %3374 = vrot.lane.b32.xlu0 %v3989_v30, %s6935_s28  ;;  %v3998_v22 = vpack.c.bf16 %v7124_v5, %v7124_v5 }
 0x384   : > { %3364 = vrot.lane.b32.xlu1 %v3984_v4, %s6935_s28  ;;  %v7125_v4 = vld [vmem:[#allocation38_spill] sm:$0xff] }
 0x385   : > { %v2975_v58 = vpop.permute.xlu0 %2974  ;;  %v4003_v41 = vpack.c.bf16 %v7125_v4, %v7125_v4 }
 0x386   : > { %v2961_v60 = vpop.permute.xlu1 %2960  ;;  %3050 = vst.msk [vmem:[%s6288_s26 + $0xa0] sm:$0xff] %vm2011_vm1, %v2975_v58  ;;  %v7126_v58 = vld [vmem:[#allocation29_spill] sm:$0xff] }
 0x387   : > { %3043 = vst.msk [vmem:[%s6288_s26 + $0x68] sm:$0xff] %vm2011_vm1, %v2961_v60  ;;  %3378 = vrot.lane.b32.xlu0 %v3991_v18, %s6935_s28  ;;  %v4000_v8 = vpack.c.bf16 %v7126_v58, %v7126_v58 }
 0x388   : > { %3368 = vrot.lane.b32.xlu1 %v3986_v56, %s6935_s28  ;;  %v7127_v56 = vld [vmem:[#allocation44_spill] sm:$0xff] }
 0x389   : > { %v2979_v46 = vpop.permute.xlu0 %2978  ;;  %v4005_v10 = vpack.c.bf16 %v7127_v56, %v7127_v56 }
 0x38a   : > { %v2965_v11 = vpop.permute.xlu1 %2964  ;;  %3052 = vst.msk [vmem:[%s6288_s26 + $0xb0] sm:$0xff] %vm2011_vm1, %v2979_v46  ;;  %v7128_v46 = vld [vmem:[#allocation34_spill] sm:$0xff] }
 0x38b   : > { %3045 = vst.msk [vmem:[%s6288_s26 + $0x78] sm:$0xff] %vm2011_vm1, %v2965_v11  ;;  %3382 = vrot.lane.b32.xlu0 %v3993_v31, %s6935_s28  ;;  %v4002_v47 = vpack.c.bf16 %v7128_v46, %v7128_v46  ;;  %v7129_v31 = vld [vmem:[#allocation40_spill] sm:$0xff] }
 0x38c   : > { %3372 = vrot.lane.b32.xlu1 %v3988_v19, %s6935_s28 }
 0x38d   : > { %v2983_v21 = vpop.permute.xlu0 %2982 }
 0x38e   : > { %v2969_v12 = vpop.permute.xlu1 %2968  ;;  %3054 = vst.msk [vmem:[%s6288_s26 + $0xc0] sm:$0xff] %vm2011_vm1, %v2983_v21 }
 0x38f   : > { %3047 = vst.msk [vmem:[%s6288_s26 + $0x88] sm:$0xff] %vm2011_vm1, %v2969_v12  ;;  %3386 = vrot.lane.b32.xlu0 %v3995_v44, %s6935_s28  ;;  %v4004_v12 = vpack.c.bf16 %v7129_v31, %v7129_v31  ;;  %v3976_v44 = vpack.c.bf16 %v5947_v49, %v5947_v49 }
 0x390   : > { %3376 = vrot.lane.b32.xlu1 %v3990_v13, %s6935_s28  ;;  %v7130_v13 = vld [vmem:[#allocation46_spill] sm:$0xff] }
 0x391   : > { %v2987_v52 = vpop.permute.xlu0 %2986  ;;  %v4006_v2 = vpack.c.bf16 %v7130_v13, %v7130_v13 }
 0x392   : > { %v2973_v51 = vpop.permute.xlu1 %2972  ;;  %3056 = vst.msk [vmem:[%s6288_s26 + $0xd0] sm:$0xff] %vm2011_vm1, %v2987_v52 }
 0x393   : > { %3049 = vst.msk [vmem:[%s6288_s26 + $0x98] sm:$0xff] %vm2011_vm1, %v2973_v51  ;;  %3390 = vrot.lane.b32.xlu0 %v3997_v35, %s6935_s28 }
 0x394   : > { %3380 = vrot.lane.b32.xlu1 %v3992_v63, %s6935_s28 }
 0x395   : > { %v2991_v38 = vpop.permute.xlu0 %2990 }
 0x396   : > { %v2977_v62 = vpop.permute.xlu1 %2976  ;;  %3058 = vst.msk [vmem:[%s6288_s26 + $0xe0] sm:$0xff] %vm2011_vm1, %v2991_v38 }
 0x397   : > { %3051 = vst.msk [vmem:[%s6288_s26 + $0xa8] sm:$0xff] %vm2011_vm1, %v2977_v62  ;;  %3394 = vrot.lane.b32.xlu0 %v3999_v26, %s6935_s28 }
 0x398   : > { %3384 = vrot.lane.b32.xlu1 %v3994_v3, %s6935_s28 }
 0x399   : > { %v2995_v43 = vpop.permute.xlu0 %2994 }
 0x39a   : > { %v2981_v57 = vpop.permute.xlu1 %2980  ;;  %3060 = vst.msk [vmem:[%s6288_s26 + $0xf0] sm:$0xff] %vm2011_vm1, %v2995_v43 }
 0x39b   : > { %3053 = vst.msk [vmem:[%s6288_s26 + $0xb8] sm:$0xff] %vm2011_vm1, %v2981_v57  ;;  %3398 = vrot.lane.b32.xlu0 %v4001_v14, %s6935_s28 }
 0x39c   : > { %3388 = vrot.lane.b32.xlu1 %v3996_v1, %s6935_s28 }
 0x39d   : > { %v3127_v20 = vpop.permute.xlu0 %3126 }
 0x39e   : > { %v2985_v28 = vpop.permute.xlu1 %2984  ;;  %3222 = vst.msk [vmem:[%s6443_s18] sm:$0xf] %vm2869_vm2, %v3127_v20 }
 0x39f   : > { %3055 = vst.msk [vmem:[%s6288_s26 + $0xc8] sm:$0xff] %vm2011_vm1, %v2985_v28  ;;  %3402 = vrot.lane.b32.xlu0 %v4003_v41, %s6935_s28 }
 0x3a0   : > { %3392 = vrot.lane.b32.xlu1 %v3998_v22, %s6935_s28 }
 0x3a1   : > { %v3131_v60 = vpop.permute.xlu0 %3130 }
 0x3a2   : > { %v2989_v30 = vpop.permute.xlu1 %2988  ;;  %3224 = vst.msk [vmem:[%s6443_s18 + $0x8] sm:$0xf] %vm2869_vm2, %v3131_v60 }
 0x3a3   : > { %3057 = vst.msk [vmem:[%s6288_s26 + $0xd8] sm:$0xff] %vm2011_vm1, %v2989_v30  ;;  %3406 = vrot.lane.b32.xlu0 %v4005_v10, %s6935_s28 }
 0x3a4   : > { %3396 = vrot.lane.b32.xlu1 %v4000_v8, %s6935_s28 }
 0x3a5   : > { %v3135_v11 = vpop.permute.xlu0 %3134 }
 0x3a6   : > { %v2993_v18 = vpop.permute.xlu1 %2992  ;;  %3226 = vst.msk [vmem:[%s6443_s18 + $0x10] sm:$0xf] %vm2869_vm2, %v3135_v11 }
 0x3a7   : > { %3059 = vst.msk [vmem:[%s6288_s26 + $0xe8] sm:$0xff] %vm2011_vm1, %v2993_v18 }
 0x3a8   : > { %3400 = vrot.lane.b32.xlu1 %v4002_v47, %s6935_s28 }
 0x3a9   : > { %v3139_v16 = vpop.permute.xlu0 %3138 }
 0x3aa   : > { %v2997_v19 = vpop.permute.xlu1 %2996  ;;  %3228 = vst.msk [vmem:[%s6443_s18 + $0x18] sm:$0xf] %vm2869_vm2, %v3139_v16 }
 0x3ab   : > { %3061 = vst.msk [vmem:[%s6288_s26 + $0xf8] sm:$0xff] %vm2011_vm1, %v2997_v19 }
 0x3ac   : > { %3404 = vrot.lane.b32.xlu1 %v4004_v12, %s6935_s28 }
 0x3ad   : > { %v3143_v53 = vpop.permute.xlu0 %3142 }
 0x3ae   : > { %v3129_v21 = vpop.permute.xlu1 %3128  ;;  %3230 = vst.msk [vmem:[%s6443_s18 + $0x20] sm:$0xf] %vm2869_vm2, %v3143_v53 }
 0x3af   : > { %3223 = vst.msk [vmem:[%s6443_s18 + $0x4] sm:$0xf] %vm2869_vm2, %v3129_v21 }
 0x3b0   : > { %3408 = vrot.lane.b32.xlu1 %v4006_v2, %s6935_s28 }
 0x3b1   : > { %v3147_v52 = vpop.permute.xlu0 %3146 }
 0x3b2   : > { %v3133_v51 = vpop.permute.xlu1 %3132  ;;  %3232 = vst.msk [vmem:[%s6443_s18 + $0x28] sm:$0xf] %vm2869_vm2, %v3147_v52 }
 0x3b3   : > { %3225 = vst.msk [vmem:[%s6443_s18 + $0xc] sm:$0xf] %vm2869_vm2, %v3133_v51 }
 0x3b4   : > { %3188 = vrot.lane.b32.xlu1 %v3976_v44, %s4852_s30  ;;  %s3511_s30 = sshll.u32 %s6288_s26, 4  ;;  %s4857_s26 = smov [#allocation2]   ;;  %s6704_s30 = int_to_ptr.vmem [resolvable:$true] %s3511_s30 }
 0x3b5   : > { %v3151_v63 = vpop.permute.xlu0 %3150 }
 0x3b6   : > { %v3137_v33 = vpop.permute.xlu1 %3136  ;;  %3234 = vst.msk [vmem:[%s6443_s18 + $0x30] sm:$0xf] %vm2869_vm2, %v3151_v63 }
 0x3b7   : > { %3227 = vst.msk [vmem:[%s6443_s18 + $0x14] sm:$0xf] %vm2869_vm2, %v3137_v33 }
 0x3b9   : > { %v3155_v50 = vpop.permute.xlu0 %3154 }
 0x3ba   : > { %v3141_v49 = vpop.permute.xlu1 %3140  ;;  %3236 = vst.msk [vmem:[%s6443_s18 + $0x38] sm:$0xf] %vm2869_vm2, %v3155_v50 }
 0x3bb   : > { %3229 = vst.msk [vmem:[%s6443_s18 + $0x1c] sm:$0xf] %vm2869_vm2, %v3141_v49 }
 0x3bd   : > { %v3159_v62 = vpop.permute.xlu0 %3158 }
 0x3be   : > { %v3145_v35 = vpop.permute.xlu1 %3144  ;;  %3238 = vst.msk [vmem:[%s6443_s18 + $0x40] sm:$0xf] %vm2869_vm2, %v3159_v62 }
 0x3bf   : > { %3231 = vst.msk [vmem:[%s6443_s18 + $0x24] sm:$0xf] %vm2869_vm2, %v3145_v35 }
 0x3c1   : > { %v3163_v59 = vpop.permute.xlu0 %3162 }
 0x3c2   : > { %v3149_v38 = vpop.permute.xlu1 %3148  ;;  %3240 = vst.msk [vmem:[%s6443_s18 + $0x48] sm:$0xf] %vm2869_vm2, %v3163_v59 }
 0x3c3   : > { %3233 = vst.msk [vmem:[%s6443_s18 + $0x2c] sm:$0xf] %vm2869_vm2, %v3149_v38 }
 0x3c5   : > { %v3167_v37 = vpop.permute.xlu0 %3166 }
 0x3c6   : > { %v3153_v3 = vpop.permute.xlu1 %3152  ;;  %3242 = vst.msk [vmem:[%s6443_s18 + $0x50] sm:$0xf] %vm2869_vm2, %v3167_v37 }
 0x3c7   : > { %3235 = vst.msk [vmem:[%s6443_s18 + $0x34] sm:$0xf] %vm2869_vm2, %v3153_v3 }
 0x3c9   : > { %v3171_v57 = vpop.permute.xlu0 %3170 }
 0x3ca   : > { %v3157_v26 = vpop.permute.xlu1 %3156  ;;  %3244 = vst.msk [vmem:[%s6443_s18 + $0x58] sm:$0xf] %vm2869_vm2, %v3171_v57 }
 0x3cb   : > { %3237 = vst.msk [vmem:[%s6443_s18 + $0x3c] sm:$0xf] %vm2869_vm2, %v3157_v26 }
 0x3cd   : > { %v3175_v9 = vpop.permute.xlu0 %3174 }
 0x3ce   : > { %v3161_v43 = vpop.permute.xlu1 %3160  ;;  %3246 = vst.msk [vmem:[%s6443_s18 + $0x60] sm:$0xf] %vm2869_vm2, %v3175_v9 }
 0x3cf   : > { %3239 = vst.msk [vmem:[%s6443_s18 + $0x44] sm:$0xf] %vm2869_vm2, %v3161_v43 }
 0x3d1   : > { %v3179_v25 = vpop.permute.xlu0 %3178 }
 0x3d2   : > { %v3165_v1 = vpop.permute.xlu1 %3164  ;;  %3248 = vst.msk [vmem:[%s6443_s18 + $0x68] sm:$0xf] %vm2869_vm2, %v3179_v25 }
 0x3d3   : > { %3241 = vst.msk [vmem:[%s6443_s18 + $0x4c] sm:$0xf] %vm2869_vm2, %v3165_v1  ;;  %v4273_v14 = vpop.f32.mrb[0].mxu1 }
 0x3d4   : > { %4721 = vtanh.f32 %v4273_v14  ;;  %v2358_v28 = vpop.f32.mrb[1].mxu1 }
 0x3d5   : > { %v4274_v5 = vpop.f32.mrb[2].mxu1  ;;  %v3183_v22 = vpop.permute.xlu0 %3182 }
 0x3d6   : > { %v3169_v20 = vpop.permute.xlu1 %3168  ;;  %4723 = vtanh.f32 %v4274_v5  ;;  %v2361_v4 = vpop.f32.mrb[3].mxu1  ;;  %3250 = vst.msk [vmem:[%s6443_s18 + $0x70] sm:$0xf] %vm2869_vm2, %v3183_v22 }
 0x3d7   : > { %3243 = vst.msk [vmem:[%s6443_s18 + $0x54] sm:$0xf] %vm2869_vm2, %v3169_v20  ;;  %4725 = vtanh.f32 %v2358_v28 }
 0x3d8   : > { %4727 = vtanh.f32 %v2361_v4 }
 0x3d9   : > { %v3187_v30 = vpop.permute.xlu0 %3186 }
 0x3da   : > { %v3173_v41 = vpop.permute.xlu1 %3172  ;;  %3252 = vst.msk [vmem:[%s6443_s18 + $0x78] sm:$0xf] %vm2869_vm2, %v3187_v30 }
 0x3db   : > { %3245 = vst.msk [vmem:[%s6443_s18 + $0x5c] sm:$0xf] %vm2869_vm2, %v3173_v41  ;;  %v4277_v60 = vpop.f32.mrb[4].mxu1 }
 0x3dc   : > { %4729 = vtanh.f32 %v4277_v60  ;;  %v2374_v58 = vpop.f32.mrb[5].mxu1 }
 0x3dd   : > { %v4278_v56 = vpop.f32.mrb[6].mxu1  ;;  %v3351_v18 = vpop.permute.xlu0 %3350 }
 0x3de   : > { %v3177_v8 = vpop.permute.xlu1 %3176  ;;  %v4722_v10 = vpop.eup %4721  ;;  %4731 = vtanh.f32 %v4278_v56  ;;  %3446 = vst.msk [vmem:[%s6537_s25] sm:$0xf] %vm2869_vm2, %v3351_v18 }
 0x3df   : > { %3247 = vst.msk [vmem:[%s6443_s18 + $0x64] sm:$0xf] %vm2869_vm2, %v3177_v8  ;;  %v2377_v11 = vpop.f32.mrb[7].mxu1  ;;  %2553 = vrot.lane.b32.xlu0 %v4722_v10, %s4855_s29  ;;  %4733 = vtanh.f32 %v2374_v58 }
 0x3e0   : > { %v4724_v46 = vpop.eup %4723  ;;  %4735 = vtanh.f32 %v2377_v11 }
 0x3e1   : > { %2555 = vrot.lane.b32.xlu1 %v4724_v46, %s4855_s29  ;;  %v4726_v19 = vpop.eup %4725  ;;  %v3355_v16 = vpop.permute.xlu0 %3354 }
 0x3e2   : > { %v3181_v47 = vpop.permute.xlu1 %3180  ;;  %3448 = vst.msk [vmem:[%s6537_s25 + $0x8] sm:$0xf] %vm2869_vm2, %v3355_v16  ;;  %v4728_v12 = vpop.eup %4727 }
 0x3e3   : > { %3249 = vst.msk [vmem:[%s6443_s18 + $0x6c] sm:$0xf] %vm2869_vm2, %v3181_v47  ;;  %v4281_v31 = vpop.f32.mrb[8].mxu1  ;;  %2549 = vrot.lane.b32.xlu0 %v4726_v19, %s4855_s29 }
 0x3e4   : > { %4737 = vtanh.f32 %v4281_v31  ;;  %v2390_v21 = vpop.f32.mrb[9].mxu1 }
 0x3e5   : > { %2551 = vrot.lane.b32.xlu1 %v4728_v12, %s4855_s29  ;;  %v4282_v13 = vpop.f32.mrb[10].mxu1  ;;  %v3359_v44 = vpop.permute.xlu0 %3358 }
 0x3e6   : > { %v3185_v53 = vpop.permute.xlu1 %3184  ;;  %v4730_v2 = vpop.eup %4729  ;;  %4739 = vtanh.f32 %v4282_v13  ;;  %3450 = vst.msk [vmem:[%s6537_s25 + $0x10] sm:$0xf] %vm2869_vm2, %v3359_v44 }
 0x3e7   : > { %3251 = vst.msk [vmem:[%s6443_s18 + $0x74] sm:$0xf] %vm2869_vm2, %v3185_v53  ;;  %v2393_v51 = vpop.f32.mrb[11].mxu1  ;;  %2561 = vrot.lane.b32.xlu0 %v4730_v2, %s4855_s29  ;;  %4741 = vtanh.f32 %v2390_v21 }
 0x3e8   : > { %v4732_v52 = vpop.eup %4731  ;;  %4743 = vtanh.f32 %v2393_v51 }
 0x3e9   : > { %2563 = vrot.lane.b32.xlu1 %v4732_v52, %s4855_s29  ;;  %v4734_v63 = vpop.eup %4733  ;;  %v3363_v49 = vpop.permute.xlu0 %3362 }
 0x3ea   : > { %v3353_v33 = vpop.permute.xlu1 %3352  ;;  %3452 = vst.msk [vmem:[%s6537_s25 + $0x18] sm:$0xf] %vm2869_vm2, %v3363_v49  ;;  %v4736_v35 = vpop.eup %4735 }
 0x3eb   : > { %3447 = vst.msk [vmem:[%s6537_s25 + $0x4] sm:$0xf] %vm2869_vm2, %v3353_v33  ;;  %v4285_v50 = vpop.f32.mrb[12].mxu1  ;;  %2557 = vrot.lane.b32.xlu0 %v4734_v63, %s4855_s29 }
 0x3ec   : > { %4745 = vtanh.f32 %v4285_v50  ;;  %v2406_v62 = vpop.f32.mrb[13].mxu1 }
 0x3ed   : > { %2559 = vrot.lane.b32.xlu1 %v4736_v35, %s4855_s29  ;;  %v4286_v59 = vpop.f32.mrb[14].mxu1  ;;  %v3367_v37 = vpop.permute.xlu0 %3366 }
 0x3ee   : > { %v3357_v38 = vpop.permute.xlu1 %3356  ;;  %v4738_v3 = vpop.eup %4737  ;;  %4747 = vtanh.f32 %v4286_v59  ;;  %3454 = vst.msk [vmem:[%s6537_s25 + $0x20] sm:$0xf] %vm2869_vm2, %v3367_v37 }
 0x3ef   : > { %3449 = vst.msk [vmem:[%s6537_s25 + $0xc] sm:$0xf] %vm2869_vm2, %v3357_v38  ;;  %v2409_v26 = vpop.f32.mrb[15].mxu1  ;;  %2569 = vrot.lane.b32.xlu0 %v4738_v3, %s4855_s29  ;;  %4749 = vtanh.f32 %v2406_v62 }
 0x3f0   : > { %v4740_v57 = vpop.eup %4739  ;;  %4751 = vtanh.f32 %v2409_v26 }
 0x3f1   : > { %2571 = vrot.lane.b32.xlu1 %v4740_v57, %s4855_s29  ;;  %v4742_v9 = vpop.eup %4741  ;;  %v3371_v1 = vpop.permute.xlu0 %3370 }
 0x3f2   : > { %v3361_v43 = vpop.permute.xlu1 %3360  ;;  %3456 = vst.msk [vmem:[%s6537_s25 + $0x28] sm:$0xf] %vm2869_vm2, %v3371_v1  ;;  %v4744_v14 = vpop.eup %4743 }
 0x3f3   : > { %3451 = vst.msk [vmem:[%s6537_s25 + $0x14] sm:$0xf] %vm2869_vm2, %v3361_v43  ;;  %v4289_v25 = vpop.f32.mrb[16].mxu1  ;;  %2565 = vrot.lane.b32.xlu0 %v4742_v9, %s4855_s29 }
 0x3f4   : > { %4753 = vtanh.f32 %v4289_v25  ;;  %v2422_v28 = vpop.f32.mrb[17].mxu1 }
 0x3f5   : > { %2567 = vrot.lane.b32.xlu1 %v4744_v14, %s4855_s29  ;;  %v4290_v5 = vpop.f32.mrb[18].mxu1  ;;  %v3375_v4 = vpop.permute.xlu0 %3374 }
 0x3f6   : > { %v3365_v20 = vpop.permute.xlu1 %3364  ;;  %v4746_v22 = vpop.eup %4745  ;;  %4755 = vtanh.f32 %v4290_v5  ;;  %3458 = vst.msk [vmem:[%s6537_s25 + $0x30] sm:$0xf] %vm2869_vm2, %v3375_v4 }
 0x3f7   : > { %3453 = vst.msk [vmem:[%s6537_s25 + $0x1c] sm:$0xf] %vm2869_vm2, %v3365_v20  ;;  %v2425_v41 = vpop.f32.mrb[19].mxu1  ;;  %2577 = vrot.lane.b32.xlu0 %v4746_v22, %s4855_s29  ;;  %4757 = vtanh.f32 %v2422_v28 }
 0x3f8   : > { %v4748_v30 = vpop.eup %4747  ;;  %4759 = vtanh.f32 %v2425_v41 }
 0x3f9   : > { %2579 = vrot.lane.b32.xlu1 %v4748_v30, %s4855_s29  ;;  %v4750_v58 = vpop.eup %4749  ;;  %v3379_v8 = vpop.permute.xlu0 %3378 }
 0x3fa   : > { %v3369_v60 = vpop.permute.xlu1 %3368  ;;  %3460 = vst.msk [vmem:[%s6537_s25 + $0x38] sm:$0xf] %vm2869_vm2, %v3379_v8  ;;  %v4752_v56 = vpop.eup %4751 }
 0x3fb   : > { %3455 = vst.msk [vmem:[%s6537_s25 + $0x24] sm:$0xf] %vm2869_vm2, %v3369_v60  ;;  %2573 = vrot.lane.b32.xlu0 %v4750_v58, %s4855_s29 }
 0x3fd   : > { %2575 = vrot.lane.b32.xlu1 %v4752_v56, %s4855_s29  ;;  %v4293_v18 = vpop.f32.mrb[20].mxu1  ;;  %v3383_v46 = vpop.permute.xlu0 %3382 }
 0x3fe   : > { %v3373_v10 = vpop.permute.xlu1 %3372  ;;  %v4754_v11 = vpop.eup %4753  ;;  %4761 = vtanh.f32 %v4293_v18  ;;  %3462 = vst.msk [vmem:[%s6537_s25 + $0x40] sm:$0xf] %vm2869_vm2, %v3383_v46 }
 0x3ff   : > { %3457 = vst.msk [vmem:[%s6537_s25 + $0x2c] sm:$0xf] %vm2869_vm2, %v3373_v10  ;;  %v2438_v47 = vpop.f32.mrb[21].mxu1  ;;  %2585 = vrot.lane.b32.xlu0 %v4754_v11, %s4855_s29 }
 0x400   : > { %v4294_v19 = vpop.f32.mrb[22].mxu1  ;;  %v4756_v16 = vpop.eup %4755 }
 0x401   : > { %4763 = vtanh.f32 %v4294_v19  ;;  %v2441_v31 = vpop.f32.mrb[23].mxu1  ;;  %2587 = vrot.lane.b32.xlu1 %v4756_v16, %s4855_s29  ;;  %v4758_v21 = vpop.eup %4757 }
 0x402   : > { %v3377_v12 = vpop.permute.xlu1 %3376  ;;  %4765 = vtanh.f32 %v2438_v47  ;;  %v3387_v53 = vpop.permute.xlu0 %3386 }
 0x403   : > { %3459 = vst.msk [vmem:[%s6537_s25 + $0x34] sm:$0xf] %vm2869_vm2, %v3377_v12  ;;  %3464 = vst.msk [vmem:[%s6537_s25 + $0x48] sm:$0xf] %vm2869_vm2, %v3387_v53  ;;  %2581 = vrot.lane.b32.xlu0 %v4758_v21, %s4855_s29  ;;  %v4760_v13 = vpop.eup %4759  ;;  %4767 = vtanh.f32 %v2441_v31  ;;  %v7131_v21 = vld [vmem:[#allocation45_spill] sm:$0xff] }
 0x405   : > { %2583 = vrot.lane.b32.xlu1 %v4760_v13, %s4855_s29 }
 0x406   : > { %v3381_v2 = vpop.permute.xlu1 %3380  ;;  %v3391_v44 = vpop.permute.xlu0 %3390 }
 0x407   : > { %3461 = vst.msk [vmem:[%s6537_s25 + $0x3c] sm:$0xf] %vm2869_vm2, %v3381_v2  ;;  %3466 = vst.msk [vmem:[%s6537_s25 + $0x50] sm:$0xf] %vm2869_vm2, %v3391_v44  ;;  %v7132_v44 = vld [vmem:[#allocation48_spill] sm:$0xff] }
 0x408   : > { %v4762_v51 = vpop.eup %4761 }
 0x409   : > { %2593 = vrot.lane.b32.xlu0 %v4762_v51, %s4855_s29 }
 0x40a   : > { %v3385_v52 = vpop.permute.xlu1 %3384  ;;  %v3395_v63 = vpop.permute.xlu0 %3394 }
 0x40b   : > { %v4764_v33 = vpop.eup %4763  ;;  %3463 = vst.msk [vmem:[%s6537_s25 + $0x44] sm:$0xf] %vm2869_vm2, %v3385_v52  ;;  %3468 = vst.msk [vmem:[%s6537_s25 + $0x58] sm:$0xf] %vm2869_vm2, %v3395_v63 }
 0x40c   : > { %2595 = vrot.lane.b32.xlu1 %v4764_v33, %s4855_s29  ;;  %v4766_v49 = vpop.eup %4765 }
 0x40d   : > { %2589 = vrot.lane.b32.xlu0 %v4766_v49, %s4855_s29  ;;  %v4768_v35 = vpop.eup %4767 }
 0x40e   : > { %v3389_v50 = vpop.permute.xlu1 %3388  ;;  %v3399_v62 = vpop.permute.xlu0 %3398 }
 0x40f   : > { %3465 = vst.msk [vmem:[%s6537_s25 + $0x4c] sm:$0xf] %vm2869_vm2, %v3389_v50  ;;  %3470 = vst.msk [vmem:[%s6537_s25 + $0x60] sm:$0xf] %vm2869_vm2, %v3399_v62  ;;  %v7134_v50 = vld [vmem:[#allocation55_spill] sm:$0xff] }
 0x410   : > { %2591 = vrot.lane.b32.xlu1 %v4768_v35, %s4855_s29 }
 0x412   : > { %v3393_v38 = vpop.permute.xlu1 %3392  ;;  %v3403_v59 = vpop.permute.xlu0 %3402 }
 0x413   : > { %3467 = vst.msk [vmem:[%s6537_s25 + $0x54] sm:$0xf] %vm2869_vm2, %v3393_v38  ;;  %3472 = vst.msk [vmem:[%s6537_s25 + $0x68] sm:$0xf] %vm2869_vm2, %v3403_v59  ;;  %v7135_v59 = vld [vmem:[#allocation52_spill] sm:$0xff] }
 0x416   : > { %v3397_v3 = vpop.permute.xlu1 %3396  ;;  %v3407_v37 = vpop.permute.xlu0 %3406 }
 0x417   : > { %3469 = vst.msk [vmem:[%s6537_s25 + $0x5c] sm:$0xf] %vm2869_vm2, %v3397_v3  ;;  %3474 = vst.msk [vmem:[%s6537_s25 + $0x70] sm:$0xf] %vm2869_vm2, %v3407_v37 }
 0x41a   : > { %v3401_v26 = vpop.permute.xlu1 %3400 }
 0x41b   : > { %3471 = vst.msk [vmem:[%s6537_s25 + $0x64] sm:$0xf] %vm2869_vm2, %v3401_v26 }
 0x41d   : > { %v4297_v43 = vpop.f32.mrb[24].mxu1 }
 0x41e   : > { %v3405_v57 = vpop.permute.xlu1 %3404  ;;  %4769 = vtanh.f32 %v4297_v43  ;;  %v2454_v9 = vpop.f32.mrb[25].mxu1 }
 0x41f   : > { %3473 = vst.msk [vmem:[%s6537_s25 + $0x6c] sm:$0xf] %vm2869_vm2, %v3405_v57  ;;  %v4298_v1 = vpop.f32.mrb[26].mxu1  ;;  %v7136_v57 = vld [vmem:[#allocation53_spill] sm:$0xff] }
 0x420   : > { %4771 = vtanh.f32 %v4298_v1  ;;  %v2457_v25 = vpop.f32.mrb[27].mxu1 }
 0x421   : > { %4773 = vtanh.f32 %v2454_v9 }
 0x422   : > { %v3409_v14 = vpop.permute.xlu1 %3408  ;;  %4775 = vtanh.f32 %v2457_v25 }
 0x423   : > { %3475 = vst.msk [vmem:[%s6537_s25 + $0x74] sm:$0xf] %vm2869_vm2, %v3409_v14 }
 0x426   : > { %v3189_v28 = vpop.permute.xlu1 %3188 }
 0x427   : > { %3253 = vst.msk [vmem:[%s6443_s18 + $0x7c] sm:$0xf] %vm2869_vm2, %v3189_v28  ;;  %s4009_s18 = sshll.u32 %s4935_s17, 12  ;;  %s4785_s17 = scalar_lea.vmem %s6704_s30, 4096 }
 0x428   : > { %v4770_v20 = vpop.eup %4769  ;;  %s6701_s28 = scalar_lea.hbm %s6844_s8, %s4009_s18  ;;  %p4786_p11 = scmp.ne.s32.totalorder %s6704_s30, %s4785_s17 }
 0x429   : > { %2601 = vrot.lane.b32.xlu0 %v4770_v20, %s4855_s29  ;;  %s4789_s18 = sshll.u32 %s4857_s26, 4  ;;  %s4790_s18 = int_to_ptr.vmem [resolvable:$false] %s4789_s18 }
 0x42a   : > { %v4772_v5 = vpop.eup %4771  ;;  %p4787_p12 = pnand %p4786_p11, %p4952_p5  ;;  %s4791_s20 = scalar_lea.vmem %s4790_s18, 8192 }
 0x42b   : > { %2603 = vrot.lane.b32.xlu1 %v4772_v5, %s4855_s29  ;;  %v4774_v22 = vpop.eup %4773  ;;  %p4792_p0 = scmp.lt.s32.totalorder %s6704_s30, %s4790_s18  ;;  %p4793_p1 = scmp.lt.s32.totalorder %s4791_s20, %s4785_s17 }
 0x42c   : > { %v4776_v4 = vpop.eup %4775  ;;  %p4788_p13 = pneg %p4787_p12 }
 0x42d   : > { %2597 = vrot.lane.b32.xlu0 %v4774_v22, %s4855_s29  ;;  %p4794_p2 = por %p4793_p1, %p4792_p0 }
 0x42f   : > { %2599 = vrot.lane.b32.xlu1 %v4776_v4, %s4855_s29  ;;  %v7137_v4 = vld [vmem:[#allocation56_spill] sm:$0xff]  ;;  %p4795_p3 = pnand %p4794_p2, %p4788_p13 }
 0x43e   : > { %v4301_v41 = vpop.f32.mrb[28].mxu1 }
 0x43f   : > { %4777 = vtanh.f32 %v4301_v41  ;;  %v2470_v30 = vpop.f32.mrb[29].mxu1 }
 0x440   : > { %v4302_v60 = vpop.f32.mrb[30].mxu1 }
 0x441   : > { %4779 = vtanh.f32 %v4302_v60  ;;  %v2473_v58 = vpop.f32.mrb[31].mxu1 }
 0x442   : > { %4781 = vtanh.f32 %v2470_v30 }
 0x443   : > { %4783 = vtanh.f32 %v2473_v58  ;;  %v7138_v58 = vld [vmem:[#allocation57_spill] sm:$0xff] }
 0x449   : > { %v4778_v8 = vpop.eup %4777 }
 0x44a   : > { %2609 = vrot.lane.b32.xlu0 %v4778_v8, %s4855_s29 }
 0x44b   : > { %v4780_v56 = vpop.eup %4779 }
 0x44c   : > { %2611 = vrot.lane.b32.xlu1 %v4780_v56, %s4855_s29  ;;  %v4782_v10 = vpop.eup %4781 }
 0x44d   : > { %v4784_v18 = vpop.eup %4783 }
 0x44e   : > { %2605 = vrot.lane.b32.xlu0 %v4782_v10, %s4855_s29 }
 0x450   : > { %2607 = vrot.lane.b32.xlu1 %v4784_v18, %s4855_s29 }
 0x451   : > { %v2554_v11 = vpop.permute.xlu0 %2553 }
 0x452   : > { %v2647_v46 = vmul.f32 %v5469_v24, %v2554_v11  ;;  %v7133_v24 = vld [vmem:[#allocation54_spill] sm:$0xff] }
 0x453   : > { %v2556_v47 = vpop.permute.xlu1 %2555 }
 0x454   : > { %v3915_v19 = vpack.c.bf16 %v2647_v46, %v2647_v46  ;;  %v2648_v16 = vmul.f32 %v5481_v27, %v2556_v47 }
 0x455   : > { %v2550_v31 = vpop.permute.xlu0 %2549 }
 0x456   : > { %v3916_v12 = vpack.c.bf16 %v2648_v16, %v2648_v16  ;;  %v2645_v53 = vmul.f32 %v7131_v21, %v2550_v31  ;;  %2777 = vrot.lane.b32.xlu0 %v3915_v19, %s6937_s11 }
 0x457   : > { %v2552_v13 = vpop.permute.xlu1 %2551 }
 0x458   : > { %v3913_v2 = vpack.c.bf16 %v2645_v53, %v2645_v53  ;;  %v2646_v51 = vmul.f32 %v7132_v44, %v2552_v13  ;;  %2779 = vrot.lane.b32.xlu1 %v3916_v12, %s6937_s11  ;;  %v7139_v12 = vld [vmem:[#allocation58_spill] sm:$0xff] }
 0x459   : > { %v2562_v52 = vpop.permute.xlu0 %2561 }
 0x45a   : > { %v3914_v33 = vpack.c.bf16 %v2646_v51, %v2646_v51  ;;  %v2651_v63 = vmul.f32 %v7133_v24, %v2562_v52  ;;  %2773 = vrot.lane.b32.xlu0 %v3913_v2, %s6937_s11 }
 0x45b   : > { %v2564_v27 = vpop.permute.xlu1 %2563 }
 0x45c   : > { %v3919_v49 = vpack.c.bf16 %v2651_v63, %v2651_v63  ;;  %v2652_v35 = vmul.f32 %v7134_v50, %v2564_v27  ;;  %2775 = vrot.lane.b32.xlu1 %v3914_v33, %s6937_s11 }
 0x45d   : > { %v2558_v62 = vpop.permute.xlu0 %2557 }
 0x45e   : > { %v3920_v38 = vpack.c.bf16 %v2652_v35, %v2652_v35  ;;  %v2649_v3 = vmul.f32 %v7135_v59, %v2558_v62  ;;  %2785 = vrot.lane.b32.xlu0 %v3919_v49, %s6937_s11 }
 0x45f   : > { %v2560_v37 = vpop.permute.xlu1 %2559 }
 0x460   : > { %v3917_v26 = vpack.c.bf16 %v2649_v3, %v2649_v3  ;;  %v2650_v43 = vmul.f32 %v7136_v57, %v2560_v37  ;;  %2787 = vrot.lane.b32.xlu1 %v3920_v38, %s6937_s11  ;;  %v7140_v3 = vld [vmem:[#allocation59_spill] sm:$0xff] }
 0x461   : > { %v2570_v9 = vpop.permute.xlu0 %2569 }
 0x462   : > { %v3918_v1 = vpack.c.bf16 %v2650_v43, %v2650_v43  ;;  %v2655_v25 = vmul.f32 %v5516_v39, %v2570_v9  ;;  %2781 = vrot.lane.b32.xlu0 %v3917_v26, %s6937_s11 }
 0x463   : > { %v2572_v14 = vpop.permute.xlu1 %2571 }
 0x464   : > { %v3923_v28 = vpack.c.bf16 %v2655_v25, %v2655_v25  ;;  %v2656_v20 = vmul.f32 %v5520_v45, %v2572_v14  ;;  %2783 = vrot.lane.b32.xlu1 %v3918_v1, %s6937_s11  ;;  %v7141_v25 = vld [vmem:[#allocation60_spill] sm:$0xff] }
 0x465   : > { %v2566_v5 = vpop.permute.xlu0 %2565 }
 0x466   : > { %v3924_v22 = vpack.c.bf16 %v2656_v20, %v2656_v20  ;;  %v2653_v41 = vmul.f32 %v7137_v4, %v2566_v5  ;;  %2793 = vrot.lane.b32.xlu0 %v3923_v28, %s6937_s11  ;;  %v7142_v5 = vld [vmem:[#allocation61_spill] sm:$0xff] }
 0x467   : > { %v2568_v30 = vpop.permute.xlu1 %2567 }
 0x468   : > { %v3921_v60 = vpack.c.bf16 %v2653_v41, %v2653_v41  ;;  %v2654_v8 = vmul.f32 %v7138_v58, %v2568_v30  ;;  %2795 = vrot.lane.b32.xlu1 %v3924_v22, %s6937_s11 }
 0x469   : > { %v2578_v39 = vpop.permute.xlu0 %2577 }
 0x46a   : > { %v3922_v56 = vpack.c.bf16 %v2654_v8, %v2654_v8  ;;  %v2659_v10 = vmul.f32 %v5536_v32, %v2578_v39  ;;  %2789 = vrot.lane.b32.xlu0 %v3921_v60, %s6937_s11 }
 0x46b   : > { %v2580_v45 = vpop.permute.xlu1 %2579 }
 0x46c   : > { %v3927_v18 = vpack.c.bf16 %v2659_v10, %v2659_v10  ;;  %v2660_v11 = vmul.f32 %v5540_v40, %v2580_v45  ;;  %2791 = vrot.lane.b32.xlu1 %v3922_v56, %s6937_s11 }
 0x46d   : > { %v2574_v46 = vpop.permute.xlu0 %2573 }
 0x46e   : > { %v3928_v47 = vpack.c.bf16 %v2660_v11, %v2660_v11  ;;  %v2657_v19 = vmul.f32 %v5526_v61, %v2574_v46  ;;  %2801 = vrot.lane.b32.xlu0 %v3927_v18, %s6937_s11 }
 0x46f   : > { %v2576_v16 = vpop.permute.xlu1 %2575 }
 0x470   : > { %v3925_v31 = vpack.c.bf16 %v2657_v19, %v2657_v19  ;;  %v2658_v21 = vmul.f32 %v7139_v12, %v2576_v16  ;;  %2803 = vrot.lane.b32.xlu1 %v3928_v47, %s6937_s11 }
 0x471   : > { %v2586_v32 = vpop.permute.xlu0 %2585 }
 0x472   : > { %v3926_v53 = vpack.c.bf16 %v2658_v21, %v2658_v21  ;;  %v2663_v13 = vmul.f32 %v5556_v15, %v2586_v32  ;;  %2797 = vrot.lane.b32.xlu0 %v3925_v31, %s6937_s11 }
 0x473   : > { %v2588_v40 = vpop.permute.xlu1 %2587 }
 0x474   : > { %v3931_v2 = vpack.c.bf16 %v2663_v13, %v2663_v13  ;;  %v2664_v44 = vmul.f32 %v5560_v6, %v2588_v40  ;;  %2799 = vrot.lane.b32.xlu1 %v3926_v53, %s6937_s11 }
 0x475   : > { %v2582_v61 = vpop.permute.xlu0 %2581 }
 0x476   : > { %v3932_v51 = vpack.c.bf16 %v2664_v44, %v2664_v44  ;;  %v2661_v52 = vmul.f32 %v5546_v29, %v2582_v61  ;;  %2809 = vrot.lane.b32.xlu0 %v3931_v2, %s6937_s11 }
 0x477   : > { %v2584_v33 = vpop.permute.xlu1 %2583 }
 0x478   : > { %v3929_v24 = vpack.c.bf16 %v2661_v52, %v2661_v52  ;;  %v2662_v63 = vmul.f32 %v5550_v55, %v2584_v33  ;;  %2811 = vrot.lane.b32.xlu1 %v3932_v51, %s6937_s11 }
 0x47a   : > { %v3930_v15 = vpack.c.bf16 %v2662_v63, %v2662_v63  ;;  %2805 = vrot.lane.b32.xlu0 %v3929_v24, %s6937_s11 }
 0x47b   : > { %v2594_v27 = vpop.permute.xlu0 %2593 }
 0x47c   : > { %v2667_v6 = vmul.f32 %v5576_v23, %v2594_v27  ;;  %2807 = vrot.lane.b32.xlu1 %v3930_v15, %s6937_s11 }
 0x47e   : > { %v2596_v49 = vpop.permute.xlu1 %2595  ;;  %v3935_v50 = vpack.c.bf16 %v2667_v6, %v2667_v6 }
 0x47f   : > { %v2668_v29 = vmul.f32 %v5580_v7, %v2596_v49  ;;  %v2590_v35 = vpop.permute.xlu0 %2589 }
 0x480   : > { %v2665_v38 = vmul.f32 %v5566_v54, %v2590_v35  ;;  %2817 = vrot.lane.b32.xlu0 %v3935_v50, %s6937_s11 }
 0x481   : > { %v3936_v62 = vpack.c.bf16 %v2668_v29, %v2668_v29 }
 0x482   : > { %v2592_v55 = vpop.permute.xlu1 %2591  ;;  %v3933_v59 = vpack.c.bf16 %v2665_v38, %v2665_v38 }
 0x483   : > { %v2666_v37 = vmul.f32 %v7140_v3, %v2592_v55  ;;  %2819 = vrot.lane.b32.xlu1 %v3936_v62, %s6937_s11 }
 0x484   : > { %2813 = vrot.lane.b32.xlu0 %v3933_v59, %s6937_s11 }
 0x485   : > { %v3934_v26 = vpack.c.bf16 %v2666_v37, %v2666_v37 }
 0x487   : > { %2815 = vrot.lane.b32.xlu1 %v3934_v26, %s6937_s11 }
 0x49b   : > { %v2602_v23 = vpop.permute.xlu0 %2601 }
 0x49c   : > { %v2671_v7 = vmul.f32 %v5594_v17, %v2602_v23 }
 0x49d   : > { %v2604_v57 = vpop.permute.xlu1 %2603 }
 0x49e   : > { %v3939_v43 = vpack.c.bf16 %v2671_v7, %v2671_v7  ;;  %v2672_v54 = vmul.f32 %v5597_v34, %v2604_v57 }
 0x49f   : > { %v2598_v9 = vpop.permute.xlu0 %2597 }
 0x4a0   : > { %v3940_v1 = vpack.c.bf16 %v2672_v54, %v2672_v54  ;;  %v2669_v14 = vmul.f32 %v7141_v25, %v2598_v9  ;;  %2825 = vrot.lane.b32.xlu0 %v3939_v43, %s6937_s11 }
 0x4a1   : > { %v2600_v28 = vpop.permute.xlu1 %2599 }
 0x4a2   : > { %v3937_v20 = vpack.c.bf16 %v2669_v14, %v2669_v14  ;;  %v2670_v22 = vmul.f32 %v7142_v5, %v2600_v28  ;;  %2827 = vrot.lane.b32.xlu1 %v3940_v1, %s6937_s11 }
 0x4a4   : > { %v3938_v17 = vpack.c.bf16 %v2670_v22, %v2670_v22  ;;  %2821 = vrot.lane.b32.xlu0 %v3937_v20, %s6937_s11 }
 0x4a6   : > { %2823 = vrot.lane.b32.xlu1 %v3938_v17, %s6937_s11  ;;  %s6708_s11 = scalar_lea.sflag [#allocation3], %s393_s21 }
 0x4bc   : > { %v2610_v34 = vpop.permute.xlu0 %2609 }
 0x4bd   : > { %v2675_v4 = vmul.f32 %v5620_v48, %v2610_v34 }
 0x4be   : > { %v2612_v41 = vpop.permute.xlu1 %2611 }
 0x4bf   : > { %v3943_v30 = vpack.c.bf16 %v2675_v4, %v2675_v4  ;;  %v2676_v60 = vmul.f32 %v5634_v42, %v2612_v41 }
 0x4c0   : > { %v2606_v58 = vpop.permute.xlu0 %2605 }
 0x4c1   : > { %4798 = shalt.err (!%p4795_p3)
}
 0x4c2   : > { %s4799_s21 = scalar_lea.hbm %s6701_s28, 4096  ;;  %s4803_s26 = scalar_lea.hbm %s6844_s8, 8192 }
 0x4c3   : > { %p4800_p4 = scmp.ne.s32.totalorder %s6701_s28, %s4799_s21  ;;  %p4804_p9 = scmp.lt.u32.totalorder %s6701_s28, %s6844_s8 }
 0x4c4   : > { %p4805_p10 = scmp.lt.u32.totalorder %s4803_s26, %s4799_s21  ;;  %p4807_p12 = scmp.lt.u32.totalorder %s4799_s21, %s6701_s28 }
 0x4c5   : > { %p4801_p7 = pnand %p4800_p4, %p4952_p5 }
 0x4c6   : > { %p4806_p11 = por %p4805_p10, %p4804_p9 }
 0x4c7   : > { %p4802_p8 = pneg %p4801_p7 }
 0x4c8   : > { %p4808_p13 = por %p4807_p12, %p4806_p11 }
 0x4ca   : > { %p4809_p0 = pnand %p4808_p13, %p4802_p8 }
 0x4cc   : > { %4812 = shalt.err (!%p4809_p0)
}
 0x4cd   : > { %s4858_s17 = smov 128   ;;  %s7143_s20 = smov 8   ;;  %v3944_v48 = vpack.c.bf16 %v2676_v60, %v2676_v60  ;;  %v2673_v42 = vmul.f32 %v5602_v0, %v2606_v58  ;;  %v2608_v8 = vpop.permute.xlu1 %2607  ;;  %v7145_v45 = vld [vmem:[#allocation50_spill] sm:$0xff]  ;;  %v7147_v0 = vld [vmem:[#allocation51_spill] sm:$0xff] }
 0x4ce   : > { %4337 = dma.vmem_to_hbm [thread:$0]  (%p4952_p5), %s6704_s30, 4096, %s6701_s28, %s6708_s11, %s4858_s17, %s4858_s17, %s7143_s20   ;;  %v2674_v56 = vmul.f32 %v5605_v36, %v2608_v8  ;;  %v4007_v18 = vpack.c.bf16 %v7145_v45, %v7145_v45  ;;  %v2778_v36 = vpop.permute.xlu0 %2777  ;;  %v4008_v11 = vpack.c.bf16 %v7147_v0, %v7147_v0 }
 0x4cf   : > { %s7144_s0 = smov 104   ;;  %v3941_v39 = vpack.c.bf16 %v2673_v42, %v2673_v42  ;;  %s6745_s28 = scalar_lea.vmem %s6843_s7, %s5023_s12 }
 0x4d0   : > { %2833 = vrot.lane.b32.xlu0 %v3943_v30, %s7144_s0  ;;  %2835 = vrot.lane.b32.xlu1 %v3944_v48, %s7144_s0  ;;  %v3942_v10 = vpack.c.bf16 %v2674_v56, %v2674_v56  ;;  %s7146_s11 = smov 72   ;;  %2872 = vst.msk [vmem:[%s6745_s28 + $0x8] sm:$0xf] %vm2869_vm2, %v2778_v36 }
 0x4d1   : > { %v2780_v46 = vpop.permute.xlu1 %2779 }
 0x4d2   : > { %2873 = vst.msk [vmem:[%s6745_s28 + $0xc] sm:$0xf] %vm2869_vm2, %v2780_v46  ;;  %v2774_v47 = vpop.permute.xlu0 %2773 }
 0x4d3   : > { %2870 = vst.msk [vmem:[%s6745_s28] sm:$0xf] %vm2869_vm2, %v2774_v47 }
 0x4d4   : > { %2829 = vrot.lane.b32.xlu0 %v3941_v39, %s7144_s0  ;;  %2831 = vrot.lane.b32.xlu1 %v3942_v10, %s7144_s0 }
 0x4d5   : > { %v2776_v19 = vpop.permute.xlu1 %2775 }
 0x4d6   : > { %2871 = vst.msk [vmem:[%s6745_s28 + $0x4] sm:$0xf] %vm2869_vm2, %v2776_v19  ;;  %v2786_v16 = vpop.permute.xlu0 %2785 }
 0x4d7   : > { %2876 = vst.msk [vmem:[%s6745_s28 + $0x18] sm:$0xf] %vm2869_vm2, %v2786_v16 }
 0x4d8   : > { %3410 = vrot.lane.b32.xlu0 %v4007_v18, %s7146_s11  ;;  %3412 = vrot.lane.b32.xlu1 %v4008_v11, %s7146_s11 }
 0x4d9   : > { %v2788_v31 = vpop.permute.xlu1 %2787 }
 0x4da   : > { %2877 = vst.msk [vmem:[%s6745_s28 + $0x1c] sm:$0xf] %vm2869_vm2, %v2788_v31  ;;  %v2782_v12 = vpop.permute.xlu0 %2781 }
 0x4db   : > { %2874 = vst.msk [vmem:[%s6745_s28 + $0x10] sm:$0xf] %vm2869_vm2, %v2782_v12 }
 0x4dd   : > { %v2784_v21 = vpop.permute.xlu1 %2783 }
 0x4de   : > { %2875 = vst.msk [vmem:[%s6745_s28 + $0x14] sm:$0xf] %vm2869_vm2, %v2784_v21  ;;  %v2794_v32 = vpop.permute.xlu0 %2793 }
 0x4df   : > { %2880 = vst.msk [vmem:[%s6745_s28 + $0x28] sm:$0xf] %vm2869_vm2, %v2794_v32 }
 0x4e1   : > { %v2796_v53 = vpop.permute.xlu1 %2795 }
 0x4e2   : > { %2881 = vst.msk [vmem:[%s6745_s28 + $0x2c] sm:$0xf] %vm2869_vm2, %v2796_v53  ;;  %v2790_v13 = vpop.permute.xlu0 %2789 }
 0x4e3   : > { %2878 = vst.msk [vmem:[%s6745_s28 + $0x20] sm:$0xf] %vm2869_vm2, %v2790_v13 }
 0x4e5   : > { %v2792_v40 = vpop.permute.xlu1 %2791 }
 0x4e6   : > { %2879 = vst.msk [vmem:[%s6745_s28 + $0x24] sm:$0xf] %vm2869_vm2, %v2792_v40  ;;  %v2802_v2 = vpop.permute.xlu0 %2801 }
 0x4e7   : > { %2884 = vst.msk [vmem:[%s6745_s28 + $0x38] sm:$0xf] %vm2869_vm2, %v2802_v2 }
 0x4e9   : > { %v2804_v44 = vpop.permute.xlu1 %2803 }
 0x4ea   : > { %2885 = vst.msk [vmem:[%s6745_s28 + $0x3c] sm:$0xf] %vm2869_vm2, %v2804_v44  ;;  %v2798_v61 = vpop.permute.xlu0 %2797 }
 0x4eb   : > { %2882 = vst.msk [vmem:[%s6745_s28 + $0x30] sm:$0xf] %vm2869_vm2, %v2798_v61 }
 0x4ed   : > { %v2800_v51 = vpop.permute.xlu1 %2799 }
 0x4ee   : > { %2883 = vst.msk [vmem:[%s6745_s28 + $0x34] sm:$0xf] %vm2869_vm2, %v2800_v51  ;;  %v2810_v52 = vpop.permute.xlu0 %2809 }
 0x4ef   : > { %2888 = vst.msk [vmem:[%s6745_s28 + $0x48] sm:$0xf] %vm2869_vm2, %v2810_v52 }
 0x4f1   : > { %v2812_v33 = vpop.permute.xlu1 %2811 }
 0x4f2   : > { %2889 = vst.msk [vmem:[%s6745_s28 + $0x4c] sm:$0xf] %vm2869_vm2, %v2812_v33  ;;  %v2806_v24 = vpop.permute.xlu0 %2805 }
 0x4f3   : > { %2886 = vst.msk [vmem:[%s6745_s28 + $0x40] sm:$0xf] %vm2869_vm2, %v2806_v24 }
 0x4f5   : > { %v2808_v63 = vpop.permute.xlu1 %2807 }
 0x4f6   : > { %2887 = vst.msk [vmem:[%s6745_s28 + $0x44] sm:$0xf] %vm2869_vm2, %v2808_v63  ;;  %v2818_v15 = vpop.permute.xlu0 %2817 }
 0x4f7   : > { %2892 = vst.msk [vmem:[%s6745_s28 + $0x58] sm:$0xf] %vm2869_vm2, %v2818_v15 }
 0x4f9   : > { %v2820_v27 = vpop.permute.xlu1 %2819 }
 0x4fa   : > { %2893 = vst.msk [vmem:[%s6745_s28 + $0x5c] sm:$0xf] %vm2869_vm2, %v2820_v27  ;;  %v2814_v6 = vpop.permute.xlu0 %2813 }
 0x4fb   : > { %2890 = vst.msk [vmem:[%s6745_s28 + $0x50] sm:$0xf] %vm2869_vm2, %v2814_v6 }
 0x4fd   : > { %v2816_v49 = vpop.permute.xlu1 %2815 }
 0x4fe   : > { %2891 = vst.msk [vmem:[%s6745_s28 + $0x54] sm:$0xf] %vm2869_vm2, %v2816_v49 }
 0x512   : > { %v2826_v50 = vpop.permute.xlu0 %2825 }
 0x513   : > { %2896 = vst.msk [vmem:[%s6745_s28 + $0x68] sm:$0xf] %vm2869_vm2, %v2826_v50 }
 0x514   : > { %v2828_v29 = vpop.permute.xlu1 %2827 }
 0x515   : > { %2897 = vst.msk [vmem:[%s6745_s28 + $0x6c] sm:$0xf] %vm2869_vm2, %v2828_v29 }
 0x516   : > { %v2822_v35 = vpop.permute.xlu0 %2821 }
 0x517   : > { %2894 = vst.msk [vmem:[%s6745_s28 + $0x60] sm:$0xf] %vm2869_vm2, %v2822_v35 }
 0x518   : > { %v2824_v62 = vpop.permute.xlu1 %2823 }
 0x519   : > { %2895 = vst.msk [vmem:[%s6745_s28 + $0x64] sm:$0xf] %vm2869_vm2, %v2824_v62 }
 0x542   : > { %v2834_v38 = vpop.permute.xlu0 %2833  ;;  %v2836_v55 = vpop.permute.xlu1 %2835 }
 0x543   : > { %2900 = vst.msk [vmem:[%s6745_s28 + $0x78] sm:$0xf] %vm2869_vm2, %v2834_v38  ;;  %2901 = vst.msk [vmem:[%s6745_s28 + $0x7c] sm:$0xf] %vm2869_vm2, %v2836_v55 }
 0x546   : > { %v2830_v59 = vpop.permute.xlu0 %2829  ;;  %v2832_v3 = vpop.permute.xlu1 %2831 }
 0x547   : > { %2898 = vst.msk [vmem:[%s6745_s28 + $0x70] sm:$0xf] %vm2869_vm2, %v2830_v59  ;;  %2899 = vst.msk [vmem:[%s6745_s28 + $0x74] sm:$0xf] %vm2869_vm2, %v2832_v3 }
 0x54a   : > { %v3411_v37 = vpop.permute.xlu0 %3410  ;;  %v3413_v26 = vpop.permute.xlu1 %3412 }
 0x54b   : > { %3476 = vst.msk [vmem:[%s6537_s25 + $0x78] sm:$0xf] %vm2869_vm2, %v3411_v37  ;;  %3477 = vst.msk [vmem:[%s6537_s25 + $0x7c] sm:$0xf] %vm2869_vm2, %v3413_v26 }
 0x54c PF: > { %p4343_p5 = scmp.ge.s32.totalorder %s4847_s16, 2  ;;  %s3542_s12 = sand.u32 1, %s4835_s13  }
 0x54d   : > { %s3543_s30 = scalar_lea.sflag [#allocation3], %s3542_s12 }
 0x54e   : > { %p4340_p1 = pnand %p4343_p5, %p4956_p6 }
 0x550   : > { %4830 = dma.done.wait (!%p4340_p1), %s3543_s30, 4096  }
 0x551   : > { %4832 = vsyncadd (!%p4340_p1), %s3543_s30, 4294963200  ;;  %p21_p2 = scmp.ge.s32.totalorder %s4939_s19, 4   ;;  %s7148_s13 = smov %s4839_s14 }
 0x552   : > { %s7149_s14 = smov %s4843_s15  ;;  %s7150_s15 = smov %s4950_s22 }
 0x553   : > { %s7151_s16 = smov %s4939_s19  ;;  %23 = sbr.rel (!%p21_p2) target bundleno = 5 (0x5), region = 125 }
 0x55a   :  { %3564 = vsyncpa [#allocation3], 1 }
 0x55b   :  { %3566 = vsyncpa [#allocation3 + $0x1], 1 }

</bundles_post_ra>
